<compile_context>
chip_gen: v7x
topology: tpu7x:2x2x1
jax: 0.10.0
libtpu: 0.0.40
codegen_flags: <defaults>
</compile_context>

<pallas_src>
import functools

import jax
import jax.numpy as jnp
from jax.experimental import pallas as pl
from jax.experimental.pallas import tpu as pltpu

LRELU_SLOPE = 0.2


def _round_up(v, m):
    return (v + m - 1) // m * m


# ----------------------------------------------------------------------------
# Pallas kernels
# ----------------------------------------------------------------------------
def _mm_bias_act_kernel(x_ref, w_ref, b_ref, o_ref, *, slope):
    """o = act(x @ w + b); bf16 MXU operands, f32 accumulation, bf16 store."""
    y = jnp.dot(x_ref[...], w_ref[...], preferred_element_type=jnp.float32)
    y = y + b_ref[...]
    if slope is not None:
        y = jnp.where(y >= 0, y, slope * y)
    o_ref[...] = y.astype(o_ref.dtype)


def _self_attn_kernel(x_ref, w_ref, b_ref, g_ref, o_ref):
    """SelfAttention for the whole batch in one invocation, [B, N, C] layout.

    x: [B, N, C] bf16 (N = H*W, C = lane dim)
    w: [C, 2*qk + C] fused q|k|v projection (q/k blocks zero-padded to qk=128 lanes)
    attn = softmax(q k^T) over last axis; out = attn @ v; o = gamma*out + x.
    (Equivalent to the torch NCHW formulation: attn = softmax(q^T k), out = v attn^T.)
    """
    B, N, C = x_ref.shape
    total = w_ref.shape[1]
    qk = (total - C) // 2            # 128-padded width of the q and k blocks

    x = x_ref[...]                                      # [B, N, C] bf16
    xf = x.reshape(B * N, C)                            # one MXU pass for q|k|v
    y = jnp.dot(xf, w_ref[...], preferred_element_type=jnp.float32) + b_ref[...]
    y = y.reshape(B, N, total)

    q = y[..., 0:qk].astype(jnp.bfloat16)               # cols >= C//8 are exactly zero
    k = y[..., qk:2 * qk].astype(jnp.bfloat16)
    v = y[..., 2 * qk:].astype(jnp.bfloat16)            # [B, N, C]

    # attn[b, i, j] = sum_c8 q[b, i, c8] * k[b, j, c8] (zero pad columns contribute 0)
    attn = jnp.einsum("bnc,bmc->bnm", q, k, preferred_element_type=jnp.float32)
    attn = attn - jnp.max(attn, axis=-1, keepdims=True)
    e = jnp.exp(attn)
    attn = e * pl.reciprocal(jnp.sum(e, axis=-1, keepdims=True), approx=True)

    out = jnp.einsum("bnm,bmc->bnc", attn.astype(jnp.bfloat16), v,
                     preferred_element_type=jnp.float32)
    o_ref[...] = (g_ref[0, 0] * out + x.astype(jnp.float32)).astype(o_ref.dtype)


# ----------------------------------------------------------------------------
# Wrappers
# ----------------------------------------------------------------------------
def _choose_tiles(M, Np):
    """Pick (TM, TN, grid_m, grid_n): 1-2 grid steps total; 2 'parallel' steps so both
    v7x TensorCores get work whenever the problem is big enough to split."""
    if M >= 256:
        return _round_up(-(-M // 2), 8), Np, 2, 1
    if Np % 256 == 0:
        return _round_up(M, 8), Np // 2, 1, 2
    return _round_up(M, 8), Np, 1, 1


def _mm_bias_act(x, w, b, slope):
    """x:[M,K] bf16 @ w:[Kp,Np] bf16 (pre-padded, pre-transposed) + b:[1,Np] f32
    -> [Mp, Np] bf16.  1-2 grid steps; weights/bias VMEM-resident across M-tiles."""
    M, K = x.shape
    Kp, Np = w.shape
    TM, TN, grid_m, grid_n = _choose_tiles(M, Np)
    Mp = grid_m * TM
    if (Mp, Kp) != (M, K):
        x = jnp.pad(x, ((0, Mp - M), (0, Kp - K)))

    kernel = functools.partial(_mm_bias_act_kernel, slope=slope)
    return pl.pallas_call(
        kernel,
        out_shape=jax.ShapeDtypeStruct((Mp, Np), jnp.bfloat16),
        grid=(grid_m, grid_n),
        in_specs=[
            pl.BlockSpec((TM, Kp), lambda i, j: (i, 0)),
            pl.BlockSpec((Kp, TN), lambda i, j: (0, j)),   # resident across M-tiles
            pl.BlockSpec((1, TN), lambda i, j: (0, j)),    # resident across M-tiles
        ],
        out_specs=pl.BlockSpec((TM, TN), lambda i, j: (i, j)),
        compiler_params=pltpu.CompilerParams(
            dimension_semantics=("parallel", "parallel")),
    )(x, w, b)


def _im2col_nhwc(x, k, stride, pad):
    """NHWC im2col: [B,H,W,C] -> [B*Ho*Wo, k*k*C] with (kh, kw, cin) K-ordering."""
    B, H, W, C = x.shape
    xp = jnp.pad(x, ((0, 0), (pad, pad), (pad, pad), (0, 0)))
    Ho = (H + 2 * pad - k) // stride + 1
    Wo = (W + 2 * pad - k) // stride + 1
    cols = []
    for di in range(k):
        for dj in range(k):
            cols.append(xp[:, di:di + stride * Ho:stride,
                              dj:dj + stride * Wo:stride, :])       # [B,Ho,Wo,C]
    cols = jnp.concatenate(cols, axis=-1)              # [B, Ho, Wo, k*k*C]
    return cols.reshape(B * Ho * Wo, k * k * C), Ho, Wo


def conv2d_lrelu_nhwc(x, layer, cout, stride, pad):
    """Conv2d(kernel=4) + LeakyReLU(0.2).  x NHWC bf16, layer = prepped weights."""
    B = x.shape[0]
    cols, Ho, Wo = _im2col_nhwc(x, 4, stride, pad)
    y = _mm_bias_act(cols, layer["w"], layer["b"], LRELU_SLOPE)   # [Mp, Np] bf16
    y = y[:B * Ho * Wo, :cout]
    return y.reshape(B, Ho, Wo, cout)


def self_attention_nhwc(x, p):
    """SelfAttention on an NHWC bf16 activation; whole batch in one pallas_call."""
    B, H, W, C = x.shape
    N = H * W
    total = p["w"].shape[1]
    xf = x.reshape(B, N, C)

    out = pl.pallas_call(
        _self_attn_kernel,
        out_shape=jax.ShapeDtypeStruct((B, N, C), jnp.bfloat16),
        grid=(1,),
        in_specs=[
            pl.BlockSpec((B, N, C), lambda i: (0, 0, 0)),
            pl.BlockSpec((C, total), lambda i: (0, 0)),
            pl.BlockSpec((1, total), lambda i: (0, 0)),
            pl.BlockSpec((1, 1), lambda i: (0, 0)),
        ],
        out_specs=pl.BlockSpec((B, N, C), lambda i: (0, 0, 0)),
    )(xf, p["w"], p["b"], p["gamma"])
    return out.reshape(B, H, W, C)


def _to_nchw_f32(x_nhwc):
    return x_nhwc.transpose(0, 3, 1, 2).astype(jnp.float32)


# ----------------------------------------------------------------------------
# Parameters (deterministic, synthetic) + one-time preprocessing
# ----------------------------------------------------------------------------
def _spectral_normalize(w, n_iter=30):
    """Divide conv weight by its largest singular value (idealized spectral_norm)."""
    w2d = w.reshape(w.shape[0], -1)
    u = jnp.ones((w2d.shape[0],), w.dtype) / jnp.sqrt(float(w2d.shape[0]))
    v = None
    for _ in range(n_iter):
        v = w2d.T @ u
        v = v / (jnp.linalg.norm(v) + 1e-12)
        u = w2d @ v
        u = u / (jnp.linalg.norm(u) + 1e-12)
    sigma = u @ (w2d @ v)
    return w / sigma


def _prep_conv(w, b):
    """torch [Cout,Cin,kh,kw] -> GEMM-ready [Kp,Np] bf16, (kh,kw,cin) K-ordering,
    K/N zero-padded to 128-multiples; bias -> [1, Np] f32."""
    Cout, Cin, kh, kw = w.shape
    K = kh * kw * Cin
    Kp, Np = _round_up(K, 128), _round_up(Cout, 128)
    w2 = w.transpose(2, 3, 1, 0).reshape(K, Cout)
    w2 = jnp.pad(w2, ((0, Kp - K), (0, Np - Cout))).astype(jnp.bfloat16)
    b2 = jnp.pad(b.astype(jnp.float32), (0, Np - Cout)).reshape(1, Np)
    return {"w": w2, "b": b2}


def _prep_attn(qw, qb, kw, kb, vw, vb, gamma):
    """Fuse the three 1x1-conv projections into one [C, 2*128 + C] bf16 weight.
    q/k blocks are zero-padded to 128 lanes so in-kernel slices are lane-aligned."""
    C8, C = qw.shape
    qk = _round_up(C8, 128)
    total = 2 * qk + C
    w = jnp.zeros((C, total), jnp.float32)
    w = w.at[:, 0:C8].set(qw.T)
    w = w.at[:, qk:qk + C8].set(kw.T)
    w = w.at[:, 2 * qk:].set(vw.T)
    b = jnp.zeros((1, total), jnp.float32)
    b = b.at[0, 0:C8].set(qb)
    b = b.at[0, qk:qk + C8].set(kb)
    b = b.at[0, 2 * qk:].set(vb)
    return {"w": w.astype(jnp.bfloat16), "b": b, "gamma": gamma.reshape(1, 1)}


def _conv_out(h, k, s, p):
    return (h + 2 * p - k) // s + 1


def init_params(key, input_shape):
    Cin, H, W = input_shape
    keys = jax.random.split(key, 12)

    def conv_w(k, cout, cin):
        w = 0.05 * jax.random.normal(k, (cout, cin, 4, 4), jnp.float32)
        return _spectral_normalize(w)

    def conv_b(k, cout):
        return 0.01 * jax.random.normal(k, (cout,), jnp.float32)

    def attn_params(k, c):
        k1, k2, k3, k4, k5, k6 = jax.random.split(k, 6)
        c8 = c // 8
        return _prep_attn(
            0.05 * jax.random.normal(k1, (c8, c), jnp.float32),
            0.01 * jax.random.normal(k2, (c8,), jnp.float32),
            0.05 * jax.random.normal(k3, (c8, c), jnp.float32),
            0.01 * jax.random.normal(k4, (c8,), jnp.float32),
            0.05 * jax.random.normal(k5, (c, c), jnp.float32),
            0.01 * jax.random.normal(k6, (c,), jnp.float32),
            jnp.zeros((1,), jnp.float32),        # matches nn.Parameter(torch.tensor(0.0))
        )

    p = {
        "conv1": _prep_conv(conv_w(keys[0], 32, Cin), conv_b(keys[1], 32)),
        "conv2": _prep_conv(conv_w(keys[2], 64, 32), conv_b(keys[3], 64)),
        "conv3": _prep_conv(conv_w(keys[4], 128, 64), conv_b(keys[5], 128)),
        "conv4": _prep_conv(conv_w(keys[6], 256, 128), conv_b(keys[7], 256)),
        "attn1": attn_params(keys[8], 128),
        "attn2": attn_params(keys[9], 256),
    }

    # flattened size after the conv stack (same computation as the torch dummy pass)
    h, w = H, W
    h, w = _conv_out(h, 4, 1, 1), _conv_out(w, 4, 1, 1)
    h, w = _conv_out(h, 4, 2, 1), _conv_out(w, 4, 2, 1)
    h, w = _conv_out(h, 4, 2, 1), _conv_out(w, 4, 2, 1)
    h, w = _conv_out(h, 4, 2, 1), _conv_out(w, 4, 2, 1)
    flat = 256 * h * w
    p["fc_w"] = 0.02 * jax.random.normal(keys[10], (1, flat), jnp.float32)
    p["fc_b"] = jnp.zeros((1,), jnp.float32)
    return p


# ----------------------------------------------------------------------------
# Forward pass (mirrors EnhancedDiscriminator.forward)
# ----------------------------------------------------------------------------
def enhanced_discriminator_forward(params, x_nchw):
    features = []
    # NCHW -> NHWC once at the boundary; activation chain stays bf16 NHWC.
    x = x_nchw.transpose(0, 2, 3, 1).astype(jnp.bfloat16)

    # conv1 (stride 1) + LeakyReLU ; Dropout2d = identity (eval)
    x = conv2d_lrelu_nhwc(x, params["conv1"], 32, stride=1, pad=1)
    features.append(_to_nchw_f32(x))
    # conv2 (stride 2) + LeakyReLU ; Dropout2d = identity
    x = conv2d_lrelu_nhwc(x, params["conv2"], 64, stride=2, pad=1)
    features.append(_to_nchw_f32(x))
    # conv3 (stride 2) + LeakyReLU ; Dropout2d = identity
    x = conv2d_lrelu_nhwc(x, params["conv3"], 128, stride=2, pad=1)
    features.append(_to_nchw_f32(x))
    # SelfAttention(128)
    x = self_attention_nhwc(x, params["attn1"])
    # conv4 (stride 2) + LeakyReLU ; Dropout2d = identity
    x = conv2d_lrelu_nhwc(x, params["conv4"], 256, stride=2, pad=1)
    features.append(_to_nchw_f32(x))
    # SelfAttention(256)
    x = self_attention_nhwc(x, params["attn2"])

    patch_output = _to_nchw_f32(x)                    # NCHW f32, as in torch
    B = patch_output.shape[0]
    flat = patch_output.reshape(B, -1)                # == torch .flatten(1) (C,H,W order)
    # Final Linear: tiny dot product; plain JAX (an N=1 Pallas GEMM would be a fully
    # masked lane store with no MXU utilization).
    global_out = flat @ params["fc_w"].T + params["fc_b"]
    return global_out, patch_output, features


# TODO(synk): nn.Dropout2d training-mode stochastic channel masking is not
# implemented (identity / eval semantics only).

if __name__ == "__main__":
    key = jax.random.PRNGKey(0)
    kx, kp = jax.random.split(key)

    # small, shape-consistent input: B=2, C=3, 34x34 spatial
    B, C_IN, H, W = 2, 3, 34, 34
    x = jax.random.normal(kx, (B, C_IN, H, W), jnp.float32)
    params = init_params(kp, input_shape=(C_IN, H, W))

    fwd = jax.jit(enhanced_discriminator_forward)
    global_out, patch_output, features = fwd(params, x)
    jax.block_until_ready((global_out, patch_output, features))

    # sanity on shapes implied by the module
    assert global_out.shape == (B, 1), global_out.shape
    assert patch_output.shape == (B, 256, 4, 4), patch_output.shape
    assert len(features) == 4
    assert features[0].shape == (B, 32, 33, 33)
    assert features[1].shape == (B, 64, 16, 16)
    assert features[2].shape == (B, 128, 8, 8)
    assert features[3].shape == (B, 256, 4, 4)
    assert all(bool(jnp.isfinite(f).all()) for f in (global_out, patch_output))

    print("KERNEL_OK")
</pallas_src>

<mosaic_0001>
module attributes {stable_mosaic.version = 11 : i64} {
  func.func @_mm_bias_act_kernel(%arg0: i32, %arg1: i32, %arg2: memref<1096x128xbf16, #tpu.memory_space<vmem>>, %arg3: memref<128x128xbf16, #tpu.memory_space<vmem>>, %arg4: memref<1x128xf32, #tpu.memory_space<vmem>>, %arg5: memref<1096x128xbf16, #tpu.memory_space<vmem>>) attributes {dimension_semantics = [#tpu.dimension_semantics<parallel>, #tpu.dimension_semantics<parallel>], iteration_bounds = array<i64: 2, 1>, scalar_prefetch = 0 : i64, scratch_operands = 0 : i64, tpu.core_type = #tpu.core_type<tc>, window_params = [{transform_indices = @transform_0, window_bounds = array<i64: 1096, 128>}, {transform_indices = @transform_1, window_bounds = array<i64: 128, 128>}, {transform_indices = @transform_2, window_bounds = array<i64: 1, 128>}, {transform_indices = @transform_3, window_bounds = array<i64: 1096, 128>}]} {
    %c0 = arith.constant 0 : index
    %c0_0 = arith.constant 0 : index
    %0 = vector.load %arg2[%c0, %c0_0] : memref<1096x128xbf16, #tpu.memory_space<vmem>>, vector<1096x128xbf16>
    %c0_1 = arith.constant 0 : index
    %c0_2 = arith.constant 0 : index
    %1 = vector.load %arg3[%c0_1, %c0_2] : memref<128x128xbf16, #tpu.memory_space<vmem>>, vector<128x128xbf16>
    %cst = arith.constant dense<0.000000e+00> : vector<1096x128xf32>
    %2 = tpu.matmul %0, %1, %cst {dimension_numbers = #tpu.dot_dimension_numbers<[1], [0], [0], [1], [0, 0, 1, 1], [], []>} : vector<1096x128xbf16>, vector<128x128xbf16>, vector<1096x128xf32> -> vector<1096x128xf32>
    %c0_3 = arith.constant 0 : index
    %c0_4 = arith.constant 0 : index
    %3 = vector.load %arg4[%c0_3, %c0_4] : memref<1x128xf32, #tpu.memory_space<vmem>>, vector<1x128xf32>
    %4 = vector.broadcast %3 : vector<1x128xf32> to vector<1096x128xf32>
    %5 = arith.addf %2, %4 : vector<1096x128xf32>
    %cst_5 = arith.constant 0.000000e+00 : f32
    %6 = vector.broadcast %cst_5 : f32 to vector<1096x128xf32>
    %7 = arith.cmpf oge, %5, %6 : vector<1096x128xf32>
    %cst_6 = arith.constant 2.000000e-01 : f32
    %8 = vector.broadcast %cst_6 : f32 to vector<1096x128xf32>
    %9 = arith.mulf %8, %5 : vector<1096x128xf32>
    %10 = arith.select %7, %5, %9 : vector<1096x128xi1>, vector<1096x128xf32>
    %11 = arith.truncf %10 : vector<1096x128xf32> to vector<1096x128xbf16>
    %c0_7 = arith.constant 0 : index
    %c0_8 = arith.constant 0 : index
    %12 = vector.load %arg5[%c0_7, %c0_8] : memref<1096x128xbf16, #tpu.memory_space<vmem>>, vector<1096x128xbf16>
    tpu.vector_store %arg5[%c0_7, %c0_8], %11 {strides = array<i32>} : memref<1096x128xbf16, #tpu.memory_space<vmem>>, vector<1096x128xbf16>,
    return
  }
  func.func @transform_0(%arg0: i32, %arg1: i32) -> (i32, i32) {
    %c0_i32 = arith.constant 0 : i32
    %c0_i32_0 = arith.constant 0 : i32
    return %arg0, %c0_i32 : i32, i32
  }
  func.func @transform_1(%arg0: i32, %arg1: i32) -> (i32, i32) {
    %c0_i32 = arith.constant 0 : i32
    %c0_i32_0 = arith.constant 0 : i32
    return %c0_i32, %arg1 : i32, i32
  }
  func.func @transform_2(%arg0: i32, %arg1: i32) -> (i32, i32) {
    %c0_i32 = arith.constant 0 : i32
    %c0_i32_0 = arith.constant 0 : i32
    return %c0_i32, %arg1 : i32, i32
  }
  func.func @transform_3(%arg0: i32, %arg1: i32) -> (i32, i32) {
    %c0_i32 = arith.constant 0 : i32
    return %arg0, %arg1 : i32, i32
  }
}

module attributes {stable_mosaic.version = 11 : i64} {
  func.func @_mm_bias_act_kernel(%arg0: i32, %arg1: i32, %arg2: memref<256x512xbf16, #tpu.memory_space<vmem>>, %arg3: memref<512x128xbf16, #tpu.memory_space<vmem>>, %arg4: memref<1x128xf32, #tpu.memory_space<vmem>>, %arg5: memref<256x128xbf16, #tpu.memory_space<vmem>>) attributes {dimension_semantics = [#tpu.dimension_semantics<parallel>, #tpu.dimension_semantics<parallel>], iteration_bounds = array<i64: 2, 1>, scalar_prefetch = 0 : i64, scratch_operands = 0 : i64, tpu.core_type = #tpu.core_type<tc>, window_params = [{transform_indices = @transform_0, window_bounds = array<i64: 256, 512>}, {transform_indices = @transform_1, window_bounds = array<i64: 512, 128>}, {transform_indices = @transform_2, window_bounds = array<i64: 1, 128>}, {transform_indices = @transform_3, window_bounds = array<i64: 256, 128>}]} {
    %c0 = arith.constant 0 : index
    %c0_0 = arith.constant 0 : index
    %0 = vector.load %arg2[%c0, %c0_0] : memref<256x512xbf16, #tpu.memory_space<vmem>>, vector<256x512xbf16>
    %c0_1 = arith.constant 0 : index
    %c0_2 = arith.constant 0 : index
    %1 = vector.load %arg3[%c0_1, %c0_2] : memref<512x128xbf16, #tpu.memory_space<vmem>>, vector<512x128xbf16>
    %cst = arith.constant dense<0.000000e+00> : vector<256x128xf32>
    %2 = tpu.matmul %0, %1, %cst {dimension_numbers = #tpu.dot_dimension_numbers<[1], [0], [0], [1], [0, 0, 1, 1], [], []>} : vector<256x512xbf16>, vector<512x128xbf16>, vector<256x128xf32> -> vector<256x128xf32>
    %c0_3 = arith.constant 0 : index
    %c0_4 = arith.constant 0 : index
    %3 = vector.load %arg4[%c0_3, %c0_4] : memref<1x128xf32, #tpu.memory_space<vmem>>, vector<1x128xf32>
    %4 = vector.broadcast %3 : vector<1x128xf32> to vector<256x128xf32>
    %5 = arith.addf %2, %4 : vector<256x128xf32>
    %cst_5 = arith.constant 0.000000e+00 : f32
    %6 = vector.broadcast %cst_5 : f32 to vector<256x128xf32>
    %7 = arith.cmpf oge, %5, %6 : vector<256x128xf32>
    %cst_6 = arith.constant 2.000000e-01 : f32
    %8 = vector.broadcast %cst_6 : f32 to vector<256x128xf32>
    %9 = arith.mulf %8, %5 : vector<256x128xf32>
    %10 = arith.select %7, %5, %9 : vector<256x128xi1>, vector<256x128xf32>
    %11 = arith.truncf %10 : vector<256x128xf32> to vector<256x128xbf16>
    %c0_7 = arith.constant 0 : index
    %c0_8 = arith.constant 0 : index
    %12 = vector.load %arg5[%c0_7, %c0_8] : memref<256x128xbf16, #tpu.memory_space<vmem>>, vector<256x128xbf16>
    tpu.vector_store %arg5[%c0_7, %c0_8], %11 {strides = array<i32>} : memref<256x128xbf16, #tpu.memory_space<vmem>>, vector<256x128xbf16>,
    return
  }
  func.func @transform_0(%arg0: i32, %arg1: i32) -> (i32, i32) {
    %c0_i32 = arith.constant 0 : i32
    %c0_i32_0 = arith.constant 0 : i32
    return %arg0, %c0_i32 : i32, i32
  }
  func.func @transform_1(%arg0: i32, %arg1: i32) -> (i32, i32) {
    %c0_i32 = arith.constant 0 : i32
    %c0_i32_0 = arith.constant 0 : i32
    return %c0_i32, %arg1 : i32, i32
  }
  func.func @transform_2(%arg0: i32, %arg1: i32) -> (i32, i32) {
    %c0_i32 = arith.constant 0 : i32
    %c0_i32_0 = arith.constant 0 : i32
    return %c0_i32, %arg1 : i32, i32
  }
  func.func @transform_3(%arg0: i32, %arg1: i32) -> (i32, i32) {
    %c0_i32 = arith.constant 0 : i32
    return %arg0, %arg1 : i32, i32
  }
}

module attributes {stable_mosaic.version = 11 : i64} {
  func.func @_mm_bias_act_kernel(%arg0: i32, %arg1: i32, %arg2: memref<128x1024xbf16, #tpu.memory_space<vmem>>, %arg3: memref<1024x128xbf16, #tpu.memory_space<vmem>>, %arg4: memref<1x128xf32, #tpu.memory_space<vmem>>, %arg5: memref<128x128xbf16, #tpu.memory_space<vmem>>) attributes {dimension_semantics = [#tpu.dimension_semantics<parallel>, #tpu.dimension_semantics<parallel>], iteration_bounds = array<i64: 1, 1>, scalar_prefetch = 0 : i64, scratch_operands = 0 : i64, tpu.core_type = #tpu.core_type<tc>, window_params = [{transform_indices = @transform_0, window_bounds = array<i64: 128, 1024>}, {transform_indices = @transform_1, window_bounds = array<i64: 1024, 128>}, {transform_indices = @transform_2, window_bounds = array<i64: 1, 128>}, {transform_indices = @transform_3, window_bounds = array<i64: 128, 128>}]} {
    %c0 = arith.constant 0 : index
    %c0_0 = arith.constant 0 : index
    %0 = vector.load %arg2[%c0, %c0_0] : memref<128x1024xbf16, #tpu.memory_space<vmem>>, vector<128x1024xbf16>
    %c0_1 = arith.constant 0 : index
    %c0_2 = arith.constant 0 : index
    %1 = vector.load %arg3[%c0_1, %c0_2] : memref<1024x128xbf16, #tpu.memory_space<vmem>>, vector<1024x128xbf16>
    %cst = arith.constant dense<0.000000e+00> : vector<128x128xf32>
    %2 = tpu.matmul %0, %1, %cst {dimension_numbers = #tpu.dot_dimension_numbers<[1], [0], [0], [1], [0, 0, 1, 1], [], []>} : vector<128x1024xbf16>, vector<1024x128xbf16>, vector<128x128xf32> -> vector<128x128xf32>
    %c0_3 = arith.constant 0 : index
    %c0_4 = arith.constant 0 : index
    %3 = vector.load %arg4[%c0_3, %c0_4] : memref<1x128xf32, #tpu.memory_space<vmem>>, vector<1x128xf32>
    %4 = vector.broadcast %3 : vector<1x128xf32> to vector<128x128xf32>
    %5 = arith.addf %2, %4 : vector<128x128xf32>
    %cst_5 = arith.constant 0.000000e+00 : f32
    %6 = vector.broadcast %cst_5 : f32 to vector<128x128xf32>
    %7 = arith.cmpf oge, %5, %6 : vector<128x128xf32>
    %cst_6 = arith.constant 2.000000e-01 : f32
    %8 = vector.broadcast %cst_6 : f32 to vector<128x128xf32>
    %9 = arith.mulf %8, %5 : vector<128x128xf32>
    %10 = arith.select %7, %5, %9 : vector<128x128xi1>, vector<128x128xf32>
    %11 = arith.truncf %10 : vector<128x128xf32> to vector<128x128xbf16>
    %c0_7 = arith.constant 0 : index
    %c0_8 = arith.constant 0 : index
    %12 = vector.load %arg5[%c0_7, %c0_8] : memref<128x128xbf16, #tpu.memory_space<vmem>>, vector<128x128xbf16>
    tpu.vector_store %arg5[%c0_7, %c0_8], %11 {strides = array<i32>} : memref<128x128xbf16, #tpu.memory_space<vmem>>, vector<128x128xbf16>,
    return
  }
  func.func @transform_0(%arg0: i32, %arg1: i32) -> (i32, i32) {
    %c0_i32 = arith.constant 0 : i32
    %c0_i32_0 = arith.constant 0 : i32
    return %arg0, %c0_i32 : i32, i32
  }
  func.func @transform_1(%arg0: i32, %arg1: i32) -> (i32, i32) {
    %c0_i32 = arith.constant 0 : i32
    %c0_i32_0 = arith.constant 0 : i32
    return %c0_i32, %arg1 : i32, i32
  }
  func.func @transform_2(%arg0: i32, %arg1: i32) -> (i32, i32) {
    %c0_i32 = arith.constant 0 : i32
    %c0_i32_0 = arith.constant 0 : i32
    return %c0_i32, %arg1 : i32, i32
  }
  func.func @transform_3(%arg0: i32, %arg1: i32) -> (i32, i32) {
    %c0_i32 = arith.constant 0 : i32
    return %arg0, %arg1 : i32, i32
  }
}

module attributes {stable_mosaic.version = 11 : i64} {
  func.func @_self_attn_kernel(%arg0: i32, %arg1: memref<2x64x128xbf16, #tpu.memory_space<vmem>>, %arg2: memref<128x384xbf16, #tpu.memory_space<vmem>>, %arg3: memref<1x384xf32, #tpu.memory_space<vmem>>, %arg4: memref<1x1xf32, #tpu.memory_space<vmem>>, %arg5: memref<2x64x128xbf16, #tpu.memory_space<vmem>>) attributes {dimension_semantics = [#tpu.dimension_semantics<arbitrary>], iteration_bounds = array<i64: 1>, scalar_prefetch = 0 : i64, scratch_operands = 0 : i64, tpu.core_type = #tpu.core_type<tc>, window_params = [{pipeline_mode = #tpu.pipeline_mode<synchronous>, transform_indices = @transform_0, window_bounds = array<i64: 2, 64, 128>}, {pipeline_mode = #tpu.pipeline_mode<synchronous>, transform_indices = @transform_1, window_bounds = array<i64: 128, 384>}, {pipeline_mode = #tpu.pipeline_mode<synchronous>, transform_indices = @transform_2, window_bounds = array<i64: 1, 384>}, {pipeline_mode = #tpu.pipeline_mode<synchronous>, transform_indices = @transform_3, window_bounds = array<i64: 1, 1>}, {pipeline_mode = #tpu.pipeline_mode<synchronous>, transform_indices = @transform_4, window_bounds = array<i64: 2, 64, 128>}]} {
    %c0 = arith.constant 0 : index
    %c0_0 = arith.constant 0 : index
    %c0_1 = arith.constant 0 : index
    %0 = vector.load %arg1[%c0, %c0_0, %c0_1] : memref<2x64x128xbf16, #tpu.memory_space<vmem>>, vector<2x64x128xbf16>
    %1 = vector.shape_cast %0 : vector<2x64x128xbf16> to vector<128x128xbf16>
    %c0_2 = arith.constant 0 : index
    %c0_3 = arith.constant 0 : index
    %2 = vector.load %arg2[%c0_2, %c0_3] : memref<128x384xbf16, #tpu.memory_space<vmem>>, vector<128x384xbf16>
    %cst = arith.constant dense<0.000000e+00> : vector<128x384xf32>
    %3 = tpu.matmul %1, %2, %cst {dimension_numbers = #tpu.dot_dimension_numbers<[1], [0], [0], [1], [0, 0, 1, 1], [], []>} : vector<128x128xbf16>, vector<128x384xbf16>, vector<128x384xf32> -> vector<128x384xf32>
    %c0_4 = arith.constant 0 : index
    %c0_5 = arith.constant 0 : index
    %4 = vector.load %arg3[%c0_4, %c0_5] : memref<1x384xf32, #tpu.memory_space<vmem>>, vector<1x384xf32>
    %5 = vector.broadcast %4 : vector<1x384xf32> to vector<128x384xf32>
    %6 = arith.addf %3, %5 : vector<128x384xf32>
    %7 = vector.shape_cast %6 : vector<128x384xf32> to vector<2x64x384xf32>
    %8 = vector.extract_strided_slice %7 {offsets = [0, 0, 0], sizes = [2, 64, 128], strides = [1, 1, 1]} : vector<2x64x384xf32> to vector<2x64x128xf32>
    %9 = arith.truncf %8 : vector<2x64x128xf32> to vector<2x64x128xbf16>
    %10 = vector.extract_strided_slice %7 {offsets = [0, 0, 128], sizes = [2, 64, 128], strides = [1, 1, 1]} : vector<2x64x384xf32> to vector<2x64x128xf32>
    %11 = arith.truncf %10 : vector<2x64x128xf32> to vector<2x64x128xbf16>
    %12 = vector.extract_strided_slice %7 {offsets = [0, 0, 256], sizes = [2, 64, 128], strides = [1, 1, 1]} : vector<2x64x384xf32> to vector<2x64x128xf32>
    %13 = arith.truncf %12 : vector<2x64x128xf32> to vector<2x64x128xbf16>
    "tpu.trace_start"() <{level = 10 : i32, message = "bnc,bmc->bnm"}> : () -> ()
    %cst_6 = arith.constant dense<0.000000e+00> : vector<2x64x64xf32>
    %14 = tpu.matmul %9, %11, %cst_6 {dimension_numbers = #tpu.dot_dimension_numbers<[2], [2], [1], [1], [0, 0, 0, 1, 1, 1], [0], [0]>} : vector<2x64x128xbf16>, vector<2x64x128xbf16>, vector<2x64x64xf32> -> vector<2x64x64xf32>
    "tpu.trace_stop"() : () -> ()
    %cst_7 = arith.constant dense<0xFF800000> : vector<2x64xf32>
    %15 = vector.multi_reduction <maximumf>, %14, %cst_7 [2] : vector<2x64x64xf32> to vector<2x64xf32>
    %16 = vector.shape_cast %15 : vector<2x64xf32> to vector<2x64x1xf32>
    %17 = vector.broadcast %16 : vector<2x64x1xf32> to vector<2x64x64xf32>
    %18 = arith.subf %14, %17 : vector<2x64x64xf32>
    %19 = math.exp %18 : vector<2x64x64xf32>
    %cst_8 = arith.constant dense<0.000000e+00> : vector<2x64xf32>
    %20 = vector.multi_reduction <add>, %19, %cst_8 [2] : vector<2x64x64xf32> to vector<2x64xf32>
    %21 = vector.shape_cast %20 : vector<2x64xf32> to vector<2x64x1xf32>
    %22 = tpu.reciprocal %21 {approx = true} : vector<2x64x1xf32> -> vector<2x64x1xf32>
    %23 = vector.broadcast %22 : vector<2x64x1xf32> to vector<2x64x64xf32>
    %24 = arith.mulf %19, %23 : vector<2x64x64xf32>
    %25 = arith.truncf %24 : vector<2x64x64xf32> to vector<2x64x64xbf16>
    "tpu.trace_start"() <{level = 10 : i32, message = "bnm,bmc->bnc"}> : () -> ()
    %cst_9 = arith.constant dense<0.000000e+00> : vector<2x64x128xf32>
    %26 = tpu.matmul %25, %13, %cst_9 {dimension_numbers = #tpu.dot_dimension_numbers<[2], [1], [1], [2], [0, 0, 0, 1, 1, 2], [0], [0]>} : vector<2x64x64xbf16>, vector<2x64x128xbf16>, vector<2x64x128xf32> -> vector<2x64x128xf32>
    "tpu.trace_stop"() : () -> ()
    %c0_10 = arith.constant 0 : index
    %c0_11 = arith.constant 0 : index
    %27 = vector.load %arg4[%c0_10, %c0_11] : memref<1x1xf32, #tpu.memory_space<vmem>>, vector<1x1xf32>
    %28 = vector.extract %27[0, 0] : f32 from vector<1x1xf32>
    %29 = vector.broadcast %28 : f32 to vector<2x64x128xf32>
    %30 = arith.mulf %29, %26 : vector<2x64x128xf32>
    %31 = arith.extf %0 : vector<2x64x128xbf16> to vector<2x64x128xf32>
    %32 = arith.addf %30, %31 : vector<2x64x128xf32>
    %33 = arith.truncf %32 : vector<2x64x128xf32> to vector<2x64x128xbf16>
    %c0_12 = arith.constant 0 : index
    %c0_13 = arith.constant 0 : index
    %c0_14 = arith.constant 0 : index
    %34 = vector.load %arg5[%c0_12, %c0_13, %c0_14] : memref<2x64x128xbf16, #tpu.memory_space<vmem>>, vector<2x64x128xbf16>
    tpu.vector_store %arg5[%c0_12, %c0_13, %c0_14], %33 {strides = array<i32>} : memref<2x64x128xbf16, #tpu.memory_space<vmem>>, vector<2x64x128xbf16>,
    return
  }
  func.func @transform_0(%arg0: i32) -> (i32, i32, i32) {
    %c0_i32 = arith.constant 0 : i32
    %c0_i32_0 = arith.constant 0 : i32
    %c0_i32_1 = arith.constant 0 : i32
    %c0_i32_2 = arith.constant 0 : i32
    return %c0_i32, %c0_i32_0, %c0_i32_1 : i32, i32, i32
  }
  func.func @transform_1(%arg0: i32) -> (i32, i32) {
    %c0_i32 = arith.constant 0 : i32
    %c0_i32_0 = arith.constant 0 : i32
    %c0_i32_1 = arith.constant 0 : i32
    return %c0_i32, %c0_i32_0 : i32, i32
  }
  func.func @transform_2(%arg0: i32) -> (i32, i32) {
    %c0_i32 = arith.constant 0 : i32
    %c0_i32_0 = arith.constant 0 : i32
    %c0_i32_1 = arith.constant 0 : i32
    return %c0_i32, %c0_i32_0 : i32, i32
  }
  func.func @transform_3(%arg0: i32) -> (i32, i32) {
    %c0_i32 = arith.constant 0 : i32
    %c0_i32_0 = arith.constant 0 : i32
    %c0_i32_1 = arith.constant 0 : i32
    return %c0_i32, %c0_i32_0 : i32, i32
  }
  func.func @transform_4(%arg0: i32) -> (i32, i32, i32) {
    %c0_i32 = arith.constant 0 : i32
    %c0_i32_0 = arith.constant 0 : i32
    %c0_i32_1 = arith.constant 0 : i32
    %c0_i32_2 = arith.constant 0 : i32
    return %c0_i32, %c0_i32_0, %c0_i32_1 : i32, i32, i32
  }
}

module attributes {stable_mosaic.version = 11 : i64} {
  func.func @_mm_bias_act_kernel(%arg0: i32, %arg1: i32, %arg2: memref<32x2048xbf16, #tpu.memory_space<vmem>>, %arg3: memref<2048x128xbf16, #tpu.memory_space<vmem>>, %arg4: memref<1x128xf32, #tpu.memory_space<vmem>>, %arg5: memref<32x128xbf16, #tpu.memory_space<vmem>>) attributes {dimension_semantics = [#tpu.dimension_semantics<parallel>, #tpu.dimension_semantics<parallel>], iteration_bounds = array<i64: 1, 2>, scalar_prefetch = 0 : i64, scratch_operands = 0 : i64, tpu.core_type = #tpu.core_type<tc>, window_params = [{transform_indices = @transform_0, window_bounds = array<i64: 32, 2048>}, {transform_indices = @transform_1, window_bounds = array<i64: 2048, 128>}, {transform_indices = @transform_2, window_bounds = array<i64: 1, 128>}, {transform_indices = @transform_3, window_bounds = array<i64: 32, 128>}]} {
    %c0 = arith.constant 0 : index
    %c0_0 = arith.constant 0 : index
    %0 = vector.load %arg2[%c0, %c0_0] : memref<32x2048xbf16, #tpu.memory_space<vmem>>, vector<32x2048xbf16>
    %c0_1 = arith.constant 0 : index
    %c0_2 = arith.constant 0 : index
    %1 = vector.load %arg3[%c0_1, %c0_2] : memref<2048x128xbf16, #tpu.memory_space<vmem>>, vector<2048x128xbf16>
    %cst = arith.constant dense<0.000000e+00> : vector<32x128xf32>
    %2 = tpu.matmul %0, %1, %cst {dimension_numbers = #tpu.dot_dimension_numbers<[1], [0], [0], [1], [0, 0, 1, 1], [], []>} : vector<32x2048xbf16>, vector<2048x128xbf16>, vector<32x128xf32> -> vector<32x128xf32>
    %c0_3 = arith.constant 0 : index
    %c0_4 = arith.constant 0 : index
    %3 = vector.load %arg4[%c0_3, %c0_4] : memref<1x128xf32, #tpu.memory_space<vmem>>, vector<1x128xf32>
    %4 = vector.broadcast %3 : vector<1x128xf32> to vector<32x128xf32>
    %5 = arith.addf %2, %4 : vector<32x128xf32>
    %cst_5 = arith.constant 0.000000e+00 : f32
    %6 = vector.broadcast %cst_5 : f32 to vector<32x128xf32>
    %7 = arith.cmpf oge, %5, %6 : vector<32x128xf32>
    %cst_6 = arith.constant 2.000000e-01 : f32
    %8 = vector.broadcast %cst_6 : f32 to vector<32x128xf32>
    %9 = arith.mulf %8, %5 : vector<32x128xf32>
    %10 = arith.select %7, %5, %9 : vector<32x128xi1>, vector<32x128xf32>
    %11 = arith.truncf %10 : vector<32x128xf32> to vector<32x128xbf16>
    %c0_7 = arith.constant 0 : index
    %c0_8 = arith.constant 0 : index
    %12 = vector.load %arg5[%c0_7, %c0_8] : memref<32x128xbf16, #tpu.memory_space<vmem>>, vector<32x128xbf16>
    tpu.vector_store %arg5[%c0_7, %c0_8], %11 {strides = array<i32>} : memref<32x128xbf16, #tpu.memory_space<vmem>>, vector<32x128xbf16>,
    return
  }
  func.func @transform_0(%arg0: i32, %arg1: i32) -> (i32, i32) {
    %c0_i32 = arith.constant 0 : i32
    %c0_i32_0 = arith.constant 0 : i32
    return %arg0, %c0_i32 : i32, i32
  }
  func.func @transform_1(%arg0: i32, %arg1: i32) -> (i32, i32) {
    %c0_i32 = arith.constant 0 : i32
    %c0_i32_0 = arith.constant 0 : i32
    return %c0_i32, %arg1 : i32, i32
  }
  func.func @transform_2(%arg0: i32, %arg1: i32) -> (i32, i32) {
    %c0_i32 = arith.constant 0 : i32
    %c0_i32_0 = arith.constant 0 : i32
    return %c0_i32, %arg1 : i32, i32
  }
  func.func @transform_3(%arg0: i32, %arg1: i32) -> (i32, i32) {
    %c0_i32 = arith.constant 0 : i32
    return %arg0, %arg1 : i32, i32
  }
}

module attributes {stable_mosaic.version = 11 : i64} {
  func.func @_self_attn_kernel(%arg0: i32, %arg1: memref<2x16x256xbf16, #tpu.memory_space<vmem>>, %arg2: memref<256x512xbf16, #tpu.memory_space<vmem>>, %arg3: memref<1x512xf32, #tpu.memory_space<vmem>>, %arg4: memref<1x1xf32, #tpu.memory_space<vmem>>, %arg5: memref<2x16x256xbf16, #tpu.memory_space<vmem>>) attributes {dimension_semantics = [#tpu.dimension_semantics<arbitrary>], iteration_bounds = array<i64: 1>, scalar_prefetch = 0 : i64, scratch_operands = 0 : i64, tpu.core_type = #tpu.core_type<tc>, window_params = [{pipeline_mode = #tpu.pipeline_mode<synchronous>, transform_indices = @transform_0, window_bounds = array<i64: 2, 16, 256>}, {pipeline_mode = #tpu.pipeline_mode<synchronous>, transform_indices = @transform_1, window_bounds = array<i64: 256, 512>}, {pipeline_mode = #tpu.pipeline_mode<synchronous>, transform_indices = @transform_2, window_bounds = array<i64: 1, 512>}, {pipeline_mode = #tpu.pipeline_mode<synchronous>, transform_indices = @transform_3, window_bounds = array<i64: 1, 1>}, {pipeline_mode = #tpu.pipeline_mode<synchronous>, transform_indices = @transform_4, window_bounds = array<i64: 2, 16, 256>}]} {
    %c0 = arith.constant 0 : index
    %c0_0 = arith.constant 0 : index
    %c0_1 = arith.constant 0 : index
    %0 = vector.load %arg1[%c0, %c0_0, %c0_1] : memref<2x16x256xbf16, #tpu.memory_space<vmem>>, vector<2x16x256xbf16>
    %1 = vector.shape_cast %0 : vector<2x16x256xbf16> to vector<32x256xbf16>
    %c0_2 = arith.constant 0 : index
    %c0_3 = arith.constant 0 : index
    %2 = vector.load %arg2[%c0_2, %c0_3] : memref<256x512xbf16, #tpu.memory_space<vmem>>, vector<256x512xbf16>
    %cst = arith.constant dense<0.000000e+00> : vector<32x512xf32>
    %3 = tpu.matmul %1, %2, %cst {dimension_numbers = #tpu.dot_dimension_numbers<[1], [0], [0], [1], [0, 0, 1, 1], [], []>} : vector<32x256xbf16>, vector<256x512xbf16>, vector<32x512xf32> -> vector<32x512xf32>
    %c0_4 = arith.constant 0 : index
    %c0_5 = arith.constant 0 : index
    %4 = vector.load %arg3[%c0_4, %c0_5] : memref<1x512xf32, #tpu.memory_space<vmem>>, vector<1x512xf32>
    %5 = vector.broadcast %4 : vector<1x512xf32> to vector<32x512xf32>
    %6 = arith.addf %3, %5 : vector<32x512xf32>
    %7 = vector.shape_cast %6 : vector<32x512xf32> to vector<2x16x512xf32>
    %8 = vector.extract_strided_slice %7 {offsets = [0, 0, 0], sizes = [2, 16, 128], strides = [1, 1, 1]} : vector<2x16x512xf32> to vector<2x16x128xf32>
    %9 = arith.truncf %8 : vector<2x16x128xf32> to vector<2x16x128xbf16>
    %10 = vector.extract_strided_slice %7 {offsets = [0, 0, 128], sizes = [2, 16, 128], strides = [1, 1, 1]} : vector<2x16x512xf32> to vector<2x16x128xf32>
    %11 = arith.truncf %10 : vector<2x16x128xf32> to vector<2x16x128xbf16>
    %12 = vector.extract_strided_slice %7 {offsets = [0, 0, 256], sizes = [2, 16, 256], strides = [1, 1, 1]} : vector<2x16x512xf32> to vector<2x16x256xf32>
    %13 = arith.truncf %12 : vector<2x16x256xf32> to vector<2x16x256xbf16>
    "tpu.trace_start"() <{level = 10 : i32, message = "bnc,bmc->bnm"}> : () -> ()
    %cst_6 = arith.constant dense<0.000000e+00> : vector<2x16x16xf32>
    %14 = tpu.matmul %9, %11, %cst_6 {dimension_numbers = #tpu.dot_dimension_numbers<[2], [2], [1], [1], [0, 0, 0, 1, 1, 1], [0], [0]>} : vector<2x16x128xbf16>, vector<2x16x128xbf16>, vector<2x16x16xf32> -> vector<2x16x16xf32>
    "tpu.trace_stop"() : () -> ()
    %cst_7 = arith.constant dense<0xFF800000> : vector<2x16xf32>
    %15 = vector.multi_reduction <maximumf>, %14, %cst_7 [2] : vector<2x16x16xf32> to vector<2x16xf32>
    %16 = vector.shape_cast %15 : vector<2x16xf32> to vector<2x16x1xf32>
    %17 = vector.broadcast %16 : vector<2x16x1xf32> to vector<2x16x16xf32>
    %18 = arith.subf %14, %17 : vector<2x16x16xf32>
    %19 = math.exp %18 : vector<2x16x16xf32>
    %cst_8 = arith.constant dense<0.000000e+00> : vector<2x16xf32>
    %20 = vector.multi_reduction <add>, %19, %cst_8 [2] : vector<2x16x16xf32> to vector<2x16xf32>
    %21 = vector.shape_cast %20 : vector<2x16xf32> to vector<2x16x1xf32>
    %22 = tpu.reciprocal %21 {approx = true} : vector<2x16x1xf32> -> vector<2x16x1xf32>
    %23 = vector.broadcast %22 : vector<2x16x1xf32> to vector<2x16x16xf32>
    %24 = arith.mulf %19, %23 : vector<2x16x16xf32>
    %25 = arith.truncf %24 : vector<2x16x16xf32> to vector<2x16x16xbf16>
    "tpu.trace_start"() <{level = 10 : i32, message = "bnm,bmc->bnc"}> : () -> ()
    %cst_9 = arith.constant dense<0.000000e+00> : vector<2x16x256xf32>
    %26 = tpu.matmul %25, %13, %cst_9 {dimension_numbers = #tpu.dot_dimension_numbers<[2], [1], [1], [2], [0, 0, 0, 1, 1, 2], [0], [0]>} : vector<2x16x16xbf16>, vector<2x16x256xbf16>, vector<2x16x256xf32> -> vector<2x16x256xf32>
    "tpu.trace_stop"() : () -> ()
    %c0_10 = arith.constant 0 : index
    %c0_11 = arith.constant 0 : index
    %27 = vector.load %arg4[%c0_10, %c0_11] : memref<1x1xf32, #tpu.memory_space<vmem>>, vector<1x1xf32>
    %28 = vector.extract %27[0, 0] : f32 from vector<1x1xf32>
    %29 = vector.broadcast %28 : f32 to vector<2x16x256xf32>
    %30 = arith.mulf %29, %26 : vector<2x16x256xf32>
    %31 = arith.extf %0 : vector<2x16x256xbf16> to vector<2x16x256xf32>
    %32 = arith.addf %30, %31 : vector<2x16x256xf32>
    %33 = arith.truncf %32 : vector<2x16x256xf32> to vector<2x16x256xbf16>
    %c0_12 = arith.constant 0 : index
    %c0_13 = arith.constant 0 : index
    %c0_14 = arith.constant 0 : index
    %34 = vector.load %arg5[%c0_12, %c0_13, %c0_14] : memref<2x16x256xbf16, #tpu.memory_space<vmem>>, vector<2x16x256xbf16>
    tpu.vector_store %arg5[%c0_12, %c0_13, %c0_14], %33 {strides = array<i32>} : memref<2x16x256xbf16, #tpu.memory_space<vmem>>, vector<2x16x256xbf16>,
    return
  }
  func.func @transform_0(%arg0: i32) -> (i32, i32, i32) {
    %c0_i32 = arith.constant 0 : i32
    %c0_i32_0 = arith.constant 0 : i32
    %c0_i32_1 = arith.constant 0 : i32
    %c0_i32_2 = arith.constant 0 : i32
    return %c0_i32, %c0_i32_0, %c0_i32_1 : i32, i32, i32
  }
  func.func @transform_1(%arg0: i32) -> (i32, i32) {
    %c0_i32 = arith.constant 0 : i32
    %c0_i32_0 = arith.constant 0 : i32
    %c0_i32_1 = arith.constant 0 : i32
    return %c0_i32, %c0_i32_0 : i32, i32
  }
  func.func @transform_2(%arg0: i32) -> (i32, i32) {
    %c0_i32 = arith.constant 0 : i32
    %c0_i32_0 = arith.constant 0 : i32
    %c0_i32_1 = arith.constant 0 : i32
    return %c0_i32, %c0_i32_0 : i32, i32
  }
  func.func @transform_3(%arg0: i32) -> (i32, i32) {
    %c0_i32 = arith.constant 0 : i32
    %c0_i32_0 = arith.constant 0 : i32
    %c0_i32_1 = arith.constant 0 : i32
    return %c0_i32, %c0_i32_0 : i32, i32
  }
  func.func @transform_4(%arg0: i32) -> (i32, i32, i32) {
    %c0_i32 = arith.constant 0 : i32
    %c0_i32_0 = arith.constant 0 : i32
    %c0_i32_1 = arith.constant 0 : i32
    %c0_i32_2 = arith.constant 0 : i32
    return %c0_i32, %c0_i32_0, %c0_i32_1 : i32, i32, i32
  }
}

</mosaic_0001>

<bundles_post_ra>
// kernel: enhanced_discriminator_forward.6
= control target key start
LH: loop header
LB: loop body
LE: loop exit
PB: predicated region body
PF: predicated region fallthrough
CT: control target
= control target key end

     0   :  { %s3934_s12 = smov 0   ;;  %s3936_s13 = smov 0   ;;  %s4441_s0 = inlined_call_operand.vmem [shape: bf16[2192,128], index: 0, kind: input, shape index: {}]   ;;  %s4442_s1 = inlined_call_operand.vmem [shape: bf16[128,128], index: 1, kind: input, shape index: {}]   ;;  %s4443_s2 = inlined_call_operand.vmem [shape: f32[1,128], index: 2, kind: input, shape index: {}]   ;;  %s4444_s3 = inlined_call_operand.vmem [shape: bf16[2192,128], index: 3, kind: output, shape index: {}]  }
   0x1   :  { %s3938_s14 = smov 0  }
   0x2 LB: > { %s25_s15 = sadd.s32 1, %s3906_s13  ;;  %p2635_p0 = scmp.ge.s32.totalorder %s3910_s14, 1  ;;  %s3910_s14 = sphi %s3938_s14, %s13_s14   ;;  %s3906_s13 = sphi %s3936_s13, %s4446_s13   ;;  %s3902_s12 = sphi %s3934_s12, %s4445_s12  }
   0x3   : > { %p27_p1 = scmp.ge.s32.totalorder %s25_s15, 2  ;;  %p169_p2 = scmp.lt.s32.totalorder %s3910_s14, 3 }
   0x5   : > { %s4448_s15 = smov (%p27_p1, %s25_s15), 0  ;;  %p170_p3 = pnand %p2635_p0, %p169_p2 }
   0x6   : > { %v3810_v0 = vld [vmem:[%s4442_s1] sm:$0xff] (!%p170_p3)   ;;  %v3912_v1 = vmov (!%p170_p3), 0.0   ;;  %v3811_v2 = vld [vmem:[%s4442_s1 + $0x8] sm:$0xff] (!%p170_p3)   ;;  %s203_s20 = smul.u32 (!%p170_p3), 137, %s3902_s12  ;;  %vm3913_vm0 = vmmov (!%p170_p3), 0   ;;  %v3812_v3 = vld [vmem:[%s4442_s1 + $0x10] sm:$0xff] (!%p170_p3)  }
   0x7   : > { %173 = sbr.rel (%p170_p3) target bundleno = 533 (0x215), region = 32  ;;  %3476 = vmatprep.subr.bf16.mxu0 (!%p170_p3), %v3912_v1  ;;  %3768 = vmatprep.subr.bf16.mxu1 (!%p170_p3), %v3912_v1  ;;  %v3813_v4 = vld [vmem:[%s4442_s1 + $0x18] sm:$0xff] (!%p170_p3)   ;;  %v3814_v5 = vld [vmem:[%s4442_s1 + $0x20] sm:$0xff] (!%p170_p3)   ;;  %v3815_v6 = vld [vmem:[%s4442_s1 + $0x28] sm:$0xff] (!%p170_p3)  }
   0x8   : > { %3477 = vmatpush3.bf16.msra.mxu0 (!%p170_p3), %v3810_v0  ;;  %3776 = vmatpush3.bf16.msra.mxu1 (!%p170_p3), %v3810_v0  ;;  %p204_p4 = scmp.lt.s32.totalorder (!%p170_p3), %s203_s20, 273  ;;  %v3816_v7 = vld [vmem:[%s4442_s1 + $0x30] sm:$0xff] (!%p170_p3)   ;;  %v3817_v8 = vld [vmem:[%s4442_s1 + $0x38] sm:$0xff] (!%p170_p3)   ;;  %v4167_v63 = vld [vmem:[%s4443_s2] ss:$0 sm:$0xff] (!%p170_p3) }
   0x9   : > { %3478 = vmatprep.subr.bf16.mxu0 (!%p170_p3), %v3912_v1  ;;  %3769 = vmatprep.subr.bf16.mxu1 (!%p170_p3), %v3912_v1 }
   0xa   : > { %3492 = vmatprep.mubr.msk.bf16.mxu0 (!%p170_p3), %vm3913_vm0, %v3912_v1  ;;  %3632 = vmatprep.mubr.msk.bf16.mxu1 (!%p170_p3), %vm3913_vm0, %v3912_v1 }
   0xc   : > { %3479 = vmatpush3.bf16.msra.mxu0 (!%p170_p3), %v3811_v2  ;;  %3777 = vmatpush3.bf16.msra.mxu1 (!%p170_p3), %v3811_v2 }
   0xd   : > { %3480 = vmatprep.subr.bf16.mxu0 (!%p170_p3), %v3912_v1  ;;  %3770 = vmatprep.subr.bf16.mxu1 (!%p170_p3), %v3912_v1 }
   0xe   : > { %s4450_s20 = smov (!%p204_p4, %s203_s20), 273 }
   0xf   : > { %s2636_s23 = sshll.u32 %s4450_s20, 2 }
  0x10   : > { %s3979_s26 = scalar_lea.vmem %s4441_s0, %s2636_s23  ;;  %3481 = vmatpush3.bf16.msra.mxu0 %v3812_v3  ;;  %3778 = vmatpush3.bf16.msra.mxu1 %v3812_v3  ;;  %s4188_s17 = scalar_lea.vmem %s4444_s3, %s2636_s23 }
  0x11   : > { %3482 = vmatprep.subr.bf16.mxu0 %v3912_v1  ;;  %3771 = vmatprep.subr.bf16.mxu1 %v3912_v1  ;;  %v3818_v9 = vld [vmem:[%s3979_s26] sm:$0xff]   ;;  %v3819_v10 = vld [vmem:[%s3979_s26 + $0x118] sm:$0xff]   ;;  %v3820_v11 = vld [vmem:[%s3979_s26 + $0x8] sm:$0xff]  }
  0x12   : > { %v3821_v12 = vld [vmem:[%s3979_s26 + $0x120] sm:$0xff]   ;;  %v3822_v13 = vld [vmem:[%s3979_s26 + $0x10] sm:$0xff]   ;;  %v3823_v14 = vld [vmem:[%s3979_s26 + $0x128] sm:$0xff]  }
  0x13   : > { %v3824_v15 = vld [vmem:[%s3979_s26 + $0x18] sm:$0xff]   ;;  %v3825_v16 = vld [vmem:[%s3979_s26 + $0x130] sm:$0xff]   ;;  %v3826_v17 = vld [vmem:[%s3979_s26 + $0x20] sm:$0xff]  }
  0x14   : > { %3483 = vmatpush3.bf16.msra.mxu0 %v3813_v4  ;;  %3779 = vmatpush3.bf16.msra.mxu1 %v3813_v4  ;;  %v3827_v18 = vld [vmem:[%s3979_s26 + $0x138] sm:$0xff]   ;;  %v3828_v19 = vld [vmem:[%s3979_s26 + $0x28] sm:$0xff]   ;;  %v3829_v20 = vld [vmem:[%s3979_s26 + $0x140] sm:$0xff]  }
  0x15   : > { %3484 = vmatprep.subr.bf16.mxu0 %v3912_v1  ;;  %3772 = vmatprep.subr.bf16.mxu1 %v3912_v1  ;;  %v3830_v21 = vld [vmem:[%s3979_s26 + $0x30] sm:$0xff]   ;;  %v3831_v22 = vld [vmem:[%s3979_s26 + $0x148] sm:$0xff]   ;;  %v3832_v23 = vld [vmem:[%s3979_s26 + $0x38] sm:$0xff]  }
  0x16   : > { %v3833_v24 = vld [vmem:[%s3979_s26 + $0x150] sm:$0xff]   ;;  %v3834_v25 = vld [vmem:[%s3979_s26 + $0x40] sm:$0xff]   ;;  %v3835_v26 = vld [vmem:[%s3979_s26 + $0x158] sm:$0xff]  }
  0x17   : > { %v3836_v27 = vld [vmem:[%s3979_s26 + $0x48] sm:$0xff]   ;;  %v3837_v28 = vld [vmem:[%s3979_s26 + $0x160] sm:$0xff]   ;;  %v3838_v29 = vld [vmem:[%s3979_s26 + $0x50] sm:$0xff]  }
  0x18   : > { %3485 = vmatpush3.bf16.msra.mxu0 %v3814_v5  ;;  %3780 = vmatpush3.bf16.msra.mxu1 %v3814_v5  ;;  %v3839_v30 = vld [vmem:[%s3979_s26 + $0x168] sm:$0xff]   ;;  %v3840_v31 = vld [vmem:[%s3979_s26 + $0x58] sm:$0xff]   ;;  %v3841_v32 = vld [vmem:[%s3979_s26 + $0x170] sm:$0xff]  }
  0x19   : > { %3486 = vmatprep.subr.bf16.mxu0 %v3912_v1  ;;  %3773 = vmatprep.subr.bf16.mxu1 %v3912_v1  ;;  %v3842_v33 = vld [vmem:[%s3979_s26 + $0x60] sm:$0xff]   ;;  %v3843_v34 = vld [vmem:[%s3979_s26 + $0x178] sm:$0xff]   ;;  %v3844_v35 = vld [vmem:[%s3979_s26 + $0x68] sm:$0xff]  }
  0x1a   : > { %v3845_v36 = vld [vmem:[%s3979_s26 + $0x180] sm:$0xff]   ;;  %v3846_v37 = vld [vmem:[%s3979_s26 + $0x70] sm:$0xff]   ;;  %v3847_v38 = vld [vmem:[%s3979_s26 + $0x188] sm:$0xff]  }
  0x1b   : > { %v3848_v39 = vld [vmem:[%s3979_s26 + $0x78] sm:$0xff]   ;;  %v3849_v40 = vld [vmem:[%s3979_s26 + $0x190] sm:$0xff]   ;;  %v3850_v41 = vld [vmem:[%s3979_s26 + $0x80] sm:$0xff]  }
  0x1c   : > { %3487 = vmatpush3.bf16.msra.mxu0 %v3815_v6  ;;  %3781 = vmatpush3.bf16.msra.mxu1 %v3815_v6  ;;  %v3851_v42 = vld [vmem:[%s3979_s26 + $0x198] sm:$0xff]   ;;  %v3852_v43 = vld [vmem:[%s3979_s26 + $0x88] sm:$0xff]   ;;  %v3853_v44 = vld [vmem:[%s3979_s26 + $0x1a0] sm:$0xff]  }
  0x1d   : > { %3488 = vmatprep.subr.bf16.mxu0 %v3912_v1  ;;  %3774 = vmatprep.subr.bf16.mxu1 %v3912_v1  ;;  %v3854_v45 = vld [vmem:[%s3979_s26 + $0x90] sm:$0xff]   ;;  %v3855_v46 = vld [vmem:[%s3979_s26 + $0x1a8] sm:$0xff]   ;;  %v3856_v47 = vld [vmem:[%s3979_s26 + $0x98] sm:$0xff]  }
  0x1e   : > { %v3857_v48 = vld [vmem:[%s3979_s26 + $0x1b0] sm:$0xff]   ;;  %v3858_v49 = vld [vmem:[%s3979_s26 + $0xa0] sm:$0xff]   ;;  %v3859_v50 = vld [vmem:[%s3979_s26 + $0x1b8] sm:$0xff]  }
  0x1f   : > { %v3860_v51 = vld [vmem:[%s3979_s26 + $0xa8] sm:$0xff]   ;;  %v3861_v52 = vld [vmem:[%s3979_s26 + $0x1c0] sm:$0xff]   ;;  %v3862_v53 = vld [vmem:[%s3979_s26 + $0xb0] sm:$0xff]  }
  0x20   : > { %3489 = vmatpush3.bf16.msra.mxu0 %v3816_v7  ;;  %3782 = vmatpush3.bf16.msra.mxu1 %v3816_v7  ;;  %v3863_v54 = vld [vmem:[%s3979_s26 + $0x1c8] sm:$0xff]   ;;  %v3864_v55 = vld [vmem:[%s3979_s26 + $0xb8] sm:$0xff]   ;;  %v3865_v56 = vld [vmem:[%s3979_s26 + $0x1d0] sm:$0xff]  }
  0x21   : > { %3490 = vmatprep.subr.bf16.mxu0 %v3912_v1  ;;  %3775 = vmatprep.subr.bf16.mxu1 %v3912_v1  ;;  %v3866_v57 = vld [vmem:[%s3979_s26 + $0xc0] sm:$0xff]   ;;  %v3867_v58 = vld [vmem:[%s3979_s26 + $0x1d8] sm:$0xff]   ;;  %v3868_v59 = vld [vmem:[%s3979_s26 + $0xc8] sm:$0xff]  }
  0x22   : > { %v3869_v60 = vld [vmem:[%s3979_s26 + $0x1e0] sm:$0xff]   ;;  %v3870_v61 = vld [vmem:[%s3979_s26 + $0xd0] sm:$0xff]   ;;  %v3871_v62 = vld [vmem:[%s3979_s26 + $0x1e8] sm:$0xff]  }
  0x23   : > { %v3872_v5 = vld [vmem:[%s3979_s26 + $0xd8] sm:$0xff]  }
  0x24   : > { %3491 = vmatpush3.bf16.msra.mxu0 %v3817_v8  ;;  %3783 = vmatpush3.bf16.msra.mxu1 %v3817_v8  ;;  %v3873_v8 = vld [vmem:[%s3979_s26 + $0x1f0] sm:$0xff]  }
  0x27   : > { %3493 = vmatmul.mubr.bf16.vlgmr.msra.gmra.mrb[0].mxu0 %v3818_v9  ;;  %3633 = vmatmul.mubr.bf16.vlgmr.msra.gmra.mrb[0].mxu1 %v3819_v10 }
  0x28   : > { %3496 = vmatprep.mubr.msk.bf16.mxu0 %vm3913_vm0, %v3912_v1  ;;  %3636 = vmatprep.mubr.msk.bf16.mxu1 %vm3913_vm0, %v3912_v1 }
  0x2f   : > { %3497 = vmatmul.mubr.bf16.gmra.mrb[4].mxu0 %v3820_v11  ;;  %3637 = vmatmul.mubr.bf16.gmra.mrb[4].mxu1 %v3821_v12 }
  0x30   : > { %3500 = vmatprep.mubr.msk.bf16.mxu0 %vm3913_vm0, %v3912_v1  ;;  %3640 = vmatprep.mubr.msk.bf16.mxu1 %vm3913_vm0, %v3912_v1 }
  0x37   : > { %3501 = vmatmul.mubr.bf16.gmra.mrb[8].mxu0 %v3822_v13  ;;  %3641 = vmatmul.mubr.bf16.gmra.mrb[8].mxu1 %v3823_v14 }
  0x38   : > { %3504 = vmatprep.mubr.msk.bf16.mxu0 %vm3913_vm0, %v3912_v1  ;;  %3644 = vmatprep.mubr.msk.bf16.mxu1 %vm3913_vm0, %v3912_v1 }
  0x3f   : > { %3505 = vmatmul.mubr.bf16.gmra.mrb[12].mxu0 %v3824_v15  ;;  %3645 = vmatmul.mubr.bf16.gmra.mrb[12].mxu1 %v3825_v16 }
  0x40   : > { %3508 = vmatprep.mubr.msk.bf16.mxu0 %vm3913_vm0, %v3912_v1  ;;  %3648 = vmatprep.mubr.msk.bf16.mxu1 %vm3913_vm0, %v3912_v1 }
  0x47   : > { %3509 = vmatmul.mubr.bf16.gmra.mrb[16].mxu0 %v3826_v17  ;;  %3649 = vmatmul.mubr.bf16.gmra.mrb[16].mxu1 %v3827_v18 }
  0x48   : > { %3512 = vmatprep.mubr.msk.bf16.mxu0 %vm3913_vm0, %v3912_v1  ;;  %3652 = vmatprep.mubr.msk.bf16.mxu1 %vm3913_vm0, %v3912_v1 }
  0x4f   : > { %3513 = vmatmul.mubr.bf16.gmra.mrb[20].mxu0 %v3828_v19  ;;  %3653 = vmatmul.mubr.bf16.gmra.mrb[20].mxu1 %v3829_v20 }
  0x50   : > { %3516 = vmatprep.mubr.msk.bf16.mxu0 %vm3913_vm0, %v3912_v1  ;;  %3656 = vmatprep.mubr.msk.bf16.mxu1 %vm3913_vm0, %v3912_v1 }
  0x57   : > { %3517 = vmatmul.mubr.bf16.gmra.mrb[24].mxu0 %v3830_v21  ;;  %3657 = vmatmul.mubr.bf16.gmra.mrb[24].mxu1 %v3831_v22 }
  0x58   : > { %3520 = vmatprep.mubr.msk.bf16.mxu0 %vm3913_vm0, %v3912_v1  ;;  %3660 = vmatprep.mubr.msk.bf16.mxu1 %vm3913_vm0, %v3912_v1 }
  0x5f   : > { %3521 = vmatmul.mubr.bf16.gmra.mrb[28].mxu0 %v3832_v23  ;;  %3661 = vmatmul.mubr.bf16.gmra.mrb[28].mxu1 %v3833_v24 }
  0x60   : > { %3524 = vmatprep.mubr.msk.bf16.mxu0 %vm3913_vm0, %v3912_v1  ;;  %3664 = vmatprep.mubr.msk.bf16.mxu1 %vm3913_vm0, %v3912_v1 }
  0x67   : > { %3525 = vmatmul.mubr.bf16.gmra.mrb[32].mxu0 %v3834_v25  ;;  %3665 = vmatmul.mubr.bf16.gmra.mrb[32].mxu1 %v3835_v26 }
  0x68   : > { %3528 = vmatprep.mubr.msk.bf16.mxu0 %vm3913_vm0, %v3912_v1  ;;  %3668 = vmatprep.mubr.msk.bf16.mxu1 %vm3913_vm0, %v3912_v1 }
  0x6f   : > { %3529 = vmatmul.mubr.bf16.gmra.mrb[36].mxu0 %v3836_v27  ;;  %3669 = vmatmul.mubr.bf16.gmra.mrb[36].mxu1 %v3837_v28 }
  0x70   : > { %3532 = vmatprep.mubr.msk.bf16.mxu0 %vm3913_vm0, %v3912_v1  ;;  %3672 = vmatprep.mubr.msk.bf16.mxu1 %vm3913_vm0, %v3912_v1 }
  0x77   : > { %3533 = vmatmul.mubr.bf16.gmra.mrb[40].mxu0 %v3838_v29  ;;  %3673 = vmatmul.mubr.bf16.gmra.mrb[40].mxu1 %v3839_v30  ;;  %v3874_v29 = vld [vmem:[%s3979_s26 + $0xe0] sm:$0xff]  }
  0x78   : > { %3536 = vmatprep.mubr.msk.bf16.mxu0 %vm3913_vm0, %v3912_v1  ;;  %3676 = vmatprep.mubr.msk.bf16.mxu1 %vm3913_vm0, %v3912_v1 }
  0x7f   : > { %3537 = vmatmul.mubr.bf16.gmra.mrb[44].mxu0 %v3840_v31  ;;  %3677 = vmatmul.mubr.bf16.gmra.mrb[44].mxu1 %v3841_v32  ;;  %v3875_v32 = vld [vmem:[%s3979_s26 + $0x1f8] sm:$0xff]  }
  0x80   : > { %3540 = vmatprep.mubr.msk.bf16.mxu0 %vm3913_vm0, %v3912_v1  ;;  %3680 = vmatprep.mubr.msk.bf16.mxu1 %vm3913_vm0, %v3912_v1 }
  0x87   : > { %3541 = vmatmul.mubr.bf16.gmra.mrb[48].mxu0 %v3842_v33  ;;  %3681 = vmatmul.mubr.bf16.gmra.mrb[48].mxu1 %v3843_v34 }
  0x88   : > { %3544 = vmatprep.mubr.msk.bf16.mxu0 %vm3913_vm0, %v3912_v1  ;;  %3684 = vmatprep.mubr.msk.bf16.mxu1 %vm3913_vm0, %v3912_v1 }
  0x8f   : > { %3545 = vmatmul.mubr.bf16.gmra.mrb[52].mxu0 %v3844_v35  ;;  %3685 = vmatmul.mubr.bf16.gmra.mrb[52].mxu1 %v3845_v36 }
  0x90   : > { %3548 = vmatprep.mubr.msk.bf16.mxu0 %vm3913_vm0, %v3912_v1  ;;  %3688 = vmatprep.mubr.msk.bf16.mxu1 %vm3913_vm0, %v3912_v1 }
  0x97   : > { %3549 = vmatmul.mubr.bf16.gmra.mrb[56].mxu0 %v3846_v37  ;;  %3689 = vmatmul.mubr.bf16.gmra.mrb[56].mxu1 %v3847_v38 }
  0x98   : > { %3552 = vmatprep.mubr.msk.bf16.mxu0 %vm3913_vm0, %v3912_v1  ;;  %3692 = vmatprep.mubr.msk.bf16.mxu1 %vm3913_vm0, %v3912_v1 }
  0x9f   : > { %3553 = vmatmul.mubr.bf16.gmra.mrb[60].mxu0 %v3848_v39  ;;  %3693 = vmatmul.mubr.bf16.gmra.mrb[60].mxu1 %v3849_v40 }
  0xa0   : > { %3556 = vmatprep.mubr.msk.bf16.mxu0 %vm3913_vm0, %v3912_v1  ;;  %3696 = vmatprep.mubr.msk.bf16.mxu1 %vm3913_vm0, %v3912_v1 }
  0xa7   : > { %3557 = vmatmul.mubr.bf16.gmra.mrb[64].mxu0 %v3850_v41  ;;  %3697 = vmatmul.mubr.bf16.gmra.mrb[64].mxu1 %v3851_v42 }
  0xa8   : > { %3560 = vmatprep.mubr.msk.bf16.mxu0 %vm3913_vm0, %v3912_v1  ;;  %3700 = vmatprep.mubr.msk.bf16.mxu1 %vm3913_vm0, %v3912_v1 }
  0xaf   : > { %3561 = vmatmul.mubr.bf16.gmra.mrb[68].mxu0 %v3852_v43  ;;  %3701 = vmatmul.mubr.bf16.gmra.mrb[68].mxu1 %v3853_v44 }
  0xb0   : > { %3564 = vmatprep.mubr.msk.bf16.mxu0 %vm3913_vm0, %v3912_v1  ;;  %3704 = vmatprep.mubr.msk.bf16.mxu1 %vm3913_vm0, %v3912_v1 }
  0xb7   : > { %3565 = vmatmul.mubr.bf16.gmra.mrb[72].mxu0 %v3854_v45  ;;  %3705 = vmatmul.mubr.bf16.gmra.mrb[72].mxu1 %v3855_v46 }
  0xb8   : > { %3568 = vmatprep.mubr.msk.bf16.mxu0 %vm3913_vm0, %v3912_v1  ;;  %3708 = vmatprep.mubr.msk.bf16.mxu1 %vm3913_vm0, %v3912_v1 }
  0xbf   : > { %3569 = vmatmul.mubr.bf16.gmra.mrb[76].mxu0 %v3856_v47  ;;  %3709 = vmatmul.mubr.bf16.gmra.mrb[76].mxu1 %v3857_v48 }
  0xc0   : > { %3572 = vmatprep.mubr.msk.bf16.mxu0 %vm3913_vm0, %v3912_v1  ;;  %3712 = vmatprep.mubr.msk.bf16.mxu1 %vm3913_vm0, %v3912_v1 }
  0xc7   : > { %3573 = vmatmul.mubr.bf16.gmra.mrb[80].mxu0 %v3858_v49  ;;  %3713 = vmatmul.mubr.bf16.gmra.mrb[80].mxu1 %v3859_v50 }
  0xc8   : > { %3576 = vmatprep.mubr.msk.bf16.mxu0 %vm3913_vm0, %v3912_v1  ;;  %3716 = vmatprep.mubr.msk.bf16.mxu1 %vm3913_vm0, %v3912_v1 }
  0xcf   : > { %3577 = vmatmul.mubr.bf16.gmra.mrb[84].mxu0 %v3860_v51  ;;  %3717 = vmatmul.mubr.bf16.gmra.mrb[84].mxu1 %v3861_v52 }
  0xd0   : > { %3580 = vmatprep.mubr.msk.bf16.mxu0 %vm3913_vm0, %v3912_v1  ;;  %3720 = vmatprep.mubr.msk.bf16.mxu1 %vm3913_vm0, %v3912_v1 }
  0xd7   : > { %3581 = vmatmul.mubr.bf16.gmra.mrb[88].mxu0 %v3862_v53  ;;  %3721 = vmatmul.mubr.bf16.gmra.mrb[88].mxu1 %v3863_v54  ;;  %v3876_v53 = vld [vmem:[%s3979_s26 + $0xe8] sm:$0xff]  }
  0xd8   : > { %3584 = vmatprep.mubr.msk.bf16.mxu0 %vm3913_vm0, %v3912_v1  ;;  %3724 = vmatprep.mubr.msk.bf16.mxu1 %vm3913_vm0, %v3912_v1 }
  0xdf   : > { %3585 = vmatmul.mubr.bf16.gmra.mrb[92].mxu0 %v3864_v55  ;;  %3725 = vmatmul.mubr.bf16.gmra.mrb[92].mxu1 %v3865_v56  ;;  %v3877_v56 = vld [vmem:[%s3979_s26 + $0x200] sm:$0xff]  }
  0xe0   : > { %3588 = vmatprep.mubr.msk.bf16.mxu0 %vm3913_vm0, %v3912_v1  ;;  %3728 = vmatprep.mubr.msk.bf16.mxu1 %vm3913_vm0, %v3912_v1 }
  0xe7   : > { %3589 = vmatmul.mubr.bf16.gmra.mrb[96].mxu0 %v3866_v57  ;;  %3729 = vmatmul.mubr.bf16.gmra.mrb[96].mxu1 %v3867_v58 }
  0xe8   : > { %3592 = vmatprep.mubr.msk.bf16.mxu0 %vm3913_vm0, %v3912_v1  ;;  %3732 = vmatprep.mubr.msk.bf16.mxu1 %vm3913_vm0, %v3912_v1 }
  0xef   : > { %3593 = vmatmul.mubr.bf16.gmra.mrb[100].mxu0 %v3868_v59  ;;  %3733 = vmatmul.mubr.bf16.gmra.mrb[100].mxu1 %v3869_v60 }
  0xf0   : > { %3596 = vmatprep.mubr.msk.bf16.mxu0 %vm3913_vm0, %v3912_v1  ;;  %3736 = vmatprep.mubr.msk.bf16.mxu1 %vm3913_vm0, %v3912_v1 }
  0xf7   : > { %3597 = vmatmul.mubr.bf16.gmra.mrb[104].mxu0 %v3870_v61  ;;  %3737 = vmatmul.mubr.bf16.gmra.mrb[104].mxu1 %v3871_v62 }
  0xf8   : > { %3600 = vmatprep.mubr.msk.bf16.mxu0 %vm3913_vm0, %v3912_v1  ;;  %3740 = vmatprep.mubr.msk.bf16.mxu1 %vm3913_vm0, %v3912_v1 }
  0xfa   : > { %v880_v0 = vpop.f32.mrb[0].mxu0  ;;  %v1160_v2 = vpop.f32.mrb[0].mxu1 }
  0xfb   : > { %v881_v3 = vadd.f32 %v4167_v63, %v880_v0  ;;  %v3494_v4 = vpop.f32.mrb[1].mxu0  ;;  %v1161_v6 = vadd.f32 %v4167_v63, %v1160_v2  ;;  %v3634_v7 = vpop.f32.mrb[1].mxu1 }
  0xfc   : > { %v883_v9 = vpop.f32.mrb[2].mxu0  ;;  %v1163_v10 = vpop.f32.mrb[2].mxu1 }
  0xfd   : > { %v1567_v11 = vmul.f32 0.2, %v881_v3  ;;  %v884_v12 = vadd.f32 %v4167_v63, %v883_v9  ;;  %v3495_v13 = vpop.f32.mrb[3].mxu0  ;;  %vm1500_vm1 = vcmp.ge.f32.partialorder %v1161_v6, 0.0  ;;  %v3635_v14 = vpop.f32.mrb[3].mxu1  ;;  %vm1430_vm2 = vcmp.ge.f32.partialorder %v881_v3, 0.0 }
  0xfe   : > { %v1637_v15 = vmul.f32 0.2, %v1161_v6  ;;  %v1164_v16 = vadd.f32 %v4167_v63, %v1163_v10 }
  0xff   : > { %vm1431_vm3 = vcmp.ge.f32.partialorder %v884_v12, 0.0  ;;  %v1568_v17 = vmul.f32 0.2, %v884_v12  ;;  %3601 = vmatmul.mubr.bf16.gmra.mrb[108].mxu0 %v3872_v5  ;;  %3741 = vmatmul.mubr.bf16.gmra.mrb[108].mxu1 %v3873_v8  ;;  %v1704_v20 = vsel %vm1430_vm2, %v881_v3, %v1567_v11 }
 0x100   : > { %v1774_v18 = vsel %vm1500_vm1, %v1161_v6, %v1637_v15  ;;  %vm1501_vm4 = vcmp.ge.f32.partialorder %v1164_v16, 0.0  ;;  %v1638_v19 = vmul.f32 0.2, %v1164_v16  ;;  %3604 = vmatprep.mubr.msk.bf16.mxu0 %vm3913_vm0, %v3912_v1  ;;  %3744 = vmatprep.mubr.msk.bf16.mxu1 %vm3913_vm0, %v3912_v1  ;;  %v3878_v15 = vld [vmem:[%s3979_s26 + $0xf0] sm:$0xff]  }
 0x101   : > { %v1705_v21 = vsel %vm1431_vm3, %v884_v12, %v1568_v17 }
 0x102   : > { %v2995_v22 = vpack.c.bf16 %v1705_v21, %v1704_v20  ;;  %v888_v23 = vpop.f32.mrb[4].mxu0  ;;  %v1775_v24 = vsel %vm1501_vm4, %v1164_v16, %v1638_v19  ;;  %v1168_v25 = vpop.f32.mrb[4].mxu1 }
 0x103   : > { %v889_v26 = vadd.f32 %v4167_v63, %v888_v23  ;;  %v3170_v27 = vpack.c.bf16 %v1775_v24, %v1774_v18  ;;  %v3498_v28 = vpop.f32.mrb[5].mxu0  ;;  %v1169_v30 = vadd.f32 %v4167_v63, %v1168_v25  ;;  %v3638_v31 = vpop.f32.mrb[5].mxu1  ;;  %v3879_v18 = vld [vmem:[%s3979_s26 + $0x208] sm:$0xff]  }
 0x104   : > { %2996 = vst [vmem:[%s4188_s17] sm:$0xff] %v2995_v22   ;;  %v891_v33 = vpop.f32.mrb[6].mxu0  ;;  %v1171_v34 = vpop.f32.mrb[6].mxu1 }
 0x105   : > { %v1569_v35 = vmul.f32 0.2, %v889_v26  ;;  %3366 = vst [vmem:[%s4188_s17 + $0x118] sm:$0xff] %v3170_v27   ;;  %v892_v36 = vadd.f32 %v4167_v63, %v891_v33  ;;  %v3499_v37 = vpop.f32.mrb[7].mxu0  ;;  %vm1502_vm5 = vcmp.ge.f32.partialorder %v1169_v30, 0.0  ;;  %v3639_v38 = vpop.f32.mrb[7].mxu1  ;;  %v1172_v40 = vadd.f32 %v4167_v63, %v1171_v34 }
 0x106   : > { %vm1432_vm6 = vcmp.ge.f32.partialorder %v889_v26, 0.0  ;;  %v1639_v39 = vmul.f32 0.2, %v1169_v30 }
 0x107   : > { %vm1433_vm7 = vcmp.ge.f32.partialorder %v892_v36, 0.0  ;;  %v1570_v41 = vmul.f32 0.2, %v892_v36  ;;  %3605 = vmatmul.mubr.bf16.gmra.mrb[112].mxu0 %v3874_v29  ;;  %3745 = vmatmul.mubr.bf16.gmra.mrb[112].mxu1 %v3875_v32  ;;  %vm1503_vm8 = vcmp.ge.f32.partialorder %v1172_v40, 0.0  ;;  %v1640_v43 = vmul.f32 0.2, %v1172_v40 }
 0x108   : > { %v1776_v42 = vsel %vm1502_vm5, %v1169_v30, %v1639_v39  ;;  %3608 = vmatprep.mubr.msk.bf16.mxu0 %vm3913_vm0, %v3912_v1  ;;  %3748 = vmatprep.mubr.msk.bf16.mxu1 %vm3913_vm0, %v3912_v1  ;;  %v1706_v44 = vsel %vm1432_vm6, %v889_v26, %v1569_v35  ;;  %v3880_v39 = vld [vmem:[%s3979_s26 + $0xf8] sm:$0xff]  }
 0x109   : > { %v1707_v45 = vsel %vm1433_vm7, %v892_v36, %v1570_v41  ;;  %v1777_v48 = vsel %vm1503_vm8, %v1172_v40, %v1640_v43 }
 0x10a   : > { %v3000_v46 = vpack.c.bf16 %v1707_v45, %v1706_v44  ;;  %v896_v47 = vpop.f32.mrb[8].mxu0  ;;  %v1176_v49 = vpop.f32.mrb[8].mxu1  ;;  %v3175_v51 = vpack.c.bf16 %v1777_v48, %v1776_v42  ;;  %v3881_v42 = vld [vmem:[%s3979_s26 + $0x210] sm:$0xff]  }
 0x10b   : > { %v897_v50 = vadd.f32 %v4167_v63, %v896_v47  ;;  %v3502_v52 = vpop.f32.mrb[9].mxu0  ;;  %v1177_v54 = vadd.f32 %v4167_v63, %v1176_v49  ;;  %v3642_v55 = vpop.f32.mrb[9].mxu1 }
 0x10c   : > { %3332 = vst [vmem:[%s4188_s17 + $0x8] sm:$0xff] %v3000_v46   ;;  %v899_v57 = vpop.f32.mrb[10].mxu0  ;;  %v1179_v58 = vpop.f32.mrb[10].mxu1  ;;  %3367 = vst [vmem:[%s4188_s17 + $0x120] sm:$0xff] %v3175_v51  }
 0x10d   : > { %v1571_v59 = vmul.f32 0.2, %v897_v50  ;;  %v900_v60 = vadd.f32 %v4167_v63, %v899_v57  ;;  %v3503_v61 = vpop.f32.mrb[11].mxu0  ;;  %vm1504_vm9 = vcmp.ge.f32.partialorder %v1177_v54, 0.0  ;;  %v3643_v62 = vpop.f32.mrb[11].mxu1  ;;  %vm1434_vm10 = vcmp.ge.f32.partialorder %v897_v50, 0.0 }
 0x10e   : > { %v1641_v0 = vmul.f32 0.2, %v1177_v54  ;;  %v1180_v2 = vadd.f32 %v4167_v63, %v1179_v58 }
 0x10f   : > { %vm1435_vm11 = vcmp.ge.f32.partialorder %v900_v60, 0.0  ;;  %v1572_v3 = vmul.f32 0.2, %v900_v60  ;;  %3609 = vmatmul.mubr.bf16.gmra.mrb[116].mxu0 %v3876_v53  ;;  %3749 = vmatmul.mubr.bf16.gmra.mrb[116].mxu1 %v3877_v56  ;;  %v1708_v6 = vsel %vm1434_vm10, %v897_v50, %v1571_v59 }
 0x110   : > { %v1778_v4 = vsel %vm1504_vm9, %v1177_v54, %v1641_v0  ;;  %vm1505_vm12 = vcmp.ge.f32.partialorder %v1180_v2, 0.0  ;;  %v1642_v5 = vmul.f32 0.2, %v1180_v2  ;;  %3612 = vmatprep.mubr.msk.bf16.mxu0 %vm3913_vm0, %v3912_v1  ;;  %3752 = vmatprep.mubr.msk.bf16.mxu1 %vm3913_vm0, %v3912_v1  ;;  %v3882_v0 = vld [vmem:[%s3979_s26 + $0x100] sm:$0xff]  }
 0x111   : > { %v1709_v7 = vsel %vm1435_vm11, %v900_v60, %v1572_v3 }
 0x112   : > { %v3005_v8 = vpack.c.bf16 %v1709_v7, %v1708_v6  ;;  %v904_v9 = vpop.f32.mrb[12].mxu0  ;;  %v1779_v10 = vsel %vm1505_vm12, %v1180_v2, %v1642_v5  ;;  %v1184_v11 = vpop.f32.mrb[12].mxu1 }
 0x113   : > { %v905_v12 = vadd.f32 %v4167_v63, %v904_v9  ;;  %v3180_v13 = vpack.c.bf16 %v1779_v10, %v1778_v4  ;;  %v3506_v14 = vpop.f32.mrb[13].mxu0  ;;  %v1185_v16 = vadd.f32 %v4167_v63, %v1184_v11  ;;  %v3646_v17 = vpop.f32.mrb[13].mxu1  ;;  %v3883_v4 = vld [vmem:[%s3979_s26 + $0x218] sm:$0xff]  }
 0x114   : > { %3333 = vst [vmem:[%s4188_s17 + $0x10] sm:$0xff] %v3005_v8   ;;  %v907_v19 = vpop.f32.mrb[14].mxu0  ;;  %v1187_v20 = vpop.f32.mrb[14].mxu1 }
 0x115   : > { %v1573_v21 = vmul.f32 0.2, %v905_v12  ;;  %3368 = vst [vmem:[%s4188_s17 + $0x128] sm:$0xff] %v3180_v13   ;;  %v908_v22 = vadd.f32 %v4167_v63, %v907_v19  ;;  %v3507_v23 = vpop.f32.mrb[15].mxu0  ;;  %vm1506_vm13 = vcmp.ge.f32.partialorder %v1185_v16, 0.0  ;;  %v3647_v24 = vpop.f32.mrb[15].mxu1  ;;  %v1188_v26 = vadd.f32 %v4167_v63, %v1187_v20 }
 0x116   : > { %vm1436_vm14 = vcmp.ge.f32.partialorder %v905_v12, 0.0  ;;  %v1643_v25 = vmul.f32 0.2, %v1185_v16 }
 0x117   : > { %vm1437_vm15 = vcmp.ge.f32.partialorder %v908_v22, 0.0  ;;  %v1574_v27 = vmul.f32 0.2, %v908_v22  ;;  %3613 = vmatmul.mubr.bf16.gmra.mrb[120].mxu0 %v3878_v15  ;;  %3753 = vmatmul.mubr.bf16.gmra.mrb[120].mxu1 %v3879_v18  ;;  %vm1507_vm1 = vcmp.ge.f32.partialorder %v1188_v26, 0.0  ;;  %v1644_v29 = vmul.f32 0.2, %v1188_v26 }
 0x118   : > { %v1780_v28 = vsel %vm1506_vm13, %v1185_v16, %v1643_v25  ;;  %3616 = vmatprep.mubr.msk.bf16.mxu0 %vm3913_vm0, %v3912_v1  ;;  %3756 = vmatprep.mubr.msk.bf16.mxu1 %vm3913_vm0, %v3912_v1  ;;  %v1710_v30 = vsel %vm1436_vm14, %v905_v12, %v1573_v21  ;;  %v3884_v25 = vld [vmem:[%s3979_s26 + $0x108] sm:$0xff]  }
 0x119   : > { %v1711_v31 = vsel %vm1437_vm15, %v908_v22, %v1574_v27  ;;  %v1781_v34 = vsel %vm1507_vm1, %v1188_v26, %v1644_v29 }
 0x11a   : > { %v3010_v32 = vpack.c.bf16 %v1711_v31, %v1710_v30  ;;  %v912_v33 = vpop.f32.mrb[16].mxu0  ;;  %v1192_v35 = vpop.f32.mrb[16].mxu1  ;;  %v3185_v37 = vpack.c.bf16 %v1781_v34, %v1780_v28  ;;  %v3885_v28 = vld [vmem:[%s3979_s26 + $0x220] ss:$0 sps:$4 sm:$0xff]  }
 0x11b   : > { %v913_v36 = vadd.f32 %v4167_v63, %v912_v33  ;;  %v3510_v38 = vpop.f32.mrb[17].mxu0  ;;  %v1193_v40 = vadd.f32 %v4167_v63, %v1192_v35  ;;  %v3650_v41 = vpop.f32.mrb[17].mxu1 }
 0x11c   : > { %3334 = vst [vmem:[%s4188_s17 + $0x18] sm:$0xff] %v3010_v32   ;;  %v915_v43 = vpop.f32.mrb[18].mxu0  ;;  %v1195_v44 = vpop.f32.mrb[18].mxu1  ;;  %3369 = vst [vmem:[%s4188_s17 + $0x130] sm:$0xff] %v3185_v37  }
 0x11d   : > { %v1575_v45 = vmul.f32 0.2, %v913_v36  ;;  %v916_v46 = vadd.f32 %v4167_v63, %v915_v43  ;;  %v3511_v47 = vpop.f32.mrb[19].mxu0  ;;  %vm1508_vm2 = vcmp.ge.f32.partialorder %v1193_v40, 0.0  ;;  %v3651_v48 = vpop.f32.mrb[19].mxu1  ;;  %vm1438_vm3 = vcmp.ge.f32.partialorder %v913_v36, 0.0 }
 0x11e   : > { %v1645_v49 = vmul.f32 0.2, %v1193_v40  ;;  %v1196_v50 = vadd.f32 %v4167_v63, %v1195_v44 }
 0x11f   : > { %vm1439_vm4 = vcmp.ge.f32.partialorder %v916_v46, 0.0  ;;  %v1576_v51 = vmul.f32 0.2, %v916_v46  ;;  %3617 = vmatmul.mubr.bf16.gmra.mrb[124].mxu0 %v3880_v39  ;;  %3757 = vmatmul.mubr.bf16.gmra.mrb[124].mxu1 %v3881_v42  ;;  %v1712_v54 = vsel %vm1438_vm3, %v913_v36, %v1575_v45 }
 0x120   : > { %v1782_v52 = vsel %vm1508_vm2, %v1193_v40, %v1645_v49  ;;  %vm1509_vm5 = vcmp.ge.f32.partialorder %v1196_v50, 0.0  ;;  %v1646_v53 = vmul.f32 0.2, %v1196_v50  ;;  %3620 = vmatprep.mubr.msk.bf16.mxu0 %vm3913_vm0, %v3912_v1  ;;  %3760 = vmatprep.mubr.msk.bf16.mxu1 %vm3913_vm0, %v3912_v1  ;;  %v3886_v49 = vld [vmem:[%s3979_s26 + $0x110] sm:$0xff]  }
 0x121   : > { %v1713_v55 = vsel %vm1439_vm4, %v916_v46, %v1576_v51 }
 0x122   : > { %v3015_v56 = vpack.c.bf16 %v1713_v55, %v1712_v54  ;;  %v920_v57 = vpop.f32.mrb[20].mxu0  ;;  %v1783_v58 = vsel %vm1509_vm5, %v1196_v50, %v1646_v53  ;;  %v1200_v59 = vpop.f32.mrb[20].mxu1 }
 0x123   : > { %v921_v60 = vadd.f32 %v4167_v63, %v920_v57  ;;  %v3190_v61 = vpack.c.bf16 %v1783_v58, %v1782_v52  ;;  %v3514_v62 = vpop.f32.mrb[21].mxu0  ;;  %v1201_v2 = vadd.f32 %v4167_v63, %v1200_v59  ;;  %v3654_v3 = vpop.f32.mrb[21].mxu1 }
 0x124   : > { %3335 = vst [vmem:[%s4188_s17 + $0x20] sm:$0xff] %v3015_v56   ;;  %v923_v5 = vpop.f32.mrb[22].mxu0  ;;  %v1203_v6 = vpop.f32.mrb[22].mxu1 }
 0x125   : > { %v1577_v7 = vmul.f32 0.2, %v921_v60  ;;  %3370 = vst [vmem:[%s4188_s17 + $0x138] sm:$0xff] %v3190_v61   ;;  %v924_v8 = vadd.f32 %v4167_v63, %v923_v5  ;;  %v3515_v9 = vpop.f32.mrb[23].mxu0  ;;  %vm1510_vm6 = vcmp.ge.f32.partialorder %v1201_v2, 0.0  ;;  %v3655_v10 = vpop.f32.mrb[23].mxu1  ;;  %v1204_v12 = vadd.f32 %v4167_v63, %v1203_v6 }
 0x126   : > { %vm1440_vm7 = vcmp.ge.f32.partialorder %v921_v60, 0.0  ;;  %v1647_v11 = vmul.f32 0.2, %v1201_v2 }
 0x127   : > { %vm1441_vm8 = vcmp.ge.f32.partialorder %v924_v8, 0.0  ;;  %v1578_v13 = vmul.f32 0.2, %v924_v8  ;;  %3621 = vmatmul.mubr.bf16.gmra.mrb[128].mxu0 %v3882_v0  ;;  %3761 = vmatmul.mubr.bf16.gmra.mrb[128].mxu1 %v3883_v4  ;;  %vm1511_vm9 = vcmp.ge.f32.partialorder %v1204_v12, 0.0  ;;  %v1648_v15 = vmul.f32 0.2, %v1204_v12 }
 0x128   : > { %v1784_v14 = vsel %vm1510_vm6, %v1201_v2, %v1647_v11  ;;  %3624 = vmatprep.mubr.msk.bf16.mxu0 %vm3913_vm0, %v3912_v1  ;;  %3764 = vmatprep.mubr.msk.bf16.mxu1 %vm3913_vm0, %v3912_v1  ;;  %v1714_v16 = vsel %vm1440_vm7, %v921_v60, %v1577_v7 }
 0x129   : > { %v1715_v17 = vsel %vm1441_vm8, %v924_v8, %v1578_v13  ;;  %v1785_v20 = vsel %vm1511_vm9, %v1204_v12, %v1648_v15 }
 0x12a   : > { %v3020_v18 = vpack.c.bf16 %v1715_v17, %v1714_v16  ;;  %v928_v19 = vpop.f32.mrb[24].mxu0  ;;  %v1208_v21 = vpop.f32.mrb[24].mxu1  ;;  %v3195_v23 = vpack.c.bf16 %v1785_v20, %v1784_v14 }
 0x12b   : > { %v929_v22 = vadd.f32 %v4167_v63, %v928_v19  ;;  %v3518_v24 = vpop.f32.mrb[25].mxu0  ;;  %v1209_v26 = vadd.f32 %v4167_v63, %v1208_v21  ;;  %v3658_v27 = vpop.f32.mrb[25].mxu1 }
 0x12c   : > { %3336 = vst [vmem:[%s4188_s17 + $0x28] sm:$0xff] %v3020_v18   ;;  %v931_v29 = vpop.f32.mrb[26].mxu0  ;;  %v1211_v30 = vpop.f32.mrb[26].mxu1  ;;  %3371 = vst [vmem:[%s4188_s17 + $0x140] sm:$0xff] %v3195_v23  }
 0x12d   : > { %v1579_v31 = vmul.f32 0.2, %v929_v22  ;;  %v932_v32 = vadd.f32 %v4167_v63, %v931_v29  ;;  %v3519_v33 = vpop.f32.mrb[27].mxu0  ;;  %vm1512_vm10 = vcmp.ge.f32.partialorder %v1209_v26, 0.0  ;;  %v3659_v34 = vpop.f32.mrb[27].mxu1  ;;  %vm1442_vm11 = vcmp.ge.f32.partialorder %v929_v22, 0.0 }
 0x12e   : > { %v1649_v35 = vmul.f32 0.2, %v1209_v26  ;;  %v1212_v36 = vadd.f32 %v4167_v63, %v1211_v30 }
 0x12f   : > { %vm1443_vm12 = vcmp.ge.f32.partialorder %v932_v32, 0.0  ;;  %v1580_v37 = vmul.f32 0.2, %v932_v32  ;;  %3625 = vmatmul.mubr.bf16.gmra.mrb[132].mxu0 %v3884_v25  ;;  %3765 = vmatmul.mubr.bf16.gmra.mrb[132].mxu1 %v3885_v28  ;;  %v1716_v40 = vsel %vm1442_vm11, %v929_v22, %v1579_v31 }
 0x130   : > { %v1786_v38 = vsel %vm1512_vm10, %v1209_v26, %v1649_v35  ;;  %vm1513_vm13 = vcmp.ge.f32.partialorder %v1212_v36, 0.0  ;;  %v1650_v39 = vmul.f32 0.2, %v1212_v36  ;;  %3628 = vmatprep.mubr.msk.bf16.mxu0 %vm3913_vm0, %v3912_v1 }
 0x131   : > { %v1717_v41 = vsel %vm1443_vm12, %v932_v32, %v1580_v37 }
 0x132   : > { %v3025_v42 = vpack.c.bf16 %v1717_v41, %v1716_v40  ;;  %v936_v43 = vpop.f32.mrb[28].mxu0  ;;  %v1787_v44 = vsel %vm1513_vm13, %v1212_v36, %v1650_v39  ;;  %v1216_v45 = vpop.f32.mrb[28].mxu1 }
 0x133   : > { %v937_v46 = vadd.f32 %v4167_v63, %v936_v43  ;;  %v3200_v47 = vpack.c.bf16 %v1787_v44, %v1786_v38  ;;  %v3522_v48 = vpop.f32.mrb[29].mxu0  ;;  %v1217_v50 = vadd.f32 %v4167_v63, %v1216_v45  ;;  %v3662_v51 = vpop.f32.mrb[29].mxu1 }
 0x134   : > { %3337 = vst [vmem:[%s4188_s17 + $0x30] sm:$0xff] %v3025_v42   ;;  %v939_v52 = vpop.f32.mrb[30].mxu0  ;;  %v1219_v53 = vpop.f32.mrb[30].mxu1 }
 0x135   : > { %v1581_v54 = vmul.f32 0.2, %v937_v46  ;;  %3372 = vst [vmem:[%s4188_s17 + $0x148] sm:$0xff] %v3200_v47   ;;  %v940_v1 = vadd.f32 %v4167_v63, %v939_v52  ;;  %v3523_v55 = vpop.f32.mrb[31].mxu0  ;;  %vm1514_vm0 = vcmp.ge.f32.partialorder %v1217_v50, 0.0  ;;  %v3663_v56 = vpop.f32.mrb[31].mxu1  ;;  %v1220_v58 = vadd.f32 %v4167_v63, %v1219_v53 }
 0x136   : > { %vm1444_vm14 = vcmp.ge.f32.partialorder %v937_v46, 0.0  ;;  %v1651_v57 = vmul.f32 0.2, %v1217_v50 }
 0x137   : > { %vm1445_vm15 = vcmp.ge.f32.partialorder %v940_v1, 0.0  ;;  %v1582_v59 = vmul.f32 0.2, %v940_v1  ;;  %3629 = vmatmul.mubr.bf16.gmra.mrb[136].mxu0 %v3886_v49  ;;  %vm1515_vm1 = vcmp.ge.f32.partialorder %v1220_v58, 0.0  ;;  %v1652_v61 = vmul.f32 0.2, %v1220_v58 }
 0x138   : > { %v1788_v60 = vsel %vm1514_vm0, %v1217_v50, %v1651_v57  ;;  %v1718_v62 = vsel %vm1444_vm14, %v937_v46, %v1581_v54 }
 0x139   : > { %v1719_v0 = vsel %vm1445_vm15, %v940_v1, %v1582_v59  ;;  %v1789_v4 = vsel %vm1515_vm1, %v1220_v58, %v1652_v61 }
 0x13a   : > { %v3030_v2 = vpack.c.bf16 %v1719_v0, %v1718_v62  ;;  %v944_v3 = vpop.f32.mrb[32].mxu0  ;;  %v1224_v5 = vpop.f32.mrb[32].mxu1  ;;  %v3205_v7 = vpack.c.bf16 %v1789_v4, %v1788_v60 }
 0x13b   : > { %v945_v6 = vadd.f32 %v4167_v63, %v944_v3  ;;  %v3526_v8 = vpop.f32.mrb[33].mxu0  ;;  %v1225_v9 = vadd.f32 %v4167_v63, %v1224_v5  ;;  %v3666_v10 = vpop.f32.mrb[33].mxu1 }
 0x13c   : > { %3338 = vst [vmem:[%s4188_s17 + $0x38] sm:$0xff] %v3030_v2   ;;  %v947_v11 = vpop.f32.mrb[34].mxu0  ;;  %v1227_v12 = vpop.f32.mrb[34].mxu1  ;;  %3373 = vst [vmem:[%s4188_s17 + $0x150] sm:$0xff] %v3205_v7  }
 0x13d   : > { %v1583_v13 = vmul.f32 0.2, %v945_v6  ;;  %v948_v14 = vadd.f32 %v4167_v63, %v947_v11  ;;  %v3527_v15 = vpop.f32.mrb[35].mxu0  ;;  %vm1516_vm2 = vcmp.ge.f32.partialorder %v1225_v9, 0.0  ;;  %v3667_v16 = vpop.f32.mrb[35].mxu1  ;;  %vm1446_vm3 = vcmp.ge.f32.partialorder %v945_v6, 0.0 }
 0x13e   : > { %v1653_v17 = vmul.f32 0.2, %v1225_v9  ;;  %v1228_v18 = vadd.f32 %v4167_v63, %v1227_v12 }
 0x13f   : > { %vm1447_vm4 = vcmp.ge.f32.partialorder %v948_v14, 0.0  ;;  %v1584_v19 = vmul.f32 0.2, %v948_v14  ;;  %v1720_v22 = vsel %vm1446_vm3, %v945_v6, %v1583_v13 }
 0x140   : > { %v1790_v20 = vsel %vm1516_vm2, %v1225_v9, %v1653_v17  ;;  %vm1517_vm5 = vcmp.ge.f32.partialorder %v1228_v18, 0.0  ;;  %v1654_v21 = vmul.f32 0.2, %v1228_v18 }
 0x141   : > { %v1721_v23 = vsel %vm1447_vm4, %v948_v14, %v1584_v19 }
 0x142   : > { %v3035_v24 = vpack.c.bf16 %v1721_v23, %v1720_v22  ;;  %v952_v25 = vpop.f32.mrb[36].mxu0  ;;  %v1791_v26 = vsel %vm1517_vm5, %v1228_v18, %v1654_v21  ;;  %v1232_v27 = vpop.f32.mrb[36].mxu1 }
 0x143   : > { %v953_v28 = vadd.f32 %v4167_v63, %v952_v25  ;;  %v3210_v29 = vpack.c.bf16 %v1791_v26, %v1790_v20  ;;  %v3530_v30 = vpop.f32.mrb[37].mxu0  ;;  %v1233_v31 = vadd.f32 %v4167_v63, %v1232_v27  ;;  %v3670_v32 = vpop.f32.mrb[37].mxu1 }
 0x144   : > { %3339 = vst [vmem:[%s4188_s17 + $0x40] sm:$0xff] %v3035_v24   ;;  %v955_v33 = vpop.f32.mrb[38].mxu0  ;;  %v1235_v34 = vpop.f32.mrb[38].mxu1 }
 0x145   : > { %v1585_v35 = vmul.f32 0.2, %v953_v28  ;;  %3374 = vst [vmem:[%s4188_s17 + $0x158] sm:$0xff] %v3210_v29   ;;  %v956_v36 = vadd.f32 %v4167_v63, %v955_v33  ;;  %v3531_v37 = vpop.f32.mrb[39].mxu0  ;;  %vm1518_vm6 = vcmp.ge.f32.partialorder %v1233_v31, 0.0  ;;  %v3671_v38 = vpop.f32.mrb[39].mxu1  ;;  %v1236_v40 = vadd.f32 %v4167_v63, %v1235_v34 }
 0x146   : > { %vm1448_vm7 = vcmp.ge.f32.partialorder %v953_v28, 0.0  ;;  %v1655_v39 = vmul.f32 0.2, %v1233_v31 }
 0x147   : > { %vm1449_vm8 = vcmp.ge.f32.partialorder %v956_v36, 0.0  ;;  %v1586_v41 = vmul.f32 0.2, %v956_v36  ;;  %vm1519_vm9 = vcmp.ge.f32.partialorder %v1236_v40, 0.0  ;;  %v1656_v43 = vmul.f32 0.2, %v1236_v40 }
 0x148   : > { %v1792_v42 = vsel %vm1518_vm6, %v1233_v31, %v1655_v39  ;;  %v1722_v44 = vsel %vm1448_vm7, %v953_v28, %v1585_v35 }
 0x149   : > { %v1723_v45 = vsel %vm1449_vm8, %v956_v36, %v1586_v41  ;;  %v1793_v48 = vsel %vm1519_vm9, %v1236_v40, %v1656_v43 }
 0x14a   : > { %v3040_v46 = vpack.c.bf16 %v1723_v45, %v1722_v44  ;;  %v960_v47 = vpop.f32.mrb[40].mxu0  ;;  %v1240_v49 = vpop.f32.mrb[40].mxu1  ;;  %v3215_v51 = vpack.c.bf16 %v1793_v48, %v1792_v42 }
 0x14b   : > { %v961_v50 = vadd.f32 %v4167_v63, %v960_v47  ;;  %v3534_v52 = vpop.f32.mrb[41].mxu0  ;;  %v1241_v53 = vadd.f32 %v4167_v63, %v1240_v49  ;;  %v3674_v54 = vpop.f32.mrb[41].mxu1 }
 0x14c   : > { %3340 = vst [vmem:[%s4188_s17 + $0x48] sm:$0xff] %v3040_v46   ;;  %v963_v1 = vpop.f32.mrb[42].mxu0  ;;  %v1243_v55 = vpop.f32.mrb[42].mxu1  ;;  %3375 = vst [vmem:[%s4188_s17 + $0x160] sm:$0xff] %v3215_v51  }
 0x14d   : > { %v1587_v56 = vmul.f32 0.2, %v961_v50  ;;  %v964_v57 = vadd.f32 %v4167_v63, %v963_v1  ;;  %v3535_v58 = vpop.f32.mrb[43].mxu0  ;;  %vm1520_vm10 = vcmp.ge.f32.partialorder %v1241_v53, 0.0  ;;  %v3675_v59 = vpop.f32.mrb[43].mxu1  ;;  %vm1450_vm11 = vcmp.ge.f32.partialorder %v961_v50, 0.0 }
 0x14e   : > { %v1657_v60 = vmul.f32 0.2, %v1241_v53  ;;  %v1244_v61 = vadd.f32 %v4167_v63, %v1243_v55 }
 0x14f   : > { %vm1451_vm12 = vcmp.ge.f32.partialorder %v964_v57, 0.0  ;;  %v1588_v62 = vmul.f32 0.2, %v964_v57  ;;  %v1724_v3 = vsel %vm1450_vm11, %v961_v50, %v1587_v56 }
 0x150   : > { %v1794_v0 = vsel %vm1520_vm10, %v1241_v53, %v1657_v60  ;;  %vm1521_vm13 = vcmp.ge.f32.partialorder %v1244_v61, 0.0  ;;  %v1658_v2 = vmul.f32 0.2, %v1244_v61 }
 0x151   : > { %v1725_v4 = vsel %vm1451_vm12, %v964_v57, %v1588_v62 }
 0x152   : > { %v3045_v5 = vpack.c.bf16 %v1725_v4, %v1724_v3  ;;  %v968_v6 = vpop.f32.mrb[44].mxu0  ;;  %v1795_v7 = vsel %vm1521_vm13, %v1244_v61, %v1658_v2  ;;  %v1248_v8 = vpop.f32.mrb[44].mxu1 }
 0x153   : > { %v969_v9 = vadd.f32 %v4167_v63, %v968_v6  ;;  %v3220_v10 = vpack.c.bf16 %v1795_v7, %v1794_v0  ;;  %v3538_v11 = vpop.f32.mrb[45].mxu0  ;;  %v1249_v12 = vadd.f32 %v4167_v63, %v1248_v8  ;;  %v3678_v13 = vpop.f32.mrb[45].mxu1 }
 0x154   : > { %3341 = vst [vmem:[%s4188_s17 + $0x50] sm:$0xff] %v3045_v5   ;;  %v971_v14 = vpop.f32.mrb[46].mxu0  ;;  %v1251_v15 = vpop.f32.mrb[46].mxu1 }
 0x155   : > { %v1589_v16 = vmul.f32 0.2, %v969_v9  ;;  %3376 = vst [vmem:[%s4188_s17 + $0x168] sm:$0xff] %v3220_v10   ;;  %v972_v17 = vadd.f32 %v4167_v63, %v971_v14  ;;  %v3539_v18 = vpop.f32.mrb[47].mxu0  ;;  %vm1522_vm0 = vcmp.ge.f32.partialorder %v1249_v12, 0.0  ;;  %v3679_v19 = vpop.f32.mrb[47].mxu1  ;;  %v1252_v21 = vadd.f32 %v4167_v63, %v1251_v15 }
 0x156   : > { %vm1452_vm14 = vcmp.ge.f32.partialorder %v969_v9, 0.0  ;;  %v1659_v20 = vmul.f32 0.2, %v1249_v12 }
 0x157   : > { %vm1453_vm15 = vcmp.ge.f32.partialorder %v972_v17, 0.0  ;;  %v1590_v22 = vmul.f32 0.2, %v972_v17  ;;  %vm1523_vm1 = vcmp.ge.f32.partialorder %v1252_v21, 0.0  ;;  %v1660_v24 = vmul.f32 0.2, %v1252_v21 }
 0x158   : > { %v1796_v23 = vsel %vm1522_vm0, %v1249_v12, %v1659_v20  ;;  %v1726_v25 = vsel %vm1452_vm14, %v969_v9, %v1589_v16 }
 0x159   : > { %v1727_v26 = vsel %vm1453_vm15, %v972_v17, %v1590_v22  ;;  %v1797_v29 = vsel %vm1523_vm1, %v1252_v21, %v1660_v24 }
 0x15a   : > { %v3050_v27 = vpack.c.bf16 %v1727_v26, %v1726_v25  ;;  %v976_v28 = vpop.f32.mrb[48].mxu0  ;;  %v1256_v30 = vpop.f32.mrb[48].mxu1  ;;  %v3225_v32 = vpack.c.bf16 %v1797_v29, %v1796_v23 }
 0x15b   : > { %v977_v31 = vadd.f32 %v4167_v63, %v976_v28  ;;  %v3542_v33 = vpop.f32.mrb[49].mxu0  ;;  %v1257_v34 = vadd.f32 %v4167_v63, %v1256_v30  ;;  %v3682_v35 = vpop.f32.mrb[49].mxu1 }
 0x15c   : > { %3342 = vst [vmem:[%s4188_s17 + $0x58] sm:$0xff] %v3050_v27   ;;  %v979_v36 = vpop.f32.mrb[50].mxu0  ;;  %v1259_v37 = vpop.f32.mrb[50].mxu1  ;;  %3377 = vst [vmem:[%s4188_s17 + $0x170] sm:$0xff] %v3225_v32  }
 0x15d   : > { %v1591_v38 = vmul.f32 0.2, %v977_v31  ;;  %v980_v39 = vadd.f32 %v4167_v63, %v979_v36  ;;  %v3543_v40 = vpop.f32.mrb[51].mxu0  ;;  %vm1524_vm2 = vcmp.ge.f32.partialorder %v1257_v34, 0.0  ;;  %v3683_v41 = vpop.f32.mrb[51].mxu1  ;;  %vm1454_vm3 = vcmp.ge.f32.partialorder %v977_v31, 0.0 }
 0x15e   : > { %v1661_v42 = vmul.f32 0.2, %v1257_v34  ;;  %v1260_v43 = vadd.f32 %v4167_v63, %v1259_v37 }
 0x15f   : > { %vm1455_vm4 = vcmp.ge.f32.partialorder %v980_v39, 0.0  ;;  %v1592_v44 = vmul.f32 0.2, %v980_v39  ;;  %v1728_v47 = vsel %vm1454_vm3, %v977_v31, %v1591_v38 }
 0x160   : > { %v1798_v45 = vsel %vm1524_vm2, %v1257_v34, %v1661_v42  ;;  %vm1525_vm5 = vcmp.ge.f32.partialorder %v1260_v43, 0.0  ;;  %v1662_v46 = vmul.f32 0.2, %v1260_v43 }
 0x161   : > { %v1729_v48 = vsel %vm1455_vm4, %v980_v39, %v1592_v44 }
 0x162   : > { %v3055_v49 = vpack.c.bf16 %v1729_v48, %v1728_v47  ;;  %v984_v50 = vpop.f32.mrb[52].mxu0  ;;  %v1799_v51 = vsel %vm1525_vm5, %v1260_v43, %v1662_v46  ;;  %v1264_v52 = vpop.f32.mrb[52].mxu1 }
 0x163   : > { %v985_v53 = vadd.f32 %v4167_v63, %v984_v50  ;;  %v3230_v54 = vpack.c.bf16 %v1799_v51, %v1798_v45  ;;  %v3546_v1 = vpop.f32.mrb[53].mxu0  ;;  %v1265_v55 = vadd.f32 %v4167_v63, %v1264_v52  ;;  %v3686_v56 = vpop.f32.mrb[53].mxu1 }
 0x164   : > { %3343 = vst [vmem:[%s4188_s17 + $0x60] sm:$0xff] %v3055_v49   ;;  %v987_v57 = vpop.f32.mrb[54].mxu0  ;;  %v1267_v58 = vpop.f32.mrb[54].mxu1 }
 0x165   : > { %v1593_v59 = vmul.f32 0.2, %v985_v53  ;;  %3378 = vst [vmem:[%s4188_s17 + $0x178] sm:$0xff] %v3230_v54   ;;  %v988_v60 = vadd.f32 %v4167_v63, %v987_v57  ;;  %v3547_v61 = vpop.f32.mrb[55].mxu0  ;;  %vm1526_vm6 = vcmp.ge.f32.partialorder %v1265_v55, 0.0  ;;  %v3687_v62 = vpop.f32.mrb[55].mxu1  ;;  %v1268_v2 = vadd.f32 %v4167_v63, %v1267_v58 }
 0x166   : > { %vm1456_vm7 = vcmp.ge.f32.partialorder %v985_v53, 0.0  ;;  %v1663_v0 = vmul.f32 0.2, %v1265_v55 }
 0x167   : > { %vm1457_vm8 = vcmp.ge.f32.partialorder %v988_v60, 0.0  ;;  %v1594_v3 = vmul.f32 0.2, %v988_v60  ;;  %vm1527_vm9 = vcmp.ge.f32.partialorder %v1268_v2, 0.0  ;;  %v1664_v5 = vmul.f32 0.2, %v1268_v2 }
 0x168   : > { %v1800_v4 = vsel %vm1526_vm6, %v1265_v55, %v1663_v0  ;;  %v1730_v6 = vsel %vm1456_vm7, %v985_v53, %v1593_v59 }
 0x169   : > { %v1731_v7 = vsel %vm1457_vm8, %v988_v60, %v1594_v3  ;;  %v1801_v10 = vsel %vm1527_vm9, %v1268_v2, %v1664_v5 }
 0x16a   : > { %v3060_v8 = vpack.c.bf16 %v1731_v7, %v1730_v6  ;;  %v992_v9 = vpop.f32.mrb[56].mxu0  ;;  %v1272_v11 = vpop.f32.mrb[56].mxu1  ;;  %v3235_v13 = vpack.c.bf16 %v1801_v10, %v1800_v4 }
 0x16b   : > { %v993_v12 = vadd.f32 %v4167_v63, %v992_v9  ;;  %v3550_v14 = vpop.f32.mrb[57].mxu0  ;;  %v1273_v15 = vadd.f32 %v4167_v63, %v1272_v11  ;;  %v3690_v16 = vpop.f32.mrb[57].mxu1 }
 0x16c   : > { %3344 = vst [vmem:[%s4188_s17 + $0x68] sm:$0xff] %v3060_v8   ;;  %v995_v17 = vpop.f32.mrb[58].mxu0  ;;  %v1275_v18 = vpop.f32.mrb[58].mxu1  ;;  %3379 = vst [vmem:[%s4188_s17 + $0x180] sm:$0xff] %v3235_v13  }
 0x16d   : > { %v1595_v19 = vmul.f32 0.2, %v993_v12  ;;  %v996_v20 = vadd.f32 %v4167_v63, %v995_v17  ;;  %v3551_v21 = vpop.f32.mrb[59].mxu0  ;;  %vm1528_vm10 = vcmp.ge.f32.partialorder %v1273_v15, 0.0  ;;  %v3691_v22 = vpop.f32.mrb[59].mxu1  ;;  %vm1458_vm11 = vcmp.ge.f32.partialorder %v993_v12, 0.0 }
 0x16e   : > { %v1665_v23 = vmul.f32 0.2, %v1273_v15  ;;  %v1276_v24 = vadd.f32 %v4167_v63, %v1275_v18 }
 0x16f   : > { %vm1459_vm12 = vcmp.ge.f32.partialorder %v996_v20, 0.0  ;;  %v1596_v25 = vmul.f32 0.2, %v996_v20  ;;  %v1732_v28 = vsel %vm1458_vm11, %v993_v12, %v1595_v19 }
 0x170   : > { %v1802_v26 = vsel %vm1528_vm10, %v1273_v15, %v1665_v23  ;;  %vm1529_vm13 = vcmp.ge.f32.partialorder %v1276_v24, 0.0  ;;  %v1666_v27 = vmul.f32 0.2, %v1276_v24  ;;  %v4324_v15 = vld [vmem:[%s4443_s2] ss:$0 sm:$0xff] }
 0x171   : > { %v1733_v29 = vsel %vm1459_vm12, %v996_v20, %v1596_v25 }
 0x172   : > { %v3065_v30 = vpack.c.bf16 %v1733_v29, %v1732_v28  ;;  %v1000_v31 = vpop.f32.mrb[60].mxu0  ;;  %v1803_v32 = vsel %vm1529_vm13, %v1276_v24, %v1666_v27  ;;  %v1280_v33 = vpop.f32.mrb[60].mxu1 }
 0x173   : > { %v1001_v34 = vadd.f32 %v4167_v63, %v1000_v31  ;;  %v3240_v35 = vpack.c.bf16 %v1803_v32, %v1802_v26  ;;  %v3554_v36 = vpop.f32.mrb[61].mxu0  ;;  %v1281_v37 = vadd.f32 %v4167_v63, %v1280_v33  ;;  %v3694_v38 = vpop.f32.mrb[61].mxu1 }
 0x174   : > { %3345 = vst [vmem:[%s4188_s17 + $0x70] sm:$0xff] %v3065_v30   ;;  %v1003_v39 = vpop.f32.mrb[62].mxu0  ;;  %v1283_v40 = vpop.f32.mrb[62].mxu1 }
 0x175   : > { %v1597_v41 = vmul.f32 0.2, %v1001_v34  ;;  %3380 = vst [vmem:[%s4188_s17 + $0x188] sm:$0xff] %v3240_v35   ;;  %v1004_v42 = vadd.f32 %v4167_v63, %v1003_v39  ;;  %v3555_v43 = vpop.f32.mrb[63].mxu0  ;;  %vm1530_vm0 = vcmp.ge.f32.partialorder %v1281_v37, 0.0  ;;  %v3695_v44 = vpop.f32.mrb[63].mxu1  ;;  %v1284_v46 = vadd.f32 %v4167_v63, %v1283_v40 }
 0x176   : > { %vm1460_vm14 = vcmp.ge.f32.partialorder %v1001_v34, 0.0  ;;  %v1667_v45 = vmul.f32 0.2, %v1281_v37 }
 0x177   : > { %vm1461_vm15 = vcmp.ge.f32.partialorder %v1004_v42, 0.0  ;;  %v1598_v47 = vmul.f32 0.2, %v1004_v42  ;;  %vm1531_vm1 = vcmp.ge.f32.partialorder %v1284_v46, 0.0  ;;  %v1668_v49 = vmul.f32 0.2, %v1284_v46 }
 0x178   : > { %v1804_v48 = vsel %vm1530_vm0, %v1281_v37, %v1667_v45  ;;  %v1734_v50 = vsel %vm1460_vm14, %v1001_v34, %v1597_v41 }
 0x179   : > { %v1735_v51 = vsel %vm1461_vm15, %v1004_v42, %v1598_v47  ;;  %v1805_v54 = vsel %vm1531_vm1, %v1284_v46, %v1668_v49 }
 0x17a   : > { %v3070_v52 = vpack.c.bf16 %v1735_v51, %v1734_v50  ;;  %v1008_v53 = vpop.f32.mrb[64].mxu0  ;;  %v1288_v1 = vpop.f32.mrb[64].mxu1  ;;  %v3245_v56 = vpack.c.bf16 %v1805_v54, %v1804_v48 }
 0x17b   : > { %v1009_v55 = vadd.f32 %v4167_v63, %v1008_v53  ;;  %v3558_v57 = vpop.f32.mrb[65].mxu0  ;;  %v1289_v58 = vadd.f32 %v4167_v63, %v1288_v1  ;;  %v3698_v59 = vpop.f32.mrb[65].mxu1 }
 0x17c   : > { %3346 = vst [vmem:[%s4188_s17 + $0x78] sm:$0xff] %v3070_v52   ;;  %v1011_v60 = vpop.f32.mrb[66].mxu0  ;;  %v1291_v61 = vpop.f32.mrb[66].mxu1  ;;  %3381 = vst [vmem:[%s4188_s17 + $0x190] sm:$0xff] %v3245_v56  }
 0x17d   : > { %v1599_v62 = vmul.f32 0.2, %v1009_v55  ;;  %v1012_v0 = vadd.f32 %v4167_v63, %v1011_v60  ;;  %v3559_v2 = vpop.f32.mrb[67].mxu0  ;;  %vm1532_vm2 = vcmp.ge.f32.partialorder %v1289_v58, 0.0  ;;  %v3699_v3 = vpop.f32.mrb[67].mxu1  ;;  %vm1462_vm3 = vcmp.ge.f32.partialorder %v1009_v55, 0.0 }
 0x17e   : > { %v1669_v4 = vmul.f32 0.2, %v1289_v58  ;;  %v1292_v5 = vadd.f32 %v4167_v63, %v1291_v61 }
 0x17f   : > { %vm1463_vm4 = vcmp.ge.f32.partialorder %v1012_v0, 0.0  ;;  %v1600_v6 = vmul.f32 0.2, %v1012_v0  ;;  %v1736_v9 = vsel %vm1462_vm3, %v1009_v55, %v1599_v62 }
 0x180   : > { %v1806_v7 = vsel %vm1532_vm2, %v1289_v58, %v1669_v4  ;;  %vm1533_vm5 = vcmp.ge.f32.partialorder %v1292_v5, 0.0  ;;  %v1670_v8 = vmul.f32 0.2, %v1292_v5 }
 0x181   : > { %v1737_v10 = vsel %vm1463_vm4, %v1012_v0, %v1600_v6 }
 0x182   : > { %v3075_v11 = vpack.c.bf16 %v1737_v10, %v1736_v9  ;;  %v1016_v12 = vpop.f32.mrb[68].mxu0  ;;  %v1807_v13 = vsel %vm1533_vm5, %v1292_v5, %v1670_v8  ;;  %v1296_v14 = vpop.f32.mrb[68].mxu1 }
 0x183   : > { %v1017_v63 = vadd.f32 %v4324_v15, %v1016_v12  ;;  %v3250_v16 = vpack.c.bf16 %v1807_v13, %v1806_v7  ;;  %v3562_v17 = vpop.f32.mrb[69].mxu0  ;;  %v1297_v18 = vadd.f32 %v4324_v15, %v1296_v14  ;;  %v3702_v19 = vpop.f32.mrb[69].mxu1 }
 0x184   : > { %3347 = vst [vmem:[%s4188_s17 + $0x80] sm:$0xff] %v3075_v11   ;;  %v1019_v20 = vpop.f32.mrb[70].mxu0  ;;  %v1299_v21 = vpop.f32.mrb[70].mxu1 }
 0x185   : > { %v1601_v22 = vmul.f32 0.2, %v1017_v63  ;;  %3382 = vst [vmem:[%s4188_s17 + $0x198] sm:$0xff] %v3250_v16   ;;  %v1020_v23 = vadd.f32 %v4324_v15, %v1019_v20  ;;  %v3563_v24 = vpop.f32.mrb[71].mxu0  ;;  %vm1534_vm6 = vcmp.ge.f32.partialorder %v1297_v18, 0.0  ;;  %v3703_v25 = vpop.f32.mrb[71].mxu1  ;;  %v1300_v27 = vadd.f32 %v4324_v15, %v1299_v21 }
 0x186   : > { %vm1464_vm7 = vcmp.ge.f32.partialorder %v1017_v63, 0.0  ;;  %v1671_v26 = vmul.f32 0.2, %v1297_v18 }
 0x187   : > { %vm1465_vm8 = vcmp.ge.f32.partialorder %v1020_v23, 0.0  ;;  %v1602_v28 = vmul.f32 0.2, %v1020_v23  ;;  %vm1535_vm9 = vcmp.ge.f32.partialorder %v1300_v27, 0.0  ;;  %v1672_v30 = vmul.f32 0.2, %v1300_v27 }
 0x188   : > { %v1808_v29 = vsel %vm1534_vm6, %v1297_v18, %v1671_v26  ;;  %v1738_v31 = vsel %vm1464_vm7, %v1017_v63, %v1601_v22 }
 0x189   : > { %v1739_v32 = vsel %vm1465_vm8, %v1020_v23, %v1602_v28  ;;  %v1809_v35 = vsel %vm1535_vm9, %v1300_v27, %v1672_v30 }
 0x18a   : > { %v3080_v33 = vpack.c.bf16 %v1739_v32, %v1738_v31  ;;  %v1024_v34 = vpop.f32.mrb[72].mxu0  ;;  %v1304_v36 = vpop.f32.mrb[72].mxu1  ;;  %v3255_v38 = vpack.c.bf16 %v1809_v35, %v1808_v29 }
 0x18b   : > { %v1025_v37 = vadd.f32 %v4324_v15, %v1024_v34  ;;  %v3566_v39 = vpop.f32.mrb[73].mxu0  ;;  %v1305_v40 = vadd.f32 %v4324_v15, %v1304_v36  ;;  %v3706_v41 = vpop.f32.mrb[73].mxu1 }
 0x18c   : > { %3348 = vst [vmem:[%s4188_s17 + $0x88] sm:$0xff] %v3080_v33   ;;  %v1027_v42 = vpop.f32.mrb[74].mxu0  ;;  %v1307_v43 = vpop.f32.mrb[74].mxu1  ;;  %3383 = vst [vmem:[%s4188_s17 + $0x1a0] sm:$0xff] %v3255_v38  }
 0x18d   : > { %v1603_v44 = vmul.f32 0.2, %v1025_v37  ;;  %v1028_v45 = vadd.f32 %v4324_v15, %v1027_v42  ;;  %v3567_v46 = vpop.f32.mrb[75].mxu0  ;;  %vm1536_vm10 = vcmp.ge.f32.partialorder %v1305_v40, 0.0  ;;  %v3707_v47 = vpop.f32.mrb[75].mxu1  ;;  %vm1466_vm11 = vcmp.ge.f32.partialorder %v1025_v37, 0.0 }
 0x18e   : > { %v1673_v48 = vmul.f32 0.2, %v1305_v40  ;;  %v1308_v49 = vadd.f32 %v4324_v15, %v1307_v43 }
 0x18f   : > { %vm1467_vm12 = vcmp.ge.f32.partialorder %v1028_v45, 0.0  ;;  %v1604_v50 = vmul.f32 0.2, %v1028_v45  ;;  %v1740_v53 = vsel %vm1466_vm11, %v1025_v37, %v1603_v44 }
 0x190   : > { %v1810_v51 = vsel %vm1536_vm10, %v1305_v40, %v1673_v48  ;;  %vm1537_vm13 = vcmp.ge.f32.partialorder %v1308_v49, 0.0  ;;  %v1674_v52 = vmul.f32 0.2, %v1308_v49 }
 0x191   : > { %v1741_v54 = vsel %vm1467_vm12, %v1028_v45, %v1604_v50 }
 0x192   : > { %v3085_v1 = vpack.c.bf16 %v1741_v54, %v1740_v53  ;;  %v1032_v55 = vpop.f32.mrb[76].mxu0  ;;  %v1811_v56 = vsel %vm1537_vm13, %v1308_v49, %v1674_v52  ;;  %v1312_v57 = vpop.f32.mrb[76].mxu1 }
 0x193   : > { %v1033_v58 = vadd.f32 %v4324_v15, %v1032_v55  ;;  %v3260_v59 = vpack.c.bf16 %v1811_v56, %v1810_v51  ;;  %v3570_v60 = vpop.f32.mrb[77].mxu0  ;;  %v1313_v61 = vadd.f32 %v4324_v15, %v1312_v57  ;;  %v3710_v62 = vpop.f32.mrb[77].mxu1 }
 0x194   : > { %3349 = vst [vmem:[%s4188_s17 + $0x90] sm:$0xff] %v3085_v1   ;;  %v1035_v0 = vpop.f32.mrb[78].mxu0  ;;  %v1315_v2 = vpop.f32.mrb[78].mxu1 }
 0x195   : > { %v1605_v3 = vmul.f32 0.2, %v1033_v58  ;;  %3384 = vst [vmem:[%s4188_s17 + $0x1a8] sm:$0xff] %v3260_v59   ;;  %v1036_v4 = vadd.f32 %v4324_v15, %v1035_v0  ;;  %v3571_v5 = vpop.f32.mrb[79].mxu0  ;;  %vm1538_vm0 = vcmp.ge.f32.partialorder %v1313_v61, 0.0  ;;  %v3711_v6 = vpop.f32.mrb[79].mxu1  ;;  %v1316_v8 = vadd.f32 %v4324_v15, %v1315_v2 }
 0x196   : > { %vm1468_vm14 = vcmp.ge.f32.partialorder %v1033_v58, 0.0  ;;  %v1675_v7 = vmul.f32 0.2, %v1313_v61 }
 0x197   : > { %vm1469_vm15 = vcmp.ge.f32.partialorder %v1036_v4, 0.0  ;;  %v1606_v9 = vmul.f32 0.2, %v1036_v4  ;;  %vm1539_vm1 = vcmp.ge.f32.partialorder %v1316_v8, 0.0  ;;  %v1676_v11 = vmul.f32 0.2, %v1316_v8 }
 0x198   : > { %v1812_v10 = vsel %vm1538_vm0, %v1313_v61, %v1675_v7  ;;  %v1742_v12 = vsel %vm1468_vm14, %v1033_v58, %v1605_v3 }
 0x199   : > { %v1743_v13 = vsel %vm1469_vm15, %v1036_v4, %v1606_v9  ;;  %v1813_v16 = vsel %vm1539_vm1, %v1316_v8, %v1676_v11 }
 0x19a   : > { %v3090_v14 = vpack.c.bf16 %v1743_v13, %v1742_v12  ;;  %v1040_v63 = vpop.f32.mrb[80].mxu0  ;;  %v1320_v17 = vpop.f32.mrb[80].mxu1  ;;  %v3265_v19 = vpack.c.bf16 %v1813_v16, %v1812_v10 }
 0x19b   : > { %v1041_v18 = vadd.f32 %v4324_v15, %v1040_v63  ;;  %v3574_v20 = vpop.f32.mrb[81].mxu0  ;;  %v1321_v21 = vadd.f32 %v4324_v15, %v1320_v17  ;;  %v3714_v22 = vpop.f32.mrb[81].mxu1 }
 0x19c   : > { %3350 = vst [vmem:[%s4188_s17 + $0x98] sm:$0xff] %v3090_v14   ;;  %v1043_v23 = vpop.f32.mrb[82].mxu0  ;;  %v1323_v24 = vpop.f32.mrb[82].mxu1  ;;  %3385 = vst [vmem:[%s4188_s17 + $0x1b0] sm:$0xff] %v3265_v19  }
 0x19d   : > { %v1607_v25 = vmul.f32 0.2, %v1041_v18  ;;  %v1044_v26 = vadd.f32 %v4324_v15, %v1043_v23  ;;  %v3575_v27 = vpop.f32.mrb[83].mxu0  ;;  %vm1540_vm2 = vcmp.ge.f32.partialorder %v1321_v21, 0.0  ;;  %v3715_v28 = vpop.f32.mrb[83].mxu1  ;;  %vm1470_vm3 = vcmp.ge.f32.partialorder %v1041_v18, 0.0 }
 0x19e   : > { %v1677_v29 = vmul.f32 0.2, %v1321_v21  ;;  %v1324_v30 = vadd.f32 %v4324_v15, %v1323_v24 }
 0x19f   : > { %vm1471_vm4 = vcmp.ge.f32.partialorder %v1044_v26, 0.0  ;;  %v1608_v31 = vmul.f32 0.2, %v1044_v26  ;;  %v1744_v34 = vsel %vm1470_vm3, %v1041_v18, %v1607_v25 }
 0x1a0   : > { %v1814_v32 = vsel %vm1540_vm2, %v1321_v21, %v1677_v29  ;;  %vm1541_vm5 = vcmp.ge.f32.partialorder %v1324_v30, 0.0  ;;  %v1678_v33 = vmul.f32 0.2, %v1324_v30 }
 0x1a1   : > { %v1745_v35 = vsel %vm1471_vm4, %v1044_v26, %v1608_v31 }
 0x1a2   : > { %v3095_v36 = vpack.c.bf16 %v1745_v35, %v1744_v34  ;;  %v1048_v37 = vpop.f32.mrb[84].mxu0  ;;  %v1815_v38 = vsel %vm1541_vm5, %v1324_v30, %v1678_v33  ;;  %v1328_v39 = vpop.f32.mrb[84].mxu1 }
 0x1a3   : > { %v1049_v40 = vadd.f32 %v4324_v15, %v1048_v37  ;;  %v3270_v41 = vpack.c.bf16 %v1815_v38, %v1814_v32  ;;  %v3578_v42 = vpop.f32.mrb[85].mxu0  ;;  %v1329_v43 = vadd.f32 %v4324_v15, %v1328_v39  ;;  %v3718_v44 = vpop.f32.mrb[85].mxu1 }
 0x1a4   : > { %3351 = vst [vmem:[%s4188_s17 + $0xa0] sm:$0xff] %v3095_v36   ;;  %v1051_v45 = vpop.f32.mrb[86].mxu0  ;;  %v1331_v46 = vpop.f32.mrb[86].mxu1 }
 0x1a5   : > { %v1609_v47 = vmul.f32 0.2, %v1049_v40  ;;  %3386 = vst [vmem:[%s4188_s17 + $0x1b8] sm:$0xff] %v3270_v41   ;;  %v1052_v48 = vadd.f32 %v4324_v15, %v1051_v45  ;;  %v3579_v49 = vpop.f32.mrb[87].mxu0  ;;  %vm1542_vm6 = vcmp.ge.f32.partialorder %v1329_v43, 0.0  ;;  %v3719_v50 = vpop.f32.mrb[87].mxu1  ;;  %v1332_v52 = vadd.f32 %v4324_v15, %v1331_v46 }
 0x1a6   : > { %vm1472_vm7 = vcmp.ge.f32.partialorder %v1049_v40, 0.0  ;;  %v1679_v51 = vmul.f32 0.2, %v1329_v43 }
 0x1a7   : > { %vm1473_vm8 = vcmp.ge.f32.partialorder %v1052_v48, 0.0  ;;  %v1610_v53 = vmul.f32 0.2, %v1052_v48  ;;  %vm1543_vm9 = vcmp.ge.f32.partialorder %v1332_v52, 0.0  ;;  %v1680_v1 = vmul.f32 0.2, %v1332_v52 }
 0x1a8   : > { %v1816_v54 = vsel %vm1542_vm6, %v1329_v43, %v1679_v51  ;;  %v1746_v55 = vsel %vm1472_vm7, %v1049_v40, %v1609_v47 }
 0x1a9   : > { %v1747_v56 = vsel %vm1473_vm8, %v1052_v48, %v1610_v53  ;;  %v1817_v59 = vsel %vm1543_vm9, %v1332_v52, %v1680_v1 }
 0x1aa   : > { %v3100_v57 = vpack.c.bf16 %v1747_v56, %v1746_v55  ;;  %v1056_v58 = vpop.f32.mrb[88].mxu0  ;;  %v1336_v60 = vpop.f32.mrb[88].mxu1  ;;  %v3275_v62 = vpack.c.bf16 %v1817_v59, %v1816_v54 }
 0x1ab   : > { %v1057_v61 = vadd.f32 %v4324_v15, %v1056_v58  ;;  %v3582_v0 = vpop.f32.mrb[89].mxu0  ;;  %v1337_v2 = vadd.f32 %v4324_v15, %v1336_v60  ;;  %v3722_v3 = vpop.f32.mrb[89].mxu1 }
 0x1ac   : > { %3352 = vst [vmem:[%s4188_s17 + $0xa8] sm:$0xff] %v3100_v57   ;;  %v1059_v4 = vpop.f32.mrb[90].mxu0  ;;  %v1339_v5 = vpop.f32.mrb[90].mxu1  ;;  %3387 = vst [vmem:[%s4188_s17 + $0x1c0] sm:$0xff] %v3275_v62  }
 0x1ad   : > { %v1611_v6 = vmul.f32 0.2, %v1057_v61  ;;  %v1060_v7 = vadd.f32 %v4324_v15, %v1059_v4  ;;  %v3583_v8 = vpop.f32.mrb[91].mxu0  ;;  %vm1544_vm10 = vcmp.ge.f32.partialorder %v1337_v2, 0.0  ;;  %v3723_v9 = vpop.f32.mrb[91].mxu1  ;;  %vm1474_vm11 = vcmp.ge.f32.partialorder %v1057_v61, 0.0 }
 0x1ae   : > { %v1681_v10 = vmul.f32 0.2, %v1337_v2  ;;  %v1340_v11 = vadd.f32 %v4324_v15, %v1339_v5 }
 0x1af   : > { %vm1475_vm12 = vcmp.ge.f32.partialorder %v1060_v7, 0.0  ;;  %v1612_v12 = vmul.f32 0.2, %v1060_v7  ;;  %v1748_v63 = vsel %vm1474_vm11, %v1057_v61, %v1611_v6 }
 0x1b0   : > { %v1818_v13 = vsel %vm1544_vm10, %v1337_v2, %v1681_v10  ;;  %vm1545_vm13 = vcmp.ge.f32.partialorder %v1340_v11, 0.0  ;;  %v1682_v14 = vmul.f32 0.2, %v1340_v11 }
 0x1b1   : > { %v1749_v16 = vsel %vm1475_vm12, %v1060_v7, %v1612_v12 }
 0x1b2   : > { %v3105_v17 = vpack.c.bf16 %v1749_v16, %v1748_v63  ;;  %v1064_v18 = vpop.f32.mrb[92].mxu0  ;;  %v1819_v19 = vsel %vm1545_vm13, %v1340_v11, %v1682_v14  ;;  %v1344_v20 = vpop.f32.mrb[92].mxu1 }
 0x1b3   : > { %v1065_v21 = vadd.f32 %v4324_v15, %v1064_v18  ;;  %v3280_v22 = vpack.c.bf16 %v1819_v19, %v1818_v13  ;;  %v3586_v23 = vpop.f32.mrb[93].mxu0  ;;  %v1345_v24 = vadd.f32 %v4324_v15, %v1344_v20  ;;  %v3726_v25 = vpop.f32.mrb[93].mxu1 }
 0x1b4   : > { %3353 = vst [vmem:[%s4188_s17 + $0xb0] sm:$0xff] %v3105_v17   ;;  %v1067_v26 = vpop.f32.mrb[94].mxu0  ;;  %v1347_v27 = vpop.f32.mrb[94].mxu1 }
 0x1b5   : > { %v1613_v28 = vmul.f32 0.2, %v1065_v21  ;;  %3388 = vst [vmem:[%s4188_s17 + $0x1c8] sm:$0xff] %v3280_v22   ;;  %v1068_v29 = vadd.f32 %v4324_v15, %v1067_v26  ;;  %v3587_v30 = vpop.f32.mrb[95].mxu0  ;;  %vm1546_vm0 = vcmp.ge.f32.partialorder %v1345_v24, 0.0  ;;  %v3727_v31 = vpop.f32.mrb[95].mxu1  ;;  %v1348_v33 = vadd.f32 %v4324_v15, %v1347_v27 }
 0x1b6   : > { %vm1476_vm14 = vcmp.ge.f32.partialorder %v1065_v21, 0.0  ;;  %v1683_v32 = vmul.f32 0.2, %v1345_v24 }
 0x1b7   : > { %vm1477_vm15 = vcmp.ge.f32.partialorder %v1068_v29, 0.0  ;;  %v1614_v34 = vmul.f32 0.2, %v1068_v29  ;;  %vm1547_vm1 = vcmp.ge.f32.partialorder %v1348_v33, 0.0  ;;  %v1684_v36 = vmul.f32 0.2, %v1348_v33 }
 0x1b8   : > { %v1820_v35 = vsel %vm1546_vm0, %v1345_v24, %v1683_v32  ;;  %v1750_v37 = vsel %vm1476_vm14, %v1065_v21, %v1613_v28 }
 0x1b9   : > { %v1751_v38 = vsel %vm1477_vm15, %v1068_v29, %v1614_v34  ;;  %v1821_v41 = vsel %vm1547_vm1, %v1348_v33, %v1684_v36 }
 0x1ba   : > { %v3110_v39 = vpack.c.bf16 %v1751_v38, %v1750_v37  ;;  %v1072_v40 = vpop.f32.mrb[96].mxu0  ;;  %v1352_v42 = vpop.f32.mrb[96].mxu1  ;;  %v3285_v44 = vpack.c.bf16 %v1821_v41, %v1820_v35 }
 0x1bb   : > { %v1073_v43 = vadd.f32 %v4324_v15, %v1072_v40  ;;  %v3590_v45 = vpop.f32.mrb[97].mxu0  ;;  %v1353_v46 = vadd.f32 %v4324_v15, %v1352_v42  ;;  %v3730_v47 = vpop.f32.mrb[97].mxu1 }
 0x1bc   : > { %3354 = vst [vmem:[%s4188_s17 + $0xb8] sm:$0xff] %v3110_v39   ;;  %v1075_v48 = vpop.f32.mrb[98].mxu0  ;;  %v1355_v49 = vpop.f32.mrb[98].mxu1  ;;  %3389 = vst [vmem:[%s4188_s17 + $0x1d0] sm:$0xff] %v3285_v44  }
 0x1bd   : > { %v1615_v50 = vmul.f32 0.2, %v1073_v43  ;;  %v1076_v51 = vadd.f32 %v4324_v15, %v1075_v48  ;;  %v3591_v52 = vpop.f32.mrb[99].mxu0  ;;  %vm1548_vm2 = vcmp.ge.f32.partialorder %v1353_v46, 0.0  ;;  %v3731_v53 = vpop.f32.mrb[99].mxu1  ;;  %vm1478_vm3 = vcmp.ge.f32.partialorder %v1073_v43, 0.0 }
 0x1be   : > { %v1685_v54 = vmul.f32 0.2, %v1353_v46  ;;  %v1356_v1 = vadd.f32 %v4324_v15, %v1355_v49 }
 0x1bf   : > { %vm1479_vm4 = vcmp.ge.f32.partialorder %v1076_v51, 0.0  ;;  %v1616_v55 = vmul.f32 0.2, %v1076_v51  ;;  %v1752_v58 = vsel %vm1478_vm3, %v1073_v43, %v1615_v50 }
 0x1c0   : > { %v1822_v56 = vsel %vm1548_vm2, %v1353_v46, %v1685_v54  ;;  %vm1549_vm5 = vcmp.ge.f32.partialorder %v1356_v1, 0.0  ;;  %v1686_v57 = vmul.f32 0.2, %v1356_v1 }
 0x1c1   : > { %v1753_v59 = vsel %vm1479_vm4, %v1076_v51, %v1616_v55 }
 0x1c2   : > { %v3115_v60 = vpack.c.bf16 %v1753_v59, %v1752_v58  ;;  %v1080_v61 = vpop.f32.mrb[100].mxu0  ;;  %v1823_v62 = vsel %vm1549_vm5, %v1356_v1, %v1686_v57  ;;  %v1360_v0 = vpop.f32.mrb[100].mxu1 }
 0x1c3   : > { %v1081_v2 = vadd.f32 %v4324_v15, %v1080_v61  ;;  %v3290_v3 = vpack.c.bf16 %v1823_v62, %v1822_v56  ;;  %v3594_v4 = vpop.f32.mrb[101].mxu0  ;;  %v1361_v5 = vadd.f32 %v4324_v15, %v1360_v0  ;;  %v3734_v6 = vpop.f32.mrb[101].mxu1 }
 0x1c4   : > { %3355 = vst [vmem:[%s4188_s17 + $0xc0] sm:$0xff] %v3115_v60   ;;  %v1083_v7 = vpop.f32.mrb[102].mxu0  ;;  %v1363_v8 = vpop.f32.mrb[102].mxu1 }
 0x1c5   : > { %v1617_v9 = vmul.f32 0.2, %v1081_v2  ;;  %3390 = vst [vmem:[%s4188_s17 + $0x1d8] sm:$0xff] %v3290_v3   ;;  %v1084_v10 = vadd.f32 %v4324_v15, %v1083_v7  ;;  %v3595_v11 = vpop.f32.mrb[103].mxu0  ;;  %vm1550_vm6 = vcmp.ge.f32.partialorder %v1361_v5, 0.0  ;;  %v3735_v12 = vpop.f32.mrb[103].mxu1  ;;  %v1364_v14 = vadd.f32 %v4324_v15, %v1363_v8 }
 0x1c6   : > { %vm1480_vm7 = vcmp.ge.f32.partialorder %v1081_v2, 0.0  ;;  %v1687_v13 = vmul.f32 0.2, %v1361_v5 }
 0x1c7   : > { %vm1481_vm8 = vcmp.ge.f32.partialorder %v1084_v10, 0.0  ;;  %v1618_v63 = vmul.f32 0.2, %v1084_v10  ;;  %vm1551_vm9 = vcmp.ge.f32.partialorder %v1364_v14, 0.0  ;;  %v1688_v17 = vmul.f32 0.2, %v1364_v14 }
 0x1c8   : > { %v1824_v16 = vsel %vm1550_vm6, %v1361_v5, %v1687_v13  ;;  %v1754_v18 = vsel %vm1480_vm7, %v1081_v2, %v1617_v9 }
 0x1c9   : > { %v1755_v19 = vsel %vm1481_vm8, %v1084_v10, %v1618_v63  ;;  %v1825_v22 = vsel %vm1551_vm9, %v1364_v14, %v1688_v17 }
 0x1ca   : > { %v3120_v20 = vpack.c.bf16 %v1755_v19, %v1754_v18  ;;  %v1088_v21 = vpop.f32.mrb[104].mxu0  ;;  %v1368_v23 = vpop.f32.mrb[104].mxu1  ;;  %v3295_v25 = vpack.c.bf16 %v1825_v22, %v1824_v16 }
 0x1cb   : > { %v1089_v24 = vadd.f32 %v4324_v15, %v1088_v21  ;;  %v3598_v26 = vpop.f32.mrb[105].mxu0  ;;  %v1369_v27 = vadd.f32 %v4324_v15, %v1368_v23  ;;  %v3738_v28 = vpop.f32.mrb[105].mxu1 }
 0x1cc   : > { %3356 = vst [vmem:[%s4188_s17 + $0xc8] sm:$0xff] %v3120_v20   ;;  %v1091_v29 = vpop.f32.mrb[106].mxu0  ;;  %v1371_v30 = vpop.f32.mrb[106].mxu1  ;;  %3391 = vst [vmem:[%s4188_s17 + $0x1e0] sm:$0xff] %v3295_v25  }
 0x1cd   : > { %v1619_v31 = vmul.f32 0.2, %v1089_v24  ;;  %v1092_v32 = vadd.f32 %v4324_v15, %v1091_v29  ;;  %v3599_v33 = vpop.f32.mrb[107].mxu0  ;;  %vm1552_vm10 = vcmp.ge.f32.partialorder %v1369_v27, 0.0  ;;  %v3739_v34 = vpop.f32.mrb[107].mxu1  ;;  %vm1482_vm11 = vcmp.ge.f32.partialorder %v1089_v24, 0.0 }
 0x1ce   : > { %v1689_v35 = vmul.f32 0.2, %v1369_v27  ;;  %v1372_v36 = vadd.f32 %v4324_v15, %v1371_v30 }
 0x1cf   : > { %vm1483_vm12 = vcmp.ge.f32.partialorder %v1092_v32, 0.0  ;;  %v1620_v37 = vmul.f32 0.2, %v1092_v32  ;;  %v1756_v40 = vsel %vm1482_vm11, %v1089_v24, %v1619_v31 }
 0x1d0   : > { %v1826_v38 = vsel %vm1552_vm10, %v1369_v27, %v1689_v35  ;;  %vm1553_vm13 = vcmp.ge.f32.partialorder %v1372_v36, 0.0  ;;  %v1690_v39 = vmul.f32 0.2, %v1372_v36 }
 0x1d1   : > { %v1757_v41 = vsel %vm1483_vm12, %v1092_v32, %v1620_v37 }
 0x1d2   : > { %v3125_v42 = vpack.c.bf16 %v1757_v41, %v1756_v40  ;;  %v1096_v43 = vpop.f32.mrb[108].mxu0  ;;  %v1827_v44 = vsel %vm1553_vm13, %v1372_v36, %v1690_v39  ;;  %v1376_v45 = vpop.f32.mrb[108].mxu1 }
 0x1d3   : > { %v1097_v46 = vadd.f32 %v4324_v15, %v1096_v43  ;;  %v3300_v47 = vpack.c.bf16 %v1827_v44, %v1826_v38  ;;  %v3602_v48 = vpop.f32.mrb[109].mxu0  ;;  %v1377_v49 = vadd.f32 %v4324_v15, %v1376_v45  ;;  %v3742_v50 = vpop.f32.mrb[109].mxu1 }
 0x1d4   : > { %3357 = vst [vmem:[%s4188_s17 + $0xd0] sm:$0xff] %v3125_v42   ;;  %v1099_v51 = vpop.f32.mrb[110].mxu0  ;;  %v1379_v52 = vpop.f32.mrb[110].mxu1 }
 0x1d5   : > { %v1621_v53 = vmul.f32 0.2, %v1097_v46  ;;  %3392 = vst [vmem:[%s4188_s17 + $0x1e8] sm:$0xff] %v3300_v47   ;;  %v1100_v54 = vadd.f32 %v4324_v15, %v1099_v51  ;;  %v3603_v1 = vpop.f32.mrb[111].mxu0  ;;  %vm1554_vm0 = vcmp.ge.f32.partialorder %v1377_v49, 0.0  ;;  %v3743_v55 = vpop.f32.mrb[111].mxu1  ;;  %v1380_v57 = vadd.f32 %v4324_v15, %v1379_v52 }
 0x1d6   : > { %vm1484_vm14 = vcmp.ge.f32.partialorder %v1097_v46, 0.0  ;;  %v1691_v56 = vmul.f32 0.2, %v1377_v49 }
 0x1d7   : > { %vm1485_vm15 = vcmp.ge.f32.partialorder %v1100_v54, 0.0  ;;  %v1622_v58 = vmul.f32 0.2, %v1100_v54  ;;  %vm1555_vm1 = vcmp.ge.f32.partialorder %v1380_v57, 0.0  ;;  %v1692_v60 = vmul.f32 0.2, %v1380_v57 }
 0x1d8   : > { %v1828_v59 = vsel %vm1554_vm0, %v1377_v49, %v1691_v56  ;;  %v1758_v61 = vsel %vm1484_vm14, %v1097_v46, %v1621_v53 }
 0x1d9   : > { %v1759_v62 = vsel %vm1485_vm15, %v1100_v54, %v1622_v58  ;;  %v1829_v3 = vsel %vm1555_vm1, %v1380_v57, %v1692_v60 }
 0x1da   : > { %v3130_v0 = vpack.c.bf16 %v1759_v62, %v1758_v61  ;;  %v1104_v2 = vpop.f32.mrb[112].mxu0  ;;  %v1384_v4 = vpop.f32.mrb[112].mxu1  ;;  %v3305_v6 = vpack.c.bf16 %v1829_v3, %v1828_v59 }
 0x1db   : > { %v1105_v5 = vadd.f32 %v4324_v15, %v1104_v2  ;;  %v3606_v7 = vpop.f32.mrb[113].mxu0  ;;  %v1385_v8 = vadd.f32 %v4324_v15, %v1384_v4  ;;  %v3746_v9 = vpop.f32.mrb[113].mxu1 }
 0x1dc   : > { %3358 = vst [vmem:[%s4188_s17 + $0xd8] sm:$0xff] %v3130_v0   ;;  %v1107_v10 = vpop.f32.mrb[114].mxu0  ;;  %v1387_v11 = vpop.f32.mrb[114].mxu1  ;;  %3393 = vst [vmem:[%s4188_s17 + $0x1f0] sm:$0xff] %v3305_v6  }
 0x1dd   : > { %v1623_v12 = vmul.f32 0.2, %v1105_v5  ;;  %v1108_v13 = vadd.f32 %v4324_v15, %v1107_v10  ;;  %v3607_v14 = vpop.f32.mrb[115].mxu0  ;;  %vm1556_vm2 = vcmp.ge.f32.partialorder %v1385_v8, 0.0  ;;  %v3747_v63 = vpop.f32.mrb[115].mxu1  ;;  %vm1486_vm3 = vcmp.ge.f32.partialorder %v1105_v5, 0.0 }
 0x1de   : > { %v1693_v16 = vmul.f32 0.2, %v1385_v8  ;;  %v1388_v17 = vadd.f32 %v4324_v15, %v1387_v11 }
 0x1df   : > { %vm1487_vm4 = vcmp.ge.f32.partialorder %v1108_v13, 0.0  ;;  %v1624_v18 = vmul.f32 0.2, %v1108_v13  ;;  %v1760_v21 = vsel %vm1486_vm3, %v1105_v5, %v1623_v12 }
 0x1e0   : > { %v1830_v19 = vsel %vm1556_vm2, %v1385_v8, %v1693_v16  ;;  %vm1557_vm5 = vcmp.ge.f32.partialorder %v1388_v17, 0.0  ;;  %v1694_v20 = vmul.f32 0.2, %v1388_v17 }
 0x1e1   : > { %v1761_v22 = vsel %vm1487_vm4, %v1108_v13, %v1624_v18 }
 0x1e2   : > { %v3135_v23 = vpack.c.bf16 %v1761_v22, %v1760_v21  ;;  %v1112_v24 = vpop.f32.mrb[116].mxu0  ;;  %v1831_v25 = vsel %vm1557_vm5, %v1388_v17, %v1694_v20  ;;  %v1392_v26 = vpop.f32.mrb[116].mxu1 }
 0x1e3   : > { %v1113_v27 = vadd.f32 %v4324_v15, %v1112_v24  ;;  %v3310_v28 = vpack.c.bf16 %v1831_v25, %v1830_v19  ;;  %v3610_v29 = vpop.f32.mrb[117].mxu0  ;;  %v1393_v30 = vadd.f32 %v4324_v15, %v1392_v26  ;;  %v3750_v31 = vpop.f32.mrb[117].mxu1 }
 0x1e4   : > { %3359 = vst [vmem:[%s4188_s17 + $0xe0] sm:$0xff] %v3135_v23   ;;  %v1115_v32 = vpop.f32.mrb[118].mxu0  ;;  %v1395_v33 = vpop.f32.mrb[118].mxu1 }
 0x1e5   : > { %v1625_v34 = vmul.f32 0.2, %v1113_v27  ;;  %3394 = vst [vmem:[%s4188_s17 + $0x1f8] sm:$0xff] %v3310_v28   ;;  %v1116_v35 = vadd.f32 %v4324_v15, %v1115_v32  ;;  %v3611_v36 = vpop.f32.mrb[119].mxu0  ;;  %vm1558_vm6 = vcmp.ge.f32.partialorder %v1393_v30, 0.0  ;;  %v3751_v37 = vpop.f32.mrb[119].mxu1  ;;  %v1396_v39 = vadd.f32 %v4324_v15, %v1395_v33 }
 0x1e6   : > { %vm1488_vm7 = vcmp.ge.f32.partialorder %v1113_v27, 0.0  ;;  %v1695_v38 = vmul.f32 0.2, %v1393_v30 }
 0x1e7   : > { %vm1489_vm8 = vcmp.ge.f32.partialorder %v1116_v35, 0.0  ;;  %v1626_v40 = vmul.f32 0.2, %v1116_v35  ;;  %vm1559_vm9 = vcmp.ge.f32.partialorder %v1396_v39, 0.0  ;;  %v1696_v42 = vmul.f32 0.2, %v1396_v39 }
 0x1e8   : > { %v1832_v41 = vsel %vm1558_vm6, %v1393_v30, %v1695_v38  ;;  %v1762_v43 = vsel %vm1488_vm7, %v1113_v27, %v1625_v34 }
 0x1e9   : > { %v1763_v44 = vsel %vm1489_vm8, %v1116_v35, %v1626_v40  ;;  %v1833_v47 = vsel %vm1559_vm9, %v1396_v39, %v1696_v42 }
 0x1ea   : > { %v3140_v45 = vpack.c.bf16 %v1763_v44, %v1762_v43  ;;  %v1120_v46 = vpop.f32.mrb[120].mxu0  ;;  %v1400_v48 = vpop.f32.mrb[120].mxu1  ;;  %v3315_v50 = vpack.c.bf16 %v1833_v47, %v1832_v41 }
 0x1eb   : > { %v1121_v49 = vadd.f32 %v4324_v15, %v1120_v46  ;;  %v3614_v51 = vpop.f32.mrb[121].mxu0  ;;  %v1401_v52 = vadd.f32 %v4324_v15, %v1400_v48  ;;  %v3754_v53 = vpop.f32.mrb[121].mxu1 }
 0x1ec   : > { %3360 = vst [vmem:[%s4188_s17 + $0xe8] sm:$0xff] %v3140_v45   ;;  %v1123_v54 = vpop.f32.mrb[122].mxu0  ;;  %v1403_v1 = vpop.f32.mrb[122].mxu1  ;;  %3395 = vst [vmem:[%s4188_s17 + $0x200] sm:$0xff] %v3315_v50  }
 0x1ed   : > { %v1627_v55 = vmul.f32 0.2, %v1121_v49  ;;  %v1124_v56 = vadd.f32 %v4324_v15, %v1123_v54  ;;  %v3615_v57 = vpop.f32.mrb[123].mxu0  ;;  %vm1560_vm10 = vcmp.ge.f32.partialorder %v1401_v52, 0.0  ;;  %v3755_v58 = vpop.f32.mrb[123].mxu1  ;;  %vm1490_vm11 = vcmp.ge.f32.partialorder %v1121_v49, 0.0 }
 0x1ee   : > { %v1697_v59 = vmul.f32 0.2, %v1401_v52  ;;  %v1404_v60 = vadd.f32 %v4324_v15, %v1403_v1 }
 0x1ef   : > { %vm1491_vm12 = vcmp.ge.f32.partialorder %v1124_v56, 0.0  ;;  %v1628_v61 = vmul.f32 0.2, %v1124_v56  ;;  %v1764_v2 = vsel %vm1490_vm11, %v1121_v49, %v1627_v55 }
 0x1f0   : > { %v1834_v62 = vsel %vm1560_vm10, %v1401_v52, %v1697_v59  ;;  %vm1561_vm13 = vcmp.ge.f32.partialorder %v1404_v60, 0.0  ;;  %v1698_v0 = vmul.f32 0.2, %v1404_v60 }
 0x1f1   : > { %v1765_v3 = vsel %vm1491_vm12, %v1124_v56, %v1628_v61 }
 0x1f2   : > { %v3145_v4 = vpack.c.bf16 %v1765_v3, %v1764_v2  ;;  %v1128_v5 = vpop.f32.mrb[124].mxu0  ;;  %v1835_v6 = vsel %vm1561_vm13, %v1404_v60, %v1698_v0  ;;  %v1408_v7 = vpop.f32.mrb[124].mxu1 }
 0x1f3   : > { %v1129_v8 = vadd.f32 %v4324_v15, %v1128_v5  ;;  %v3320_v9 = vpack.c.bf16 %v1835_v6, %v1834_v62  ;;  %v3618_v10 = vpop.f32.mrb[125].mxu0  ;;  %v1409_v11 = vadd.f32 %v4324_v15, %v1408_v7  ;;  %v3758_v12 = vpop.f32.mrb[125].mxu1 }
 0x1f4   : > { %3361 = vst [vmem:[%s4188_s17 + $0xf0] sm:$0xff] %v3145_v4   ;;  %v1131_v13 = vpop.f32.mrb[126].mxu0  ;;  %v1411_v14 = vpop.f32.mrb[126].mxu1 }
 0x1f5   : > { %v1629_v63 = vmul.f32 0.2, %v1129_v8  ;;  %3396 = vst [vmem:[%s4188_s17 + $0x208] sm:$0xff] %v3320_v9   ;;  %v1132_v16 = vadd.f32 %v4324_v15, %v1131_v13  ;;  %v3619_v17 = vpop.f32.mrb[127].mxu0  ;;  %vm1562_vm0 = vcmp.ge.f32.partialorder %v1409_v11, 0.0  ;;  %v3759_v18 = vpop.f32.mrb[127].mxu1  ;;  %v1412_v20 = vadd.f32 %v4324_v15, %v1411_v14 }
 0x1f6   : > { %vm1492_vm14 = vcmp.ge.f32.partialorder %v1129_v8, 0.0  ;;  %v1699_v19 = vmul.f32 0.2, %v1409_v11 }
 0x1f7   : > { %vm1493_vm15 = vcmp.ge.f32.partialorder %v1132_v16, 0.0  ;;  %v1630_v21 = vmul.f32 0.2, %v1132_v16  ;;  %vm1563_vm1 = vcmp.ge.f32.partialorder %v1412_v20, 0.0  ;;  %v1700_v23 = vmul.f32 0.2, %v1412_v20 }
 0x1f8   : > { %v1836_v22 = vsel %vm1562_vm0, %v1409_v11, %v1699_v19  ;;  %v1766_v24 = vsel %vm1492_vm14, %v1129_v8, %v1629_v63 }
 0x1f9   : > { %v1767_v25 = vsel %vm1493_vm15, %v1132_v16, %v1630_v21  ;;  %v1837_v28 = vsel %vm1563_vm1, %v1412_v20, %v1700_v23 }
 0x1fa   : > { %v3150_v26 = vpack.c.bf16 %v1767_v25, %v1766_v24  ;;  %v1136_v27 = vpop.f32.mrb[128].mxu0  ;;  %v1416_v29 = vpop.f32.mrb[128].mxu1  ;;  %v3325_v31 = vpack.c.bf16 %v1837_v28, %v1836_v22 }
 0x1fb   : > { %v1137_v30 = vadd.f32 %v4324_v15, %v1136_v27  ;;  %v3622_v32 = vpop.f32.mrb[129].mxu0  ;;  %v1417_v33 = vadd.f32 %v4324_v15, %v1416_v29  ;;  %v3762_v34 = vpop.f32.mrb[129].mxu1 }
 0x1fc   : > { %3362 = vst [vmem:[%s4188_s17 + $0xf8] sm:$0xff] %v3150_v26   ;;  %v1139_v35 = vpop.f32.mrb[130].mxu0  ;;  %v1419_v36 = vpop.f32.mrb[130].mxu1  ;;  %3397 = vst [vmem:[%s4188_s17 + $0x210] sm:$0xff] %v3325_v31  }
 0x1fd   : > { %v1631_v37 = vmul.f32 0.2, %v1137_v30  ;;  %v1140_v38 = vadd.f32 %v4324_v15, %v1139_v35  ;;  %v3623_v39 = vpop.f32.mrb[131].mxu0  ;;  %vm1564_vm2 = vcmp.ge.f32.partialorder %v1417_v33, 0.0  ;;  %v3763_v40 = vpop.f32.mrb[131].mxu1  ;;  %vm1494_vm3 = vcmp.ge.f32.partialorder %v1137_v30, 0.0 }
 0x1fe   : > { %v1701_v41 = vmul.f32 0.2, %v1417_v33  ;;  %v1420_v42 = vadd.f32 %v4324_v15, %v1419_v36 }
 0x1ff   : > { %vm1495_vm4 = vcmp.ge.f32.partialorder %v1140_v38, 0.0  ;;  %v1632_v43 = vmul.f32 0.2, %v1140_v38  ;;  %v1768_v46 = vsel %vm1494_vm3, %v1137_v30, %v1631_v37 }
 0x200   : > { %v1838_v44 = vsel %vm1564_vm2, %v1417_v33, %v1701_v41  ;;  %vm1565_vm5 = vcmp.ge.f32.partialorder %v1420_v42, 0.0  ;;  %v1702_v45 = vmul.f32 0.2, %v1420_v42 }
 0x201   : > { %v1769_v47 = vsel %vm1495_vm4, %v1140_v38, %v1632_v43 }
 0x202   : > { %v3155_v48 = vpack.c.bf16 %v1769_v47, %v1768_v46  ;;  %v1144_v49 = vpop.f32.mrb[132].mxu0  ;;  %v1839_v50 = vsel %vm1565_vm5, %v1420_v42, %v1702_v45  ;;  %v1424_v51 = vpop.f32.mrb[132].mxu1 }
 0x203   : > { %v1145_v52 = vadd.f32 %v4324_v15, %v1144_v49  ;;  %v3330_v53 = vpack.c.bf16 %v1839_v50, %v1838_v44  ;;  %v3626_v54 = vpop.f32.mrb[133].mxu0  ;;  %v1425_v1 = vadd.f32 %v4324_v15, %v1424_v51  ;;  %v3766_v55 = vpop.f32.mrb[133].mxu1 }
 0x204   : > { %3363 = vst [vmem:[%s4188_s17 + $0x100] sm:$0xff] %v3155_v48   ;;  %v1147_v56 = vpop.f32.mrb[134].mxu0  ;;  %v1427_v57 = vpop.f32.mrb[134].mxu1 }
 0x205   : > { %v1633_v58 = vmul.f32 0.2, %v1145_v52  ;;  %3398 = vst [vmem:[%s4188_s17 + $0x218] sm:$0xff] %v3330_v53   ;;  %v1148_v59 = vadd.f32 %v4324_v15, %v1147_v56  ;;  %v3627_v60 = vpop.f32.mrb[135].mxu0  ;;  %vm1566_vm6 = vcmp.ge.f32.partialorder %v1425_v1, 0.0  ;;  %v3767_v61 = vpop.f32.mrb[135].mxu1 }
 0x206   : > { %vm1496_vm7 = vcmp.ge.f32.partialorder %v1145_v52, 0.0  ;;  %v1703_v62 = vmul.f32 0.2, %v1425_v1 }
 0x207   : > { %vm1497_vm8 = vcmp.ge.f32.partialorder %v1148_v59, 0.0  ;;  %v1634_v0 = vmul.f32 0.2, %v1148_v59  ;;  %v1770_v3 = vsel %vm1496_vm7, %v1145_v52, %v1633_v58 }
 0x208   : > { %v1840_v2 = vsel %vm1566_vm6, %v1425_v1, %v1703_v62 }
 0x209   : > { %v1771_v4 = vsel %vm1497_vm8, %v1148_v59, %v1634_v0  ;;  %v2991_v5 = vpack.c.bf16 %v1840_v2, %v1840_v2 }
 0x20a   : > { %v3160_v6 = vpack.c.bf16 %v1771_v4, %v1770_v3  ;;  %v1152_v7 = vpop.f32.mrb[136].mxu0 }
 0x20b   : > { %2526 = vst [vmem:[%s4188_s17 + $0x220] sm:$0xf] %v2991_v5  ;;  %v1153_v8 = vadd.f32 %v4324_v15, %v1152_v7  ;;  %v3630_v9 = vpop.f32.mrb[137].mxu0 }
 0x20c   : > { %3364 = vst [vmem:[%s4188_s17 + $0x108] sm:$0xff] %v3160_v6   ;;  %v1155_v10 = vpop.f32.mrb[138].mxu0 }
 0x20d   : > { %v1635_v11 = vmul.f32 0.2, %v1153_v8  ;;  %v1156_v12 = vadd.f32 %v4324_v15, %v1155_v10  ;;  %v3631_v13 = vpop.f32.mrb[139].mxu0  ;;  %vm1498_vm9 = vcmp.ge.f32.partialorder %v1153_v8, 0.0 }
 0x20f   : > { %vm1499_vm10 = vcmp.ge.f32.partialorder %v1156_v12, 0.0  ;;  %v1636_v14 = vmul.f32 0.2, %v1156_v12  ;;  %v1772_v63 = vsel %vm1498_vm9, %v1153_v8, %v1635_v11 }
 0x211   : > { %v1773_v16 = vsel %vm1499_vm10, %v1156_v12, %v1636_v14 }
 0x212   : > { %v3165_v17 = vpack.c.bf16 %v1773_v16, %v1772_v63 }
 0x214   : > { %3365 = vst [vmem:[%s4188_s17 + $0x110] sm:$0xff] %v3165_v17  }
 0x215 PF: > { %s13_s14 = sadd.s32 1, %s3910_s14   ;;  %s4445_s12 = smov %s3906_s13 }
 0x216   : > { %p10_p5 = scmp.ge.s32.totalorder %s13_s14, 4   ;;  %s4446_s13 = smov %s4448_s15 }
 0x218   :  { %12 = sbr.rel (!%p10_p5) target bundleno = 2 (0x2), region = 68 }

// kernel: enhanced_discriminator_forward.7
= control target key start
LH: loop header
LB: loop body
LE: loop exit
PB: predicated region body
PF: predicated region fallthrough
CT: control target
= control target key end

     0   :  { %s2247_s12 = smov 0   ;;  %s2249_s13 = smov 0   ;;  %s2504_s0 = inlined_call_operand.vmem [shape: bf16[512,512], index: 0, kind: input, shape index: {}]   ;;  %s2505_s1 = inlined_call_operand.vmem [shape: bf16[512,128], index: 1, kind: input, shape index: {}]   ;;  %s2506_s2 = inlined_call_operand.vmem [shape: f32[1,128], index: 2, kind: input, shape index: {}]   ;;  %s2507_s3 = inlined_call_operand.vmem [shape: bf16[512,128], index: 3, kind: output, shape index: {}]  }
   0x1   :  { %s2251_s14 = smov 0  }
   0x2 LB: > { %s25_s15 = sadd.s32 1, %s2221_s13  ;;  %p1562_p0 = scmp.ge.s32.totalorder %s2225_s14, 1  ;;  %s2225_s14 = sphi %s2251_s14, %s13_s14   ;;  %s2221_s13 = sphi %s2249_s13, %s2509_s13   ;;  %s2217_s12 = sphi %s2247_s12, %s2508_s12  }
   0x3   : > { %p27_p1 = scmp.ge.s32.totalorder %s25_s15, 2  ;;  %p170_p2 = scmp.lt.s32.totalorder %s2225_s14, 3 }
   0x5   : > { %s2511_s15 = smov (%p27_p1, %s25_s15), 0  ;;  %p171_p3 = pnand %p1562_p0, %p170_p2 }
   0x6   : > { %v2075_v0 = vld [vmem:[%s2505_s1 + $0x40] sm:$0xff] (!%p171_p3)   ;;  %v2079_v4 = vld [vmem:[%s2505_s1 + $0x48] sm:$0xff] (!%p171_p3)   ;;  %v2083_v8 = vld [vmem:[%s2505_s1 + $0x50] sm:$0xff] (!%p171_p3)   ;;  %s1563_s25 = sshll.u32 (!%p171_p3), %s2217_s12, 5 }
   0x7   : > { %174 = sbr.rel (%p171_p3) target bundleno = 387 (0x183), region = 32  ;;  %v2076_v1 = vld [vmem:[%s2505_s1 + $0xc0] sm:$0xff] (!%p171_p3)   ;;  %1827 = vmatprep.subr.bf16.mxu0 (!%p171_p3), %v2075_v0  ;;  %v2080_v5 = vld [vmem:[%s2505_s1 + $0xc8] sm:$0xff] (!%p171_p3)   ;;  %v2084_v9 = vld [vmem:[%s2505_s1 + $0xd0] sm:$0xff] (!%p171_p3)   ;;  %p206_p4 = scmp.lt.s32.totalorder (!%p171_p3), %s1563_s25, 63 }
   0x8   : > { %v2077_v2 = vld [vmem:[%s2505_s1] sm:$0xff] (!%p171_p3)   ;;  %1939 = vmatprep.subr.bf16.mxu1 (!%p171_p3), %v2076_v1  ;;  %v2081_v6 = vld [vmem:[%s2505_s1 + $0x8] sm:$0xff] (!%p171_p3)   ;;  %v2085_v10 = vld [vmem:[%s2505_s1 + $0x10] sm:$0xff] (!%p171_p3)  }
   0x9   : > { %v2078_v3 = vld [vmem:[%s2505_s1 + $0x80] sm:$0xff] (!%p171_p3)   ;;  %1828 = vmatpush3.bf16.msra.mxu0 (!%p171_p3), %v2077_v2  ;;  %v2082_v7 = vld [vmem:[%s2505_s1 + $0x88] sm:$0xff] (!%p171_p3)   ;;  %v2086_v11 = vld [vmem:[%s2505_s1 + $0x90] sm:$0xff] (!%p171_p3)  }
   0xa   : > { %1940 = vmatpush3.bf16.msra.mxu1 (!%p171_p3), %v2078_v3  ;;  %1829 = vmatprep.subr.bf16.mxu0 (!%p171_p3), %v2079_v4  ;;  %v2087_v12 = vld [vmem:[%s2505_s1 + $0x58] sm:$0xff] (!%p171_p3)   ;;  %v2091_v16 = vld [vmem:[%s2505_s1 + $0x60] sm:$0xff] (!%p171_p3)   ;;  %v2095_v20 = vld [vmem:[%s2505_s1 + $0x68] sm:$0xff] (!%p171_p3)  }
   0xb   : > { %1941 = vmatprep.subr.bf16.mxu1 (!%p171_p3), %v2080_v5  ;;  %v2088_v13 = vld [vmem:[%s2505_s1 + $0xd8] sm:$0xff] (!%p171_p3)   ;;  %v2092_v17 = vld [vmem:[%s2505_s1 + $0xe0] sm:$0xff] (!%p171_p3)   ;;  %v2096_v21 = vld [vmem:[%s2505_s1 + $0xe8] sm:$0xff] (!%p171_p3)  }
   0xc   : > { %v2089_v14 = vld [vmem:[%s2505_s1 + $0x18] sm:$0xff] (!%p171_p3)   ;;  %v2093_v18 = vld [vmem:[%s2505_s1 + $0x20] sm:$0xff] (!%p171_p3)   ;;  %v2097_v22 = vld [vmem:[%s2505_s1 + $0x28] sm:$0xff] (!%p171_p3)  }
   0xd   : > { %1830 = vmatpush3.bf16.msra.mxu0 (!%p171_p3), %v2081_v6  ;;  %v2090_v15 = vld [vmem:[%s2505_s1 + $0x98] sm:$0xff] (!%p171_p3)   ;;  %v2094_v19 = vld [vmem:[%s2505_s1 + $0xa0] sm:$0xff] (!%p171_p3)   ;;  %v2098_v23 = vld [vmem:[%s2505_s1 + $0xa8] sm:$0xff] (!%p171_p3)  }
   0xe   : > { %1942 = vmatpush3.bf16.msra.mxu1 %v2082_v7  ;;  %1831 = vmatprep.subr.bf16.mxu0 %v2083_v8  ;;  %s2513_s25 = smov (!%p206_p4, %s1563_s25), 63  ;;  %v2099_v24 = vld [vmem:[%s2505_s1 + $0x70] sm:$0xff]   ;;  %v2103_v28 = vld [vmem:[%s2505_s1 + $0x78] sm:$0xff]  }
   0xf   : > { %1943 = vmatprep.subr.bf16.mxu1 %v2084_v9  ;;  %v2100_v25 = vld [vmem:[%s2505_s1 + $0xf0] sm:$0xff]   ;;  %s1699_s24 = sshll.u32 %s2513_s25, 4  ;;  %v2104_v29 = vld [vmem:[%s2505_s1 + $0xf8] sm:$0xff]   ;;  %s1567_s17 = sshll.u32 %s2513_s25, 2 }
  0x10   : > { %v2101_v26 = vld [vmem:[%s2505_s1 + $0x30] sm:$0xff]   ;;  %s2364_s12 = scalar_lea.vmem %s2504_s0, %s1699_s24  ;;  %v2105_v30 = vld [vmem:[%s2505_s1 + $0x38] sm:$0xff]   ;;  %s2447_s20 = scalar_lea.vmem %s2507_s3, %s1567_s17 }
  0x11   : > { %1832 = vmatpush3.bf16.msra.mxu0 %v2085_v10  ;;  %v2102_v27 = vld [vmem:[%s2505_s1 + $0xb0] sm:$0xff]   ;;  %v2106_v31 = vld [vmem:[%s2505_s1 + $0xb8] sm:$0xff]  }
  0x12   : > { %1944 = vmatpush3.bf16.msra.mxu1 %v2086_v11  ;;  %1833 = vmatprep.subr.bf16.mxu0 %v2087_v12  ;;  %v2107_v32 = vld [vmem:[%s2364_s12] ss:$16 sps:$4 sm:$0xff]   ;;  %v2109_v33 = vld [vmem:[%s2364_s12 + $0x4] ss:$16 sps:$4 sm:$0xff]   ;;  %v2110_v34 = vld [vmem:[%s2364_s12 + $0x8] ss:$16 sps:$4 sm:$0xff]  }
  0x13   : > { %1945 = vmatprep.subr.bf16.mxu1 %v2088_v13  ;;  %v2112_v35 = vld [vmem:[%s2364_s12 + $0xc] ss:$16 sps:$4 sm:$0xff]   ;;  %908 = vmatprep.mubr.bf16.mxu0 %v2109_v33  ;;  %v2113_v36 = vld [vmem:[%s2364_s12 + $0x24] ss:$16 sps:$4 sm:$0xff]   ;;  %v2117_v38 = vld [vmem:[%s2364_s12 + $0x20] ss:$16 sps:$4 sm:$0xff]  }
  0x14   : > { %1069 = vmatprep.mubr.bf16.mxu1 %v2112_v35  ;;  %v2115_v37 = vld [vmem:[%s2364_s12 + $0x2c] ss:$16 sps:$4 sm:$0xff]   ;;  %v2118_v39 = vld [vmem:[%s2364_s12 + $0x28] ss:$16 sps:$4 sm:$0xff]   ;;  %v2119_v40 = vld [vmem:[%s2364_s12 + $0x44] ss:$16 sps:$4 sm:$0xff]  }
  0x15   : > { %1834 = vmatpush3.bf16.msra.mxu0 %v2089_v14  ;;  %v2121_v41 = vld [vmem:[%s2364_s12 + $0x4c] ss:$16 sps:$4 sm:$0xff]   ;;  %v2123_v42 = vld [vmem:[%s2364_s12 + $0x40] ss:$16 sps:$4 sm:$0xff]   ;;  %v2124_v43 = vld [vmem:[%s2364_s12 + $0x48] ss:$16 sps:$4 sm:$0xff]  }
  0x16   : > { %1946 = vmatpush3.bf16.msra.mxu1 %v2090_v15  ;;  %1835 = vmatprep.subr.bf16.mxu0 %v2091_v16  ;;  %v2125_v44 = vld [vmem:[%s2364_s12 + $0x64] ss:$16 sps:$4 sm:$0xff]   ;;  %v2127_v45 = vld [vmem:[%s2364_s12 + $0x6c] ss:$16 sps:$4 sm:$0xff]   ;;  %v2129_v46 = vld [vmem:[%s2364_s12 + $0x60] ss:$16 sps:$4 sm:$0xff]  }
  0x17   : > { %1947 = vmatprep.subr.bf16.mxu1 %v2092_v17  ;;  %v2130_v47 = vld [vmem:[%s2364_s12 + $0x68] ss:$16 sps:$4 sm:$0xff]   ;;  %v2131_v48 = vld [vmem:[%s2364_s12 + $0x84] ss:$16 sps:$4 sm:$0xff]   ;;  %v2133_v49 = vld [vmem:[%s2364_s12 + $0x8c] ss:$16 sps:$4 sm:$0xff]  }
  0x18   : > { %v2135_v50 = vld [vmem:[%s2364_s12 + $0x80] ss:$16 sps:$4 sm:$0xff]   ;;  %v2136_v51 = vld [vmem:[%s2364_s12 + $0x88] ss:$16 sps:$4 sm:$0xff]   ;;  %v2137_v52 = vld [vmem:[%s2364_s12 + $0xa4] ss:$16 sps:$4 sm:$0xff]  }
  0x19   : > { %1836 = vmatpush3.bf16.msra.mxu0 %v2093_v18  ;;  %v2139_v53 = vld [vmem:[%s2364_s12 + $0xac] ss:$16 sps:$4 sm:$0xff]   ;;  %v2141_v54 = vld [vmem:[%s2364_s12 + $0xa0] ss:$16 sps:$4 sm:$0xff]   ;;  %v2142_v55 = vld [vmem:[%s2364_s12 + $0xa8] ss:$16 sps:$4 sm:$0xff]  }
  0x1a   : > { %1948 = vmatpush3.bf16.msra.mxu1 %v2094_v19  ;;  %1837 = vmatprep.subr.bf16.mxu0 %v2095_v20  ;;  %v2143_v56 = vld [vmem:[%s2364_s12 + $0xc4] ss:$16 sps:$4 sm:$0xff]   ;;  %v2145_v57 = vld [vmem:[%s2364_s12 + $0xcc] ss:$16 sps:$4 sm:$0xff]   ;;  %v2147_v58 = vld [vmem:[%s2364_s12 + $0xc0] ss:$16 sps:$4 sm:$0xff]  }
  0x1b   : > { %1949 = vmatprep.subr.bf16.mxu1 %v2096_v21  ;;  %v2148_v59 = vld [vmem:[%s2364_s12 + $0xc8] ss:$16 sps:$4 sm:$0xff]   ;;  %v2149_v60 = vld [vmem:[%s2364_s12 + $0xe4] ss:$16 sps:$4 sm:$0xff]   ;;  %v2151_v61 = vld [vmem:[%s2364_s12 + $0xec] ss:$16 sps:$4 sm:$0xff]  }
  0x1c   : > { %v2153_v62 = vld [vmem:[%s2364_s12 + $0xe0] ss:$16 sps:$4 sm:$0xff]   ;;  %v2154_v63 = vld [vmem:[%s2364_s12 + $0xe8] ss:$16 sps:$4 sm:$0xff]   ;;  %v2155_v0 = vld [vmem:[%s2364_s12 + $0x104] ss:$16 sps:$4 sm:$0xff]  }
  0x1d   : > { %1838 = vmatpush3.bf16.msra.mxu0 %v2097_v22  ;;  %v2157_v1 = vld [vmem:[%s2364_s12 + $0x10c] ss:$16 sps:$4 sm:$0xff]   ;;  %v2159_v2 = vld [vmem:[%s2364_s12 + $0x100] ss:$16 sps:$4 sm:$0xff]   ;;  %v2160_v3 = vld [vmem:[%s2364_s12 + $0x108] ss:$16 sps:$4 sm:$0xff]  }
  0x1e   : > { %1950 = vmatpush3.bf16.msra.mxu1 %v2098_v23  ;;  %1839 = vmatprep.subr.bf16.mxu0 %v2099_v24  ;;  %v2161_v4 = vld [vmem:[%s2364_s12 + $0x124] ss:$16 sps:$4 sm:$0xff]   ;;  %v2163_v5 = vld [vmem:[%s2364_s12 + $0x12c] ss:$16 sps:$4 sm:$0xff]   ;;  %v2165_v6 = vld [vmem:[%s2364_s12 + $0x120] ss:$16 sps:$4 sm:$0xff]  }
  0x1f   : > { %1951 = vmatprep.subr.bf16.mxu1 %v2100_v25  ;;  %v2166_v7 = vld [vmem:[%s2364_s12 + $0x128] ss:$16 sps:$4 sm:$0xff]   ;;  %v2167_v8 = vld [vmem:[%s2364_s12 + $0x144] ss:$16 sps:$4 sm:$0xff]   ;;  %v2169_v9 = vld [vmem:[%s2364_s12 + $0x14c] ss:$16 sps:$4 sm:$0xff]  }
  0x20   : > { %v2171_v10 = vld [vmem:[%s2364_s12 + $0x140] ss:$16 sps:$4 sm:$0xff]   ;;  %v2172_v11 = vld [vmem:[%s2364_s12 + $0x148] ss:$16 sps:$4 sm:$0xff]   ;;  %v2173_v12 = vld [vmem:[%s2364_s12 + $0x164] ss:$16 sps:$4 sm:$0xff]  }
  0x21   : > { %1840 = vmatpush3.bf16.msra.mxu0 %v2101_v26  ;;  %v2175_v13 = vld [vmem:[%s2364_s12 + $0x16c] ss:$16 sps:$4 sm:$0xff]   ;;  %v2177_v14 = vld [vmem:[%s2364_s12 + $0x160] ss:$16 sps:$4 sm:$0xff]   ;;  %v2178_v15 = vld [vmem:[%s2364_s12 + $0x168] ss:$16 sps:$4 sm:$0xff]  }
  0x22   : > { %1952 = vmatpush3.bf16.msra.mxu1 %v2102_v27  ;;  %1841 = vmatprep.subr.bf16.mxu0 %v2103_v28  ;;  %v2179_v16 = vld [vmem:[%s2364_s12 + $0x184] ss:$16 sps:$4 sm:$0xff]   ;;  %v2181_v17 = vld [vmem:[%s2364_s12 + $0x18c] ss:$16 sps:$4 sm:$0xff]   ;;  %v2183_v18 = vld [vmem:[%s2364_s12 + $0x180] ss:$16 sps:$4 sm:$0xff]  }
  0x23   : > { %1953 = vmatprep.subr.bf16.mxu1 %v2104_v29  ;;  %v2184_v19 = vld [vmem:[%s2364_s12 + $0x188] ss:$16 sps:$4 sm:$0xff]   ;;  %v2185_v20 = vld [vmem:[%s2364_s12 + $0x1a4] ss:$16 sps:$4 sm:$0xff]   ;;  %v2187_v21 = vld [vmem:[%s2364_s12 + $0x1ac] ss:$16 sps:$4 sm:$0xff]  }
  0x24   : > { %v2189_v22 = vld [vmem:[%s2364_s12 + $0x1a0] ss:$16 sps:$4 sm:$0xff]   ;;  %v2190_v23 = vld [vmem:[%s2364_s12 + $0x1a8] ss:$16 sps:$4 sm:$0xff]   ;;  %v2191_v24 = vld [vmem:[%s2364_s12 + $0x1c4] ss:$16 sps:$4 sm:$0xff]  }
  0x25   : > { %1842 = vmatpush3.bf16.msra.mxu0 %v2105_v30  ;;  %v2193_v25 = vld [vmem:[%s2364_s12 + $0x1cc] ss:$16 sps:$4 sm:$0xff]   ;;  %v2195_v26 = vld [vmem:[%s2364_s12 + $0x1c0] ss:$16 sps:$4 sm:$0xff]   ;;  %v2196_v27 = vld [vmem:[%s2364_s12 + $0x1c8] ss:$16 sps:$4 sm:$0xff]  }
  0x26   : > { %1954 = vmatpush3.bf16.msra.mxu1 %v2106_v31  ;;  %v2197_v28 = vld [vmem:[%s2364_s12 + $0x1e4] ss:$16 sps:$4 sm:$0xff]   ;;  %v2199_v29 = vld [vmem:[%s2364_s12 + $0x1ec] ss:$16 sps:$4 sm:$0xff]   ;;  %v2201_v30 = vld [vmem:[%s2364_s12 + $0x1e0] ss:$16 sps:$4 sm:$0xff]  }
  0x27   : > { %v2202_v31 = vld [vmem:[%s2364_s12 + $0x1e8] ss:$16 sps:$4 sm:$0xff]  }
  0x28   : > { %909 = vmatmul.mubr.bf16.vlgmr.msra.gmra.mrb[0].mxu0 %v2107_v32 }
  0x29   : > { %1070 = vmatmul.mubr.bf16.vlgmr.msra.gmra.mrb[0].mxu1 %v2110_v34  ;;  %916 = vmatprep.mubr.bf16.mxu0 %v2113_v36  ;;  %v2439_v34 = vld [vmem:[%s2506_s2] ss:$0 sm:$0xff] }
  0x2a   : > { %1077 = vmatprep.mubr.bf16.mxu1 %v2115_v37 }
  0x30   : > { %917 = vmatmul.mubr.bf16.gmra.mrb[4].mxu0 %v2117_v38 }
  0x31   : > { %1078 = vmatmul.mubr.bf16.gmra.mrb[4].mxu1 %v2118_v39  ;;  %924 = vmatprep.mubr.bf16.mxu0 %v2119_v40 }
  0x32   : > { %1085 = vmatprep.mubr.bf16.mxu1 %v2121_v41 }
  0x38   : > { %925 = vmatmul.mubr.bf16.gmra.mrb[8].mxu0 %v2123_v42 }
  0x39   : > { %1086 = vmatmul.mubr.bf16.gmra.mrb[8].mxu1 %v2124_v43  ;;  %932 = vmatprep.mubr.bf16.mxu0 %v2125_v44 }
  0x3a   : > { %1093 = vmatprep.mubr.bf16.mxu1 %v2127_v45 }
  0x40   : > { %933 = vmatmul.mubr.bf16.gmra.mrb[12].mxu0 %v2129_v46 }
  0x41   : > { %1094 = vmatmul.mubr.bf16.gmra.mrb[12].mxu1 %v2130_v47  ;;  %940 = vmatprep.mubr.bf16.mxu0 %v2131_v48 }
  0x42   : > { %1101 = vmatprep.mubr.bf16.mxu1 %v2133_v49 }
  0x48   : > { %941 = vmatmul.mubr.bf16.gmra.mrb[16].mxu0 %v2135_v50 }
  0x49   : > { %1102 = vmatmul.mubr.bf16.gmra.mrb[16].mxu1 %v2136_v51  ;;  %948 = vmatprep.mubr.bf16.mxu0 %v2137_v52 }
  0x4a   : > { %1109 = vmatprep.mubr.bf16.mxu1 %v2139_v53 }
  0x50   : > { %949 = vmatmul.mubr.bf16.gmra.mrb[20].mxu0 %v2141_v54 }
  0x51   : > { %1110 = vmatmul.mubr.bf16.gmra.mrb[20].mxu1 %v2142_v55  ;;  %956 = vmatprep.mubr.bf16.mxu0 %v2143_v56 }
  0x52   : > { %1117 = vmatprep.mubr.bf16.mxu1 %v2145_v57 }
  0x58   : > { %957 = vmatmul.mubr.bf16.gmra.mrb[24].mxu0 %v2147_v58 }
  0x59   : > { %1118 = vmatmul.mubr.bf16.gmra.mrb[24].mxu1 %v2148_v59  ;;  %964 = vmatprep.mubr.bf16.mxu0 %v2149_v60 }
  0x5a   : > { %1125 = vmatprep.mubr.bf16.mxu1 %v2151_v61 }
  0x60   : > { %965 = vmatmul.mubr.bf16.gmra.mrb[28].mxu0 %v2153_v62 }
  0x61   : > { %1126 = vmatmul.mubr.bf16.gmra.mrb[28].mxu1 %v2154_v63  ;;  %972 = vmatprep.mubr.bf16.mxu0 %v2155_v0 }
  0x62   : > { %1133 = vmatprep.mubr.bf16.mxu1 %v2157_v1 }
  0x68   : > { %973 = vmatmul.mubr.bf16.gmra.mrb[32].mxu0 %v2159_v2 }
  0x69   : > { %1134 = vmatmul.mubr.bf16.gmra.mrb[32].mxu1 %v2160_v3  ;;  %980 = vmatprep.mubr.bf16.mxu0 %v2161_v4 }
  0x6a   : > { %1141 = vmatprep.mubr.bf16.mxu1 %v2163_v5 }
  0x70   : > { %981 = vmatmul.mubr.bf16.gmra.mrb[36].mxu0 %v2165_v6 }
  0x71   : > { %1142 = vmatmul.mubr.bf16.gmra.mrb[36].mxu1 %v2166_v7  ;;  %988 = vmatprep.mubr.bf16.mxu0 %v2167_v8 }
  0x72   : > { %1149 = vmatprep.mubr.bf16.mxu1 %v2169_v9 }
  0x78   : > { %989 = vmatmul.mubr.bf16.gmra.mrb[40].mxu0 %v2171_v10 }
  0x79   : > { %1150 = vmatmul.mubr.bf16.gmra.mrb[40].mxu1 %v2172_v11  ;;  %996 = vmatprep.mubr.bf16.mxu0 %v2173_v12 }
  0x7a   : > { %1157 = vmatprep.mubr.bf16.mxu1 %v2175_v13 }
  0x80   : > { %997 = vmatmul.mubr.bf16.gmra.mrb[44].mxu0 %v2177_v14 }
  0x81   : > { %1158 = vmatmul.mubr.bf16.gmra.mrb[44].mxu1 %v2178_v15  ;;  %1004 = vmatprep.mubr.bf16.mxu0 %v2179_v16 }
  0x82   : > { %1165 = vmatprep.mubr.bf16.mxu1 %v2181_v17 }
  0x88   : > { %1005 = vmatmul.mubr.bf16.gmra.mrb[48].mxu0 %v2183_v18 }
  0x89   : > { %1166 = vmatmul.mubr.bf16.gmra.mrb[48].mxu1 %v2184_v19  ;;  %1012 = vmatprep.mubr.bf16.mxu0 %v2185_v20 }
  0x8a   : > { %1173 = vmatprep.mubr.bf16.mxu1 %v2187_v21 }
  0x90   : > { %1013 = vmatmul.mubr.bf16.gmra.mrb[52].mxu0 %v2189_v22 }
  0x91   : > { %1174 = vmatmul.mubr.bf16.gmra.mrb[52].mxu1 %v2190_v23  ;;  %1020 = vmatprep.mubr.bf16.mxu0 %v2191_v24 }
  0x92   : > { %1181 = vmatprep.mubr.bf16.mxu1 %v2193_v25 }
  0x98   : > { %1021 = vmatmul.mubr.bf16.gmra.mrb[56].mxu0 %v2195_v26 }
  0x99   : > { %1182 = vmatmul.mubr.bf16.gmra.mrb[56].mxu1 %v2196_v27  ;;  %1028 = vmatprep.mubr.bf16.mxu0 %v2197_v28 }
  0x9a   : > { %1189 = vmatprep.mubr.bf16.mxu1 %v2199_v29 }
  0xa0   : > { %1029 = vmatmul.mubr.bf16.gmra.mrb[60].mxu0 %v2201_v30 }
  0xa1   : > { %1190 = vmatmul.mubr.bf16.gmra.mrb[60].mxu1 %v2202_v31 }
  0xfb   : > { %v1843_v32 = vpop.f32.mrb[0].mxu0 }
  0xfc   : > { %v1955_v33 = vpop.f32.mrb[0].mxu1  ;;  %v1844_v35 = vpop.f32.mrb[1].mxu0 }
  0xfd   : > { %v1845_v36 = vadd.f32 %v1844_v35, %v1843_v32  ;;  %v1956_v37 = vpop.f32.mrb[1].mxu1  ;;  %v1846_v38 = vpop.f32.mrb[2].mxu0 }
  0xfe   : > { %v1957_v39 = vadd.f32 %v1956_v37, %v1955_v33  ;;  %v1958_v40 = vpop.f32.mrb[2].mxu1  ;;  %v1847_v41 = vpop.f32.mrb[3].mxu0 }
  0xff   : > { %v911_v42 = vadd.f32 %v1845_v36, %v2439_v34  ;;  %v1848_v43 = vadd.f32 %v1847_v41, %v1846_v38  ;;  %v1959_v44 = vpop.f32.mrb[3].mxu1 }
 0x100   : > { %v1960_v45 = vadd.f32 %v1959_v44, %v1958_v40 }
 0x101   : > { %v1072_v46 = vadd.f32 %v1957_v39, %v911_v42  ;;  %v914_v47 = vadd.f32 %v1848_v43, %v2439_v34 }
 0x103   : > { %v1230_v48 = vmul.f32 0.2, %v1072_v46  ;;  %v1075_v49 = vadd.f32 %v1960_v45, %v914_v47  ;;  %v1849_v50 = vpop.f32.mrb[4].mxu0  ;;  %vm1198_vm0 = vcmp.ge.f32.partialorder %v1072_v46, 0.0 }
 0x104   : > { %v1961_v51 = vpop.f32.mrb[4].mxu1  ;;  %v1850_v52 = vpop.f32.mrb[5].mxu0 }
 0x105   : > { %vm1199_vm1 = vcmp.ge.f32.partialorder %v1075_v49, 0.0  ;;  %v1231_v53 = vmul.f32 0.2, %v1075_v49  ;;  %v1851_v54 = vadd.f32 %v1850_v52, %v1849_v50  ;;  %v1962_v55 = vpop.f32.mrb[5].mxu1  ;;  %v1852_v56 = vpop.f32.mrb[6].mxu0  ;;  %v1262_v60 = vsel %vm1198_vm0, %v1072_v46, %v1230_v48 }
 0x106   : > { %v1963_v57 = vadd.f32 %v1962_v55, %v1961_v51  ;;  %v1964_v58 = vpop.f32.mrb[6].mxu1  ;;  %v1853_v59 = vpop.f32.mrb[7].mxu0 }
 0x107   : > { %v1263_v61 = vsel %vm1199_vm1, %v1075_v49, %v1231_v53  ;;  %v919_v62 = vadd.f32 %v1851_v54, %v2439_v34  ;;  %v1854_v63 = vadd.f32 %v1853_v59, %v1852_v56  ;;  %v1965_v0 = vpop.f32.mrb[7].mxu1 }
 0x108   : > { %v1735_v1 = vpack.c.bf16 %v1263_v61, %v1262_v60  ;;  %v1966_v2 = vadd.f32 %v1965_v0, %v1964_v58 }
 0x109   : > { %v1080_v3 = vadd.f32 %v1963_v57, %v919_v62  ;;  %v922_v4 = vadd.f32 %v1854_v63, %v2439_v34 }
 0x10a   : > { %1736 = vst [vmem:[%s2447_s20] sm:$0xff] %v1735_v1  }
 0x10b   : > { %v1232_v5 = vmul.f32 0.2, %v1080_v3  ;;  %v1083_v6 = vadd.f32 %v1966_v2, %v922_v4  ;;  %v1855_v7 = vpop.f32.mrb[8].mxu0  ;;  %vm1200_vm2 = vcmp.ge.f32.partialorder %v1080_v3, 0.0 }
 0x10c   : > { %v1967_v8 = vpop.f32.mrb[8].mxu1  ;;  %v1856_v9 = vpop.f32.mrb[9].mxu0 }
 0x10d   : > { %vm1201_vm3 = vcmp.ge.f32.partialorder %v1083_v6, 0.0  ;;  %v1233_v10 = vmul.f32 0.2, %v1083_v6  ;;  %v1857_v11 = vadd.f32 %v1856_v9, %v1855_v7  ;;  %v1968_v12 = vpop.f32.mrb[9].mxu1  ;;  %v1858_v13 = vpop.f32.mrb[10].mxu0  ;;  %v1264_v17 = vsel %vm1200_vm2, %v1080_v3, %v1232_v5 }
 0x10e   : > { %v1969_v14 = vadd.f32 %v1968_v12, %v1967_v8  ;;  %v1970_v15 = vpop.f32.mrb[10].mxu1  ;;  %v1859_v16 = vpop.f32.mrb[11].mxu0 }
 0x10f   : > { %v1265_v18 = vsel %vm1201_vm3, %v1083_v6, %v1233_v10  ;;  %v927_v19 = vadd.f32 %v1857_v11, %v2439_v34  ;;  %v1860_v20 = vadd.f32 %v1859_v16, %v1858_v13  ;;  %v1971_v21 = vpop.f32.mrb[11].mxu1 }
 0x110   : > { %v1740_v22 = vpack.c.bf16 %v1265_v18, %v1264_v17  ;;  %v1972_v23 = vadd.f32 %v1971_v21, %v1970_v15 }
 0x111   : > { %v1088_v24 = vadd.f32 %v1969_v14, %v927_v19  ;;  %v930_v25 = vadd.f32 %v1860_v20, %v2439_v34 }
 0x112   : > { %1812 = vst [vmem:[%s2447_s20 + $0x8] sm:$0xff] %v1740_v22  }
 0x113   : > { %v1234_v26 = vmul.f32 0.2, %v1088_v24  ;;  %v1091_v27 = vadd.f32 %v1972_v23, %v930_v25  ;;  %v1861_v28 = vpop.f32.mrb[12].mxu0  ;;  %vm1202_vm4 = vcmp.ge.f32.partialorder %v1088_v24, 0.0 }
 0x114   : > { %v1973_v29 = vpop.f32.mrb[12].mxu1  ;;  %v1862_v30 = vpop.f32.mrb[13].mxu0 }
 0x115   : > { %vm1203_vm5 = vcmp.ge.f32.partialorder %v1091_v27, 0.0  ;;  %v1235_v31 = vmul.f32 0.2, %v1091_v27  ;;  %v1863_v32 = vadd.f32 %v1862_v30, %v1861_v28  ;;  %v1974_v33 = vpop.f32.mrb[13].mxu1  ;;  %v1864_v35 = vpop.f32.mrb[14].mxu0  ;;  %v1266_v39 = vsel %vm1202_vm4, %v1088_v24, %v1234_v26 }
 0x116   : > { %v1975_v36 = vadd.f32 %v1974_v33, %v1973_v29  ;;  %v1976_v37 = vpop.f32.mrb[14].mxu1  ;;  %v1865_v38 = vpop.f32.mrb[15].mxu0 }
 0x117   : > { %v1267_v40 = vsel %vm1203_vm5, %v1091_v27, %v1235_v31  ;;  %v935_v41 = vadd.f32 %v1863_v32, %v2439_v34  ;;  %v1866_v42 = vadd.f32 %v1865_v38, %v1864_v35  ;;  %v1977_v43 = vpop.f32.mrb[15].mxu1 }
 0x118   : > { %v1745_v44 = vpack.c.bf16 %v1267_v40, %v1266_v39  ;;  %v1978_v45 = vadd.f32 %v1977_v43, %v1976_v37 }
 0x119   : > { %v1096_v46 = vadd.f32 %v1975_v36, %v935_v41  ;;  %v938_v47 = vadd.f32 %v1866_v42, %v2439_v34 }
 0x11a   : > { %1813 = vst [vmem:[%s2447_s20 + $0x10] sm:$0xff] %v1745_v44  }
 0x11b   : > { %v1236_v48 = vmul.f32 0.2, %v1096_v46  ;;  %v1099_v49 = vadd.f32 %v1978_v45, %v938_v47  ;;  %v1867_v50 = vpop.f32.mrb[16].mxu0  ;;  %vm1204_vm6 = vcmp.ge.f32.partialorder %v1096_v46, 0.0 }
 0x11c   : > { %v1979_v51 = vpop.f32.mrb[16].mxu1  ;;  %v1868_v52 = vpop.f32.mrb[17].mxu0 }
 0x11d   : > { %vm1205_vm7 = vcmp.ge.f32.partialorder %v1099_v49, 0.0  ;;  %v1237_v53 = vmul.f32 0.2, %v1099_v49  ;;  %v1869_v54 = vadd.f32 %v1868_v52, %v1867_v50  ;;  %v1980_v55 = vpop.f32.mrb[17].mxu1  ;;  %v1870_v56 = vpop.f32.mrb[18].mxu0  ;;  %v1268_v60 = vsel %vm1204_vm6, %v1096_v46, %v1236_v48 }
 0x11e   : > { %v1981_v57 = vadd.f32 %v1980_v55, %v1979_v51  ;;  %v1982_v58 = vpop.f32.mrb[18].mxu1  ;;  %v1871_v59 = vpop.f32.mrb[19].mxu0 }
 0x11f   : > { %v1269_v61 = vsel %vm1205_vm7, %v1099_v49, %v1237_v53  ;;  %v943_v62 = vadd.f32 %v1869_v54, %v2439_v34  ;;  %v1872_v63 = vadd.f32 %v1871_v59, %v1870_v56  ;;  %v1983_v0 = vpop.f32.mrb[19].mxu1 }
 0x120   : > { %v1750_v1 = vpack.c.bf16 %v1269_v61, %v1268_v60  ;;  %v1984_v2 = vadd.f32 %v1983_v0, %v1982_v58 }
 0x121   : > { %v1104_v3 = vadd.f32 %v1981_v57, %v943_v62  ;;  %v946_v4 = vadd.f32 %v1872_v63, %v2439_v34 }
 0x122   : > { %1814 = vst [vmem:[%s2447_s20 + $0x18] sm:$0xff] %v1750_v1  }
 0x123   : > { %v1238_v5 = vmul.f32 0.2, %v1104_v3  ;;  %v1107_v6 = vadd.f32 %v1984_v2, %v946_v4  ;;  %v1873_v7 = vpop.f32.mrb[20].mxu0  ;;  %vm1206_vm8 = vcmp.ge.f32.partialorder %v1104_v3, 0.0 }
 0x124   : > { %v1985_v8 = vpop.f32.mrb[20].mxu1  ;;  %v1874_v9 = vpop.f32.mrb[21].mxu0 }
 0x125   : > { %vm1207_vm9 = vcmp.ge.f32.partialorder %v1107_v6, 0.0  ;;  %v1239_v10 = vmul.f32 0.2, %v1107_v6  ;;  %v1875_v11 = vadd.f32 %v1874_v9, %v1873_v7  ;;  %v1986_v12 = vpop.f32.mrb[21].mxu1  ;;  %v1876_v13 = vpop.f32.mrb[22].mxu0  ;;  %v1270_v17 = vsel %vm1206_vm8, %v1104_v3, %v1238_v5 }
 0x126   : > { %v1987_v14 = vadd.f32 %v1986_v12, %v1985_v8  ;;  %v1988_v15 = vpop.f32.mrb[22].mxu1  ;;  %v1877_v16 = vpop.f32.mrb[23].mxu0 }
 0x127   : > { %v1271_v18 = vsel %vm1207_vm9, %v1107_v6, %v1239_v10  ;;  %v951_v19 = vadd.f32 %v1875_v11, %v2439_v34  ;;  %v1878_v20 = vadd.f32 %v1877_v16, %v1876_v13  ;;  %v1989_v21 = vpop.f32.mrb[23].mxu1 }
 0x128   : > { %v1755_v22 = vpack.c.bf16 %v1271_v18, %v1270_v17  ;;  %v1990_v23 = vadd.f32 %v1989_v21, %v1988_v15 }
 0x129   : > { %v1112_v24 = vadd.f32 %v1987_v14, %v951_v19  ;;  %v954_v25 = vadd.f32 %v1878_v20, %v2439_v34 }
 0x12a   : > { %1815 = vst [vmem:[%s2447_s20 + $0x20] sm:$0xff] %v1755_v22  }
 0x12b   : > { %v1240_v26 = vmul.f32 0.2, %v1112_v24  ;;  %v1115_v27 = vadd.f32 %v1990_v23, %v954_v25  ;;  %v1879_v28 = vpop.f32.mrb[24].mxu0  ;;  %vm1208_vm10 = vcmp.ge.f32.partialorder %v1112_v24, 0.0 }
 0x12c   : > { %v1991_v29 = vpop.f32.mrb[24].mxu1  ;;  %v1880_v30 = vpop.f32.mrb[25].mxu0 }
 0x12d   : > { %vm1209_vm11 = vcmp.ge.f32.partialorder %v1115_v27, 0.0  ;;  %v1241_v31 = vmul.f32 0.2, %v1115_v27  ;;  %v1881_v32 = vadd.f32 %v1880_v30, %v1879_v28  ;;  %v1992_v33 = vpop.f32.mrb[25].mxu1  ;;  %v1882_v35 = vpop.f32.mrb[26].mxu0  ;;  %v1272_v39 = vsel %vm1208_vm10, %v1112_v24, %v1240_v26 }
 0x12e   : > { %v1993_v36 = vadd.f32 %v1992_v33, %v1991_v29  ;;  %v1994_v37 = vpop.f32.mrb[26].mxu1  ;;  %v1883_v38 = vpop.f32.mrb[27].mxu0 }
 0x12f   : > { %v1273_v40 = vsel %vm1209_vm11, %v1115_v27, %v1241_v31  ;;  %v959_v41 = vadd.f32 %v1881_v32, %v2439_v34  ;;  %v1884_v42 = vadd.f32 %v1883_v38, %v1882_v35  ;;  %v1995_v43 = vpop.f32.mrb[27].mxu1 }
 0x130   : > { %v1760_v44 = vpack.c.bf16 %v1273_v40, %v1272_v39  ;;  %v1996_v45 = vadd.f32 %v1995_v43, %v1994_v37 }
 0x131   : > { %v1120_v46 = vadd.f32 %v1993_v36, %v959_v41  ;;  %v962_v47 = vadd.f32 %v1884_v42, %v2439_v34 }
 0x132   : > { %1816 = vst [vmem:[%s2447_s20 + $0x28] sm:$0xff] %v1760_v44  }
 0x133   : > { %v1242_v48 = vmul.f32 0.2, %v1120_v46  ;;  %v1123_v49 = vadd.f32 %v1996_v45, %v962_v47  ;;  %v1885_v50 = vpop.f32.mrb[28].mxu0  ;;  %vm1210_vm12 = vcmp.ge.f32.partialorder %v1120_v46, 0.0 }
 0x134   : > { %v1997_v51 = vpop.f32.mrb[28].mxu1  ;;  %v1886_v52 = vpop.f32.mrb[29].mxu0 }
 0x135   : > { %vm1211_vm13 = vcmp.ge.f32.partialorder %v1123_v49, 0.0  ;;  %v1243_v53 = vmul.f32 0.2, %v1123_v49  ;;  %v1887_v54 = vadd.f32 %v1886_v52, %v1885_v50  ;;  %v1998_v55 = vpop.f32.mrb[29].mxu1  ;;  %v1888_v56 = vpop.f32.mrb[30].mxu0  ;;  %v1274_v60 = vsel %vm1210_vm12, %v1120_v46, %v1242_v48 }
 0x136   : > { %v1999_v57 = vadd.f32 %v1998_v55, %v1997_v51  ;;  %v2000_v58 = vpop.f32.mrb[30].mxu1  ;;  %v1889_v59 = vpop.f32.mrb[31].mxu0 }
 0x137   : > { %v1275_v61 = vsel %vm1211_vm13, %v1123_v49, %v1243_v53  ;;  %v967_v62 = vadd.f32 %v1887_v54, %v2439_v34  ;;  %v1890_v63 = vadd.f32 %v1889_v59, %v1888_v56  ;;  %v2001_v0 = vpop.f32.mrb[31].mxu1 }
 0x138   : > { %v1765_v1 = vpack.c.bf16 %v1275_v61, %v1274_v60  ;;  %v2002_v2 = vadd.f32 %v2001_v0, %v2000_v58 }
 0x139   : > { %v1128_v3 = vadd.f32 %v1999_v57, %v967_v62  ;;  %v970_v4 = vadd.f32 %v1890_v63, %v2439_v34 }
 0x13a   : > { %1817 = vst [vmem:[%s2447_s20 + $0x30] sm:$0xff] %v1765_v1  }
 0x13b   : > { %v1244_v5 = vmul.f32 0.2, %v1128_v3  ;;  %v1131_v6 = vadd.f32 %v2002_v2, %v970_v4  ;;  %v1891_v7 = vpop.f32.mrb[32].mxu0  ;;  %vm1212_vm14 = vcmp.ge.f32.partialorder %v1128_v3, 0.0 }
 0x13c   : > { %v2003_v8 = vpop.f32.mrb[32].mxu1  ;;  %v1892_v9 = vpop.f32.mrb[33].mxu0 }
 0x13d   : > { %vm1213_vm15 = vcmp.ge.f32.partialorder %v1131_v6, 0.0  ;;  %v1245_v10 = vmul.f32 0.2, %v1131_v6  ;;  %v1893_v11 = vadd.f32 %v1892_v9, %v1891_v7  ;;  %v2004_v12 = vpop.f32.mrb[33].mxu1  ;;  %v1894_v13 = vpop.f32.mrb[34].mxu0  ;;  %v1276_v17 = vsel %vm1212_vm14, %v1128_v3, %v1244_v5 }
 0x13e   : > { %v2005_v14 = vadd.f32 %v2004_v12, %v2003_v8  ;;  %v2006_v15 = vpop.f32.mrb[34].mxu1  ;;  %v1895_v16 = vpop.f32.mrb[35].mxu0 }
 0x13f   : > { %v1277_v18 = vsel %vm1213_vm15, %v1131_v6, %v1245_v10  ;;  %v975_v19 = vadd.f32 %v1893_v11, %v2439_v34  ;;  %v1896_v20 = vadd.f32 %v1895_v16, %v1894_v13  ;;  %v2007_v21 = vpop.f32.mrb[35].mxu1 }
 0x140   : > { %v1770_v22 = vpack.c.bf16 %v1277_v18, %v1276_v17  ;;  %v2008_v23 = vadd.f32 %v2007_v21, %v2006_v15 }
 0x141   : > { %v1136_v24 = vadd.f32 %v2005_v14, %v975_v19  ;;  %v978_v25 = vadd.f32 %v1896_v20, %v2439_v34 }
 0x142   : > { %1818 = vst [vmem:[%s2447_s20 + $0x38] sm:$0xff] %v1770_v22  }
 0x143   : > { %v1246_v26 = vmul.f32 0.2, %v1136_v24  ;;  %v1139_v27 = vadd.f32 %v2008_v23, %v978_v25  ;;  %v1897_v28 = vpop.f32.mrb[36].mxu0  ;;  %vm1214_vm0 = vcmp.ge.f32.partialorder %v1136_v24, 0.0 }
 0x144   : > { %v2009_v29 = vpop.f32.mrb[36].mxu1  ;;  %v1898_v30 = vpop.f32.mrb[37].mxu0 }
 0x145   : > { %vm1215_vm1 = vcmp.ge.f32.partialorder %v1139_v27, 0.0  ;;  %v1247_v31 = vmul.f32 0.2, %v1139_v27  ;;  %v1899_v32 = vadd.f32 %v1898_v30, %v1897_v28  ;;  %v2010_v33 = vpop.f32.mrb[37].mxu1  ;;  %v1900_v35 = vpop.f32.mrb[38].mxu0  ;;  %v1278_v39 = vsel %vm1214_vm0, %v1136_v24, %v1246_v26 }
 0x146   : > { %v2011_v36 = vadd.f32 %v2010_v33, %v2009_v29  ;;  %v2012_v37 = vpop.f32.mrb[38].mxu1  ;;  %v1901_v38 = vpop.f32.mrb[39].mxu0 }
 0x147   : > { %v1279_v40 = vsel %vm1215_vm1, %v1139_v27, %v1247_v31  ;;  %v983_v41 = vadd.f32 %v1899_v32, %v2439_v34  ;;  %v1902_v42 = vadd.f32 %v1901_v38, %v1900_v35  ;;  %v2013_v43 = vpop.f32.mrb[39].mxu1 }
 0x148   : > { %v1775_v44 = vpack.c.bf16 %v1279_v40, %v1278_v39  ;;  %v2014_v45 = vadd.f32 %v2013_v43, %v2012_v37 }
 0x149   : > { %v1144_v46 = vadd.f32 %v2011_v36, %v983_v41  ;;  %v986_v47 = vadd.f32 %v1902_v42, %v2439_v34 }
 0x14a   : > { %1819 = vst [vmem:[%s2447_s20 + $0x40] sm:$0xff] %v1775_v44  }
 0x14b   : > { %v1248_v48 = vmul.f32 0.2, %v1144_v46  ;;  %v1147_v49 = vadd.f32 %v2014_v45, %v986_v47  ;;  %v1903_v50 = vpop.f32.mrb[40].mxu0  ;;  %vm1216_vm2 = vcmp.ge.f32.partialorder %v1144_v46, 0.0 }
 0x14c   : > { %v2015_v51 = vpop.f32.mrb[40].mxu1  ;;  %v1904_v52 = vpop.f32.mrb[41].mxu0 }
 0x14d   : > { %vm1217_vm3 = vcmp.ge.f32.partialorder %v1147_v49, 0.0  ;;  %v1249_v53 = vmul.f32 0.2, %v1147_v49  ;;  %v1905_v54 = vadd.f32 %v1904_v52, %v1903_v50  ;;  %v2016_v55 = vpop.f32.mrb[41].mxu1  ;;  %v1906_v56 = vpop.f32.mrb[42].mxu0  ;;  %v1280_v60 = vsel %vm1216_vm2, %v1144_v46, %v1248_v48 }
 0x14e   : > { %v2017_v57 = vadd.f32 %v2016_v55, %v2015_v51  ;;  %v2018_v58 = vpop.f32.mrb[42].mxu1  ;;  %v1907_v59 = vpop.f32.mrb[43].mxu0 }
 0x14f   : > { %v1281_v61 = vsel %vm1217_vm3, %v1147_v49, %v1249_v53  ;;  %v991_v62 = vadd.f32 %v1905_v54, %v2439_v34  ;;  %v1908_v63 = vadd.f32 %v1907_v59, %v1906_v56  ;;  %v2019_v0 = vpop.f32.mrb[43].mxu1 }
 0x150   : > { %v1780_v1 = vpack.c.bf16 %v1281_v61, %v1280_v60  ;;  %v2020_v2 = vadd.f32 %v2019_v0, %v2018_v58 }
 0x151   : > { %v1152_v3 = vadd.f32 %v2017_v57, %v991_v62  ;;  %v994_v4 = vadd.f32 %v1908_v63, %v2439_v34 }
 0x152   : > { %1820 = vst [vmem:[%s2447_s20 + $0x48] sm:$0xff] %v1780_v1  }
 0x153   : > { %v1250_v5 = vmul.f32 0.2, %v1152_v3  ;;  %v1155_v6 = vadd.f32 %v2020_v2, %v994_v4  ;;  %v1909_v7 = vpop.f32.mrb[44].mxu0  ;;  %vm1218_vm4 = vcmp.ge.f32.partialorder %v1152_v3, 0.0 }
 0x154   : > { %v2021_v8 = vpop.f32.mrb[44].mxu1  ;;  %v1910_v9 = vpop.f32.mrb[45].mxu0 }
 0x155   : > { %vm1219_vm5 = vcmp.ge.f32.partialorder %v1155_v6, 0.0  ;;  %v1251_v10 = vmul.f32 0.2, %v1155_v6  ;;  %v1911_v11 = vadd.f32 %v1910_v9, %v1909_v7  ;;  %v2022_v12 = vpop.f32.mrb[45].mxu1  ;;  %v1912_v13 = vpop.f32.mrb[46].mxu0  ;;  %v1282_v17 = vsel %vm1218_vm4, %v1152_v3, %v1250_v5 }
 0x156   : > { %v2023_v14 = vadd.f32 %v2022_v12, %v2021_v8  ;;  %v2024_v15 = vpop.f32.mrb[46].mxu1  ;;  %v1913_v16 = vpop.f32.mrb[47].mxu0 }
 0x157   : > { %v1283_v18 = vsel %vm1219_vm5, %v1155_v6, %v1251_v10  ;;  %v999_v19 = vadd.f32 %v1911_v11, %v2439_v34  ;;  %v1914_v20 = vadd.f32 %v1913_v16, %v1912_v13  ;;  %v2025_v21 = vpop.f32.mrb[47].mxu1 }
 0x158   : > { %v1785_v22 = vpack.c.bf16 %v1283_v18, %v1282_v17  ;;  %v2026_v23 = vadd.f32 %v2025_v21, %v2024_v15 }
 0x159   : > { %v1160_v24 = vadd.f32 %v2023_v14, %v999_v19  ;;  %v1002_v25 = vadd.f32 %v1914_v20, %v2439_v34 }
 0x15a   : > { %1821 = vst [vmem:[%s2447_s20 + $0x50] sm:$0xff] %v1785_v22  }
 0x15b   : > { %v1252_v26 = vmul.f32 0.2, %v1160_v24  ;;  %v1163_v27 = vadd.f32 %v2026_v23, %v1002_v25  ;;  %v1915_v28 = vpop.f32.mrb[48].mxu0  ;;  %vm1220_vm6 = vcmp.ge.f32.partialorder %v1160_v24, 0.0 }
 0x15c   : > { %v2027_v29 = vpop.f32.mrb[48].mxu1  ;;  %v1916_v30 = vpop.f32.mrb[49].mxu0 }
 0x15d   : > { %vm1221_vm7 = vcmp.ge.f32.partialorder %v1163_v27, 0.0  ;;  %v1253_v31 = vmul.f32 0.2, %v1163_v27  ;;  %v1917_v32 = vadd.f32 %v1916_v30, %v1915_v28  ;;  %v2028_v33 = vpop.f32.mrb[49].mxu1  ;;  %v1918_v35 = vpop.f32.mrb[50].mxu0  ;;  %v1284_v39 = vsel %vm1220_vm6, %v1160_v24, %v1252_v26 }
 0x15e   : > { %v2029_v36 = vadd.f32 %v2028_v33, %v2027_v29  ;;  %v2030_v37 = vpop.f32.mrb[50].mxu1  ;;  %v1919_v38 = vpop.f32.mrb[51].mxu0 }
 0x15f   : > { %v1285_v40 = vsel %vm1221_vm7, %v1163_v27, %v1253_v31  ;;  %v1007_v41 = vadd.f32 %v1917_v32, %v2439_v34  ;;  %v1920_v42 = vadd.f32 %v1919_v38, %v1918_v35  ;;  %v2031_v43 = vpop.f32.mrb[51].mxu1 }
 0x160   : > { %v1790_v44 = vpack.c.bf16 %v1285_v40, %v1284_v39  ;;  %v2032_v45 = vadd.f32 %v2031_v43, %v2030_v37 }
 0x161   : > { %v1168_v46 = vadd.f32 %v2029_v36, %v1007_v41  ;;  %v1010_v47 = vadd.f32 %v1920_v42, %v2439_v34 }
 0x162   : > { %1822 = vst [vmem:[%s2447_s20 + $0x58] sm:$0xff] %v1790_v44  }
 0x163   : > { %v1254_v48 = vmul.f32 0.2, %v1168_v46  ;;  %v1171_v49 = vadd.f32 %v2032_v45, %v1010_v47  ;;  %v1921_v50 = vpop.f32.mrb[52].mxu0  ;;  %vm1222_vm8 = vcmp.ge.f32.partialorder %v1168_v46, 0.0 }
 0x164   : > { %v2033_v51 = vpop.f32.mrb[52].mxu1  ;;  %v1922_v52 = vpop.f32.mrb[53].mxu0 }
 0x165   : > { %vm1223_vm9 = vcmp.ge.f32.partialorder %v1171_v49, 0.0  ;;  %v1255_v53 = vmul.f32 0.2, %v1171_v49  ;;  %v1923_v54 = vadd.f32 %v1922_v52, %v1921_v50  ;;  %v2034_v55 = vpop.f32.mrb[53].mxu1  ;;  %v1924_v56 = vpop.f32.mrb[54].mxu0  ;;  %v1286_v60 = vsel %vm1222_vm8, %v1168_v46, %v1254_v48 }
 0x166   : > { %v2035_v57 = vadd.f32 %v2034_v55, %v2033_v51  ;;  %v2036_v58 = vpop.f32.mrb[54].mxu1  ;;  %v1925_v59 = vpop.f32.mrb[55].mxu0 }
 0x167   : > { %v1287_v61 = vsel %vm1223_vm9, %v1171_v49, %v1255_v53  ;;  %v1015_v62 = vadd.f32 %v1923_v54, %v2439_v34  ;;  %v1926_v63 = vadd.f32 %v1925_v59, %v1924_v56  ;;  %v2037_v0 = vpop.f32.mrb[55].mxu1 }
 0x168   : > { %v1795_v1 = vpack.c.bf16 %v1287_v61, %v1286_v60  ;;  %v2038_v2 = vadd.f32 %v2037_v0, %v2036_v58 }
 0x169   : > { %v1176_v3 = vadd.f32 %v2035_v57, %v1015_v62  ;;  %v1018_v4 = vadd.f32 %v1926_v63, %v2439_v34 }
 0x16a   : > { %1823 = vst [vmem:[%s2447_s20 + $0x60] sm:$0xff] %v1795_v1  }
 0x16b   : > { %v1256_v5 = vmul.f32 0.2, %v1176_v3  ;;  %v1179_v6 = vadd.f32 %v2038_v2, %v1018_v4  ;;  %v1927_v7 = vpop.f32.mrb[56].mxu0  ;;  %vm1224_vm10 = vcmp.ge.f32.partialorder %v1176_v3, 0.0 }
 0x16c   : > { %v2039_v8 = vpop.f32.mrb[56].mxu1  ;;  %v1928_v9 = vpop.f32.mrb[57].mxu0 }
 0x16d   : > { %vm1225_vm11 = vcmp.ge.f32.partialorder %v1179_v6, 0.0  ;;  %v1257_v10 = vmul.f32 0.2, %v1179_v6  ;;  %v1929_v11 = vadd.f32 %v1928_v9, %v1927_v7  ;;  %v2040_v12 = vpop.f32.mrb[57].mxu1  ;;  %v1930_v13 = vpop.f32.mrb[58].mxu0  ;;  %v1288_v17 = vsel %vm1224_vm10, %v1176_v3, %v1256_v5 }
 0x16e   : > { %v2041_v14 = vadd.f32 %v2040_v12, %v2039_v8  ;;  %v2042_v15 = vpop.f32.mrb[58].mxu1  ;;  %v1931_v16 = vpop.f32.mrb[59].mxu0 }
 0x16f   : > { %v1289_v18 = vsel %vm1225_vm11, %v1179_v6, %v1257_v10  ;;  %v1023_v19 = vadd.f32 %v1929_v11, %v2439_v34  ;;  %v1932_v20 = vadd.f32 %v1931_v16, %v1930_v13  ;;  %v2043_v21 = vpop.f32.mrb[59].mxu1 }
 0x170   : > { %v1800_v22 = vpack.c.bf16 %v1289_v18, %v1288_v17  ;;  %v2044_v23 = vadd.f32 %v2043_v21, %v2042_v15 }
 0x171   : > { %v1184_v24 = vadd.f32 %v2041_v14, %v1023_v19  ;;  %v1026_v25 = vadd.f32 %v1932_v20, %v2439_v34 }
 0x172   : > { %1824 = vst [vmem:[%s2447_s20 + $0x68] sm:$0xff] %v1800_v22  }
 0x173   : > { %v1258_v26 = vmul.f32 0.2, %v1184_v24  ;;  %v1187_v27 = vadd.f32 %v2044_v23, %v1026_v25  ;;  %v1933_v28 = vpop.f32.mrb[60].mxu0  ;;  %vm1226_vm12 = vcmp.ge.f32.partialorder %v1184_v24, 0.0 }
 0x174   : > { %v2045_v29 = vpop.f32.mrb[60].mxu1  ;;  %v1934_v30 = vpop.f32.mrb[61].mxu0 }
 0x175   : > { %vm1227_vm13 = vcmp.ge.f32.partialorder %v1187_v27, 0.0  ;;  %v1259_v31 = vmul.f32 0.2, %v1187_v27  ;;  %v1935_v32 = vadd.f32 %v1934_v30, %v1933_v28  ;;  %v2046_v33 = vpop.f32.mrb[61].mxu1  ;;  %v1936_v35 = vpop.f32.mrb[62].mxu0  ;;  %v1290_v39 = vsel %vm1226_vm12, %v1184_v24, %v1258_v26 }
 0x176   : > { %v2047_v36 = vadd.f32 %v2046_v33, %v2045_v29  ;;  %v2048_v37 = vpop.f32.mrb[62].mxu1  ;;  %v1937_v38 = vpop.f32.mrb[63].mxu0 }
 0x177   : > { %v1291_v40 = vsel %vm1227_vm13, %v1187_v27, %v1259_v31  ;;  %v1031_v41 = vadd.f32 %v1935_v32, %v2439_v34  ;;  %v1938_v42 = vadd.f32 %v1937_v38, %v1936_v35  ;;  %v2049_v43 = vpop.f32.mrb[63].mxu1 }
 0x178   : > { %v1805_v44 = vpack.c.bf16 %v1291_v40, %v1290_v39  ;;  %v2050_v45 = vadd.f32 %v2049_v43, %v2048_v37 }
 0x179   : > { %v1192_v46 = vadd.f32 %v2047_v36, %v1031_v41  ;;  %v1034_v47 = vadd.f32 %v1938_v42, %v2439_v34 }
 0x17a   : > { %1825 = vst [vmem:[%s2447_s20 + $0x70] sm:$0xff] %v1805_v44  }
 0x17b   : > { %v1260_v48 = vmul.f32 0.2, %v1192_v46  ;;  %v1195_v49 = vadd.f32 %v2050_v45, %v1034_v47  ;;  %vm1228_vm14 = vcmp.ge.f32.partialorder %v1192_v46, 0.0 }
 0x17d   : > { %vm1229_vm15 = vcmp.ge.f32.partialorder %v1195_v49, 0.0  ;;  %v1261_v50 = vmul.f32 0.2, %v1195_v49  ;;  %v1292_v51 = vsel %vm1228_vm14, %v1192_v46, %v1260_v48 }
 0x17f   : > { %v1293_v52 = vsel %vm1229_vm15, %v1195_v49, %v1261_v50 }
 0x180   : > { %v1810_v53 = vpack.c.bf16 %v1293_v52, %v1292_v51 }
 0x182   : > { %1826 = vst [vmem:[%s2447_s20 + $0x78] sm:$0xff] %v1810_v53  }
 0x183 PF: > { %s13_s14 = sadd.s32 1, %s2225_s14   ;;  %s2508_s12 = smov %s2221_s13 }
 0x184   : > { %p10_p5 = scmp.ge.s32.totalorder %s13_s14, 4   ;;  %s2509_s13 = smov %s2511_s15 }
 0x186   :  { %12 = sbr.rel (!%p10_p5) target bundleno = 2 (0x2), region = 68 }

// kernel: enhanced_discriminator_forward.9
= control target key start
LH: loop header
LB: loop body
LE: loop exit
PB: predicated region body
PF: predicated region fallthrough
CT: control target
= control target key end

     0   :  { %v1478_v1 = vmov 0   ;;  %v70_v33 = vlaneseq  ;;  %vm625_vm0 = vcmask 523264   ;;  %s1942_s1 = inlined_call_operand.vmem [shape: bf16[128,384], index: 1, kind: input, shape index: {}]   ;;  %s1943_s0 = inlined_call_operand.vmem [shape: bf16[2,64,128], index: 0, kind: input, shape index: {}]   ;;  %s1944_s2 = inlined_call_operand.vmem [shape: f32[1,384], index: 2, kind: input, shape index: {}]   ;;  %s1945_s3 = inlined_call_operand.<no memory space> [shape: f32[1,1], index: 3, kind: input, shape index: {}]   ;;  %s1946_s4 = inlined_call_operand.vmem [shape: bf16[2,64,128], index: 4, kind: output, shape index: {}]  }
   0x1   :  { %v1365_v0 = vld [vmem:[%s1942_s1 + $0x4] ss:$12 sps:$4 sm:$0xff]   ;;  %293 = vmatprep.mubr.bf16.mxu0 %v1478_v1  ;;  %v1367_v2 = vld [vmem:[%s1942_s1] ss:$12 sps:$4 sm:$0xff]   ;;  %v1368_v3 = vld [vmem:[%s1942_s1 + $0x1c] ss:$12 sps:$4 sm:$0xff]  }
   0x2   :  { %261 = vmatprep.subr.bf16.mxu0 %v1365_v0  ;;  %v1370_v4 = vld [vmem:[%s1942_s1 + $0x18] ss:$12 sps:$4 sm:$0xff]   ;;  %v1371_v5 = vld [vmem:[%s1942_s1 + $0x34] ss:$12 sps:$4 sm:$0xff]   ;;  %v1373_v6 = vld [vmem:[%s1942_s1 + $0x30] ss:$12 sps:$4 sm:$0xff]  }
   0x3   :  { %262 = vmatpush1.bf16.msra.mxu0 %v1367_v2  ;;  %v1374_v7 = vld [vmem:[%s1942_s1 + $0x4c] ss:$12 sps:$4 sm:$0xff]   ;;  %v20_v8 = vld [vmem:[%s1943_s0] sm:$0xff]   ;;  %v1376_v9 = vld [vmem:[%s1942_s1 + $0x48] ss:$12 sps:$4 sm:$0xff]   ;;  %v71_v34 = vshrl.u32 %v70_v33, 7 }
   0x4   :  { %263 = vmatprep.subr.bf16.mxu0 %v1368_v3  ;;  %v1377_v10 = vld [vmem:[%s1942_s1 + $0x64] ss:$12 sps:$4 sm:$0xff]   ;;  %v1379_v11 = vld [vmem:[%s1942_s1 + $0x60] ss:$12 sps:$4 sm:$0xff]   ;;  %1282 = vmatprep.mubr.bf16.mxu1 %v20_v8  ;;  %v1397_v12 = vld [vmem:[%s1942_s1 + $0x8] ss:$12 sps:$4 sm:$0xff]  }
   0x5   :  { %v1398_v13 = vld [vmem:[%s1942_s1 + $0x20] ss:$12 sps:$4 sm:$0xff]   ;;  %v1380_v14 = vld [vmem:[%s1942_s1 + $0x7c] ss:$12 sps:$4 sm:$0xff]   ;;  %1266 = vmatprep.subr.bf16.mxu1 %v1397_v12  ;;  %v1399_v15 = vld [vmem:[%s1942_s1 + $0x38] ss:$12 sps:$4 sm:$0xff]  }
   0x6   :  { %1267 = vmatpush3.bf16.msra.mxu1 %v1397_v12  ;;  %v1382_v16 = vld [vmem:[%s1942_s1 + $0x78] ss:$12 sps:$4 sm:$0xff]   ;;  %v1383_v17 = vld [vmem:[%s1942_s1 + $0x94] ss:$12 sps:$4 sm:$0xff]   ;;  %v1400_v18 = vld [vmem:[%s1942_s1 + $0x50] ss:$12 sps:$4 sm:$0xff]  }
   0x7   :  { %264 = vmatpush1.bf16.msra.mxu0 %v1370_v4  ;;  %1268 = vmatprep.subr.bf16.mxu1 %v1398_v13  ;;  %v1385_v19 = vld [vmem:[%s1942_s1 + $0x90] ss:$12 sps:$4 sm:$0xff]   ;;  %v1386_v20 = vld [vmem:[%s1942_s1 + $0xac] ss:$12 sps:$4 sm:$0xff]   ;;  %v1401_v21 = vld [vmem:[%s1942_s1 + $0x68] ss:$12 sps:$4 sm:$0xff]  }
   0x8   :  { %265 = vmatprep.subr.bf16.mxu0 %v1371_v5  ;;  %v1388_v22 = vld [vmem:[%s1942_s1 + $0xa8] ss:$12 sps:$4 sm:$0xff]   ;;  %v1402_v23 = vld [vmem:[%s1942_s1 + $0x80] ss:$12 sps:$4 sm:$0xff]   ;;  %v1403_v24 = vld [vmem:[%s1942_s1 + $0x98] ss:$12 sps:$4 sm:$0xff]  }
   0x9   :  { %v1581_v25 = vld [vmem:[%s1943_s0 + $0x8] sm:$0xff]   ;;  %v1404_v26 = vld [vmem:[%s1942_s1 + $0xb0] ss:$12 sps:$4 sm:$0xff]   ;;  %v1605_v29 = vld [vmem:[%s1943_s0 + $0x20] sm:$0xff]   ;;  %v72_v35 = vsub.s32 0, %v71_v34  ;;  %v76_v37 = vsub.s32 1, %v71_v34 }
   0xa   :  { %1269 = vmatpush3.bf16.msra.mxu1 %v1398_v13  ;;  %v1591_v27 = vld [vmem:[%s1943_s0 + $0x10] sm:$0xff]   ;;  %v1600_v28 = vld [vmem:[%s1943_s0 + $0x18] sm:$0xff]   ;;  %v1614_v30 = vld [vmem:[%s1943_s0 + $0x28] sm:$0xff]   ;;  %v80_v51 = vsub.s32 2, %v71_v34 }
   0xb   :  { %266 = vmatpush1.bf16.msra.mxu0 %v1373_v6  ;;  %1270 = vmatprep.subr.bf16.mxu1 %v1399_v15  ;;  %v1619_v31 = vld [vmem:[%s1943_s0 + $0x30] sm:$0xff]   ;;  %v1628_v32 = vld [vmem:[%s1943_s0 + $0x38] sm:$0xff]   ;;  %v68_v36 = vld [vmem:[%s1944_s2] sm:$0x7] }
   0xc   :  { %267 = vmatprep.subr.bf16.mxu0 %v1374_v7  ;;  %v1639_v38 = vrot.slane %v68_v36, %v72_v35  ;;  %v1641_v40 = vrot.slane %v68_v36, %v76_v37  ;;  %v1655_v59 = vrot.slane %v68_v36, %v80_v51 }
   0xe   :  { %1271 = vmatpush3.bf16.msra.mxu1 %v1399_v15 }
   0xf   :  { %268 = vmatpush1.bf16.msra.mxu0 %v1376_v9  ;;  %1272 = vmatprep.subr.bf16.mxu1 %v1400_v18 }
  0x10   :  { %269 = vmatprep.subr.bf16.mxu0 %v1377_v10 }
  0x12   :  { %1273 = vmatpush3.bf16.msra.mxu1 %v1400_v18 }
  0x13   :  { %270 = vmatpush1.bf16.msra.mxu0 %v1379_v11  ;;  %1274 = vmatprep.subr.bf16.mxu1 %v1401_v21 }
  0x14   :  { %271 = vmatprep.subr.bf16.mxu0 %v1380_v14 }
  0x16   :  { %1275 = vmatpush3.bf16.msra.mxu1 %v1401_v21 }
  0x17   :  { %272 = vmatpush1.bf16.msra.mxu0 %v1382_v16  ;;  %1276 = vmatprep.subr.bf16.mxu1 %v1402_v23 }
  0x18   :  { %273 = vmatprep.subr.bf16.mxu0 %v1383_v17 }
  0x1a   :  { %1277 = vmatpush3.bf16.msra.mxu1 %v1402_v23 }
  0x1b   :  { %274 = vmatpush1.bf16.msra.mxu0 %v1385_v19  ;;  %1278 = vmatprep.subr.bf16.mxu1 %v1403_v24 }
  0x1c   :  { %275 = vmatprep.subr.bf16.mxu0 %v1386_v20 }
  0x1e   :  { %1279 = vmatpush3.bf16.msra.mxu1 %v1403_v24 }
  0x1f   :  { %276 = vmatpush1.bf16.msra.mxu0 %v1388_v22  ;;  %1280 = vmatprep.subr.bf16.mxu1 %v1404_v26 }
  0x22   :  { %294 = vmatmul.mubr.bf16.vlgmr.msra.gmra.mrb[0].mxu0 %v20_v8  ;;  %1281 = vmatpush3.bf16.msra.mxu1 %v1404_v26 }
  0x23   :  { %303 = vmatprep.mubr.bf16.mxu0 %v1478_v1 }
  0x25   :  { %1283 = vmatmul.mubr.bf16.vlgmr.msra.gmra.mrb[0].mxu1 %v1581_v25 }
  0x26   :  { %1286 = vmatprep.mubr.bf16.mxu1 %v1591_v27 }
  0x2a   :  { %304 = vmatmul.mubr.bf16.gmra.mrb[4].mxu0 %v1581_v25 }
  0x2b   :  { %313 = vmatprep.mubr.bf16.mxu0 %v1478_v1 }
  0x2d   :  { %1287 = vmatmul.mubr.bf16.gmra.mrb[4].mxu1 %v1600_v28 }
  0x2e   :  { %1290 = vmatprep.mubr.bf16.mxu1 %v1605_v29 }
  0x32   :  { %314 = vmatmul.mubr.bf16.gmra.mrb[8].mxu0 %v1591_v27 }
  0x33   :  { %323 = vmatprep.mubr.bf16.mxu0 %v1478_v1 }
  0x35   :  { %1291 = vmatmul.mubr.bf16.gmra.mrb[8].mxu1 %v1614_v30 }
  0x36   :  { %1294 = vmatprep.mubr.bf16.mxu1 %v1619_v31 }
  0x3a   :  { %324 = vmatmul.mubr.bf16.gmra.mrb[12].mxu0 %v1600_v28 }
  0x3b   :  { %333 = vmatprep.mubr.bf16.mxu0 %v1478_v1 }
  0x3d   :  { %1295 = vmatmul.mubr.bf16.gmra.mrb[12].mxu1 %v1628_v32 }
  0x42   :  { %334 = vmatmul.mubr.bf16.gmra.mrb[16].mxu0 %v1605_v29 }
  0x43   :  { %343 = vmatprep.mubr.bf16.mxu0 %v1478_v1 }
  0x4a   :  { %344 = vmatmul.mubr.bf16.gmra.mrb[20].mxu0 %v1614_v30 }
  0x4b   :  { %353 = vmatprep.mubr.bf16.mxu0 %v1478_v1 }
  0x52   :  { %354 = vmatmul.mubr.bf16.gmra.mrb[24].mxu0 %v1619_v31 }
  0x53   :  { %363 = vmatprep.mubr.bf16.mxu0 %v1478_v1 }
  0x5a   :  { %364 = vmatmul.mubr.bf16.gmra.mrb[28].mxu0 %v1628_v32 }
  0xf5   :  { %v295_v39 = vpop.f32.mrb[0].mxu0 }
  0xf6   :  { %v297_v41 = vpop.f32.mrb[1].mxu0  ;;  %v296_v43 = vadd.f32 %v295_v39, %v1639_v38 }
  0xf7   :  { %v299_v42 = vpop.f32.mrb[2].mxu0  ;;  %v298_v46 = vadd.f32 %v297_v41, %v1641_v40 }
  0xf8   :  { %v300_v44 = vadd.f32 %v299_v42, %v1639_v38  ;;  %v301_v45 = vpop.f32.mrb[3].mxu0  ;;  %v1284_v62 = vpop.f32.mrb[0].mxu1 }
  0xf9   :  { %v302_v47 = vadd.f32 %v301_v45, %v1641_v40  ;;  %v417_v63 = vadd.f32 %v1284_v62, %v1655_v59  ;;  %v408_v0 = vpop.f32.mrb[1].mxu1 }
  0xfa   :  { %v471_v48 = vpack.c.bf16 %v300_v44, %v296_v43  ;;  %v409_v2 = vadd.f32 %v408_v0, %v1655_v59  ;;  %v1285_v3 = vpop.f32.mrb[2].mxu1 }
  0xfb   :  { %v479_v49 = vpack.c.bf16 %v302_v47, %v298_v46  ;;  %v420_v5 = vadd.f32 %v1285_v3, %v1655_v59  ;;  %v411_v6 = vpop.f32.mrb[3].mxu1 }
  0xfc   :  { %1306 = vmatprep.mubr.bf16.mxu1 %v471_v48  ;;  %v412_v8 = vadd.f32 %v411_v6, %v1655_v59 }
  0xfd   :  { %v305_v50 = vpop.f32.mrb[4].mxu0  ;;  %1298 = vmatprep.subr.bf16.mxu1 %v479_v49  ;;  %v1669_v12 = vpack.c.bf16 %v420_v5, %v417_v63 }
  0xfe   :  { %v307_v52 = vpop.f32.mrb[5].mxu0  ;;  %1299 = vmatpush3.bf16.xpose.msra.mxu1 %v479_v49  ;;  %v1648_v54 = vadd.f32 %v305_v50, %v1639_v38  ;;  %v1673_v15 = vpack.c.bf16 %v412_v8, %v409_v2 }
  0xff   :  { %v309_v53 = vpop.f32.mrb[6].mxu0  ;;  %v308_v57 = vadd.f32 %v307_v52, %v1641_v40 }
 0x100   :  { %v1651_v55 = vadd.f32 %v309_v53, %v1639_v38  ;;  %v311_v56 = vpop.f32.mrb[7].mxu0  ;;  %v1288_v18 = vpop.f32.mrb[4].mxu1 }
 0x101   :  { %v312_v58 = vadd.f32 %v311_v56, %v1641_v40  ;;  %v433_v19 = vadd.f32 %v1288_v18, %v1655_v59  ;;  %v424_v20 = vpop.f32.mrb[5].mxu1 }
 0x102   :  { %v472_v60 = vpack.c.bf16 %v1651_v55, %v1648_v54  ;;  %v425_v22 = vadd.f32 %v424_v20, %v1655_v59  ;;  %v1289_v23 = vpop.f32.mrb[6].mxu1 }
 0x103   :  { %v480_v61 = vpack.c.bf16 %v312_v58, %v308_v57  ;;  %v436_v26 = vadd.f32 %v1289_v23, %v1655_v59  ;;  %v427_v33 = vpop.f32.mrb[7].mxu1 }
 0x104   :  { %v428_v35 = vadd.f32 %v427_v33, %v1655_v59 }
 0x105   :  { %v315_v1 = vpop.f32.mrb[8].mxu0  ;;  %1300 = vmatprep.subr.bf16.mxu1 %v480_v61  ;;  %v1683_v41 = vpack.c.bf16 %v436_v26, %v433_v19 }
 0x106   :  { %v317_v4 = vpop.f32.mrb[9].mxu0  ;;  %1301 = vmatpush3.bf16.xpose.msra.mxu1 %v480_v61  ;;  %v1664_v9 = vadd.f32 %v315_v1, %v1639_v38  ;;  %v489_v44 = vpack.c.bf16 %v428_v35, %v425_v22 }
 0x107   :  { %v319_v7 = vpop.f32.mrb[10].mxu0  ;;  %v318_v13 = vadd.f32 %v317_v4, %v1641_v40 }
 0x108   :  { %v1667_v10 = vadd.f32 %v319_v7, %v1639_v38  ;;  %v321_v11 = vpop.f32.mrb[11].mxu0  ;;  %v1292_v47 = vpop.f32.mrb[8].mxu1 }
 0x109   :  { %v322_v14 = vadd.f32 %v321_v11, %v1641_v40  ;;  %v449_v48 = vadd.f32 %v1292_v47, %v1655_v59  ;;  %v440_v49 = vpop.f32.mrb[9].mxu1 }
 0x10a   :  { %v473_v16 = vpack.c.bf16 %v1667_v10, %v1664_v9  ;;  %v441_v51 = vadd.f32 %v440_v49, %v1655_v59  ;;  %v1293_v52 = vpop.f32.mrb[10].mxu1 }
 0x10b   :  { %v481_v17 = vpack.c.bf16 %v322_v14, %v318_v13  ;;  %v452_v56 = vadd.f32 %v1293_v52, %v1655_v59  ;;  %v443_v57 = vpop.f32.mrb[11].mxu1 }
 0x10c   :  { %v444_v61 = vadd.f32 %v443_v57, %v1655_v59 }
 0x10d   :  { %v325_v21 = vpop.f32.mrb[12].mxu0  ;;  %1302 = vmatprep.subr.bf16.mxu1 %v481_v17  ;;  %v1694_v1 = vpack.c.bf16 %v452_v56, %v449_v48 }
 0x10e   :  { %v327_v24 = vpop.f32.mrb[13].mxu0  ;;  %1303 = vmatpush3.bf16.xpose.msra.mxu1 %v481_v17  ;;  %v326_v36 = vadd.f32 %v325_v21, %v1639_v38  ;;  %v1698_v4 = vpack.c.bf16 %v444_v61, %v441_v51 }
 0x10f   :  { %v329_v34 = vpop.f32.mrb[14].mxu0  ;;  %v328_v42 = vadd.f32 %v327_v24, %v1641_v40 }
 0x110   :  { %v330_v37 = vadd.f32 %v329_v34, %v1639_v38  ;;  %v331_v39 = vpop.f32.mrb[15].mxu0  ;;  %v1296_v7 = vpop.f32.mrb[12].mxu1 }
 0x111   :  { %v332_v43 = vadd.f32 %v331_v39, %v1641_v40  ;;  %v465_v8 = vadd.f32 %v1296_v7, %v1655_v59  ;;  %v456_v9 = vpop.f32.mrb[13].mxu1 }
 0x112   :  { %v474_v45 = vpack.c.bf16 %v330_v37, %v326_v36  ;;  %v457_v11 = vadd.f32 %v456_v9, %v1655_v59  ;;  %v1297_v13 = vpop.f32.mrb[14].mxu1 }
 0x113   :  { %v482_v46 = vpack.c.bf16 %v332_v43, %v328_v42  ;;  %v468_v18 = vadd.f32 %v1297_v13, %v1655_v59  ;;  %v459_v19 = vpop.f32.mrb[15].mxu1 }
 0x114   :  { %v460_v21 = vadd.f32 %v459_v19, %v1655_v59 }
 0x115   :  { %v335_v50 = vpop.f32.mrb[16].mxu0  ;;  %1304 = vmatprep.subr.bf16.mxu1 %v482_v46 }
 0x116   :  { %v337_v53 = vpop.f32.mrb[17].mxu0  ;;  %1305 = vmatpush3.bf16.xpose.msra.mxu1 %v482_v46  ;;  %v336_v62 = vadd.f32 %v335_v50, %v1639_v38  ;;  %v1715_v23 = vpack.c.bf16 %v460_v21, %v457_v11 }
 0x117   :  { %v339_v58 = vpop.f32.mrb[18].mxu0  ;;  %1330 = vmatprep.subr.bf16.mxu1 %v1673_v15  ;;  %v338_v2 = vadd.f32 %v337_v53, %v1641_v40 }
 0x118   :  { %v340_v63 = vadd.f32 %v339_v58, %v1639_v38  ;;  %v341_v0 = vpop.f32.mrb[19].mxu0 }
 0x119   :  { %v342_v3 = vadd.f32 %v341_v0, %v1641_v40 }
 0x11a   :  { %v475_v5 = vpack.c.bf16 %v340_v63, %v336_v62 }
 0x11b   :  { %v483_v6 = vpack.c.bf16 %v342_v3, %v338_v2 }
 0x11c   :  { %1322 = vmatprep.mubr.bf16.mxu0 %v475_v5 }
 0x11d   :  { %v345_v10 = vpop.f32.mrb[20].mxu0  ;;  %1307 = vmatmul.mubr.bf16.vlgmr.msra.gmra.mrb[16].mxu1 %v472_v60  ;;  %1314 = vmatprep.subr.bf16.mxu0 %v483_v6  ;;  %v1710_v60 = vpack.c.bf16 %v468_v18, %v465_v8 }
 0x11e   :  { %v346_v14 = vadd.f32 %v345_v10, %v1639_v38  ;;  %v347_v17 = vpop.f32.mrb[21].mxu0  ;;  %1310 = vmatprep.mubr.bf16.mxu1 %v473_v16  ;;  %1315 = vmatpush3.bf16.xpose.msra.mxu0 %v483_v6 }
 0x11f   :  { %v349_v20 = vpop.f32.mrb[22].mxu0  ;;  %1331 = vmatpush3.bf16.msra.mxu1 %v1673_v15  ;;  %v348_v22 = vadd.f32 %v347_v17, %v1641_v40 }
 0x120   :  { %v350_v54 = vadd.f32 %v349_v20, %v1639_v38  ;;  %v351_v55 = vpop.f32.mrb[23].mxu0  ;;  %1332 = vmatprep.subr.bf16.mxu1 %v1669_v12 }
 0x121   :  { %v352_v16 = vadd.f32 %v351_v55, %v1641_v40 }
 0x122   :  { %v476_v24 = vpack.c.bf16 %v350_v54, %v346_v14 }
 0x123   :  { %v484_v26 = vpack.c.bf16 %v352_v16, %v348_v22  ;;  %1333 = vmatpush3.bf16.msra.mxu1 %v1669_v12 }
 0x124   :  { %1334 = vmatprep.subr.bf16.mxu1 %v489_v44 }
 0x125   :  { %v355_v59 = vpop.f32.mrb[24].mxu0  ;;  %1311 = vmatmul.mubr.bf16.gmra.mrb[20].mxu1 %v474_v45  ;;  %1316 = vmatprep.subr.bf16.mxu0 %v484_v26 }
 0x126   :  { %v356_v15 = vadd.f32 %v355_v59, %v1639_v38  ;;  %v357_v33 = vpop.f32.mrb[25].mxu0  ;;  %1317 = vmatpush3.bf16.xpose.msra.mxu0 %v484_v26 }
 0x127   :  { %v359_v34 = vpop.f32.mrb[26].mxu0  ;;  %1335 = vmatpush3.bf16.msra.mxu1 %v489_v44  ;;  %v358_v37 = vadd.f32 %v357_v33, %v1641_v40 }
 0x128   :  { %v360_v35 = vadd.f32 %v359_v34, %v1639_v38  ;;  %v361_v36 = vpop.f32.mrb[27].mxu0  ;;  %1336 = vmatprep.subr.bf16.mxu1 %v1683_v41 }
 0x129   :  { %v362_v39 = vadd.f32 %v361_v36, %v1641_v40 }
 0x12a   :  { %v477_v12 = vpack.c.bf16 %v360_v35, %v356_v15 }
 0x12b   :  { %v485_v42 = vpack.c.bf16 %v362_v39, %v358_v37  ;;  %1337 = vmatpush3.bf16.msra.mxu1 %v1683_v41 }
 0x12c   :  { %1346 = vmatprep.subr.bf16.mxu1 %v1698_v4 }
 0x12d   :  { %v365_v43 = vpop.f32.mrb[28].mxu0  ;;  %1318 = vmatprep.subr.bf16.mxu0 %v485_v42 }
 0x12e   :  { %v366_v45 = vadd.f32 %v365_v43, %v1639_v38  ;;  %v367_v44 = vpop.f32.mrb[29].mxu0  ;;  %1319 = vmatpush3.bf16.xpose.msra.mxu0 %v485_v42 }
 0x12f   :  { %v369_v46 = vpop.f32.mrb[30].mxu0  ;;  %v368_v49 = vadd.f32 %v367_v44, %v1641_v40 }
 0x130   :  { %v370_v47 = vadd.f32 %v369_v46, %v1639_v38  ;;  %v371_v48 = vpop.f32.mrb[31].mxu0 }
 0x131   :  { %v372_v50 = vadd.f32 %v371_v48, %v1641_v40 }
 0x132   :  { %v478_v51 = vpack.c.bf16 %v370_v47, %v366_v45 }
 0x133   :  { %v486_v52 = vpack.c.bf16 %v372_v50, %v368_v49 }
 0x135   :  { %1320 = vmatprep.subr.bf16.mxu0 %v486_v52 }
 0x136   :  { %1321 = vmatpush3.bf16.xpose.msra.mxu0 %v486_v52 }
 0x13d   :  { %1323 = vmatmul.mubr.bf16.vlgmr.msra.gmra.mrb[32].mxu0 %v476_v24 }
 0x13e   :  { %1326 = vmatprep.mubr.bf16.mxu0 %v477_v12 }
 0x145   :  { %1327 = vmatmul.mubr.bf16.gmra.mrb[36].mxu0 %v478_v51 }
 0x1f0   :  { %v1308_v41 = vpop.f32.mrb[16].mxu1 }
 0x1f1   :  { %v529_v53 = vpop.f32.mrb[17].mxu1  ;;  %v632_v56 = vsel %vm625_vm0, %v1308_v41, -inf }
 0x1f2   :  { %633 = vmax.xlane.f32.xlu1 %v632_v56  ;;  %v1309_v57 = vpop.f32.mrb[18].mxu1  ;;  %v626_v38 = vsel %vm625_vm0, %v529_v53, -inf }
 0x1f3   :  { %627 = vmax.xlane.f32.xlu0 %v626_v38  ;;  %v532_v58 = vpop.f32.mrb[19].mxu1  ;;  %v635_v40 = vsel %vm625_vm0, %v1309_v57, -inf }
 0x1f4   :  { %v629_v61 = vsel %vm625_vm0, %v532_v58, -inf }
 0x1f6   :  { %636 = vmax.xlane.f32.xlu1 %v635_v40 }
 0x1f7   :  { %630 = vmax.xlane.f32.xlu0 %v629_v61 }
 0x1f8   :  { %v1733_v62 = vpop.f32.mrb[20].mxu1 }
 0x1f9   :  { %v545_v63 = vpop.f32.mrb[21].mxu1  ;;  %v644_v6 = vsel %vm625_vm0, %v1733_v62, -inf }
 0x1fa   :  { %v1735_v0 = vpop.f32.mrb[22].mxu1  ;;  %v638_v2 = vsel %vm625_vm0, %v545_v63, -inf }
 0x1fb   :  { %639 = vmax.xlane.f32.xlu0 %v638_v2  ;;  %v548_v3 = vpop.f32.mrb[23].mxu1  ;;  %v647_v7 = vsel %vm625_vm0, %v1735_v0, -inf }
 0x1fc   :  { %v641_v5 = vsel %vm625_vm0, %v548_v3, -inf }
 0x1fd   :  { %642 = vmax.xlane.f32.xlu1 %v641_v5 }
 0x1ff   :  { %645 = vmax.xlane.f32.xlu0 %v644_v6 }
 0x201   :  { %648 = vmax.xlane.f32.xlu1 %v647_v7 }
 0x210   :  { %v1743_v8 = vpop.f32.mrb[32].mxu0 }
 0x211   :  { %v1745_v9 = vpop.f32.mrb[33].mxu0  ;;  %v656_v17 = vsel %vm625_vm0, %v1743_v8, -inf }
 0x212   :  { %v1747_v10 = vpop.f32.mrb[34].mxu0  ;;  %v650_v11 = vsel %vm625_vm0, %v1745_v9, -inf }
 0x213   :  { %v1751_v13 = vpop.f32.mrb[35].mxu0  ;;  %651 = vmax.xlane.f32.xlu0 %v650_v11  ;;  %v659_v19 = vsel %vm625_vm0, %v1747_v10, -inf }
 0x214   :  { %v653_v14 = vsel %vm625_vm0, %v1751_v13, -inf }
 0x215   :  { %654 = vmax.xlane.f32.xlu1 %v653_v14 }
 0x217   :  { %657 = vmax.xlane.f32.xlu0 %v656_v17 }
 0x218   :  { %v1757_v18 = vpop.f32.mrb[36].mxu0 }
 0x219   :  { %v1761_v20 = vpop.f32.mrb[37].mxu0  ;;  %660 = vmax.xlane.f32.xlu1 %v659_v19  ;;  %v668_v16 = vsel %vm625_vm0, %v1757_v18, -inf }
 0x21a   :  { %v1763_v21 = vpop.f32.mrb[38].mxu0  ;;  %v662_v54 = vsel %vm625_vm0, %v1761_v20, -inf }
 0x21b   :  { %v1767_v55 = vpop.f32.mrb[39].mxu0  ;;  %663 = vmax.xlane.f32.xlu0 %v662_v54  ;;  %v671_v24 = vsel %vm625_vm0, %v1763_v21, -inf }
 0x21c   :  { %v665_v22 = vsel %vm625_vm0, %v1767_v55, -inf }
 0x21d   :  { %666 = vmax.xlane.f32.xlu1 %v665_v22 }
 0x21f   :  { %669 = vmax.xlane.f32.xlu0 %v668_v16 }
 0x221   :  { %672 = vmax.xlane.f32.xlu1 %v671_v24 }
 0x27f   :  { %v634_v26 = vpop.xlane.xlu1 %633 }
 0x280   :  { %v676_v59 = vsub.f32 %v1308_v41, %v634_v26  ;;  %v628_v15 = vpop.xlane.xlu0 %627 }
 0x281   :  { %v674_v33 = vsub.f32 %v529_v53, %v628_v15 }
 0x282   :  { %v694_v34 = vmul.f32 1.442695, %v676_v59 }
 0x283   :  { %v690_v35 = vmul.f32 1.442695, %v674_v33  ;;  %v637_v36 = vpop.xlane.xlu1 %636 }
 0x284   :  { %v677_v37 = vsub.f32 %v1309_v57, %v637_v36  ;;  %v631_v39 = vpop.xlane.xlu0 %630 }
 0x285   :  { %1413 = vpow2.f32 %v690_v35  ;;  %v675_v12 = vsub.f32 %v532_v58, %v631_v39 }
 0x286   :  { %1415 = vpow2.f32 %v694_v34  ;;  %v696_v42 = vmul.f32 1.442695, %v677_v37 }
 0x287   :  { %v692_v43 = vmul.f32 1.442695, %v675_v12 }
 0x288   :  { %v640_v45 = vpop.xlane.xlu0 %639 }
 0x289   :  { %1417 = vpow2.f32 %v692_v43  ;;  %v678_v44 = vsub.f32 %v545_v63, %v640_v45 }
 0x28a   :  { %v643_v46 = vpop.xlane.xlu1 %642  ;;  %1419 = vpow2.f32 %v696_v42 }
 0x28b   :  { %v698_v47 = vmul.f32 1.442695, %v678_v44  ;;  %v679_v48 = vsub.f32 %v548_v3, %v643_v46 }
 0x28c   :  { %v646_v49 = vpop.xlane.xlu0 %645 }
 0x28d   :  { %1421 = vpow2.f32 %v698_v47  ;;  %v700_v50 = vmul.f32 1.442695, %v679_v48  ;;  %v680_v51 = vsub.f32 %v1733_v62, %v646_v49 }
 0x28e   :  { %v649_v52 = vpop.xlane.xlu1 %648 }
 0x28f   :  { %v1776_v41 = vpop.eup %1413  ;;  %1423 = vpow2.f32 %v700_v50  ;;  %v702_v53 = vmul.f32 1.442695, %v680_v51  ;;  %v681_v56 = vsub.f32 %v1735_v0, %v649_v52 }
 0x290   :  { %v722_v57 = vsel %vm625_vm0, %v1776_v41, 0.0  ;;  %v1781_v38 = vpop.eup %1415 }
 0x291   :  { %1425 = vpow2.f32 %v702_v53  ;;  %v704_v58 = vmul.f32 1.442695, %v681_v56  ;;  %723 = vadd.xlane.f32.xlu0 %v722_v57  ;;  %v728_v61 = vsel %vm625_vm0, %v1781_v38, 0.0 }
 0x293   :  { %v1783_v40 = vpop.eup %1417  ;;  %1427 = vpow2.f32 %v704_v58 }
 0x294   :  { %v725_v62 = vsel %vm625_vm0, %v1783_v40, 0.0  ;;  %v1789_v63 = vpop.eup %1419 }
 0x295   :  { %729 = vadd.xlane.f32.xlu0 %v728_v61  ;;  %726 = vadd.xlane.f32.xlu1 %v725_v62  ;;  %v731_v3 = vsel %vm625_vm0, %v1789_v63, 0.0 }
 0x297   :  { %v1791_v0 = vpop.eup %1421 }
 0x298   :  { %v734_v2 = vsel %vm625_vm0, %v1791_v0, 0.0 }
 0x299   :  { %v1797_v5 = vpop.eup %1423  ;;  %735 = vadd.xlane.f32.xlu0 %v734_v2  ;;  %732 = vadd.xlane.f32.xlu1 %v731_v3  ;;  %v9_v2 = vstv %s1945_s3 }
 0x29a   :  { %v737_v11 = vsel %vm625_vm0, %v1797_v5, 0.0  ;;  %10 = vst [vmem:[#allocation2] sm:$0x1] %v9_v2 }
 0x29b   :  { %v1799_v6 = vpop.eup %1425 }
 0x29c   :  { %v740_v7 = vsel %vm625_vm0, %v1799_v6, 0.0 }
 0x29d   :  { %v1805_v14 = vpop.eup %1427  ;;  %741 = vadd.xlane.f32.xlu0 %v740_v7  ;;  %738 = vadd.xlane.f32.xlu1 %v737_v11 }
 0x29e   :  { %v743_v19 = vsel %vm625_vm0, %v1805_v14, 0.0 }
 0x2a0   :  { %v652_v17 = vpop.xlane.xlu0 %651 }
 0x2a1   :  { %v682_v54 = vsub.f32 %v1745_v9, %v652_v17  ;;  %744 = vadd.xlane.f32.xlu1 %v743_v19  ;;  %v964_v3 = vld [vmem:[#allocation2] sm:$0x1] }
 0x2a2   :  { %v655_v22 = vpop.xlane.xlu1 %654  ;;  %1362 = vpush %v964_v3 }
 0x2a3   :  { %v706_v16 = vmul.f32 1.442695, %v682_v54  ;;  %v683_v24 = vsub.f32 %v1751_v13, %v655_v22 }
 0x2a4   :  { %v658_v26 = vpop.xlane.xlu0 %657 }
 0x2a5   :  { %1429 = vpow2.f32 %v706_v16  ;;  %v708_v59 = vmul.f32 1.442695, %v683_v24  ;;  %v684_v15 = vsub.f32 %v1743_v8, %v658_v26 }
 0x2a6   :  { %v661_v33 = vpop.xlane.xlu1 %660 }
 0x2a7   :  { %1431 = vpow2.f32 %v708_v59  ;;  %v710_v34 = vmul.f32 1.442695, %v684_v15  ;;  %v685_v35 = vsub.f32 %v1747_v10, %v661_v33 }
 0x2a8   :  { %v664_v36 = vpop.xlane.xlu0 %663 }
 0x2a9   :  { %1433 = vpow2.f32 %v710_v34  ;;  %v712_v37 = vmul.f32 1.442695, %v685_v35  ;;  %v686_v9 = vsub.f32 %v1761_v20, %v664_v36 }
 0x2aa   :  { %v667_v39 = vpop.xlane.xlu1 %666 }
 0x2ab   :  { %1435 = vpow2.f32 %v712_v37  ;;  %v714_v12 = vmul.f32 1.442695, %v686_v9  ;;  %v687_v13 = vsub.f32 %v1767_v55, %v667_v39 }
 0x2ac   :  { %v670_v42 = vpop.xlane.xlu0 %669 }
 0x2ad   :  { %1437 = vpow2.f32 %v714_v12  ;;  %v716_v43 = vmul.f32 1.442695, %v687_v13  ;;  %v688_v8 = vsub.f32 %v1757_v18, %v670_v42 }
 0x2ae   :  { %v673_v45 = vpop.xlane.xlu1 %672 }
 0x2af   :  { %v1816_v44 = vpop.eup %1429  ;;  %1439 = vpow2.f32 %v716_v43  ;;  %v718_v10 = vmul.f32 1.442695, %v688_v8  ;;  %v689_v46 = vsub.f32 %v1763_v21, %v673_v45 }
 0x2b0   :  { %v746_v20 = vsel %vm625_vm0, %v1816_v44, 0.0 }
 0x2b1   :  { %v1821_v47 = vpop.eup %1431  ;;  %1441 = vpow2.f32 %v718_v10  ;;  %v720_v48 = vmul.f32 1.442695, %v689_v46  ;;  %747 = vadd.xlane.f32.xlu0 %v746_v20 }
 0x2b2   :  { %v749_v55 = vsel %vm625_vm0, %v1821_v47, 0.0 }
 0x2b3   :  { %v1825_v49 = vpop.eup %1433  ;;  %1443 = vpow2.f32 %v720_v48  ;;  %750 = vadd.xlane.f32.xlu1 %v749_v55 }
 0x2b4   :  { %v752_v18 = vsel %vm625_vm0, %v1825_v49, 0.0 }
 0x2b5   :  { %v1829_v50 = vpop.eup %1435  ;;  %753 = vadd.xlane.f32.xlu0 %v752_v18 }
 0x2b6   :  { %v755_v21 = vsel %vm625_vm0, %v1829_v50, 0.0 }
 0x2b7   :  { %v1833_v51 = vpop.eup %1437  ;;  %756 = vadd.xlane.f32.xlu1 %v755_v21 }
 0x2b8   :  { %v758_v52 = vsel %vm625_vm0, %v1833_v51, 0.0 }
 0x2b9   :  { %v1837_v53 = vpop.eup %1439  ;;  %759 = vadd.xlane.f32.xlu0 %v758_v52 }
 0x2ba   :  { %v761_v56 = vsel %vm625_vm0, %v1837_v53, 0.0 }
 0x2bb   :  { %v1841_v57 = vpop.eup %1441  ;;  %762 = vadd.xlane.f32.xlu1 %v761_v56 }
 0x2bc   :  { %v764_v58 = vsel %vm625_vm0, %v1841_v57, 0.0 }
 0x2bd   :  { %v1845_v61 = vpop.eup %1443  ;;  %765 = vadd.xlane.f32.xlu0 %v764_v58 }
 0x2be   :  { %v767_v62 = vsel %vm625_vm0, %v1845_v61, 0.0 }
 0x2bf   :  { %768 = vadd.xlane.f32.xlu1 %v767_v62 }
 0x2d3   :  { %s1363_s3 = spop %1362 }
 0x31e   :  { %v724_v7 = vpop.xlane.xlu0 %723 }
 0x31f   :  { %1445 = vrcp.f32 %v724_v7 }
 0x322   :  { %v730_v11 = vpop.xlane.xlu0 %729  ;;  %v727_v17 = vpop.xlane.xlu1 %726 }
 0x323   :  { %1447 = vrcp.f32 %v727_v17 }
 0x324   :  { %1449 = vrcp.f32 %v730_v11 }
 0x326   :  { %v736_v19 = vpop.xlane.xlu0 %735  ;;  %v733_v54 = vpop.xlane.xlu1 %732 }
 0x327   :  { %1451 = vrcp.f32 %v733_v54 }
 0x328   :  { %1453 = vrcp.f32 %v736_v19  ;;  %v1883_v19 = vstv %s1363_s3 }
 0x329   :  { %v1446_v24 = vpop.eup %1445 }
 0x32a   :  { %v742_v22 = vpop.xlane.xlu0 %741  ;;  %v739_v16 = vpop.xlane.xlu1 %738  ;;  %v786_v15 = vmul.f32 %v1446_v24, %v1776_v41 }
 0x32b   :  { %1455 = vrcp.f32 %v739_v16  ;;  %v986_v16 = vunpack.c.h.bf16 %v1581_v25 }
 0x32c   :  { %1457 = vrcp.f32 %v742_v22 }
 0x32d   :  { %v1448_v26 = vpop.eup %1447 }
 0x32e   :  { %v745_v59 = vpop.xlane.xlu1 %744  ;;  %v787_v33 = vmul.f32 %v1448_v26, %v1783_v40  ;;  %v1450_v34 = vpop.eup %1449 }
 0x32f   :  { %1459 = vrcp.f32 %v745_v59  ;;  %v788_v37 = vmul.f32 %v1450_v34, %v1781_v38 }
 0x330   :  { %v802_v35 = vpack.c.bf16 %v787_v33, %v786_v15 }
 0x331   :  { %v1452_v36 = vpop.eup %1451 }
 0x332   :  { %v789_v9 = vmul.f32 %v1452_v36, %v1789_v63  ;;  %1338 = vmatprep.mubr.msk.bf16.mxu1 %vm625_vm0, %v802_v35  ;;  %v1454_v39 = vpop.eup %1453 }
 0x333   :  { %v790_v43 = vmul.f32 %v1454_v39, %v1791_v0 }
 0x334   :  { %v803_v12 = vpack.c.bf16 %v789_v9, %v788_v37 }
 0x335   :  { %v1456_v13 = vpop.eup %1455 }
 0x336   :  { %v1458_v42 = vpop.eup %1457  ;;  %1339 = vmatmul.mubr.msk.bf16.vlgmr.msra.gmra.mrb[24].mxu1 %vm625_vm0, %v803_v12  ;;  %v791_v41 = vmul.f32 %v1456_v13, %v1797_v5 }
 0x337   :  { %1347 = vmatpush3.bf16.msra.mxu1 %v1698_v4  ;;  %v792_v63 = vmul.f32 %v1458_v42, %v1799_v6  ;;  %v989_v42 = vunpack.c.l.bf16 %v1600_v28 }
 0x338   :  { %1348 = vmatprep.subr.bf16.mxu1 %v1694_v1  ;;  %v804_v38 = vpack.c.bf16 %v791_v41, %v790_v43  ;;  %v990_v41 = vunpack.c.h.bf16 %v1600_v28 }
 0x339   :  { %v1460_v40 = vpop.eup %1459 }
 0x33a   :  { %v793_v8 = vmul.f32 %v1460_v40, %v1805_v14  ;;  %1342 = vmatprep.mubr.msk.bf16.mxu1 %vm625_vm0, %v804_v38  ;;  %v987_v38 = vunpack.c.l.bf16 %v1591_v27 }
 0x33b   :  { %1349 = vmatpush3.bf16.msra.mxu1 %v1694_v1 }
 0x33c   :  { %v805_v45 = vpack.c.bf16 %v793_v8, %v792_v63  ;;  %1350 = vmatprep.subr.bf16.mxu1 %v1715_v23  ;;  %v988_v8 = vunpack.c.h.bf16 %v1591_v27 }
 0x33e   :  { %v748_v0 = vpop.xlane.xlu0 %747  ;;  %1343 = vmatmul.mubr.msk.bf16.gmra.mrb[28].mxu1 %vm625_vm0, %v805_v45 }
 0x33f   :  { %1461 = vrcp.f32 %v748_v0  ;;  %1351 = vmatpush3.bf16.msra.mxu1 %v1715_v23 }
 0x340   :  { %v751_v4 = vpop.xlane.xlu1 %750  ;;  %1352 = vmatprep.subr.bf16.mxu1 %v1710_v60 }
 0x341   :  { %1463 = vrcp.f32 %v751_v4 }
 0x342   :  { %v754_v5 = vpop.xlane.xlu0 %753 }
 0x343   :  { %1465 = vrcp.f32 %v754_v5  ;;  %1353 = vmatpush3.bf16.msra.mxu1 %v1710_v60 }
 0x344   :  { %v757_v6 = vpop.xlane.xlu1 %756 }
 0x345   :  { %1467 = vrcp.f32 %v757_v6 }
 0x346   :  { %v760_v1 = vpop.xlane.xlu0 %759 }
 0x347   :  { %1469 = vrcp.f32 %v760_v1 }
 0x348   :  { %v763_v14 = vpop.xlane.xlu1 %762 }
 0x349   :  { %v1462_v10 = vpop.eup %1461  ;;  %1471 = vrcp.f32 %v763_v14 }
 0x34a   :  { %v766_v46 = vpop.xlane.xlu0 %765  ;;  %v794_v23 = vmul.f32 %v1462_v10, %v1816_v44 }
 0x34b   :  { %v1464_v20 = vpop.eup %1463  ;;  %1473 = vrcp.f32 %v766_v46 }
 0x34c   :  { %v769_v48 = vpop.xlane.xlu1 %768  ;;  %v795_v55 = vmul.f32 %v1464_v20, %v1821_v47  ;;  %v993_v20 = vunpack.c.l.bf16 %v1614_v30 }
 0x34d   :  { %v1466_v18 = vpop.eup %1465  ;;  %1475 = vrcp.f32 %v769_v48 }
 0x34e   :  { %v806_v21 = vpack.c.bf16 %v795_v55, %v794_v23  ;;  %v796_v60 = vmul.f32 %v1466_v18, %v1825_v49  ;;  %v994_v23 = vunpack.c.h.bf16 %v1614_v30  ;;  %v991_v18 = vunpack.c.l.bf16 %v1605_v29 }
 0x34f   :  { %v1468_v52 = vpop.eup %1467 }
 0x350   :  { %v797_v56 = vmul.f32 %v1468_v52, %v1829_v50  ;;  %1354 = vmatprep.mubr.msk.bf16.mxu1 %vm625_vm0, %v806_v21  ;;  %v992_v52 = vunpack.c.h.bf16 %v1605_v29  ;;  %v997_v29 = vunpack.c.l.bf16 %v1628_v32 }
 0x351   :  { %v1470_v58 = vpop.eup %1469 }
 0x352   :  { %v807_v62 = vpack.c.bf16 %v797_v56, %v796_v60  ;;  %v798_v3 = vmul.f32 %v1470_v58, %v1833_v51 }
 0x353   :  { %v1472_v2 = vpop.eup %1471 }
 0x354   :  { %1355 = vmatmul.mubr.msk.bf16.vlgmr.msra.gmra.mrb[32].mxu1 %vm625_vm0, %v807_v62  ;;  %v799_v44 = vmul.f32 %v1472_v2, %v1837_v53  ;;  %v985_v53 = vunpack.c.l.bf16 %v1581_v25 }
 0x355   :  { %v1474_v47 = vpop.eup %1473 }
 0x356   :  { %v808_v7 = vpack.c.bf16 %v799_v44, %v798_v3  ;;  %v800_v49 = vmul.f32 %v1474_v47, %v1841_v57  ;;  %v1477_v57 = vld [vmem:[%s1943_s0] sm:$0xff]  }
 0x357   :  { %v1476_v11 = vpop.eup %1475  ;;  %v984_v59 = vunpack.c.h.bf16 %v1477_v57 }
 0x358   :  { %1358 = vmatprep.mubr.msk.bf16.mxu1 %vm625_vm0, %v808_v7  ;;  %v801_v50 = vmul.f32 %v1476_v11, %v1845_v61  ;;  %v983_v61 = vunpack.c.l.bf16 %v1477_v57 }
 0x35a   :  { %v809_v17 = vpack.c.bf16 %v801_v50, %v800_v49  ;;  %v998_v50 = vunpack.c.h.bf16 %v1628_v32 }
 0x35c   :  { %1359 = vmatmul.mubr.msk.bf16.gmra.mrb[36].mxu1 %vm625_vm0, %v809_v17 }
 0x409   :  { %v1340_v54 = vpop.f32.mrb[24].mxu1 }
 0x40a   :  { %v969_v51 = vmul.f32 %v1340_v54, %v1883_v19  ;;  %v856_v22 = vpop.f32.mrb[25].mxu1  ;;  %v995_v54 = vunpack.c.l.bf16 %v1619_v31 }
 0x40b   :  { %v967_v24 = vmul.f32 %v1883_v19, %v856_v22  ;;  %v1341_v26 = vpop.f32.mrb[26].mxu1 }
 0x40c   :  { %v970_v15 = vmul.f32 %v1341_v26, %v1883_v19  ;;  %v859_v33 = vpop.f32.mrb[27].mxu1  ;;  %v1001_v35 = vadd.f32 %v985_v53, %v969_v51  ;;  %v996_v53 = vunpack.c.h.bf16 %v1619_v31 }
 0x40d   :  { %v968_v34 = vmul.f32 %v1883_v19, %v859_v33  ;;  %v999_v37 = vadd.f32 %v983_v61, %v967_v24 }
 0x40e   :  { %v1002_v36 = vadd.f32 %v986_v16, %v970_v15 }
 0x40f   :  { %v1000_v9 = vadd.f32 %v984_v59, %v968_v34 }
 0x410   :  { %v1179_v39 = vpack.c.bf16 %v1002_v36, %v1001_v35 }
 0x411   :  { %v1174_v25 = vpack.c.bf16 %v1000_v9, %v999_v37  ;;  %v1344_v12 = vpop.f32.mrb[28].mxu1 }
 0x412   :  { %1211 = vst [vmem:[%s1946_s4 + $0x8] sm:$0xff] %v1179_v39   ;;  %v973_v13 = vmul.f32 %v1344_v12, %v1883_v19  ;;  %v872_v43 = vpop.f32.mrb[29].mxu1 }
 0x413   :  { %1175 = vst [vmem:[%s1946_s4] sm:$0xff] %v1174_v25   ;;  %v971_v40 = vmul.f32 %v1883_v19, %v872_v43  ;;  %v1345_v63 = vpop.f32.mrb[30].mxu1 }
 0x414   :  { %v974_v45 = vmul.f32 %v1345_v63, %v1883_v19  ;;  %v875_v0 = vpop.f32.mrb[31].mxu1  ;;  %v1005_v5 = vadd.f32 %v989_v42, %v973_v13 }
 0x415   :  { %v972_v4 = vmul.f32 %v1883_v19, %v875_v0  ;;  %v1003_v1 = vadd.f32 %v987_v38, %v971_v40 }
 0x416   :  { %v1006_v6 = vadd.f32 %v990_v41, %v974_v45 }
 0x417   :  { %v1004_v28 = vadd.f32 %v988_v8, %v972_v4 }
 0x418   :  { %v1189_v14 = vpack.c.bf16 %v1006_v6, %v1005_v5 }
 0x419   :  { %v1184_v10 = vpack.c.bf16 %v1004_v28, %v1003_v1 }
 0x41a   :  { %1213 = vst [vmem:[%s1946_s4 + $0x18] sm:$0xff] %v1189_v14  }
 0x41b   :  { %1212 = vst [vmem:[%s1946_s4 + $0x10] sm:$0xff] %v1184_v10  }
 0x427   :  { %v1356_v27 = vpop.f32.mrb[32].mxu1 }
 0x428   :  { %v977_v46 = vmul.f32 %v1356_v27, %v1883_v19  ;;  %v933_v48 = vpop.f32.mrb[33].mxu1 }
 0x429   :  { %v975_v55 = vmul.f32 %v1883_v19, %v933_v48  ;;  %v1357_v21 = vpop.f32.mrb[34].mxu1 }
 0x42a   :  { %v978_v60 = vmul.f32 %v1357_v21, %v1883_v19  ;;  %v936_v56 = vpop.f32.mrb[35].mxu1  ;;  %v1009_v62 = vadd.f32 %v993_v20, %v977_v46 }
 0x42b   :  { %v976_v58 = vmul.f32 %v1883_v19, %v936_v56  ;;  %v1007_v3 = vadd.f32 %v991_v18, %v975_v55 }
 0x42c   :  { %v1010_v2 = vadd.f32 %v994_v23, %v978_v60 }
 0x42d   :  { %v1008_v44 = vadd.f32 %v992_v52, %v976_v58 }
 0x42e   :  { %v1199_v47 = vpack.c.bf16 %v1010_v2, %v1009_v62 }
 0x42f   :  { %v1194_v7 = vpack.c.bf16 %v1008_v44, %v1007_v3  ;;  %v1360_v11 = vpop.f32.mrb[36].mxu1 }
 0x430   :  { %1215 = vst [vmem:[%s1946_s4 + $0x28] sm:$0xff] %v1199_v47   ;;  %v981_v30 = vmul.f32 %v1360_v11, %v1883_v19  ;;  %v949_v49 = vpop.f32.mrb[37].mxu1 }
 0x431   :  { %1214 = vst [vmem:[%s1946_s4 + $0x20] sm:$0xff] %v1194_v7   ;;  %v979_v17 = vmul.f32 %v1883_v19, %v949_v49  ;;  %v1361_v51 = vpop.f32.mrb[38].mxu1 }
 0x432   :  { %v982_v22 = vmul.f32 %v1361_v51, %v1883_v19  ;;  %v952_v16 = vpop.f32.mrb[39].mxu1  ;;  %v1013_v57 = vadd.f32 %v997_v29, %v981_v30 }
 0x433   :  { %v980_v24 = vmul.f32 %v1883_v19, %v952_v16  ;;  %v1011_v26 = vadd.f32 %v995_v54, %v979_v17 }
 0x434   :  { %v1014_v61 = vadd.f32 %v998_v50, %v982_v22 }
 0x435   :  { %v1012_v32 = vadd.f32 %v996_v53, %v980_v24 }
 0x436   :  { %v1209_v59 = vpack.c.bf16 %v1014_v61, %v1013_v57 }
 0x437   :  { %v1204_v15 = vpack.c.bf16 %v1012_v32, %v1011_v26 }
 0x438   :  { %1217 = vst [vmem:[%s1946_s4 + $0x38] sm:$0xff] %v1209_v59  }
 0x439   :  { %1216 = vst [vmem:[%s1946_s4 + $0x30] sm:$0xff] %v1204_v15  }

// kernel: enhanced_discriminator_forward.8
= control target key start
LH: loop header
LB: loop body
LE: loop exit
PB: predicated region body
PF: predicated region fallthrough
CT: control target
= control target key end

     0   :  { %s2463_s1 = inlined_call_operand.vmem [shape: bf16[1024,128], index: 1, kind: input, shape index: {}]   ;;  %s2464_s0 = inlined_call_operand.vmem [shape: bf16[128,1024], index: 0, kind: input, shape index: {}]   ;;  %s2465_s2 = inlined_call_operand.vmem [shape: f32[1,128], index: 2, kind: input, shape index: {}]   ;;  %s2466_s3 = inlined_call_operand.vmem [shape: bf16[128,128], index: 3, kind: output, shape index: {}]  }
   0x1   :  { %v1902_v0 = vld [vmem:[%s2463_s1 + $0x40] sm:$0xff]   ;;  %v1906_v4 = vld [vmem:[%s2463_s1 + $0x48] sm:$0xff]   ;;  %v1910_v8 = vld [vmem:[%s2463_s1 + $0x50] sm:$0xff]  }
   0x2   :  { %v1903_v1 = vld [vmem:[%s2463_s1 + $0xc0] sm:$0xff]   ;;  %1646 = vmatprep.subr.bf16.mxu0 %v1902_v0  ;;  %v1907_v5 = vld [vmem:[%s2463_s1 + $0xc8] sm:$0xff]   ;;  %v1911_v9 = vld [vmem:[%s2463_s1 + $0xd0] sm:$0xff]  }
   0x3   :  { %v1904_v2 = vld [vmem:[%s2463_s1] sm:$0xff]   ;;  %1710 = vmatprep.subr.bf16.mxu1 %v1903_v1  ;;  %v1908_v6 = vld [vmem:[%s2463_s1 + $0x8] sm:$0xff]   ;;  %v1912_v10 = vld [vmem:[%s2463_s1 + $0x10] sm:$0xff]  }
   0x4   :  { %v1905_v3 = vld [vmem:[%s2463_s1 + $0x80] sm:$0xff]   ;;  %1647 = vmatpush3.bf16.msra.mxu0 %v1904_v2  ;;  %v1909_v7 = vld [vmem:[%s2463_s1 + $0x88] sm:$0xff]   ;;  %v1913_v11 = vld [vmem:[%s2463_s1 + $0x90] sm:$0xff]  }
   0x5   :  { %1711 = vmatpush3.bf16.msra.mxu1 %v1905_v3  ;;  %1648 = vmatprep.subr.bf16.mxu0 %v1906_v4  ;;  %v1914_v12 = vld [vmem:[%s2463_s1 + $0x58] sm:$0xff]   ;;  %v1918_v16 = vld [vmem:[%s2463_s1 + $0x60] sm:$0xff]   ;;  %v1922_v20 = vld [vmem:[%s2463_s1 + $0x68] sm:$0xff]  }
   0x6   :  { %1712 = vmatprep.subr.bf16.mxu1 %v1907_v5  ;;  %v1915_v13 = vld [vmem:[%s2463_s1 + $0xd8] sm:$0xff]   ;;  %v1919_v17 = vld [vmem:[%s2463_s1 + $0xe0] sm:$0xff]   ;;  %v1923_v21 = vld [vmem:[%s2463_s1 + $0xe8] sm:$0xff]  }
   0x7   :  { %v1916_v14 = vld [vmem:[%s2463_s1 + $0x18] sm:$0xff]   ;;  %v1920_v18 = vld [vmem:[%s2463_s1 + $0x20] sm:$0xff]   ;;  %v1924_v22 = vld [vmem:[%s2463_s1 + $0x28] sm:$0xff]  }
   0x8   :  { %1649 = vmatpush3.bf16.msra.mxu0 %v1908_v6  ;;  %v1917_v15 = vld [vmem:[%s2463_s1 + $0x98] sm:$0xff]   ;;  %v1921_v19 = vld [vmem:[%s2463_s1 + $0xa0] sm:$0xff]   ;;  %v1925_v23 = vld [vmem:[%s2463_s1 + $0xa8] sm:$0xff]  }
   0x9   :  { %1713 = vmatpush3.bf16.msra.mxu1 %v1909_v7  ;;  %1650 = vmatprep.subr.bf16.mxu0 %v1910_v8  ;;  %v1926_v24 = vld [vmem:[%s2463_s1 + $0x70] sm:$0xff]   ;;  %v1930_v28 = vld [vmem:[%s2463_s1 + $0x78] sm:$0xff]   ;;  %v15_v32 = vld [vmem:[%s2464_s0] sm:$0xff] }
   0xa   :  { %1714 = vmatprep.subr.bf16.mxu1 %v1911_v9  ;;  %v1927_v25 = vld [vmem:[%s2463_s1 + $0xf0] sm:$0xff]   ;;  %v1931_v29 = vld [vmem:[%s2463_s1 + $0xf8] sm:$0xff]   ;;  %v19_v33 = vld [vmem:[%s2464_s0 + $0x20] sm:$0xff] }
   0xb   :  { %v1928_v26 = vld [vmem:[%s2463_s1 + $0x30] sm:$0xff]   ;;  %v1932_v30 = vld [vmem:[%s2463_s1 + $0x38] sm:$0xff]   ;;  %v16_v34 = vld [vmem:[%s2464_s0 + $0x8] sm:$0xff]  ;;  %v1439_v35 = vcombine.low %v15_v32, %v19_v33  ;;  %v1440_v36 = vcombine.high %v15_v32, %v19_v33 }
   0xc   :  { %1651 = vmatpush3.bf16.msra.mxu0 %v1912_v10  ;;  %v1929_v27 = vld [vmem:[%s2463_s1 + $0xb0] sm:$0xff]   ;;  %v1933_v31 = vld [vmem:[%s2463_s1 + $0xb8] sm:$0xff]   ;;  %v20_v37 = vld [vmem:[%s2464_s0 + $0x28] sm:$0xff] }
   0xd   :  { %1715 = vmatpush3.bf16.msra.mxu1 %v1913_v11  ;;  %1652 = vmatprep.subr.bf16.mxu0 %v1914_v12  ;;  %v1441_v38 = vcombine.low %v16_v34, %v20_v37  ;;  %v1442_v39 = vcombine.high %v16_v34, %v20_v37  ;;  %v1934_v40 = vld [vmem:[%s2463_s1 + $0x140] sm:$0xff]   ;;  %v24_v47 = vld [vmem:[%s2464_s0 + $0x48] sm:$0xff]  ;;  %v1942_v62 = vld [vmem:[%s2463_s1 + $0x150] sm:$0xff]  }
   0xe   :  { %1716 = vmatprep.subr.bf16.mxu1 %v1915_v13  ;;  %950 = vmatprep.mubr.bf16.mxu0 %v1440_v36  ;;  %v1935_v41 = vld [vmem:[%s2463_s1 + $0x100] sm:$0xff]   ;;  %v28_v48 = vld [vmem:[%s2464_s0 + $0x68] sm:$0xff]  ;;  %v1943_v63 = vld [vmem:[%s2463_s1 + $0x110] sm:$0xff]  }
   0xf   :  { %1047 = vmatprep.mubr.bf16.mxu1 %v1442_v39  ;;  %v1936_v42 = vld [vmem:[%s2463_s1 + $0x1c0] sm:$0xff]   ;;  %v1450_v49 = vcombine.high %v24_v47, %v28_v48  ;;  %v1938_v50 = vld [vmem:[%s2463_s1 + $0x148] sm:$0xff]   ;;  %v1449_v53 = vcombine.low %v24_v47, %v28_v48  ;;  %v1944_v0 = vld [vmem:[%s2463_s1 + $0x1d0] sm:$0xff]  }
  0x10   :  { %1653 = vmatpush3.bf16.msra.mxu0 %v1916_v14  ;;  %v1937_v43 = vld [vmem:[%s2463_s1 + $0x180] sm:$0xff]   ;;  %v1939_v52 = vld [vmem:[%s2463_s1 + $0x108] sm:$0xff]   ;;  %v1945_v1 = vld [vmem:[%s2463_s1 + $0x190] sm:$0xff]  }
  0x11   :  { %1717 = vmatpush3.bf16.msra.mxu1 %v1917_v15  ;;  %1654 = vmatprep.subr.bf16.mxu0 %v1918_v16  ;;  %v23_v44 = vld [vmem:[%s2464_s0 + $0x40] sm:$0xff]  ;;  %v1940_v54 = vld [vmem:[%s2463_s1 + $0x1c8] sm:$0xff]   ;;  %v1946_v10 = vld [vmem:[%s2463_s1 + $0x158] sm:$0xff]  }
  0x12   :  { %1718 = vmatprep.subr.bf16.mxu1 %v1919_v17  ;;  %v27_v45 = vld [vmem:[%s2464_s0 + $0x60] sm:$0xff]  ;;  %v1941_v55 = vld [vmem:[%s2463_s1 + $0x188] sm:$0xff]   ;;  %v1947_v11 = vld [vmem:[%s2463_s1 + $0x118] sm:$0xff]  }
  0x13   :  { %v1448_v46 = vcombine.high %v23_v44, %v27_v45  ;;  %v1447_v51 = vcombine.low %v23_v44, %v27_v45  ;;  %v31_v56 = vld [vmem:[%s2464_s0 + $0x80] sm:$0xff]  ;;  %v32_v58 = vld [vmem:[%s2464_s0 + $0x88] sm:$0xff]  ;;  %v1948_v12 = vld [vmem:[%s2463_s1 + $0x1d8] sm:$0xff]  }
  0x14   :  { %1655 = vmatpush3.bf16.msra.mxu0 %v1920_v18  ;;  %v35_v57 = vld [vmem:[%s2464_s0 + $0xa0] sm:$0xff]  ;;  %v36_v59 = vld [vmem:[%s2464_s0 + $0xa8] sm:$0xff]  ;;  %v1949_v13 = vld [vmem:[%s2463_s1 + $0x198] sm:$0xff]  }
  0x15   :  { %1719 = vmatpush3.bf16.msra.mxu1 %v1921_v19  ;;  %1656 = vmatprep.subr.bf16.mxu0 %v1922_v20  ;;  %v1456_v60 = vcombine.high %v31_v56, %v35_v57  ;;  %v1458_v61 = vcombine.high %v32_v58, %v36_v59  ;;  %v1455_v2 = vcombine.low %v31_v56, %v35_v57  ;;  %v39_v3 = vld [vmem:[%s2464_s0 + $0xc0] sm:$0xff]  ;;  %v40_v5 = vld [vmem:[%s2464_s0 + $0xc8] sm:$0xff]  ;;  %v1959_v39 = vld [vmem:[%s2463_s1 + $0x130] sm:$0xff]  }
  0x16   :  { %1720 = vmatprep.subr.bf16.mxu1 %v1923_v21  ;;  %v43_v4 = vld [vmem:[%s2464_s0 + $0xe0] sm:$0xff]  ;;  %v1457_v6 = vcombine.low %v32_v58, %v36_v59  ;;  %v44_v8 = vld [vmem:[%s2464_s0 + $0xe8] sm:$0xff]  ;;  %v1963_v48 = vld [vmem:[%s2463_s1 + $0x138] sm:$0xff]  }
  0x17   :  { %v1464_v7 = vcombine.high %v39_v3, %v43_v4  ;;  %v1466_v9 = vcombine.high %v40_v5, %v44_v8  ;;  %v47_v14 = vld [vmem:[%s2464_s0 + $0x100] sm:$0xff]  ;;  %v48_v16 = vld [vmem:[%s2464_s0 + $0x108] sm:$0xff]  ;;  %v1463_v19 = vcombine.low %v39_v3, %v43_v4  ;;  %v1465_v21 = vcombine.low %v40_v5, %v44_v8  ;;  %v26_v8 = vld [vmem:[%s2464_s0 + $0x58] sm:$0xff] }
  0x18   :  { %1657 = vmatpush3.bf16.msra.mxu0 %v1924_v22  ;;  %v51_v15 = vld [vmem:[%s2464_s0 + $0x120] sm:$0xff]  ;;  %v52_v17 = vld [vmem:[%s2464_s0 + $0x128] sm:$0xff] }
  0x19   :  { %1721 = vmatpush3.bf16.msra.mxu1 %v1925_v23  ;;  %1658 = vmatprep.subr.bf16.mxu0 %v1926_v24  ;;  %v1950_v18 = vld [vmem:[%s2463_s1 + $0x160] sm:$0xff]   ;;  %v1472_v22 = vcombine.high %v47_v14, %v51_v15  ;;  %v1474_v24 = vcombine.high %v48_v16, %v52_v17  ;;  %v1956_v32 = vld [vmem:[%s2463_s1 + $0x1e8] sm:$0xff]   ;;  %v1471_v34 = vcombine.low %v47_v14, %v51_v15  ;;  %v33_v14 = vld [vmem:[%s2464_s0 + $0x90] sm:$0xff] }
  0x1a   :  { %1722 = vmatprep.subr.bf16.mxu1 %v1927_v25  ;;  %v1951_v20 = vld [vmem:[%s2463_s1 + $0x120] sm:$0xff]   ;;  %v1957_v33 = vld [vmem:[%s2463_s1 + $0x1a8] sm:$0xff]   ;;  %v37_v15 = vld [vmem:[%s2464_s0 + $0xb0] sm:$0xff] }
  0x1b   :  { %v1952_v23 = vld [vmem:[%s2463_s1 + $0x1e0] sm:$0xff]   ;;  %v64_v44 = vld [vmem:[%s2464_s0 + $0x188] sm:$0xff] }
  0x1c   :  { %1659 = vmatpush3.bf16.msra.mxu0 %v1928_v26  ;;  %v1953_v25 = vld [vmem:[%s2463_s1 + $0x1a0] sm:$0xff]   ;;  %v68_v45 = vld [vmem:[%s2464_s0 + $0x1a8] sm:$0xff] }
  0x1d   :  { %1723 = vmatpush3.bf16.msra.mxu1 %v1929_v27  ;;  %1660 = vmatprep.subr.bf16.mxu0 %v1930_v28  ;;  %v55_v26 = vld [vmem:[%s2464_s0 + $0x140] sm:$0xff]  ;;  %v1954_v28 = vld [vmem:[%s2463_s1 + $0x168] sm:$0xff]   ;;  %v1489_v59 = vcombine.low %v64_v44, %v68_v45 }
  0x1e   :  { %1724 = vmatprep.subr.bf16.mxu1 %v1931_v29  ;;  %v59_v27 = vld [vmem:[%s2464_s0 + $0x160] sm:$0xff]  ;;  %v56_v29 = vld [vmem:[%s2464_s0 + $0x148] sm:$0xff] }
  0x1f   :  { %v1480_v36 = vcombine.high %v55_v26, %v59_v27  ;;  %v1479_v47 = vcombine.low %v55_v26, %v59_v27  ;;  %v72_v56 = vld [vmem:[%s2464_s0 + $0x1c8] sm:$0xff]  ;;  %v1459_v26 = vcombine.low %v33_v14, %v37_v15 }
  0x20   :  { %1661 = vmatpush3.bf16.msra.mxu0 %v1932_v30  ;;  %v60_v30 = vld [vmem:[%s2464_s0 + $0x168] sm:$0xff] }
  0x21   :  { %1725 = vmatpush3.bf16.msra.mxu1 %v1933_v31  ;;  %1774 = vmatprep.subr.bf16.mxu0 %v1934_v40  ;;  %v1955_v31 = vld [vmem:[%s2463_s1 + $0x128] sm:$0xff]   ;;  %v1482_v37 = vcombine.high %v56_v29, %v60_v30  ;;  %v1960_v40 = vld [vmem:[%s2463_s1 + $0x1f0] sm:$0xff]  }
  0x22   :  { %1838 = vmatprep.subr.bf16.mxu1 %v1936_v42  ;;  %v67_v42 = vld [vmem:[%s2464_s0 + $0x1a0] sm:$0xff]  ;;  %v76_v57 = vld [vmem:[%s2464_s0 + $0x1e8] sm:$0xff] }
  0x23   :  { %951 = vmatmul.mubr.bf16.vlgmr.msra.gmra.mrb[0].mxu0 %v1439_v35  ;;  %v1473_v35 = vcombine.low %v48_v16, %v52_v17  ;;  %v1497_v3 = vcombine.low %v72_v56, %v76_v57  ;;  %v34_v16 = vld [vmem:[%s2464_s0 + $0x98] sm:$0xff] }
  0x24   :  { %1048 = vmatmul.mubr.bf16.vlgmr.msra.gmra.mrb[0].mxu1 %v1441_v38  ;;  %1775 = vmatpush3.bf16.msra.mxu0 %v1935_v41  ;;  %v1958_v38 = vld [vmem:[%s2463_s1 + $0x170] sm:$0xff]   ;;  %v63_v41 = vld [vmem:[%s2464_s0 + $0x180] sm:$0xff]  ;;  %v38_v17 = vld [vmem:[%s2464_s0 + $0xb8] sm:$0xff] }
  0x25   :  { %1839 = vmatpush3.bf16.msra.mxu1 %v1937_v43  ;;  %958 = vmatprep.mubr.bf16.mxu0 %v1448_v46  ;;  %v1961_v43 = vld [vmem:[%s2463_s1 + $0x1b0] sm:$0xff]   ;;  %v1962_v46 = vld [vmem:[%s2463_s1 + $0x178] sm:$0xff]   ;;  %v1487_v58 = vcombine.low %v63_v41, %v67_v42  ;;  %v1461_v27 = vcombine.low %v34_v16, %v38_v17 }
  0x26   :  { %1055 = vmatprep.mubr.bf16.mxu1 %v1450_v49  ;;  %1776 = vmatprep.subr.bf16.mxu0 %v1938_v50  ;;  %v1481_v49 = vcombine.low %v56_v29, %v60_v30  ;;  %v1488_v50 = vcombine.high %v63_v41, %v67_v42  ;;  %v49_v30 = vld [vmem:[%s2464_s0 + $0x110] sm:$0xff]  ;;  %v62_v41 = vld [vmem:[%s2464_s0 + $0x178] sm:$0xff] }
  0x27   :  { %1840 = vmatprep.subr.bf16.mxu1 %v1940_v54  ;;  %v71_v54 = vld [vmem:[%s2464_s0 + $0x1c0] sm:$0xff] }
  0x28   :  { %1777 = vmatpush3.bf16.msra.mxu0 %v1939_v52  ;;  %v1490_v52 = vcombine.high %v64_v44, %v68_v45 }
  0x29   :  { %1841 = vmatpush3.bf16.msra.mxu1 %v1941_v55  ;;  %1778 = vmatprep.subr.bf16.mxu0 %v1942_v62  ;;  %v75_v55 = vld [vmem:[%s2464_s0 + $0x1e0] sm:$0xff]  ;;  %v17_v62 = vld [vmem:[%s2464_s0 + $0x10] sm:$0xff] }
  0x2a   :  { %1842 = vmatprep.subr.bf16.mxu1 %v1944_v0  ;;  %v18_v0 = vld [vmem:[%s2464_s0 + $0x18] sm:$0xff] }
  0x2b   :  { %959 = vmatmul.mubr.bf16.gmra.mrb[4].mxu0 %v1447_v51  ;;  %v1964_v51 = vld [vmem:[%s2463_s1 + $0x1f8] sm:$0xff]  }
  0x2c   :  { %1056 = vmatmul.mubr.bf16.gmra.mrb[4].mxu1 %v1449_v53  ;;  %966 = vmatprep.mubr.bf16.mxu0 %v1456_v60  ;;  %v1965_v53 = vld [vmem:[%s2463_s1 + $0x1b8] sm:$0xff]   ;;  %v1496_v60 = vcombine.high %v71_v54, %v75_v55 }
  0x2d   :  { %1063 = vmatprep.mubr.bf16.mxu1 %v1458_v61  ;;  %1779 = vmatpush3.bf16.msra.mxu0 %v1943_v63  ;;  %v1498_v61 = vcombine.high %v72_v56, %v76_v57  ;;  %v21_v63 = vld [vmem:[%s2464_s0 + $0x30] sm:$0xff]  ;;  %v74_v56 = vld [vmem:[%s2464_s0 + $0x1d8] sm:$0xff] }
  0x2e   :  { %1843 = vmatpush3.bf16.msra.mxu1 %v1945_v1  ;;  %1780 = vmatprep.subr.bf16.mxu0 %v1946_v10  ;;  %v22_v1 = vld [vmem:[%s2464_s0 + $0x38] sm:$0xff]  ;;  %v1444_v4 = vcombine.high %v17_v62, %v21_v63  ;;  %v1443_v10 = vcombine.low %v17_v62, %v21_v63 }
  0x2f   :  { %1844 = vmatprep.subr.bf16.mxu1 %v1948_v12  ;;  %v1446_v5 = vcombine.high %v18_v0, %v22_v1  ;;  %v78_v57 = vld [vmem:[%s2464_s0 + $0x1f8] sm:$0xff] }
  0x30   :  { %v1501_v63 = vcombine.low %v74_v56, %v78_v57 }
  0x31   :  { %1781 = vmatpush3.bf16.msra.mxu0 %v1947_v11  ;;  %v1445_v11 = vcombine.low %v18_v0, %v22_v1 }
  0x32   :  { %1845 = vmatpush3.bf16.msra.mxu1 %v1949_v13  ;;  %1782 = vmatprep.subr.bf16.mxu0 %v1950_v18 }
  0x33   :  { %967 = vmatmul.mubr.bf16.gmra.mrb[8].mxu0 %v1455_v2  ;;  %1846 = vmatprep.subr.bf16.mxu1 %v1952_v23  ;;  %v1495_v2 = vcombine.low %v71_v54, %v75_v55  ;;  %v45_v23 = vld [vmem:[%s2464_s0 + $0xf0] sm:$0xff] }
  0x34   :  { %1064 = vmatmul.mubr.bf16.gmra.mrb[8].mxu1 %v1457_v6  ;;  %974 = vmatprep.mubr.bf16.mxu0 %v1464_v7  ;;  %v25_v6 = vld [vmem:[%s2464_s0 + $0x50] sm:$0xff] }
  0x35   :  { %1071 = vmatprep.mubr.bf16.mxu1 %v1466_v9  ;;  %1783 = vmatpush3.bf16.msra.mxu0 %v1951_v20  ;;  %v29_v7 = vld [vmem:[%s2464_s0 + $0x70] sm:$0xff]  ;;  %v30_v9 = vld [vmem:[%s2464_s0 + $0x78] sm:$0xff]  ;;  %v1460_v20 = vcombine.high %v33_v14, %v37_v15 }
  0x36   :  { %1847 = vmatpush3.bf16.msra.mxu1 %v1953_v25  ;;  %1784 = vmatprep.subr.bf16.mxu0 %v1954_v28  ;;  %v1452_v12 = vcombine.high %v25_v6, %v29_v7  ;;  %v1454_v13 = vcombine.high %v26_v8, %v30_v9  ;;  %v1451_v18 = vcombine.low %v25_v6, %v29_v7  ;;  %v46_v25 = vld [vmem:[%s2464_s0 + $0xf8] sm:$0xff]  ;;  %v73_v54 = vld [vmem:[%s2464_s0 + $0x1d0] sm:$0xff] }
  0x37   :  { %1848 = vmatprep.subr.bf16.mxu1 %v1956_v32  ;;  %v50_v32 = vld [vmem:[%s2464_s0 + $0x118] sm:$0xff]  ;;  %v77_v55 = vld [vmem:[%s2464_s0 + $0x1f0] sm:$0xff] }
  0x38   :  { %v1499_v62 = vcombine.low %v73_v54, %v77_v55 }
  0x39   :  { %1785 = vmatpush3.bf16.msra.mxu0 %v1955_v31  ;;  %v53_v31 = vld [vmem:[%s2464_s0 + $0x130] sm:$0xff] }
  0x3a   :  { %1849 = vmatpush3.bf16.msra.mxu1 %v1957_v33  ;;  %1786 = vmatprep.subr.bf16.mxu0 %v1958_v38  ;;  %v54_v33 = vld [vmem:[%s2464_s0 + $0x138] sm:$0xff]  ;;  %v57_v38 = vld [vmem:[%s2464_s0 + $0x150] sm:$0xff]  ;;  %v1475_v42 = vcombine.low %v49_v30, %v53_v31 }
  0x3b   :  { %975 = vmatmul.mubr.bf16.gmra.mrb[12].mxu0 %v1463_v19  ;;  %1850 = vmatprep.subr.bf16.mxu1 %v1960_v40  ;;  %v1453_v19 = vcombine.low %v26_v8, %v30_v9  ;;  %v58_v40 = vld [vmem:[%s2464_s0 + $0x158] sm:$0xff] }
  0x3c   :  { %1072 = vmatmul.mubr.bf16.gmra.mrb[12].mxu1 %v1465_v21  ;;  %982 = vmatprep.mubr.bf16.mxu0 %v1472_v22  ;;  %v1462_v21 = vcombine.high %v34_v16, %v38_v17  ;;  %v41_v22 = vld [vmem:[%s2464_s0 + $0xd0] sm:$0xff]  ;;  %v1486_v45 = vcombine.high %v58_v40, %v62_v41 }
  0x3d   :  { %1079 = vmatprep.mubr.bf16.mxu1 %v1474_v24  ;;  %1787 = vmatpush3.bf16.msra.mxu0 %v1959_v39  ;;  %v42_v24 = vld [vmem:[%s2464_s0 + $0xd8] sm:$0xff]  ;;  %v1468_v28 = vcombine.high %v41_v22, %v45_v23  ;;  %v61_v39 = vld [vmem:[%s2464_s0 + $0x170] sm:$0xff] }
  0x3e   :  { %1851 = vmatpush3.bf16.msra.mxu1 %v1961_v43  ;;  %1788 = vmatprep.subr.bf16.mxu0 %v1962_v46  ;;  %v1470_v29 = vcombine.high %v42_v24, %v46_v25  ;;  %v1477_v43 = vcombine.low %v50_v32, %v54_v33  ;;  %v1484_v44 = vcombine.high %v57_v38, %v61_v39  ;;  %v65_v46 = vld [vmem:[%s2464_s0 + $0x190] sm:$0xff] }
  0x3f   :  { %1852 = vmatprep.subr.bf16.mxu1 %v1964_v51  ;;  %v1485_v51 = vcombine.low %v58_v40, %v62_v41 }
  0x41   :  { %1789 = vmatpush3.bf16.msra.mxu0 %v1963_v48  ;;  %v66_v48 = vld [vmem:[%s2464_s0 + $0x198] sm:$0xff] }
  0x42   :  { %1853 = vmatpush3.bf16.msra.mxu1 %v1965_v53 }
  0x43   :  { %983 = vmatmul.mubr.bf16.gmra.mrb[16].mxu0 %v1471_v34  ;;  %v1467_v34 = vcombine.low %v41_v22, %v45_v23 }
  0x44   :  { %1080 = vmatmul.mubr.bf16.gmra.mrb[16].mxu1 %v1473_v35  ;;  %990 = vmatprep.mubr.bf16.mxu0 %v1480_v36  ;;  %v1469_v35 = vcombine.low %v42_v24, %v46_v25  ;;  %v1476_v36 = vcombine.high %v49_v30, %v53_v31 }
  0x45   :  { %1087 = vmatprep.mubr.bf16.mxu1 %v1482_v37  ;;  %v1478_v37 = vcombine.high %v50_v32, %v54_v33 }
  0x4b   :  { %991 = vmatmul.mubr.bf16.gmra.mrb[20].mxu0 %v1479_v47  ;;  %v69_v47 = vld [vmem:[%s2464_s0 + $0x1b0] sm:$0xff] }
  0x4c   :  { %1088 = vmatmul.mubr.bf16.gmra.mrb[20].mxu1 %v1481_v49  ;;  %998 = vmatprep.mubr.bf16.mxu0 %v1488_v50  ;;  %v70_v49 = vld [vmem:[%s2464_s0 + $0x1b8] sm:$0xff]  ;;  %v1483_v50 = vcombine.low %v57_v38, %v61_v39 }
  0x4d   :  { %1095 = vmatprep.mubr.bf16.mxu1 %v1490_v52  ;;  %v1492_v52 = vcombine.high %v65_v46, %v69_v47  ;;  %v1494_v53 = vcombine.high %v66_v48, %v70_v49 }
  0x53   :  { %999 = vmatmul.mubr.bf16.gmra.mrb[24].mxu0 %v1487_v58  ;;  %v1491_v58 = vcombine.low %v65_v46, %v69_v47 }
  0x54   :  { %1096 = vmatmul.mubr.bf16.gmra.mrb[24].mxu1 %v1489_v59  ;;  %1006 = vmatprep.mubr.bf16.mxu0 %v1496_v60  ;;  %v1493_v59 = vcombine.low %v66_v48, %v70_v49  ;;  %v1500_v60 = vcombine.high %v73_v54, %v77_v55 }
  0x55   :  { %1103 = vmatprep.mubr.bf16.mxu1 %v1498_v61  ;;  %v1502_v61 = vcombine.high %v74_v56, %v78_v57 }
  0x5b   :  { %1007 = vmatmul.mubr.bf16.gmra.mrb[28].mxu0 %v1495_v2  ;;  %v2373_v2 = vld [vmem:[%s2465_s2] ss:$0 sm:$0xff] }
  0x5c   :  { %1104 = vmatmul.mubr.bf16.gmra.mrb[28].mxu1 %v1497_v3  ;;  %1144 = vmatprep.mubr.bf16.mxu0 %v1444_v4 }
  0x5d   :  { %1241 = vmatprep.mubr.bf16.mxu1 %v1446_v5 }
  0x63   :  { %1145 = vmatmul.mubr.bf16.vlgmr.msra.gmra.mrb[32].mxu0 %v1443_v10 }
  0x64   :  { %1242 = vmatmul.mubr.bf16.vlgmr.msra.gmra.mrb[32].mxu1 %v1445_v11  ;;  %1152 = vmatprep.mubr.bf16.mxu0 %v1452_v12 }
  0x65   :  { %1249 = vmatprep.mubr.bf16.mxu1 %v1454_v13 }
  0x6b   :  { %1153 = vmatmul.mubr.bf16.gmra.mrb[36].mxu0 %v1451_v18 }
  0x6c   :  { %1250 = vmatmul.mubr.bf16.gmra.mrb[36].mxu1 %v1453_v19  ;;  %1160 = vmatprep.mubr.bf16.mxu0 %v1460_v20 }
  0x6d   :  { %1257 = vmatprep.mubr.bf16.mxu1 %v1462_v21 }
  0x73   :  { %1161 = vmatmul.mubr.bf16.gmra.mrb[40].mxu0 %v1459_v26 }
  0x74   :  { %1258 = vmatmul.mubr.bf16.gmra.mrb[40].mxu1 %v1461_v27  ;;  %1168 = vmatprep.mubr.bf16.mxu0 %v1468_v28 }
  0x75   :  { %1265 = vmatprep.mubr.bf16.mxu1 %v1470_v29 }
  0x7b   :  { %1169 = vmatmul.mubr.bf16.gmra.mrb[44].mxu0 %v1467_v34 }
  0x7c   :  { %1266 = vmatmul.mubr.bf16.gmra.mrb[44].mxu1 %v1469_v35  ;;  %1176 = vmatprep.mubr.bf16.mxu0 %v1476_v36 }
  0x7d   :  { %1273 = vmatprep.mubr.bf16.mxu1 %v1478_v37 }
  0x83   :  { %1177 = vmatmul.mubr.bf16.gmra.mrb[48].mxu0 %v1475_v42 }
  0x84   :  { %1274 = vmatmul.mubr.bf16.gmra.mrb[48].mxu1 %v1477_v43  ;;  %1184 = vmatprep.mubr.bf16.mxu0 %v1484_v44 }
  0x85   :  { %1281 = vmatprep.mubr.bf16.mxu1 %v1486_v45 }
  0x8b   :  { %1185 = vmatmul.mubr.bf16.gmra.mrb[52].mxu0 %v1483_v50 }
  0x8c   :  { %1282 = vmatmul.mubr.bf16.gmra.mrb[52].mxu1 %v1485_v51  ;;  %1192 = vmatprep.mubr.bf16.mxu0 %v1492_v52 }
  0x8d   :  { %1289 = vmatprep.mubr.bf16.mxu1 %v1494_v53 }
  0x93   :  { %1193 = vmatmul.mubr.bf16.gmra.mrb[56].mxu0 %v1491_v58 }
  0x94   :  { %1290 = vmatmul.mubr.bf16.gmra.mrb[56].mxu1 %v1493_v59  ;;  %1200 = vmatprep.mubr.bf16.mxu0 %v1500_v60 }
  0x95   :  { %1297 = vmatprep.mubr.bf16.mxu1 %v1502_v61 }
  0x9b   :  { %1201 = vmatmul.mubr.bf16.gmra.mrb[60].mxu0 %v1499_v62 }
  0x9c   :  { %1298 = vmatmul.mubr.bf16.gmra.mrb[60].mxu1 %v1501_v63 }
  0xf6   :  { %v1662_v0 = vpop.f32.mrb[0].mxu0 }
  0xf7   :  { %v1726_v1 = vpop.f32.mrb[0].mxu1  ;;  %v1663_v3 = vpop.f32.mrb[1].mxu0 }
  0xf8   :  { %v1664_v4 = vadd.f32 %v1663_v3, %v1662_v0  ;;  %v1727_v5 = vpop.f32.mrb[1].mxu1  ;;  %v1665_v6 = vpop.f32.mrb[2].mxu0 }
  0xf9   :  { %v1728_v7 = vadd.f32 %v1727_v5, %v1726_v1  ;;  %v1729_v8 = vpop.f32.mrb[2].mxu1  ;;  %v1666_v9 = vpop.f32.mrb[3].mxu0 }
  0xfa   :  { %v953_v10 = vadd.f32 %v1664_v4, %v2373_v2  ;;  %v1667_v11 = vadd.f32 %v1666_v9, %v1665_v6  ;;  %v1730_v12 = vpop.f32.mrb[3].mxu1 }
  0xfb   :  { %v1731_v13 = vadd.f32 %v1730_v12, %v1729_v8 }
  0xfc   :  { %v2376_v14 = vadd.f32 %v1728_v7, %v953_v10  ;;  %v956_v15 = vadd.f32 %v1667_v11, %v2373_v2 }
  0xfe   :  { %v2379_v16 = vadd.f32 %v1731_v13, %v956_v15  ;;  %v1668_v17 = vpop.f32.mrb[4].mxu0 }
  0xff   :  { %v1732_v18 = vpop.f32.mrb[4].mxu1  ;;  %v1669_v19 = vpop.f32.mrb[5].mxu0 }
 0x100   :  { %v1670_v20 = vadd.f32 %v1669_v19, %v1668_v17  ;;  %v1733_v21 = vpop.f32.mrb[5].mxu1  ;;  %v1671_v22 = vpop.f32.mrb[6].mxu0 }
 0x101   :  { %v1734_v23 = vadd.f32 %v1733_v21, %v1732_v18  ;;  %v1735_v24 = vpop.f32.mrb[6].mxu1  ;;  %v1672_v25 = vpop.f32.mrb[7].mxu0 }
 0x102   :  { %v961_v26 = vadd.f32 %v1670_v20, %v2373_v2  ;;  %v1673_v27 = vadd.f32 %v1672_v25, %v1671_v22  ;;  %v1736_v28 = vpop.f32.mrb[7].mxu1 }
 0x103   :  { %v1737_v29 = vadd.f32 %v1736_v28, %v1735_v24 }
 0x104   :  { %v2382_v30 = vadd.f32 %v1734_v23, %v961_v26  ;;  %v964_v31 = vadd.f32 %v1673_v27, %v2373_v2 }
 0x106   :  { %v2385_v32 = vadd.f32 %v1737_v29, %v964_v31  ;;  %v1674_v33 = vpop.f32.mrb[8].mxu0 }
 0x107   :  { %v1738_v34 = vpop.f32.mrb[8].mxu1  ;;  %v1675_v35 = vpop.f32.mrb[9].mxu0 }
 0x108   :  { %v1676_v36 = vadd.f32 %v1675_v35, %v1674_v33  ;;  %v1739_v37 = vpop.f32.mrb[9].mxu1  ;;  %v1677_v38 = vpop.f32.mrb[10].mxu0 }
 0x109   :  { %v1740_v39 = vadd.f32 %v1739_v37, %v1738_v34  ;;  %v1741_v40 = vpop.f32.mrb[10].mxu1  ;;  %v1678_v41 = vpop.f32.mrb[11].mxu0 }
 0x10a   :  { %v969_v42 = vadd.f32 %v1676_v36, %v2373_v2  ;;  %v1679_v43 = vadd.f32 %v1678_v41, %v1677_v38  ;;  %v1742_v44 = vpop.f32.mrb[11].mxu1 }
 0x10b   :  { %v1743_v45 = vadd.f32 %v1742_v44, %v1741_v40 }
 0x10c   :  { %v2388_v46 = vadd.f32 %v1740_v39, %v969_v42  ;;  %v972_v47 = vadd.f32 %v1679_v43, %v2373_v2 }
 0x10e   :  { %v2391_v48 = vadd.f32 %v1743_v45, %v972_v47  ;;  %v1680_v49 = vpop.f32.mrb[12].mxu0 }
 0x10f   :  { %v1744_v50 = vpop.f32.mrb[12].mxu1  ;;  %v1681_v51 = vpop.f32.mrb[13].mxu0 }
 0x110   :  { %v1682_v52 = vadd.f32 %v1681_v51, %v1680_v49  ;;  %v1745_v53 = vpop.f32.mrb[13].mxu1  ;;  %v1683_v54 = vpop.f32.mrb[14].mxu0 }
 0x111   :  { %v1746_v55 = vadd.f32 %v1745_v53, %v1744_v50  ;;  %v1747_v56 = vpop.f32.mrb[14].mxu1  ;;  %v1684_v57 = vpop.f32.mrb[15].mxu0 }
 0x112   :  { %v977_v58 = vadd.f32 %v1682_v52, %v2373_v2  ;;  %v1685_v59 = vadd.f32 %v1684_v57, %v1683_v54  ;;  %v1748_v60 = vpop.f32.mrb[15].mxu1 }
 0x113   :  { %v1749_v61 = vadd.f32 %v1748_v60, %v1747_v56 }
 0x114   :  { %v2394_v62 = vadd.f32 %v1746_v55, %v977_v58  ;;  %v980_v63 = vadd.f32 %v1685_v59, %v2373_v2 }
 0x116   :  { %v2397_v0 = vadd.f32 %v1749_v61, %v980_v63  ;;  %v1686_v1 = vpop.f32.mrb[16].mxu0 }
 0x117   :  { %v1750_v3 = vpop.f32.mrb[16].mxu1  ;;  %v1687_v4 = vpop.f32.mrb[17].mxu0 }
 0x118   :  { %v1688_v5 = vadd.f32 %v1687_v4, %v1686_v1  ;;  %v1751_v6 = vpop.f32.mrb[17].mxu1  ;;  %v1689_v7 = vpop.f32.mrb[18].mxu0 }
 0x119   :  { %v1752_v8 = vadd.f32 %v1751_v6, %v1750_v3  ;;  %v1753_v9 = vpop.f32.mrb[18].mxu1  ;;  %v1690_v10 = vpop.f32.mrb[19].mxu0 }
 0x11a   :  { %v985_v11 = vadd.f32 %v1688_v5, %v2373_v2  ;;  %v1691_v12 = vadd.f32 %v1690_v10, %v1689_v7  ;;  %v1754_v13 = vpop.f32.mrb[19].mxu1 }
 0x11b   :  { %v1755_v15 = vadd.f32 %v1754_v13, %v1753_v9 }
 0x11c   :  { %v2400_v17 = vadd.f32 %v1752_v8, %v985_v11  ;;  %v988_v18 = vadd.f32 %v1691_v12, %v2373_v2 }
 0x11e   :  { %v2403_v19 = vadd.f32 %v1755_v15, %v988_v18  ;;  %v1692_v20 = vpop.f32.mrb[20].mxu0 }
 0x11f   :  { %v1756_v21 = vpop.f32.mrb[20].mxu1  ;;  %v1693_v22 = vpop.f32.mrb[21].mxu0 }
 0x120   :  { %v1694_v23 = vadd.f32 %v1693_v22, %v1692_v20  ;;  %v1757_v24 = vpop.f32.mrb[21].mxu1  ;;  %v1695_v25 = vpop.f32.mrb[22].mxu0 }
 0x121   :  { %v1758_v26 = vadd.f32 %v1757_v24, %v1756_v21  ;;  %v1759_v27 = vpop.f32.mrb[22].mxu1  ;;  %v1696_v28 = vpop.f32.mrb[23].mxu0 }
 0x122   :  { %v993_v29 = vadd.f32 %v1694_v23, %v2373_v2  ;;  %v1697_v31 = vadd.f32 %v1696_v28, %v1695_v25  ;;  %v1760_v33 = vpop.f32.mrb[23].mxu1 }
 0x123   :  { %v1761_v34 = vadd.f32 %v1760_v33, %v1759_v27 }
 0x124   :  { %v2406_v35 = vadd.f32 %v1758_v26, %v993_v29  ;;  %v996_v36 = vadd.f32 %v1697_v31, %v2373_v2 }
 0x126   :  { %v2409_v37 = vadd.f32 %v1761_v34, %v996_v36  ;;  %v1698_v38 = vpop.f32.mrb[24].mxu0 }
 0x127   :  { %v1762_v39 = vpop.f32.mrb[24].mxu1  ;;  %v1699_v40 = vpop.f32.mrb[25].mxu0 }
 0x128   :  { %v1700_v41 = vadd.f32 %v1699_v40, %v1698_v38  ;;  %v1763_v42 = vpop.f32.mrb[25].mxu1  ;;  %v1701_v43 = vpop.f32.mrb[26].mxu0 }
 0x129   :  { %v1764_v44 = vadd.f32 %v1763_v42, %v1762_v39  ;;  %v1765_v45 = vpop.f32.mrb[26].mxu1  ;;  %v1702_v47 = vpop.f32.mrb[27].mxu0 }
 0x12a   :  { %v1001_v49 = vadd.f32 %v1700_v41, %v2373_v2  ;;  %v1703_v50 = vadd.f32 %v1702_v47, %v1701_v43  ;;  %v1766_v51 = vpop.f32.mrb[27].mxu1 }
 0x12b   :  { %v1767_v52 = vadd.f32 %v1766_v51, %v1765_v45 }
 0x12c   :  { %v2412_v53 = vadd.f32 %v1764_v44, %v1001_v49  ;;  %v1004_v54 = vadd.f32 %v1703_v50, %v2373_v2 }
 0x12e   :  { %v2415_v55 = vadd.f32 %v1767_v52, %v1004_v54  ;;  %v1704_v56 = vpop.f32.mrb[28].mxu0 }
 0x12f   :  { %v1768_v57 = vpop.f32.mrb[28].mxu1  ;;  %v1705_v58 = vpop.f32.mrb[29].mxu0 }
 0x130   :  { %v1706_v59 = vadd.f32 %v1705_v58, %v1704_v56  ;;  %v1769_v60 = vpop.f32.mrb[29].mxu1  ;;  %v1707_v61 = vpop.f32.mrb[30].mxu0 }
 0x131   :  { %v1770_v63 = vadd.f32 %v1769_v60, %v1768_v57  ;;  %v1771_v1 = vpop.f32.mrb[30].mxu1  ;;  %v1708_v3 = vpop.f32.mrb[31].mxu0 }
 0x132   :  { %v1009_v4 = vadd.f32 %v1706_v59, %v2373_v2  ;;  %v1709_v5 = vadd.f32 %v1708_v3, %v1707_v61  ;;  %v1772_v6 = vpop.f32.mrb[31].mxu1 }
 0x133   :  { %v1773_v7 = vadd.f32 %v1772_v6, %v1771_v1 }
 0x134   :  { %v2418_v8 = vadd.f32 %v1770_v63, %v1009_v4  ;;  %v1012_v9 = vadd.f32 %v1709_v5, %v2373_v2 }
 0x136   :  { %v2421_v10 = vadd.f32 %v1773_v7, %v1012_v9  ;;  %v1790_v11 = vpop.f32.mrb[32].mxu0 }
 0x137   :  { %v1854_v12 = vpop.f32.mrb[32].mxu1  ;;  %v1791_v13 = vpop.f32.mrb[33].mxu0 }
 0x138   :  { %v1792_v15 = vadd.f32 %v1791_v13, %v1790_v11  ;;  %v1855_v18 = vpop.f32.mrb[33].mxu1  ;;  %v1793_v20 = vpop.f32.mrb[34].mxu0 }
 0x139   :  { %v1856_v21 = vadd.f32 %v1855_v18, %v1854_v12  ;;  %v1857_v22 = vpop.f32.mrb[34].mxu1  ;;  %v1794_v23 = vpop.f32.mrb[35].mxu0 }
 0x13a   :  { %v1147_v24 = vadd.f32 %v1792_v15, %v2376_v14  ;;  %v1795_v25 = vadd.f32 %v1794_v23, %v1793_v20  ;;  %v1858_v26 = vpop.f32.mrb[35].mxu1 }
 0x13b   :  { %v1859_v27 = vadd.f32 %v1858_v26, %v1857_v22 }
 0x13c   :  { %v1244_v28 = vadd.f32 %v1856_v21, %v1147_v24  ;;  %v1150_v29 = vadd.f32 %v1795_v25, %v2379_v16 }
 0x13e   :  { %v1322_v2 = vmul.f32 0.2, %v1244_v28  ;;  %v1247_v31 = vadd.f32 %v1859_v27, %v1150_v29  ;;  %v1796_v33 = vpop.f32.mrb[36].mxu0  ;;  %vm1306_vm0 = vcmp.ge.f32.partialorder %v1244_v28, 0.0 }
 0x13f   :  { %v1860_v34 = vpop.f32.mrb[36].mxu1  ;;  %v1797_v36 = vpop.f32.mrb[37].mxu0 }
 0x140   :  { %vm1307_vm1 = vcmp.ge.f32.partialorder %v1247_v31, 0.0  ;;  %v1323_v38 = vmul.f32 0.2, %v1247_v31  ;;  %v1798_v39 = vadd.f32 %v1797_v36, %v1796_v33  ;;  %v1861_v40 = vpop.f32.mrb[37].mxu1  ;;  %v1799_v41 = vpop.f32.mrb[38].mxu0  ;;  %v1338_v44 = vsel %vm1306_vm0, %v1244_v28, %v1322_v2 }
 0x141   :  { %v1862_v42 = vadd.f32 %v1861_v40, %v1860_v34  ;;  %v1863_v43 = vpop.f32.mrb[38].mxu1  ;;  %v1800_v14 = vpop.f32.mrb[39].mxu0 }
 0x142   :  { %v1339_v45 = vsel %vm1307_vm1, %v1247_v31, %v1323_v38  ;;  %v1155_v47 = vadd.f32 %v1798_v39, %v2382_v30  ;;  %v1801_v49 = vadd.f32 %v1800_v14, %v1799_v41  ;;  %v1864_v16 = vpop.f32.mrb[39].mxu1 }
 0x143   :  { %v1602_v50 = vpack.c.bf16 %v1339_v45, %v1338_v44  ;;  %v1865_v51 = vadd.f32 %v1864_v16, %v1863_v43 }
 0x144   :  { %v1252_v52 = vadd.f32 %v1862_v42, %v1155_v47  ;;  %v1158_v54 = vadd.f32 %v1801_v49, %v2385_v32 }
 0x145   :  { %1603 = vst [vmem:[%s2466_s3] sm:$0xff] %v1602_v50  }
 0x146   :  { %v1324_v56 = vmul.f32 0.2, %v1252_v52  ;;  %v1255_v57 = vadd.f32 %v1865_v51, %v1158_v54  ;;  %v1802_v58 = vpop.f32.mrb[40].mxu0  ;;  %vm1308_vm2 = vcmp.ge.f32.partialorder %v1252_v52, 0.0 }
 0x147   :  { %v1866_v59 = vpop.f32.mrb[40].mxu1  ;;  %v1803_v60 = vpop.f32.mrb[41].mxu0 }
 0x148   :  { %vm1309_vm3 = vcmp.ge.f32.partialorder %v1255_v57, 0.0  ;;  %v1325_v61 = vmul.f32 0.2, %v1255_v57  ;;  %v1804_v30 = vadd.f32 %v1803_v60, %v1802_v58  ;;  %v1867_v63 = vpop.f32.mrb[41].mxu1  ;;  %v1805_v1 = vpop.f32.mrb[42].mxu0  ;;  %v1340_v6 = vsel %vm1308_vm2, %v1252_v52, %v1324_v56 }
 0x149   :  { %v1868_v3 = vadd.f32 %v1867_v63, %v1866_v59  ;;  %v1869_v4 = vpop.f32.mrb[42].mxu1  ;;  %v1806_v5 = vpop.f32.mrb[43].mxu0 }
 0x14a   :  { %v1341_v32 = vsel %vm1309_vm3, %v1255_v57, %v1325_v61  ;;  %v1163_v7 = vadd.f32 %v1804_v30, %v2388_v46  ;;  %v1807_v9 = vadd.f32 %v1806_v5, %v1805_v1  ;;  %v1870_v11 = vpop.f32.mrb[43].mxu1 }
 0x14b   :  { %v1607_v12 = vpack.c.bf16 %v1341_v32, %v1340_v6  ;;  %v1871_v13 = vadd.f32 %v1870_v11, %v1869_v4 }
 0x14c   :  { %v1260_v15 = vadd.f32 %v1868_v3, %v1163_v7  ;;  %v1166_v18 = vadd.f32 %v1807_v9, %v2391_v48 }
 0x14d   :  { %1639 = vst [vmem:[%s2466_s3 + $0x8] sm:$0xff] %v1607_v12  }
 0x14e   :  { %v1326_v20 = vmul.f32 0.2, %v1260_v15  ;;  %v1263_v21 = vadd.f32 %v1871_v13, %v1166_v18  ;;  %v1808_v22 = vpop.f32.mrb[44].mxu0  ;;  %vm1310_vm4 = vcmp.ge.f32.partialorder %v1260_v15, 0.0 }
 0x14f   :  { %v1872_v23 = vpop.f32.mrb[44].mxu1  ;;  %v1809_v24 = vpop.f32.mrb[45].mxu0 }
 0x150   :  { %vm1311_vm5 = vcmp.ge.f32.partialorder %v1263_v21, 0.0  ;;  %v1327_v25 = vmul.f32 0.2, %v1263_v21  ;;  %v1810_v46 = vadd.f32 %v1809_v24, %v1808_v22  ;;  %v1873_v26 = vpop.f32.mrb[45].mxu1  ;;  %v1811_v27 = vpop.f32.mrb[46].mxu0  ;;  %v1342_v31 = vsel %vm1310_vm4, %v1260_v15, %v1326_v20 }
 0x151   :  { %v1874_v28 = vadd.f32 %v1873_v26, %v1872_v23  ;;  %v1875_v29 = vpop.f32.mrb[46].mxu1  ;;  %v1812_v2 = vpop.f32.mrb[47].mxu0 }
 0x152   :  { %v1343_v48 = vsel %vm1311_vm5, %v1263_v21, %v1327_v25  ;;  %v1171_v33 = vadd.f32 %v1810_v46, %v2394_v62  ;;  %v1813_v34 = vadd.f32 %v1812_v2, %v1811_v27  ;;  %v1876_v36 = vpop.f32.mrb[47].mxu1 }
 0x153   :  { %v1612_v38 = vpack.c.bf16 %v1343_v48, %v1342_v31  ;;  %v1877_v39 = vadd.f32 %v1876_v36, %v1875_v29 }
 0x154   :  { %v1268_v40 = vadd.f32 %v1874_v28, %v1171_v33  ;;  %v1174_v41 = vadd.f32 %v1813_v34, %v2397_v0 }
 0x155   :  { %1640 = vst [vmem:[%s2466_s3 + $0x10] sm:$0xff] %v1612_v38  }
 0x156   :  { %v1328_v42 = vmul.f32 0.2, %v1268_v40  ;;  %v1271_v43 = vadd.f32 %v1877_v39, %v1174_v41  ;;  %v1814_v14 = vpop.f32.mrb[48].mxu0  ;;  %vm1312_vm6 = vcmp.ge.f32.partialorder %v1268_v40, 0.0 }
 0x157   :  { %v1878_v44 = vpop.f32.mrb[48].mxu1  ;;  %v1815_v45 = vpop.f32.mrb[49].mxu0 }
 0x158   :  { %vm1313_vm7 = vcmp.ge.f32.partialorder %v1271_v43, 0.0  ;;  %v1329_v47 = vmul.f32 0.2, %v1271_v43  ;;  %v1816_v62 = vadd.f32 %v1815_v45, %v1814_v14  ;;  %v1879_v49 = vpop.f32.mrb[49].mxu1  ;;  %v1817_v16 = vpop.f32.mrb[50].mxu0  ;;  %v1344_v54 = vsel %vm1312_vm6, %v1268_v40, %v1328_v42 }
 0x159   :  { %v1880_v50 = vadd.f32 %v1879_v49, %v1878_v44  ;;  %v1881_v51 = vpop.f32.mrb[50].mxu1  ;;  %v1818_v52 = vpop.f32.mrb[51].mxu0 }
 0x15a   :  { %v1345_v0 = vsel %vm1313_vm7, %v1271_v43, %v1329_v47  ;;  %v1179_v56 = vadd.f32 %v1816_v62, %v2400_v17  ;;  %v1819_v57 = vadd.f32 %v1818_v52, %v1817_v16  ;;  %v1882_v58 = vpop.f32.mrb[51].mxu1 }
 0x15b   :  { %v1617_v59 = vpack.c.bf16 %v1345_v0, %v1344_v54  ;;  %v1883_v60 = vadd.f32 %v1882_v58, %v1881_v51 }
 0x15c   :  { %v1276_v61 = vadd.f32 %v1880_v50, %v1179_v56  ;;  %v1182_v30 = vadd.f32 %v1819_v57, %v2403_v19 }
 0x15d   :  { %1641 = vst [vmem:[%s2466_s3 + $0x18] sm:$0xff] %v1617_v59  }
 0x15e   :  { %v1330_v63 = vmul.f32 0.2, %v1276_v61  ;;  %v1279_v1 = vadd.f32 %v1883_v60, %v1182_v30  ;;  %v1820_v3 = vpop.f32.mrb[52].mxu0  ;;  %vm1314_vm8 = vcmp.ge.f32.partialorder %v1276_v61, 0.0 }
 0x15f   :  { %v1884_v4 = vpop.f32.mrb[52].mxu1  ;;  %v1821_v5 = vpop.f32.mrb[53].mxu0 }
 0x160   :  { %vm1315_vm9 = vcmp.ge.f32.partialorder %v1279_v1, 0.0  ;;  %v1331_v6 = vmul.f32 0.2, %v1279_v1  ;;  %v1822_v17 = vadd.f32 %v1821_v5, %v1820_v3  ;;  %v1885_v32 = vpop.f32.mrb[53].mxu1  ;;  %v1823_v7 = vpop.f32.mrb[54].mxu0  ;;  %v1346_v13 = vsel %vm1314_vm8, %v1276_v61, %v1330_v63 }
 0x161   :  { %v1886_v9 = vadd.f32 %v1885_v32, %v1884_v4  ;;  %v1887_v11 = vpop.f32.mrb[54].mxu1  ;;  %v1824_v12 = vpop.f32.mrb[55].mxu0 }
 0x162   :  { %v1347_v19 = vsel %vm1315_vm9, %v1279_v1, %v1331_v6  ;;  %v1187_v15 = vadd.f32 %v1822_v17, %v2406_v35  ;;  %v1825_v18 = vadd.f32 %v1824_v12, %v1823_v7  ;;  %v1888_v20 = vpop.f32.mrb[55].mxu1 }
 0x163   :  { %v1622_v21 = vpack.c.bf16 %v1347_v19, %v1346_v13  ;;  %v1889_v22 = vadd.f32 %v1888_v20, %v1887_v11 }
 0x164   :  { %v1284_v23 = vadd.f32 %v1886_v9, %v1187_v15  ;;  %v1190_v24 = vadd.f32 %v1825_v18, %v2409_v37 }
 0x165   :  { %1642 = vst [vmem:[%s2466_s3 + $0x20] sm:$0xff] %v1622_v21  }
 0x166   :  { %v1332_v25 = vmul.f32 0.2, %v1284_v23  ;;  %v1287_v46 = vadd.f32 %v1889_v22, %v1190_v24  ;;  %v1826_v26 = vpop.f32.mrb[56].mxu0  ;;  %vm1316_vm10 = vcmp.ge.f32.partialorder %v1284_v23, 0.0 }
 0x167   :  { %v1890_v27 = vpop.f32.mrb[56].mxu1  ;;  %v1827_v28 = vpop.f32.mrb[57].mxu0 }
 0x168   :  { %vm1317_vm11 = vcmp.ge.f32.partialorder %v1287_v46, 0.0  ;;  %v1333_v29 = vmul.f32 0.2, %v1287_v46  ;;  %v1828_v35 = vadd.f32 %v1827_v28, %v1826_v26  ;;  %v1891_v2 = vpop.f32.mrb[57].mxu1  ;;  %v1829_v31 = vpop.f32.mrb[58].mxu0  ;;  %v1348_v36 = vsel %vm1316_vm10, %v1284_v23, %v1332_v25 }
 0x169   :  { %v1892_v48 = vadd.f32 %v1891_v2, %v1890_v27  ;;  %v1893_v33 = vpop.f32.mrb[58].mxu1  ;;  %v1830_v34 = vpop.f32.mrb[59].mxu0 }
 0x16a   :  { %v1349_v37 = vsel %vm1317_vm11, %v1287_v46, %v1333_v29  ;;  %v1195_v38 = vadd.f32 %v1828_v35, %v2412_v53  ;;  %v1831_v39 = vadd.f32 %v1830_v34, %v1829_v31  ;;  %v1894_v40 = vpop.f32.mrb[59].mxu1 }
 0x16b   :  { %v1627_v41 = vpack.c.bf16 %v1349_v37, %v1348_v36  ;;  %v1895_v42 = vadd.f32 %v1894_v40, %v1893_v33 }
 0x16c   :  { %v1292_v43 = vadd.f32 %v1892_v48, %v1195_v38  ;;  %v1198_v14 = vadd.f32 %v1831_v39, %v2415_v55 }
 0x16d   :  { %1643 = vst [vmem:[%s2466_s3 + $0x28] sm:$0xff] %v1627_v41  }
 0x16e   :  { %v1334_v44 = vmul.f32 0.2, %v1292_v43  ;;  %v1295_v45 = vadd.f32 %v1895_v42, %v1198_v14  ;;  %v1832_v47 = vpop.f32.mrb[60].mxu0  ;;  %vm1318_vm12 = vcmp.ge.f32.partialorder %v1292_v43, 0.0 }
 0x16f   :  { %v1896_v62 = vpop.f32.mrb[60].mxu1  ;;  %v1833_v49 = vpop.f32.mrb[61].mxu0 }
 0x170   :  { %vm1319_vm13 = vcmp.ge.f32.partialorder %v1295_v45, 0.0  ;;  %v1335_v16 = vmul.f32 0.2, %v1295_v45  ;;  %v1834_v53 = vadd.f32 %v1833_v49, %v1832_v47  ;;  %v1897_v50 = vpop.f32.mrb[61].mxu1  ;;  %v1835_v51 = vpop.f32.mrb[62].mxu0  ;;  %v1350_v56 = vsel %vm1318_vm12, %v1292_v43, %v1334_v44 }
 0x171   :  { %v1898_v52 = vadd.f32 %v1897_v50, %v1896_v62  ;;  %v1899_v54 = vpop.f32.mrb[62].mxu1  ;;  %v1836_v0 = vpop.f32.mrb[63].mxu0 }
 0x172   :  { %v1351_v55 = vsel %vm1319_vm13, %v1295_v45, %v1335_v16  ;;  %v1203_v57 = vadd.f32 %v1834_v53, %v2418_v8  ;;  %v1837_v58 = vadd.f32 %v1836_v0, %v1835_v51  ;;  %v1900_v59 = vpop.f32.mrb[63].mxu1 }
 0x173   :  { %v1632_v60 = vpack.c.bf16 %v1351_v55, %v1350_v56  ;;  %v1901_v61 = vadd.f32 %v1900_v59, %v1899_v54 }
 0x174   :  { %v1300_v30 = vadd.f32 %v1898_v52, %v1203_v57  ;;  %v1206_v63 = vadd.f32 %v1837_v58, %v2421_v10 }
 0x175   :  { %1644 = vst [vmem:[%s2466_s3 + $0x30] sm:$0xff] %v1632_v60  }
 0x176   :  { %v1336_v1 = vmul.f32 0.2, %v1300_v30  ;;  %v1303_v3 = vadd.f32 %v1901_v61, %v1206_v63  ;;  %vm1320_vm14 = vcmp.ge.f32.partialorder %v1300_v30, 0.0 }
 0x178   :  { %vm1321_vm15 = vcmp.ge.f32.partialorder %v1303_v3, 0.0  ;;  %v1337_v4 = vmul.f32 0.2, %v1303_v3  ;;  %v1352_v5 = vsel %vm1320_vm14, %v1300_v30, %v1336_v1 }
 0x17a   :  { %v1353_v6 = vsel %vm1321_vm15, %v1303_v3, %v1337_v4 }
 0x17b   :  { %v1637_v17 = vpack.c.bf16 %v1353_v6, %v1352_v5 }
 0x17d   :  { %1645 = vst [vmem:[%s2466_s3 + $0x38] sm:$0xff] %v1637_v17  }

// kernel: enhanced_discriminator_forward.11
= control target key start
LH: loop header
LB: loop body
LE: loop exit
PB: predicated region body
PF: predicated region fallthrough
CT: control target
= control target key end

     0   :  { %vm1060_vm0 = vmmov 0   ;;  %vm646_vm1 = vcmask 130048   ;;  %s1343_s1 = inlined_call_operand.vmem [shape: bf16[256,512], index: 1, kind: input, shape index: {}]   ;;  %s1344_s0 = inlined_call_operand.vmem [shape: bf16[2,16,256], index: 0, kind: input, shape index: {}]   ;;  %s1345_s2 = inlined_call_operand.vmem [shape: f32[1,512], index: 2, kind: input, shape index: {}]   ;;  %s1346_s3 = inlined_call_operand.<no memory space> [shape: f32[1,1], index: 3, kind: input, shape index: {}]   ;;  %s1347_s4 = inlined_call_operand.vmem [shape: bf16[2,16,256], index: 4, kind: output, shape index: {}]  }
   0x1   :  { %v943_v0 = vld [vmem:[%s1343_s1 + $0x4] ss:$16 sps:$4 sm:$0xff]   ;;  %v945_v1 = vld [vmem:[%s1343_s1] ss:$16 sps:$4 sm:$0xff]   ;;  %v1134_v14 = vld [vmem:[%s1344_s0 + $0x8] sm:$0xff] }
   0x2   :  { %450 = vmatprep.subr.bf16.mxu0 %v943_v0  ;;  %v946_v2 = vld [vmem:[%s1343_s1 + $0x24] ss:$16 sps:$4 sm:$0xff]   ;;  %v948_v3 = vld [vmem:[%s1343_s1 + $0x20] ss:$16 sps:$4 sm:$0xff]   ;;  %v995_v18 = vld [vmem:[%s1343_s1 + $0xc] ss:$16 sps:$4 sm:$0xff]  }
   0x3   :  { %451 = vmatpush1.bf16.msra.mxu0 %v945_v1  ;;  %v949_v4 = vld [vmem:[%s1343_s1 + $0x44] ss:$16 sps:$4 sm:$0xff]   ;;  %v951_v5 = vld [vmem:[%s1343_s1 + $0x40] ss:$16 sps:$4 sm:$0xff]   ;;  %v997_v19 = vld [vmem:[%s1343_s1 + $0x8] ss:$16 sps:$4 sm:$0xff]   ;;  %503 = vmatprep.subr.bf16.mxu1 %v995_v18 }
   0x4   :  { %452 = vmatprep.subr.bf16.mxu0 %v946_v2  ;;  %v952_v6 = vld [vmem:[%s1343_s1 + $0x64] ss:$16 sps:$4 sm:$0xff]   ;;  %v954_v7 = vld [vmem:[%s1343_s1 + $0x60] ss:$16 sps:$4 sm:$0xff]   ;;  %v998_v20 = vld [vmem:[%s1343_s1 + $0x2c] ss:$16 sps:$4 sm:$0xff]   ;;  %504 = vmatpush1.bf16.msra.mxu1 %v997_v19 }
   0x5   :  { %v955_v8 = vld [vmem:[%s1343_s1 + $0x84] ss:$16 sps:$4 sm:$0xff]   ;;  %v957_v9 = vld [vmem:[%s1343_s1 + $0x80] ss:$16 sps:$4 sm:$0xff]   ;;  %v1000_v21 = vld [vmem:[%s1343_s1 + $0x28] ss:$16 sps:$4 sm:$0xff]   ;;  %505 = vmatprep.subr.bf16.mxu1 %v998_v20 }
   0x6   :  { %v958_v10 = vld [vmem:[%s1343_s1 + $0xa4] ss:$16 sps:$4 sm:$0xff]   ;;  %v960_v11 = vld [vmem:[%s1343_s1 + $0xa0] ss:$16 sps:$4 sm:$0xff]   ;;  %v1001_v23 = vld [vmem:[%s1343_s1 + $0x4c] ss:$16 sps:$4 sm:$0xff]  }
   0x7   :  { %453 = vmatpush1.bf16.msra.mxu0 %v948_v3  ;;  %v961_v12 = vld [vmem:[%s1343_s1 + $0xc4] ss:$16 sps:$4 sm:$0xff]   ;;  %v963_v15 = vld [vmem:[%s1343_s1 + $0xc0] ss:$16 sps:$4 sm:$0xff]   ;;  %v1003_v25 = vld [vmem:[%s1343_s1 + $0x48] ss:$16 sps:$4 sm:$0xff]  }
   0x8   :  { %454 = vmatprep.subr.bf16.mxu0 %v949_v4  ;;  %v1129_v13 = vld [vmem:[%s1344_s0] sm:$0xff]  ;;  %506 = vmatpush1.bf16.msra.mxu1 %v1000_v21  ;;  %v1004_v27 = vld [vmem:[%s1343_s1 + $0x6c] ss:$16 sps:$4 sm:$0xff]   ;;  %v1006_v29 = vld [vmem:[%s1343_s1 + $0x68] ss:$16 sps:$4 sm:$0xff]  }
   0x9   :  { %v964_v16 = vld [vmem:[%s1343_s1 + $0xe4] ss:$16 sps:$4 sm:$0xff]   ;;  %v845_v17 = vcombine.high %v1129_v13, %v1134_v14  ;;  %v966_v22 = vld [vmem:[%s1343_s1 + $0xe0] ss:$16 sps:$4 sm:$0xff]   ;;  %507 = vmatprep.subr.bf16.mxu1 %v1001_v23  ;;  %v1007_v31 = vld [vmem:[%s1343_s1 + $0x8c] ss:$16 sps:$4 sm:$0xff]   ;;  %v844_v58 = vcombine.low %v1129_v13, %v1134_v14 }
   0xa   :  { %v967_v24 = vld [vmem:[%s1343_s1 + $0x104] ss:$16 sps:$4 sm:$0xff]   ;;  %v969_v26 = vld [vmem:[%s1343_s1 + $0x100] ss:$16 sps:$4 sm:$0xff]   ;;  %v1009_v33 = vld [vmem:[%s1343_s1 + $0x88] ss:$16 sps:$4 sm:$0xff]  }
   0xb   :  { %455 = vmatpush1.bf16.msra.mxu0 %v951_v5  ;;  %482 = vmatprep.mubr.bf16.mxu0 %v845_v17  ;;  %v970_v28 = vld [vmem:[%s1343_s1 + $0x124] ss:$16 sps:$4 sm:$0xff]   ;;  %v972_v30 = vld [vmem:[%s1343_s1 + $0x120] ss:$16 sps:$4 sm:$0xff]   ;;  %v1010_v35 = vld [vmem:[%s1343_s1 + $0xac] ss:$16 sps:$4 sm:$0xff]  }
   0xc   :  { %456 = vmatprep.subr.bf16.mxu0 %v952_v6  ;;  %535 = vmatprep.mubr.bf16.mxu1 %v845_v17  ;;  %v973_v32 = vld [vmem:[%s1343_s1 + $0x144] ss:$16 sps:$4 sm:$0xff]   ;;  %v975_v34 = vld [vmem:[%s1343_s1 + $0x140] ss:$16 sps:$4 sm:$0xff]   ;;  %v1012_v37 = vld [vmem:[%s1343_s1 + $0xa8] ss:$16 sps:$4 sm:$0xff]  }
   0xd   :  { %508 = vmatpush1.bf16.msra.mxu1 %v1003_v25  ;;  %v976_v36 = vld [vmem:[%s1343_s1 + $0x164] ss:$16 sps:$4 sm:$0xff]   ;;  %v978_v38 = vld [vmem:[%s1343_s1 + $0x160] ss:$16 sps:$4 sm:$0xff]   ;;  %v1013_v39 = vld [vmem:[%s1343_s1 + $0xcc] ss:$16 sps:$4 sm:$0xff]  }
   0xe   :  { %509 = vmatprep.subr.bf16.mxu1 %v1004_v27  ;;  %v979_v40 = vld [vmem:[%s1343_s1 + $0x184] ss:$16 sps:$4 sm:$0xff]   ;;  %v1015_v41 = vld [vmem:[%s1343_s1 + $0xc8] ss:$16 sps:$4 sm:$0xff]   ;;  %v981_v42 = vld [vmem:[%s1343_s1 + $0x180] ss:$16 sps:$4 sm:$0xff]  }
   0xf   :  { %457 = vmatpush1.bf16.msra.mxu0 %v954_v7  ;;  %v1016_v43 = vld [vmem:[%s1343_s1 + $0xec] ss:$16 sps:$4 sm:$0xff]   ;;  %v982_v44 = vld [vmem:[%s1343_s1 + $0x1a4] ss:$16 sps:$4 sm:$0xff]   ;;  %v1018_v45 = vld [vmem:[%s1343_s1 + $0xe8] ss:$16 sps:$4 sm:$0xff]  }
  0x10   :  { %458 = vmatprep.subr.bf16.mxu0 %v955_v8  ;;  %v984_v46 = vld [vmem:[%s1343_s1 + $0x1a0] ss:$16 sps:$4 sm:$0xff]   ;;  %v1019_v47 = vld [vmem:[%s1343_s1 + $0x10c] ss:$16 sps:$4 sm:$0xff]   ;;  %v985_v48 = vld [vmem:[%s1343_s1 + $0x1c4] ss:$16 sps:$4 sm:$0xff]  }
  0x11   :  { %510 = vmatpush1.bf16.msra.mxu1 %v1006_v29  ;;  %v1021_v49 = vld [vmem:[%s1343_s1 + $0x108] ss:$16 sps:$4 sm:$0xff]   ;;  %v987_v50 = vld [vmem:[%s1343_s1 + $0x1c0] ss:$16 sps:$4 sm:$0xff]   ;;  %v1022_v51 = vld [vmem:[%s1343_s1 + $0x12c] ss:$16 sps:$4 sm:$0xff]  }
  0x12   :  { %511 = vmatprep.subr.bf16.mxu1 %v1007_v31  ;;  %v988_v52 = vld [vmem:[%s1343_s1 + $0x1e4] ss:$16 sps:$4 sm:$0xff]   ;;  %v1024_v53 = vld [vmem:[%s1343_s1 + $0x128] ss:$16 sps:$4 sm:$0xff]   ;;  %v990_v54 = vld [vmem:[%s1343_s1 + $0x1e0] ss:$16 sps:$4 sm:$0xff]  }
  0x13   :  { %459 = vmatpush1.bf16.msra.mxu0 %v957_v9  ;;  %v1025_v55 = vld [vmem:[%s1343_s1 + $0x14c] ss:$16 sps:$4 sm:$0xff]   ;;  %v1261_v56 = vld [vmem:[%s1344_s0 + $0x10] sm:$0xff]  ;;  %v1027_v59 = vld [vmem:[%s1343_s1 + $0x148] ss:$16 sps:$4 sm:$0xff]   ;;  %v1059_v8 = vmov 0.0   ;;  %v90_v9 = vlaneseq }
  0x14   :  { %460 = vmatprep.subr.bf16.mxu0 %v958_v10  ;;  %v1266_v57 = vld [vmem:[%s1344_s0 + $0x18] sm:$0xff] }
  0x15   :  { %512 = vmatpush1.bf16.msra.mxu1 %v1009_v33  ;;  %v847_v60 = vcombine.high %v1261_v56, %v1266_v57  ;;  %v1028_v61 = vld [vmem:[%s1343_s1 + $0x16c] ss:$16 sps:$4 sm:$0xff]   ;;  %v1030_v62 = vld [vmem:[%s1343_s1 + $0x168] ss:$16 sps:$4 sm:$0xff]   ;;  %v846_v0 = vcombine.low %v1261_v56, %v1266_v57  ;;  %v91_v10 = vshrl.u32 %v90_v9, 7 }
  0x16   :  { %513 = vmatprep.subr.bf16.mxu1 %v1010_v35  ;;  %v1031_v63 = vld [vmem:[%s1343_s1 + $0x18c] ss:$16 sps:$4 sm:$0xff]   ;;  %v1033_v1 = vld [vmem:[%s1343_s1 + $0x188] ss:$16 sps:$4 sm:$0xff]  }
  0x17   :  { %461 = vmatpush1.bf16.msra.mxu0 %v960_v11  ;;  %v1034_v2 = vld [vmem:[%s1343_s1 + $0x1ac] ss:$16 sps:$4 sm:$0xff]   ;;  %v1036_v3 = vld [vmem:[%s1343_s1 + $0x1a8] ss:$16 sps:$4 sm:$0xff]   ;;  %v92_v11 = vsub.s32 0, %v91_v10 }
  0x18   :  { %462 = vmatprep.subr.bf16.mxu0 %v961_v12  ;;  %v1037_v4 = vld [vmem:[%s1343_s1 + $0x1cc] ss:$16 sps:$4 sm:$0xff]   ;;  %v1039_v5 = vld [vmem:[%s1343_s1 + $0x1c8] ss:$16 sps:$4 sm:$0xff]   ;;  %v88_v12 = vld [vmem:[%s1345_s2] sm:$0xf] }
  0x19   :  { %514 = vmatpush1.bf16.msra.mxu1 %v1012_v37  ;;  %v1040_v6 = vld [vmem:[%s1343_s1 + $0x1ec] ss:$16 sps:$4 sm:$0xff]   ;;  %v1042_v7 = vld [vmem:[%s1343_s1 + $0x1e8] ss:$16 sps:$4 sm:$0xff]  }
  0x1a   :  { %515 = vmatprep.subr.bf16.mxu1 %v1013_v39  ;;  %v104_v39 = vsub.s32 3, %v91_v10 }
  0x1b   :  { %463 = vmatpush1.bf16.msra.mxu0 %v963_v15  ;;  %v96_v15 = vsub.s32 1, %v91_v10 }
  0x1c   :  { %464 = vmatprep.subr.bf16.mxu0 %v964_v16  ;;  %v93_v16 = vrot.slane %v88_v12, %v92_v11 }
  0x1d   :  { %516 = vmatpush1.bf16.msra.mxu1 %v1015_v41  ;;  %v97_v18 = vrot.slane %v88_v12, %v96_v15  ;;  %v105_v41 = vrot.slane %v88_v12, %v104_v39 }
  0x1e   :  { %517 = vmatprep.subr.bf16.mxu1 %v1016_v43 }
  0x1f   :  { %465 = vmatpush1.bf16.msra.mxu0 %v966_v22 }
  0x20   :  { %466 = vmatprep.subr.bf16.mxu0 %v967_v24 }
  0x21   :  { %518 = vmatpush1.bf16.msra.mxu1 %v1018_v45 }
  0x22   :  { %519 = vmatprep.subr.bf16.mxu1 %v1019_v47 }
  0x23   :  { %467 = vmatpush1.bf16.msra.mxu0 %v969_v26 }
  0x24   :  { %468 = vmatprep.subr.bf16.mxu0 %v970_v28 }
  0x25   :  { %520 = vmatpush1.bf16.msra.mxu1 %v1021_v49 }
  0x26   :  { %521 = vmatprep.subr.bf16.mxu1 %v1022_v51 }
  0x27   :  { %469 = vmatpush1.bf16.msra.mxu0 %v972_v30 }
  0x28   :  { %470 = vmatprep.subr.bf16.mxu0 %v973_v32 }
  0x29   :  { %522 = vmatpush1.bf16.msra.mxu1 %v1024_v53 }
  0x2a   :  { %523 = vmatprep.subr.bf16.mxu1 %v1025_v55 }
  0x2b   :  { %471 = vmatpush1.bf16.msra.mxu0 %v975_v34 }
  0x2c   :  { %472 = vmatprep.subr.bf16.mxu0 %v976_v36 }
  0x2d   :  { %524 = vmatpush1.bf16.msra.mxu1 %v1027_v59 }
  0x2e   :  { %525 = vmatprep.subr.bf16.mxu1 %v1028_v61 }
  0x2f   :  { %473 = vmatpush1.bf16.msra.mxu0 %v978_v38  ;;  %v100_v38 = vsub.s32 2, %v91_v10 }
  0x30   :  { %474 = vmatprep.subr.bf16.mxu0 %v979_v40 }
  0x31   :  { %526 = vmatpush1.bf16.msra.mxu1 %v1030_v62  ;;  %v101_v40 = vrot.slane %v88_v12, %v100_v38 }
  0x32   :  { %527 = vmatprep.subr.bf16.mxu1 %v1031_v63 }
  0x33   :  { %475 = vmatpush1.bf16.msra.mxu0 %v981_v42 }
  0x34   :  { %476 = vmatprep.subr.bf16.mxu0 %v982_v44 }
  0x35   :  { %528 = vmatpush1.bf16.msra.mxu1 %v1033_v1 }
  0x36   :  { %529 = vmatprep.subr.bf16.mxu1 %v1034_v2 }
  0x37   :  { %477 = vmatpush1.bf16.msra.mxu0 %v984_v46 }
  0x38   :  { %478 = vmatprep.subr.bf16.mxu0 %v985_v48 }
  0x39   :  { %530 = vmatpush1.bf16.msra.mxu1 %v1036_v3 }
  0x3a   :  { %531 = vmatprep.subr.bf16.mxu1 %v1037_v4 }
  0x3b   :  { %479 = vmatpush1.bf16.msra.mxu0 %v987_v50 }
  0x3c   :  { %480 = vmatprep.subr.bf16.mxu0 %v988_v52 }
  0x3d   :  { %532 = vmatpush1.bf16.msra.mxu1 %v1039_v5 }
  0x3e   :  { %533 = vmatprep.subr.bf16.mxu1 %v1040_v6 }
  0x3f   :  { %481 = vmatpush1.bf16.msra.mxu0 %v990_v54 }
  0x40   :  { %926 = vmatprep.subr.bf16.mxu0 %v1059_v8 }
  0x41   :  { %534 = vmatpush1.bf16.msra.mxu1 %v1042_v7 }
  0x42   :  { %483 = vmatmul.mubr.bf16.vlgmr.msra.gmra.mrb[0].mxu0 %v844_v58  ;;  %932 = vmatprep.subr.bf16.mxu1 %v1059_v8 }
  0x43   :  { %492 = vmatprep.mubr.bf16.mxu0 %v847_v60 }
  0x44   :  { %536 = vmatmul.mubr.bf16.vlgmr.msra.gmra.mrb[0].mxu1 %v844_v58 }
  0x45   :  { %545 = vmatprep.mubr.bf16.mxu1 %v847_v60 }
  0x4a   :  { %493 = vmatmul.mubr.bf16.gmra.mrb[4].mxu0 %v846_v0 }
  0x4b   :  { %928 = vmatprep.mubr.msk.bf16.mxu0 %vm1060_vm0, %v1059_v8 }
  0x4c   :  { %546 = vmatmul.mubr.bf16.gmra.mrb[4].mxu1 %v846_v0 }
  0x4d   :  { %934 = vmatprep.mubr.msk.bf16.mxu1 %vm1060_vm0, %v1059_v8 }
 0x115   :  { %v484_v17 = vpop.f32.mrb[0].mxu0 }
 0x116   :  { %v486_v19 = vpop.f32.mrb[1].mxu0  ;;  %v485_v21 = vadd.f32 %v484_v17, %v93_v16 }
 0x117   :  { %v488_v20 = vpop.f32.mrb[2].mxu0  ;;  %v487_v24 = vadd.f32 %v486_v19, %v97_v18  ;;  %v537_v42 = vpop.f32.mrb[0].mxu1 }
 0x118   :  { %v489_v22 = vadd.f32 %v488_v20, %v93_v16  ;;  %v490_v23 = vpop.f32.mrb[3].mxu0  ;;  %v538_v43 = vadd.f32 %v537_v42, %v101_v40  ;;  %v539_v44 = vpop.f32.mrb[1].mxu1 }
 0x119   :  { %v491_v25 = vadd.f32 %v490_v23, %v97_v18  ;;  %v540_v45 = vadd.f32 %v539_v44, %v105_v41  ;;  %v541_v46 = vpop.f32.mrb[2].mxu1 }
 0x11a   :  { %v556_v26 = vpack.c.bf16 %v489_v22, %v485_v21  ;;  %v542_v47 = vadd.f32 %v541_v46, %v101_v40  ;;  %v543_v48 = vpop.f32.mrb[3].mxu1 }
 0x11b   :  { %v558_v27 = vpack.c.bf16 %v491_v25, %v487_v24  ;;  %v544_v49 = vadd.f32 %v543_v48, %v105_v41 }
 0x11c   :  { %v560_v50 = vpack.c.bf16 %v542_v47, %v538_v43 }
 0x11d   :  { %v494_v28 = vpop.f32.mrb[4].mxu0  ;;  %927 = vmatpush3.bf16.xpose.msra.mxu0 %v558_v27  ;;  %v561_v51 = vpack.c.bf16 %v544_v49, %v540_v45 }
 0x11e   :  { %v496_v29 = vpop.f32.mrb[5].mxu0  ;;  %v495_v31 = vadd.f32 %v494_v28, %v93_v16 }
 0x11f   :  { %v498_v30 = vpop.f32.mrb[6].mxu0  ;;  %v497_v34 = vadd.f32 %v496_v29, %v97_v18  ;;  %v547_v52 = vpop.f32.mrb[4].mxu1  ;;  %696 = vmatprep.subr.bf16.mxu0 %v561_v51 }
 0x120   :  { %v499_v32 = vadd.f32 %v498_v30, %v93_v16  ;;  %v500_v33 = vpop.f32.mrb[7].mxu0  ;;  %v549_v53 = vpop.f32.mrb[5].mxu1  ;;  %v548_v60 = vadd.f32 %v547_v52, %v101_v40  ;;  %v796_v52 = vunpack.c.l.bf16 %v1129_v13 }
 0x121   :  { %v501_v35 = vadd.f32 %v500_v33, %v97_v18  ;;  %v551_v54 = vpop.f32.mrb[6].mxu1  ;;  %v550_v58 = vadd.f32 %v549_v53, %v105_v41 }
 0x122   :  { %v557_v36 = vpack.c.bf16 %v499_v32, %v495_v31  ;;  %v553_v55 = vpop.f32.mrb[7].mxu1  ;;  %v552_v61 = vadd.f32 %v551_v54, %v101_v40  ;;  %v797_v54 = vunpack.c.h.bf16 %v1129_v13 }
 0x123   :  { %v559_v37 = vpack.c.bf16 %v501_v35, %v497_v34  ;;  %v554_v59 = vadd.f32 %v553_v55, %v105_v41  ;;  %v1061_v34 = vmov 0   ;;  %v9_v35 = vstv %s1346_s3 }
 0x124   :  { %929 = vmatmul.mubr.bf16.vlgmr.msra.gmra.mrb[8].mxu0 %v556_v26  ;;  %v562_v63 = vpack.c.bf16 %v552_v61, %v548_v60  ;;  %10 = vst [vmem:[#allocation2] sm:$0x1] %v9_v35 }
 0x125   :  { %933 = vmatpush3.bf16.xpose.msra.mxu1 %v559_v37  ;;  %697 = vmatpush1.bf16.msra.mxu0 %v560_v50  ;;  %v563_v62 = vpack.c.bf16 %v554_v59, %v550_v58  ;;  %v798_v59 = vunpack.c.l.bf16 %v1134_v14 }
 0x126   :  { %728 = vmatprep.mubr.bf16.mxu0 %v1061_v34 }
 0x127   :  { %742 = vmatprep.subr.bf16.mxu1 %v563_v62  ;;  %v799_v62 = vunpack.c.h.bf16 %v1134_v14 }
 0x12c   :  { %935 = vmatmul.mubr.bf16.vlgmr.msra.gmra.mrb[8].mxu1 %v557_v36  ;;  %v785_v36 = vld [vmem:[#allocation2] sm:$0x1] }
 0x12d   :  { %743 = vmatpush1.bf16.msra.mxu1 %v562_v63  ;;  %774 = vmatprep.mubr.bf16.mxu1 %v1061_v34  ;;  %938 = vpush %v785_v36 }
 0x15e   :  { %s939_s3 = spop %938 }
 0x15f   :  { %v787_v51 = vstv %s939_s3 }
 0x1f7   :  { %v598_v0 = vpop.f32.mrb[8].mxu0 }
 0x1f8   :  { %v930_v1 = vpop.f32.mrb[9].mxu0  ;;  %v647_v2 = vsel %vm646_vm1, %v598_v0, -inf }
 0x1f9   :  { %648 = vmax.xlane.f32.xlu0 %v647_v2  ;;  %v601_v3 = vpop.f32.mrb[10].mxu0 }
 0x1fa   :  { %v931_v4 = vpop.f32.mrb[11].mxu0  ;;  %v650_v5 = vsel %vm646_vm1, %v601_v3, -inf }
 0x1fd   :  { %651 = vmax.xlane.f32.xlu0 %v650_v5 }
 0x1ff   :  { %v639_v6 = vpop.f32.mrb[8].mxu1 }
 0x200   :  { %v936_v7 = vpop.f32.mrb[9].mxu1  ;;  %v653_v8 = vsel %vm646_vm1, %v639_v6, -inf }
 0x201   :  { %654 = vmax.xlane.f32.xlu1 %v653_v8  ;;  %v642_v9 = vpop.f32.mrb[10].mxu1  ;;  %v800_v7 = vunpack.c.l.bf16 %v1261_v56 }
 0x202   :  { %v937_v10 = vpop.f32.mrb[11].mxu1  ;;  %v656_v11 = vsel %vm646_vm1, %v642_v9, -inf }
 0x205   :  { %657 = vmax.xlane.f32.xlu1 %v656_v11  ;;  %v802_v11 = vunpack.c.l.bf16 %v1266_v57 }
 0x286   :  { %v649_v12 = vpop.xlane.xlu0 %648 }
 0x287   :  { %v659_v15 = vsub.f32 %v598_v0, %v649_v12 }
 0x289   :  { %v663_v16 = vmul.f32 1.442695, %v659_v15 }
 0x28a   :  { %v652_v17 = vpop.xlane.xlu0 %651 }
 0x28b   :  { %1043 = vpow2.f32 %v663_v16  ;;  %v660_v18 = vsub.f32 %v601_v3, %v652_v17  ;;  %v803_v16 = vunpack.c.h.bf16 %v1266_v57 }
 0x28d   :  { %v665_v19 = vmul.f32 1.442695, %v660_v18 }
 0x28e   :  { %v655_v20 = vpop.xlane.xlu1 %654 }
 0x28f   :  { %1045 = vpow2.f32 %v665_v19  ;;  %v661_v21 = vsub.f32 %v639_v6, %v655_v20 }
 0x291   :  { %v667_v22 = vmul.f32 1.442695, %v661_v21 }
 0x292   :  { %v658_v23 = vpop.xlane.xlu1 %657 }
 0x293   :  { %1047 = vpow2.f32 %v667_v22  ;;  %v662_v24 = vsub.f32 %v642_v9, %v658_v23  ;;  %v801_v9 = vunpack.c.h.bf16 %v1261_v56 }
 0x295   :  { %v1044_v25 = vpop.eup %1043  ;;  %v669_v26 = vmul.f32 1.442695, %v662_v24 }
 0x296   :  { %v671_v27 = vsel %vm646_vm1, %v1044_v25, 0.0 }
 0x297   :  { %1049 = vpow2.f32 %v669_v26  ;;  %672 = vadd.xlane.f32.xlu0 %v671_v27 }
 0x299   :  { %v1046_v28 = vpop.eup %1045 }
 0x29a   :  { %v674_v29 = vsel %vm646_vm1, %v1046_v28, 0.0 }
 0x29b   :  { %675 = vadd.xlane.f32.xlu1 %v674_v29 }
 0x29d   :  { %v1048_v30 = vpop.eup %1047 }
 0x29e   :  { %v677_v31 = vsel %vm646_vm1, %v1048_v30, 0.0 }
 0x29f   :  { %678 = vadd.xlane.f32.xlu0 %v677_v31 }
 0x2a1   :  { %v1050_v32 = vpop.eup %1049 }
 0x2a2   :  { %v680_v33 = vsel %vm646_vm1, %v1050_v32, 0.0 }
 0x2a3   :  { %681 = vadd.xlane.f32.xlu1 %v680_v33 }
 0x324   :  { %v673_v37 = vpop.xlane.xlu0 %672 }
 0x325   :  { %1051 = vrcp.f32 %v673_v37 }
 0x328   :  { %v676_v38 = vpop.xlane.xlu1 %675 }
 0x329   :  { %1053 = vrcp.f32 %v676_v38 }
 0x32c   :  { %v679_v39 = vpop.xlane.xlu0 %678 }
 0x32d   :  { %1055 = vrcp.f32 %v679_v39 }
 0x32f   :  { %v1052_v41 = vpop.eup %1051 }
 0x330   :  { %v682_v40 = vpop.xlane.xlu1 %681  ;;  %v687_v43 = vmul.f32 %v1052_v41, %v1044_v25 }
 0x331   :  { %1057 = vrcp.f32 %v682_v40 }
 0x333   :  { %v1054_v42 = vpop.eup %1053 }
 0x334   :  { %v688_v44 = vmul.f32 %v1054_v42, %v1046_v28 }
 0x336   :  { %v691_v45 = vpack.c.bf16 %v688_v44, %v687_v43 }
 0x337   :  { %v1056_v46 = vpop.eup %1055 }
 0x338   :  { %912 = vmatmul.mubr.msk.bf16.vlgmr.msra.gmra.mrb[12].mxu0 %vm646_vm1, %v691_v45  ;;  %v689_v48 = vmul.f32 %v1056_v46, %v1048_v30 }
 0x33b   :  { %v1058_v47 = vpop.eup %1057 }
 0x33c   :  { %v690_v49 = vmul.f32 %v1058_v47, %v1050_v32 }
 0x33e   :  { %v692_v50 = vpack.c.bf16 %v690_v49, %v689_v48 }
 0x340   :  { %913 = vmatmul.mubr.msk.bf16.vlgmr.msra.gmra.mrb[12].mxu1 %vm646_vm1, %v692_v50 }
 0x40b   :  { %v730_v53 = vpop.f32.mrb[12].mxu0 }
 0x40c   :  { %v788_v55 = vmul.f32 %v787_v51, %v730_v53  ;;  %v732_v58 = vpop.f32.mrb[13].mxu0 }
 0x40d   :  { %v789_v60 = vmul.f32 %v787_v51, %v732_v58  ;;  %v734_v61 = vpop.f32.mrb[14].mxu0 }
 0x40e   :  { %v804_v63 = vadd.f32 %v796_v52, %v788_v55  ;;  %v790_v0 = vmul.f32 %v787_v51, %v734_v61  ;;  %v736_v1 = vpop.f32.mrb[15].mxu0 }
 0x40f   :  { %v805_v2 = vadd.f32 %v797_v54, %v789_v60  ;;  %v791_v3 = vmul.f32 %v787_v51, %v736_v1 }
 0x410   :  { %v806_v4 = vadd.f32 %v798_v59, %v790_v0 }
 0x411   :  { %v918_v5 = vpack.c.bf16 %v805_v2, %v804_v63  ;;  %v807_v6 = vadd.f32 %v799_v62, %v791_v3 }
 0x413   :  { %836 = vst [vmem:[%s1347_s4] sm:$0xff] %v918_v5  ;;  %v919_v13 = vpack.c.bf16 %v807_v6, %v806_v4  ;;  %v776_v8 = vpop.f32.mrb[12].mxu1 }
 0x414   :  { %v792_v10 = vmul.f32 %v787_v51, %v776_v8  ;;  %v778_v14 = vpop.f32.mrb[13].mxu1 }
 0x415   :  { %837 = vst [vmem:[%s1347_s4 + $0x8] sm:$0xff] %v919_v13  ;;  %v793_v12 = vmul.f32 %v787_v51, %v778_v14  ;;  %v780_v15 = vpop.f32.mrb[14].mxu1 }
 0x416   :  { %v808_v17 = vadd.f32 %v800_v7, %v792_v10  ;;  %v794_v18 = vmul.f32 %v787_v51, %v780_v15  ;;  %v782_v19 = vpop.f32.mrb[15].mxu1 }
 0x417   :  { %v809_v20 = vadd.f32 %v801_v9, %v793_v12  ;;  %v795_v21 = vmul.f32 %v787_v51, %v782_v19 }
 0x418   :  { %v810_v22 = vadd.f32 %v802_v11, %v794_v18 }
 0x419   :  { %v920_v23 = vpack.c.bf16 %v809_v20, %v808_v17  ;;  %v811_v56 = vadd.f32 %v803_v16, %v795_v21 }
 0x41b   :  { %838 = vst [vmem:[%s1347_s4 + $0x10] sm:$0xff] %v920_v23  ;;  %v921_v24 = vpack.c.bf16 %v811_v56, %v810_v22 }
 0x41d   :  { %839 = vst [vmem:[%s1347_s4 + $0x18] sm:$0xff] %v921_v24 }

// kernel: enhanced_discriminator_forward.10
= control target key start
LH: loop header
LB: loop body
LE: loop exit
PB: predicated region body
PF: predicated region fallthrough
CT: control target
= control target key end

     0   :  { %s3728_s12 = smov 0   ;;  %s3730_s13 = smov 0   ;;  %s4567_s0 = inlined_call_operand.vmem [shape: bf16[32,2048], index: 0, kind: input, shape index: {}]   ;;  %s4568_s1 = inlined_call_operand.vmem [shape: bf16[2048,256], index: 1, kind: input, shape index: {}]   ;;  %s4569_s2 = inlined_call_operand.vmem [shape: f32[1,256], index: 2, kind: input, shape index: {}]   ;;  %s4570_s3 = inlined_call_operand.vmem [shape: bf16[32,256], index: 3, kind: output, shape index: {}]  }
   0x1   :  { %s3732_s14 = smov 0   ;;  %s3734_s15 = smov 0  }
   0x2   :  { %s3736_s16 = smov 0  }
   0x3 LB: > { %s22_s17 = sadd.s32 1, %s3702_s15  ;;  %s3082_s18 = sadd.s32 4294967295, %s3706_s16   ;;  %s3706_s16 = sphi %s3736_s16, %s13_s16   ;;  %s3702_s15 = sphi %s3734_s15, %s4575_s15   ;;  %s3698_s14 = sphi %s3732_s14, %s4574_s14   ;;  %s3694_s13 = sphi %s3730_s13, %s4573_s13   ;;  %s3690_s12 = sphi %s3728_s12, %s4572_s12  }
   0x4   : > { %p23_p0 = scmp.ge.s32.totalorder %s22_s17, 2  ;;  %p65_p1 = scmp.ne.s32.totalorder %s3694_s13, %s3690_s12 }
   0x5   : > { %p66_p2 = scmp.eq.s32.totalorder %s3706_s16, 0  ;;  %p123_p4 = scmp.eq.s32.totalorder %s3082_s18, 1 }
   0x6   : > { %s4577_s17 = smov (%p23_p0, %s22_s17), 0  ;;  %s58_s20 = sadd.s32 1, %s3694_s13 }
   0x7   : > { %p67_p3 = por %p66_p2, %p65_p1  ;;  %s55_s19 = ssub.s32 %s3702_s15, %s4577_s17 }
   0x8   : > { %p56_p5 = scmp.eq.s32.totalorder %s55_s19, 0  ;;  %p3763_p6 = por %p123_p4, %p65_p1 }
   0x9   : > { %p3086_p7 = scmp.ge.s32.totalorder %s3706_s16, 2 }
   0xa   : > { %s3768_s22 = scalar_select %p56_p5, %s3694_s13, %s58_s20  }
   0xb   : > { %155 = sbr.rel (%p3086_p7) target bundleno = 192 (0xc0), region = 20 }
  0x12   : > { %158 = sbr.rel (!%p67_p3) target bundleno = 192 (0xc0), region = 24  ;;  %s160_s23 = sand.u32 (%p67_p3), 1, %s3694_s13  }
  0x13   : > { %s3088_s24 = sshll.u32 (%p67_p3), %s3702_s15, 2  ;;  %s3087_s25 = sshll.u32 (%p67_p3), %s160_s23, 10 }
  0x14   : > { %s3776_s28 = scalar_lea.vmem (%p67_p3), %s4568_s1, %s3088_s24  ;;  %s3780_s29 = scalar_lea.vmem (%p67_p3), [#allocation2], %s3087_s25 }
  0x15   : > { %v180_v0 = vld [vmem:[%s3776_s28] sm:$0xf] (%p67_p3)  ;;  %v182_v1 = vld [vmem:[%s3776_s28 + $0x8] sm:$0xf] (%p67_p3)  ;;  %v184_v2 = vld [vmem:[%s3776_s28 + $0x10] sm:$0xf] (%p67_p3) }
  0x16   : > { %181 = vst [vmem:[%s3780_s29] sm:$0xf] (%p67_p3), %v180_v0  ;;  %183 = vst [vmem:[%s3780_s29 + $0x4] sm:$0xf] (%p67_p3), %v182_v1  ;;  %v186_v3 = vld [vmem:[%s3776_s28 + $0x18] sm:$0xf] (%p67_p3) }
  0x17   : > { %v188_v4 = vld [vmem:[%s3776_s28 + $0x20] sm:$0xf] (%p67_p3)  ;;  %185 = vst [vmem:[%s3780_s29 + $0x8] sm:$0xf] (%p67_p3), %v184_v2  ;;  %187 = vst [vmem:[%s3780_s29 + $0xc] sm:$0xf] (%p67_p3), %v186_v3 }
  0x18   : > { %189 = vst [vmem:[%s3780_s29 + $0x10] sm:$0xf] (%p67_p3), %v188_v4  ;;  %v190_v5 = vld [vmem:[%s3776_s28 + $0x28] sm:$0xf] (%p67_p3)  ;;  %v192_v6 = vld [vmem:[%s3776_s28 + $0x30] sm:$0xf] (%p67_p3) }
  0x19   : > { %v194_v7 = vld [vmem:[%s3776_s28 + $0x38] sm:$0xf]  ;;  %191 = vst [vmem:[%s3780_s29 + $0x14] sm:$0xf] %v190_v5  ;;  %193 = vst [vmem:[%s3780_s29 + $0x18] sm:$0xf] %v192_v6 }
  0x1a   : > { %195 = vst [vmem:[%s3780_s29 + $0x1c] sm:$0xf] %v194_v7  ;;  %v196_v8 = vld [vmem:[%s3776_s28 + $0x40] sm:$0xf]  ;;  %v198_v9 = vld [vmem:[%s3776_s28 + $0x48] sm:$0xf] }
  0x1b   : > { %v200_v10 = vld [vmem:[%s3776_s28 + $0x50] sm:$0xf]  ;;  %197 = vst [vmem:[%s3780_s29 + $0x20] sm:$0xf] %v196_v8  ;;  %199 = vst [vmem:[%s3780_s29 + $0x24] sm:$0xf] %v198_v9 }
  0x1c   : > { %201 = vst [vmem:[%s3780_s29 + $0x28] sm:$0xf] %v200_v10  ;;  %v202_v11 = vld [vmem:[%s3776_s28 + $0x58] sm:$0xf]  ;;  %v204_v12 = vld [vmem:[%s3776_s28 + $0x60] sm:$0xf] }
  0x1d   : > { %v206_v13 = vld [vmem:[%s3776_s28 + $0x68] sm:$0xf]  ;;  %203 = vst [vmem:[%s3780_s29 + $0x2c] sm:$0xf] %v202_v11  ;;  %205 = vst [vmem:[%s3780_s29 + $0x30] sm:$0xf] %v204_v12 }
  0x1e   : > { %207 = vst [vmem:[%s3780_s29 + $0x34] sm:$0xf] %v206_v13  ;;  %v208_v14 = vld [vmem:[%s3776_s28 + $0x70] sm:$0xf]  ;;  %v210_v15 = vld [vmem:[%s3776_s28 + $0x78] sm:$0xf] }
  0x1f   : > { %v212_v16 = vld [vmem:[%s3776_s28 + $0x80] sm:$0xf]  ;;  %209 = vst [vmem:[%s3780_s29 + $0x38] sm:$0xf] %v208_v14  ;;  %211 = vst [vmem:[%s3780_s29 + $0x3c] sm:$0xf] %v210_v15 }
  0x20   : > { %213 = vst [vmem:[%s3780_s29 + $0x40] sm:$0xf] %v212_v16  ;;  %v214_v17 = vld [vmem:[%s3776_s28 + $0x88] sm:$0xf]  ;;  %v216_v18 = vld [vmem:[%s3776_s28 + $0x90] sm:$0xf] }
  0x21   : > { %v218_v19 = vld [vmem:[%s3776_s28 + $0x98] sm:$0xf]  ;;  %215 = vst [vmem:[%s3780_s29 + $0x44] sm:$0xf] %v214_v17  ;;  %217 = vst [vmem:[%s3780_s29 + $0x48] sm:$0xf] %v216_v18 }
  0x22   : > { %219 = vst [vmem:[%s3780_s29 + $0x4c] sm:$0xf] %v218_v19  ;;  %v220_v20 = vld [vmem:[%s3776_s28 + $0xa0] sm:$0xf]  ;;  %v222_v21 = vld [vmem:[%s3776_s28 + $0xa8] sm:$0xf] }
  0x23   : > { %v224_v22 = vld [vmem:[%s3776_s28 + $0xb0] sm:$0xf]  ;;  %221 = vst [vmem:[%s3780_s29 + $0x50] sm:$0xf] %v220_v20  ;;  %223 = vst [vmem:[%s3780_s29 + $0x54] sm:$0xf] %v222_v21 }
  0x24   : > { %225 = vst [vmem:[%s3780_s29 + $0x58] sm:$0xf] %v224_v22  ;;  %v226_v23 = vld [vmem:[%s3776_s28 + $0xb8] sm:$0xf]  ;;  %v228_v24 = vld [vmem:[%s3776_s28 + $0xc0] sm:$0xf] }
  0x25   : > { %v230_v25 = vld [vmem:[%s3776_s28 + $0xc8] sm:$0xf]  ;;  %227 = vst [vmem:[%s3780_s29 + $0x5c] sm:$0xf] %v226_v23  ;;  %229 = vst [vmem:[%s3780_s29 + $0x60] sm:$0xf] %v228_v24 }
  0x26   : > { %231 = vst [vmem:[%s3780_s29 + $0x64] sm:$0xf] %v230_v25  ;;  %v232_v26 = vld [vmem:[%s3776_s28 + $0xd0] sm:$0xf]  ;;  %v234_v27 = vld [vmem:[%s3776_s28 + $0xd8] sm:$0xf] }
  0x27   : > { %v236_v28 = vld [vmem:[%s3776_s28 + $0xe0] sm:$0xf]  ;;  %233 = vst [vmem:[%s3780_s29 + $0x68] sm:$0xf] %v232_v26  ;;  %235 = vst [vmem:[%s3780_s29 + $0x6c] sm:$0xf] %v234_v27 }
  0x28   : > { %237 = vst [vmem:[%s3780_s29 + $0x70] sm:$0xf] %v236_v28  ;;  %v238_v29 = vld [vmem:[%s3776_s28 + $0xe8] sm:$0xf]  ;;  %v240_v30 = vld [vmem:[%s3776_s28 + $0xf0] sm:$0xf] }
  0x29   : > { %v242_v31 = vld [vmem:[%s3776_s28 + $0xf8] sm:$0xf]  ;;  %239 = vst [vmem:[%s3780_s29 + $0x74] sm:$0xf] %v238_v29  ;;  %241 = vst [vmem:[%s3780_s29 + $0x78] sm:$0xf] %v240_v30 }
  0x2a   : > { %243 = vst [vmem:[%s3780_s29 + $0x7c] sm:$0xf] %v242_v31  ;;  %v244_v32 = vld [vmem:[%s3776_s28 + $0x100] sm:$0xf]  ;;  %v246_v33 = vld [vmem:[%s3776_s28 + $0x108] sm:$0xf] }
  0x2b   : > { %v248_v34 = vld [vmem:[%s3776_s28 + $0x110] sm:$0xf]  ;;  %245 = vst [vmem:[%s3780_s29 + $0x80] sm:$0xf] %v244_v32  ;;  %247 = vst [vmem:[%s3780_s29 + $0x84] sm:$0xf] %v246_v33 }
  0x2c   : > { %249 = vst [vmem:[%s3780_s29 + $0x88] sm:$0xf] %v248_v34  ;;  %v250_v35 = vld [vmem:[%s3776_s28 + $0x118] sm:$0xf]  ;;  %v252_v36 = vld [vmem:[%s3776_s28 + $0x120] sm:$0xf] }
  0x2d   : > { %v254_v37 = vld [vmem:[%s3776_s28 + $0x128] sm:$0xf]  ;;  %251 = vst [vmem:[%s3780_s29 + $0x8c] sm:$0xf] %v250_v35  ;;  %253 = vst [vmem:[%s3780_s29 + $0x90] sm:$0xf] %v252_v36 }
  0x2e   : > { %255 = vst [vmem:[%s3780_s29 + $0x94] sm:$0xf] %v254_v37  ;;  %v256_v38 = vld [vmem:[%s3776_s28 + $0x130] sm:$0xf]  ;;  %v258_v39 = vld [vmem:[%s3776_s28 + $0x138] sm:$0xf] }
  0x2f   : > { %v260_v40 = vld [vmem:[%s3776_s28 + $0x140] sm:$0xf]  ;;  %257 = vst [vmem:[%s3780_s29 + $0x98] sm:$0xf] %v256_v38  ;;  %259 = vst [vmem:[%s3780_s29 + $0x9c] sm:$0xf] %v258_v39 }
  0x30   : > { %261 = vst [vmem:[%s3780_s29 + $0xa0] sm:$0xf] %v260_v40  ;;  %v262_v41 = vld [vmem:[%s3776_s28 + $0x148] sm:$0xf]  ;;  %v264_v42 = vld [vmem:[%s3776_s28 + $0x150] sm:$0xf] }
  0x31   : > { %v266_v43 = vld [vmem:[%s3776_s28 + $0x158] sm:$0xf]  ;;  %263 = vst [vmem:[%s3780_s29 + $0xa4] sm:$0xf] %v262_v41  ;;  %265 = vst [vmem:[%s3780_s29 + $0xa8] sm:$0xf] %v264_v42 }
  0x32   : > { %267 = vst [vmem:[%s3780_s29 + $0xac] sm:$0xf] %v266_v43  ;;  %v268_v44 = vld [vmem:[%s3776_s28 + $0x160] sm:$0xf]  ;;  %v270_v45 = vld [vmem:[%s3776_s28 + $0x168] sm:$0xf] }
  0x33   : > { %v272_v46 = vld [vmem:[%s3776_s28 + $0x170] sm:$0xf]  ;;  %269 = vst [vmem:[%s3780_s29 + $0xb0] sm:$0xf] %v268_v44  ;;  %271 = vst [vmem:[%s3780_s29 + $0xb4] sm:$0xf] %v270_v45 }
  0x34   : > { %273 = vst [vmem:[%s3780_s29 + $0xb8] sm:$0xf] %v272_v46  ;;  %v274_v47 = vld [vmem:[%s3776_s28 + $0x178] sm:$0xf]  ;;  %v276_v48 = vld [vmem:[%s3776_s28 + $0x180] sm:$0xf] }
  0x35   : > { %v278_v49 = vld [vmem:[%s3776_s28 + $0x188] sm:$0xf]  ;;  %275 = vst [vmem:[%s3780_s29 + $0xbc] sm:$0xf] %v274_v47  ;;  %277 = vst [vmem:[%s3780_s29 + $0xc0] sm:$0xf] %v276_v48 }
  0x36   : > { %279 = vst [vmem:[%s3780_s29 + $0xc4] sm:$0xf] %v278_v49  ;;  %v280_v50 = vld [vmem:[%s3776_s28 + $0x190] sm:$0xf]  ;;  %v282_v51 = vld [vmem:[%s3776_s28 + $0x198] sm:$0xf] }
  0x37   : > { %v284_v52 = vld [vmem:[%s3776_s28 + $0x1a0] sm:$0xf]  ;;  %281 = vst [vmem:[%s3780_s29 + $0xc8] sm:$0xf] %v280_v50  ;;  %283 = vst [vmem:[%s3780_s29 + $0xcc] sm:$0xf] %v282_v51 }
  0x38   : > { %285 = vst [vmem:[%s3780_s29 + $0xd0] sm:$0xf] %v284_v52  ;;  %v286_v53 = vld [vmem:[%s3776_s28 + $0x1a8] sm:$0xf]  ;;  %v288_v54 = vld [vmem:[%s3776_s28 + $0x1b0] sm:$0xf] }
  0x39   : > { %v290_v55 = vld [vmem:[%s3776_s28 + $0x1b8] sm:$0xf]  ;;  %287 = vst [vmem:[%s3780_s29 + $0xd4] sm:$0xf] %v286_v53  ;;  %289 = vst [vmem:[%s3780_s29 + $0xd8] sm:$0xf] %v288_v54 }
  0x3a   : > { %291 = vst [vmem:[%s3780_s29 + $0xdc] sm:$0xf] %v290_v55  ;;  %v292_v56 = vld [vmem:[%s3776_s28 + $0x1c0] sm:$0xf]  ;;  %v294_v57 = vld [vmem:[%s3776_s28 + $0x1c8] sm:$0xf] }
  0x3b   : > { %v296_v58 = vld [vmem:[%s3776_s28 + $0x1d0] sm:$0xf]  ;;  %293 = vst [vmem:[%s3780_s29 + $0xe0] sm:$0xf] %v292_v56  ;;  %295 = vst [vmem:[%s3780_s29 + $0xe4] sm:$0xf] %v294_v57 }
  0x3c   : > { %297 = vst [vmem:[%s3780_s29 + $0xe8] sm:$0xf] %v296_v58  ;;  %v298_v59 = vld [vmem:[%s3776_s28 + $0x1d8] sm:$0xf]  ;;  %v300_v60 = vld [vmem:[%s3776_s28 + $0x1e0] sm:$0xf] }
  0x3d   : > { %v302_v61 = vld [vmem:[%s3776_s28 + $0x1e8] sm:$0xf]  ;;  %299 = vst [vmem:[%s3780_s29 + $0xec] sm:$0xf] %v298_v59  ;;  %301 = vst [vmem:[%s3780_s29 + $0xf0] sm:$0xf] %v300_v60 }
  0x3e   : > { %303 = vst [vmem:[%s3780_s29 + $0xf4] sm:$0xf] %v302_v61  ;;  %v304_v62 = vld [vmem:[%s3776_s28 + $0x1f0] sm:$0xf]  ;;  %v306_v63 = vld [vmem:[%s3776_s28 + $0x1f8] sm:$0xf] }
  0x3f   : > { %v308_v0 = vld [vmem:[%s3776_s28 + $0x200] sm:$0xf]  ;;  %305 = vst [vmem:[%s3780_s29 + $0xf8] sm:$0xf] %v304_v62  ;;  %307 = vst [vmem:[%s3780_s29 + $0xfc] sm:$0xf] %v306_v63 }
  0x40   : > { %309 = vst [vmem:[%s3780_s29 + $0x100] sm:$0xf] %v308_v0  ;;  %v310_v1 = vld [vmem:[%s3776_s28 + $0x208] sm:$0xf]  ;;  %v312_v2 = vld [vmem:[%s3776_s28 + $0x210] sm:$0xf] }
  0x41   : > { %v314_v3 = vld [vmem:[%s3776_s28 + $0x218] sm:$0xf]  ;;  %311 = vst [vmem:[%s3780_s29 + $0x104] sm:$0xf] %v310_v1  ;;  %313 = vst [vmem:[%s3780_s29 + $0x108] sm:$0xf] %v312_v2 }
  0x42   : > { %315 = vst [vmem:[%s3780_s29 + $0x10c] sm:$0xf] %v314_v3  ;;  %v316_v4 = vld [vmem:[%s3776_s28 + $0x220] sm:$0xf]  ;;  %v318_v5 = vld [vmem:[%s3776_s28 + $0x228] sm:$0xf] }
  0x43   : > { %v320_v6 = vld [vmem:[%s3776_s28 + $0x230] sm:$0xf]  ;;  %317 = vst [vmem:[%s3780_s29 + $0x110] sm:$0xf] %v316_v4  ;;  %319 = vst [vmem:[%s3780_s29 + $0x114] sm:$0xf] %v318_v5 }
  0x44   : > { %321 = vst [vmem:[%s3780_s29 + $0x118] sm:$0xf] %v320_v6  ;;  %v322_v7 = vld [vmem:[%s3776_s28 + $0x238] sm:$0xf]  ;;  %v324_v8 = vld [vmem:[%s3776_s28 + $0x240] sm:$0xf] }
  0x45   : > { %v326_v9 = vld [vmem:[%s3776_s28 + $0x248] sm:$0xf]  ;;  %323 = vst [vmem:[%s3780_s29 + $0x11c] sm:$0xf] %v322_v7  ;;  %325 = vst [vmem:[%s3780_s29 + $0x120] sm:$0xf] %v324_v8 }
  0x46   : > { %327 = vst [vmem:[%s3780_s29 + $0x124] sm:$0xf] %v326_v9  ;;  %v328_v10 = vld [vmem:[%s3776_s28 + $0x250] sm:$0xf]  ;;  %v330_v11 = vld [vmem:[%s3776_s28 + $0x258] sm:$0xf] }
  0x47   : > { %v332_v12 = vld [vmem:[%s3776_s28 + $0x260] sm:$0xf]  ;;  %329 = vst [vmem:[%s3780_s29 + $0x128] sm:$0xf] %v328_v10  ;;  %331 = vst [vmem:[%s3780_s29 + $0x12c] sm:$0xf] %v330_v11 }
  0x48   : > { %333 = vst [vmem:[%s3780_s29 + $0x130] sm:$0xf] %v332_v12  ;;  %v334_v13 = vld [vmem:[%s3776_s28 + $0x268] sm:$0xf]  ;;  %v336_v14 = vld [vmem:[%s3776_s28 + $0x270] sm:$0xf] }
  0x49   : > { %v338_v15 = vld [vmem:[%s3776_s28 + $0x278] sm:$0xf]  ;;  %335 = vst [vmem:[%s3780_s29 + $0x134] sm:$0xf] %v334_v13  ;;  %337 = vst [vmem:[%s3780_s29 + $0x138] sm:$0xf] %v336_v14 }
  0x4a   : > { %339 = vst [vmem:[%s3780_s29 + $0x13c] sm:$0xf] %v338_v15  ;;  %v340_v16 = vld [vmem:[%s3776_s28 + $0x280] sm:$0xf]  ;;  %v342_v17 = vld [vmem:[%s3776_s28 + $0x288] sm:$0xf] }
  0x4b   : > { %v344_v18 = vld [vmem:[%s3776_s28 + $0x290] sm:$0xf]  ;;  %341 = vst [vmem:[%s3780_s29 + $0x140] sm:$0xf] %v340_v16  ;;  %343 = vst [vmem:[%s3780_s29 + $0x144] sm:$0xf] %v342_v17 }
  0x4c   : > { %345 = vst [vmem:[%s3780_s29 + $0x148] sm:$0xf] %v344_v18  ;;  %v346_v19 = vld [vmem:[%s3776_s28 + $0x298] sm:$0xf]  ;;  %v348_v20 = vld [vmem:[%s3776_s28 + $0x2a0] sm:$0xf] }
  0x4d   : > { %v350_v21 = vld [vmem:[%s3776_s28 + $0x2a8] sm:$0xf]  ;;  %347 = vst [vmem:[%s3780_s29 + $0x14c] sm:$0xf] %v346_v19  ;;  %349 = vst [vmem:[%s3780_s29 + $0x150] sm:$0xf] %v348_v20 }
  0x4e   : > { %351 = vst [vmem:[%s3780_s29 + $0x154] sm:$0xf] %v350_v21  ;;  %v352_v22 = vld [vmem:[%s3776_s28 + $0x2b0] sm:$0xf]  ;;  %v354_v23 = vld [vmem:[%s3776_s28 + $0x2b8] sm:$0xf] }
  0x4f   : > { %v356_v24 = vld [vmem:[%s3776_s28 + $0x2c0] sm:$0xf]  ;;  %353 = vst [vmem:[%s3780_s29 + $0x158] sm:$0xf] %v352_v22  ;;  %355 = vst [vmem:[%s3780_s29 + $0x15c] sm:$0xf] %v354_v23 }
  0x50   : > { %357 = vst [vmem:[%s3780_s29 + $0x160] sm:$0xf] %v356_v24  ;;  %v358_v25 = vld [vmem:[%s3776_s28 + $0x2c8] sm:$0xf]  ;;  %v360_v26 = vld [vmem:[%s3776_s28 + $0x2d0] sm:$0xf] }
  0x51   : > { %v362_v27 = vld [vmem:[%s3776_s28 + $0x2d8] sm:$0xf]  ;;  %359 = vst [vmem:[%s3780_s29 + $0x164] sm:$0xf] %v358_v25  ;;  %361 = vst [vmem:[%s3780_s29 + $0x168] sm:$0xf] %v360_v26 }
  0x52   : > { %363 = vst [vmem:[%s3780_s29 + $0x16c] sm:$0xf] %v362_v27  ;;  %v364_v28 = vld [vmem:[%s3776_s28 + $0x2e0] sm:$0xf]  ;;  %v366_v29 = vld [vmem:[%s3776_s28 + $0x2e8] sm:$0xf] }
  0x53   : > { %v368_v30 = vld [vmem:[%s3776_s28 + $0x2f0] sm:$0xf]  ;;  %365 = vst [vmem:[%s3780_s29 + $0x170] sm:$0xf] %v364_v28  ;;  %367 = vst [vmem:[%s3780_s29 + $0x174] sm:$0xf] %v366_v29 }
  0x54   : > { %369 = vst [vmem:[%s3780_s29 + $0x178] sm:$0xf] %v368_v30  ;;  %v370_v31 = vld [vmem:[%s3776_s28 + $0x2f8] sm:$0xf]  ;;  %v372_v32 = vld [vmem:[%s3776_s28 + $0x300] sm:$0xf] }
  0x55   : > { %v374_v33 = vld [vmem:[%s3776_s28 + $0x308] sm:$0xf]  ;;  %371 = vst [vmem:[%s3780_s29 + $0x17c] sm:$0xf] %v370_v31  ;;  %373 = vst [vmem:[%s3780_s29 + $0x180] sm:$0xf] %v372_v32 }
  0x56   : > { %375 = vst [vmem:[%s3780_s29 + $0x184] sm:$0xf] %v374_v33  ;;  %v376_v34 = vld [vmem:[%s3776_s28 + $0x310] sm:$0xf]  ;;  %v378_v35 = vld [vmem:[%s3776_s28 + $0x318] sm:$0xf] }
  0x57   : > { %v380_v36 = vld [vmem:[%s3776_s28 + $0x320] sm:$0xf]  ;;  %377 = vst [vmem:[%s3780_s29 + $0x188] sm:$0xf] %v376_v34  ;;  %379 = vst [vmem:[%s3780_s29 + $0x18c] sm:$0xf] %v378_v35 }
  0x58   : > { %381 = vst [vmem:[%s3780_s29 + $0x190] sm:$0xf] %v380_v36  ;;  %v382_v37 = vld [vmem:[%s3776_s28 + $0x328] sm:$0xf]  ;;  %v384_v38 = vld [vmem:[%s3776_s28 + $0x330] sm:$0xf] }
  0x59   : > { %v386_v39 = vld [vmem:[%s3776_s28 + $0x338] sm:$0xf]  ;;  %383 = vst [vmem:[%s3780_s29 + $0x194] sm:$0xf] %v382_v37  ;;  %385 = vst [vmem:[%s3780_s29 + $0x198] sm:$0xf] %v384_v38 }
  0x5a   : > { %387 = vst [vmem:[%s3780_s29 + $0x19c] sm:$0xf] %v386_v39  ;;  %v388_v40 = vld [vmem:[%s3776_s28 + $0x340] sm:$0xf]  ;;  %v390_v41 = vld [vmem:[%s3776_s28 + $0x348] sm:$0xf] }
  0x5b   : > { %v392_v42 = vld [vmem:[%s3776_s28 + $0x350] sm:$0xf]  ;;  %389 = vst [vmem:[%s3780_s29 + $0x1a0] sm:$0xf] %v388_v40  ;;  %391 = vst [vmem:[%s3780_s29 + $0x1a4] sm:$0xf] %v390_v41 }
  0x5c   : > { %393 = vst [vmem:[%s3780_s29 + $0x1a8] sm:$0xf] %v392_v42  ;;  %v394_v43 = vld [vmem:[%s3776_s28 + $0x358] sm:$0xf]  ;;  %v396_v44 = vld [vmem:[%s3776_s28 + $0x360] sm:$0xf] }
  0x5d   : > { %v398_v45 = vld [vmem:[%s3776_s28 + $0x368] sm:$0xf]  ;;  %395 = vst [vmem:[%s3780_s29 + $0x1ac] sm:$0xf] %v394_v43  ;;  %397 = vst [vmem:[%s3780_s29 + $0x1b0] sm:$0xf] %v396_v44 }
  0x5e   : > { %399 = vst [vmem:[%s3780_s29 + $0x1b4] sm:$0xf] %v398_v45  ;;  %v400_v46 = vld [vmem:[%s3776_s28 + $0x370] sm:$0xf]  ;;  %v402_v47 = vld [vmem:[%s3776_s28 + $0x378] sm:$0xf] }
  0x5f   : > { %v404_v48 = vld [vmem:[%s3776_s28 + $0x380] sm:$0xf]  ;;  %401 = vst [vmem:[%s3780_s29 + $0x1b8] sm:$0xf] %v400_v46  ;;  %403 = vst [vmem:[%s3780_s29 + $0x1bc] sm:$0xf] %v402_v47 }
  0x60   : > { %405 = vst [vmem:[%s3780_s29 + $0x1c0] sm:$0xf] %v404_v48  ;;  %v406_v49 = vld [vmem:[%s3776_s28 + $0x388] sm:$0xf]  ;;  %v408_v50 = vld [vmem:[%s3776_s28 + $0x390] sm:$0xf] }
  0x61   : > { %v410_v51 = vld [vmem:[%s3776_s28 + $0x398] sm:$0xf]  ;;  %407 = vst [vmem:[%s3780_s29 + $0x1c4] sm:$0xf] %v406_v49  ;;  %409 = vst [vmem:[%s3780_s29 + $0x1c8] sm:$0xf] %v408_v50 }
  0x62   : > { %411 = vst [vmem:[%s3780_s29 + $0x1cc] sm:$0xf] %v410_v51  ;;  %v412_v52 = vld [vmem:[%s3776_s28 + $0x3a0] sm:$0xf]  ;;  %v414_v53 = vld [vmem:[%s3776_s28 + $0x3a8] sm:$0xf] }
  0x63   : > { %v416_v54 = vld [vmem:[%s3776_s28 + $0x3b0] sm:$0xf]  ;;  %413 = vst [vmem:[%s3780_s29 + $0x1d0] sm:$0xf] %v412_v52  ;;  %415 = vst [vmem:[%s3780_s29 + $0x1d4] sm:$0xf] %v414_v53 }
  0x64   : > { %417 = vst [vmem:[%s3780_s29 + $0x1d8] sm:$0xf] %v416_v54  ;;  %v418_v55 = vld [vmem:[%s3776_s28 + $0x3b8] sm:$0xf]  ;;  %v420_v56 = vld [vmem:[%s3776_s28 + $0x3c0] sm:$0xf] }
  0x65   : > { %v422_v57 = vld [vmem:[%s3776_s28 + $0x3c8] sm:$0xf]  ;;  %419 = vst [vmem:[%s3780_s29 + $0x1dc] sm:$0xf] %v418_v55  ;;  %421 = vst [vmem:[%s3780_s29 + $0x1e0] sm:$0xf] %v420_v56 }
  0x66   : > { %423 = vst [vmem:[%s3780_s29 + $0x1e4] sm:$0xf] %v422_v57  ;;  %v424_v58 = vld [vmem:[%s3776_s28 + $0x3d0] sm:$0xf]  ;;  %v426_v59 = vld [vmem:[%s3776_s28 + $0x3d8] sm:$0xf] }
  0x67   : > { %v428_v60 = vld [vmem:[%s3776_s28 + $0x3e0] sm:$0xf]  ;;  %425 = vst [vmem:[%s3780_s29 + $0x1e8] sm:$0xf] %v424_v58  ;;  %427 = vst [vmem:[%s3780_s29 + $0x1ec] sm:$0xf] %v426_v59 }
  0x68   : > { %429 = vst [vmem:[%s3780_s29 + $0x1f0] sm:$0xf] %v428_v60  ;;  %v430_v61 = vld [vmem:[%s3776_s28 + $0x3e8] sm:$0xf]  ;;  %v432_v62 = vld [vmem:[%s3776_s28 + $0x3f0] sm:$0xf] }
  0x69   : > { %v434_v63 = vld [vmem:[%s3776_s28 + $0x3f8] sm:$0xf]  ;;  %431 = vst [vmem:[%s3780_s29 + $0x1f4] sm:$0xf] %v430_v61  ;;  %433 = vst [vmem:[%s3780_s29 + $0x1f8] sm:$0xf] %v432_v62 }
  0x6a   : > { %435 = vst [vmem:[%s3780_s29 + $0x1fc] sm:$0xf] %v434_v63  ;;  %v436_v0 = vld [vmem:[%s3776_s28 + $0x400] sm:$0xf]  ;;  %v438_v1 = vld [vmem:[%s3776_s28 + $0x408] sm:$0xf] }
  0x6b   : > { %v440_v2 = vld [vmem:[%s3776_s28 + $0x410] sm:$0xf]  ;;  %437 = vst [vmem:[%s3780_s29 + $0x200] sm:$0xf] %v436_v0  ;;  %439 = vst [vmem:[%s3780_s29 + $0x204] sm:$0xf] %v438_v1 }
  0x6c   : > { %441 = vst [vmem:[%s3780_s29 + $0x208] sm:$0xf] %v440_v2  ;;  %v442_v3 = vld [vmem:[%s3776_s28 + $0x418] sm:$0xf]  ;;  %v444_v4 = vld [vmem:[%s3776_s28 + $0x420] sm:$0xf] }
  0x6d   : > { %v446_v5 = vld [vmem:[%s3776_s28 + $0x428] sm:$0xf]  ;;  %443 = vst [vmem:[%s3780_s29 + $0x20c] sm:$0xf] %v442_v3  ;;  %445 = vst [vmem:[%s3780_s29 + $0x210] sm:$0xf] %v444_v4 }
  0x6e   : > { %447 = vst [vmem:[%s3780_s29 + $0x214] sm:$0xf] %v446_v5  ;;  %v448_v6 = vld [vmem:[%s3776_s28 + $0x430] sm:$0xf]  ;;  %v450_v7 = vld [vmem:[%s3776_s28 + $0x438] sm:$0xf] }
  0x6f   : > { %v452_v8 = vld [vmem:[%s3776_s28 + $0x440] sm:$0xf]  ;;  %449 = vst [vmem:[%s3780_s29 + $0x218] sm:$0xf] %v448_v6  ;;  %451 = vst [vmem:[%s3780_s29 + $0x21c] sm:$0xf] %v450_v7 }
  0x70   : > { %453 = vst [vmem:[%s3780_s29 + $0x220] sm:$0xf] %v452_v8  ;;  %v454_v9 = vld [vmem:[%s3776_s28 + $0x448] sm:$0xf]  ;;  %v456_v10 = vld [vmem:[%s3776_s28 + $0x450] sm:$0xf] }
  0x71   : > { %v458_v11 = vld [vmem:[%s3776_s28 + $0x458] sm:$0xf]  ;;  %455 = vst [vmem:[%s3780_s29 + $0x224] sm:$0xf] %v454_v9  ;;  %457 = vst [vmem:[%s3780_s29 + $0x228] sm:$0xf] %v456_v10 }
  0x72   : > { %459 = vst [vmem:[%s3780_s29 + $0x22c] sm:$0xf] %v458_v11  ;;  %v460_v12 = vld [vmem:[%s3776_s28 + $0x460] sm:$0xf]  ;;  %v462_v13 = vld [vmem:[%s3776_s28 + $0x468] sm:$0xf] }
  0x73   : > { %v464_v14 = vld [vmem:[%s3776_s28 + $0x470] sm:$0xf]  ;;  %461 = vst [vmem:[%s3780_s29 + $0x230] sm:$0xf] %v460_v12  ;;  %463 = vst [vmem:[%s3780_s29 + $0x234] sm:$0xf] %v462_v13 }
  0x74   : > { %465 = vst [vmem:[%s3780_s29 + $0x238] sm:$0xf] %v464_v14  ;;  %v466_v15 = vld [vmem:[%s3776_s28 + $0x478] sm:$0xf]  ;;  %v468_v16 = vld [vmem:[%s3776_s28 + $0x480] sm:$0xf] }
  0x75   : > { %v470_v17 = vld [vmem:[%s3776_s28 + $0x488] sm:$0xf]  ;;  %467 = vst [vmem:[%s3780_s29 + $0x23c] sm:$0xf] %v466_v15  ;;  %469 = vst [vmem:[%s3780_s29 + $0x240] sm:$0xf] %v468_v16 }
  0x76   : > { %471 = vst [vmem:[%s3780_s29 + $0x244] sm:$0xf] %v470_v17  ;;  %v472_v18 = vld [vmem:[%s3776_s28 + $0x490] sm:$0xf]  ;;  %v474_v19 = vld [vmem:[%s3776_s28 + $0x498] sm:$0xf] }
  0x77   : > { %v476_v20 = vld [vmem:[%s3776_s28 + $0x4a0] sm:$0xf]  ;;  %473 = vst [vmem:[%s3780_s29 + $0x248] sm:$0xf] %v472_v18  ;;  %475 = vst [vmem:[%s3780_s29 + $0x24c] sm:$0xf] %v474_v19 }
  0x78   : > { %477 = vst [vmem:[%s3780_s29 + $0x250] sm:$0xf] %v476_v20  ;;  %v478_v21 = vld [vmem:[%s3776_s28 + $0x4a8] sm:$0xf]  ;;  %v480_v22 = vld [vmem:[%s3776_s28 + $0x4b0] sm:$0xf] }
  0x79   : > { %v482_v23 = vld [vmem:[%s3776_s28 + $0x4b8] sm:$0xf]  ;;  %479 = vst [vmem:[%s3780_s29 + $0x254] sm:$0xf] %v478_v21  ;;  %481 = vst [vmem:[%s3780_s29 + $0x258] sm:$0xf] %v480_v22 }
  0x7a   : > { %483 = vst [vmem:[%s3780_s29 + $0x25c] sm:$0xf] %v482_v23  ;;  %v484_v24 = vld [vmem:[%s3776_s28 + $0x4c0] sm:$0xf]  ;;  %v486_v25 = vld [vmem:[%s3776_s28 + $0x4c8] sm:$0xf] }
  0x7b   : > { %v488_v26 = vld [vmem:[%s3776_s28 + $0x4d0] sm:$0xf]  ;;  %485 = vst [vmem:[%s3780_s29 + $0x260] sm:$0xf] %v484_v24  ;;  %487 = vst [vmem:[%s3780_s29 + $0x264] sm:$0xf] %v486_v25 }
  0x7c   : > { %489 = vst [vmem:[%s3780_s29 + $0x268] sm:$0xf] %v488_v26  ;;  %v490_v27 = vld [vmem:[%s3776_s28 + $0x4d8] sm:$0xf]  ;;  %v492_v28 = vld [vmem:[%s3776_s28 + $0x4e0] sm:$0xf] }
  0x7d   : > { %v494_v29 = vld [vmem:[%s3776_s28 + $0x4e8] sm:$0xf]  ;;  %491 = vst [vmem:[%s3780_s29 + $0x26c] sm:$0xf] %v490_v27  ;;  %493 = vst [vmem:[%s3780_s29 + $0x270] sm:$0xf] %v492_v28 }
  0x7e   : > { %495 = vst [vmem:[%s3780_s29 + $0x274] sm:$0xf] %v494_v29  ;;  %v496_v30 = vld [vmem:[%s3776_s28 + $0x4f0] sm:$0xf]  ;;  %v498_v31 = vld [vmem:[%s3776_s28 + $0x4f8] sm:$0xf] }
  0x7f   : > { %v500_v32 = vld [vmem:[%s3776_s28 + $0x500] sm:$0xf]  ;;  %497 = vst [vmem:[%s3780_s29 + $0x278] sm:$0xf] %v496_v30  ;;  %499 = vst [vmem:[%s3780_s29 + $0x27c] sm:$0xf] %v498_v31 }
  0x80   : > { %501 = vst [vmem:[%s3780_s29 + $0x280] sm:$0xf] %v500_v32  ;;  %v502_v33 = vld [vmem:[%s3776_s28 + $0x508] sm:$0xf]  ;;  %v504_v34 = vld [vmem:[%s3776_s28 + $0x510] sm:$0xf] }
  0x81   : > { %v506_v35 = vld [vmem:[%s3776_s28 + $0x518] sm:$0xf]  ;;  %503 = vst [vmem:[%s3780_s29 + $0x284] sm:$0xf] %v502_v33  ;;  %505 = vst [vmem:[%s3780_s29 + $0x288] sm:$0xf] %v504_v34 }
  0x82   : > { %507 = vst [vmem:[%s3780_s29 + $0x28c] sm:$0xf] %v506_v35  ;;  %v508_v36 = vld [vmem:[%s3776_s28 + $0x520] sm:$0xf]  ;;  %v510_v37 = vld [vmem:[%s3776_s28 + $0x528] sm:$0xf] }
  0x83   : > { %v512_v38 = vld [vmem:[%s3776_s28 + $0x530] sm:$0xf]  ;;  %509 = vst [vmem:[%s3780_s29 + $0x290] sm:$0xf] %v508_v36  ;;  %511 = vst [vmem:[%s3780_s29 + $0x294] sm:$0xf] %v510_v37 }
  0x84   : > { %513 = vst [vmem:[%s3780_s29 + $0x298] sm:$0xf] %v512_v38  ;;  %v514_v39 = vld [vmem:[%s3776_s28 + $0x538] sm:$0xf]  ;;  %v516_v40 = vld [vmem:[%s3776_s28 + $0x540] sm:$0xf] }
  0x85   : > { %v518_v41 = vld [vmem:[%s3776_s28 + $0x548] sm:$0xf]  ;;  %515 = vst [vmem:[%s3780_s29 + $0x29c] sm:$0xf] %v514_v39  ;;  %517 = vst [vmem:[%s3780_s29 + $0x2a0] sm:$0xf] %v516_v40 }
  0x86   : > { %519 = vst [vmem:[%s3780_s29 + $0x2a4] sm:$0xf] %v518_v41  ;;  %v520_v42 = vld [vmem:[%s3776_s28 + $0x550] sm:$0xf]  ;;  %v522_v43 = vld [vmem:[%s3776_s28 + $0x558] sm:$0xf] }
  0x87   : > { %v524_v44 = vld [vmem:[%s3776_s28 + $0x560] sm:$0xf]  ;;  %521 = vst [vmem:[%s3780_s29 + $0x2a8] sm:$0xf] %v520_v42  ;;  %523 = vst [vmem:[%s3780_s29 + $0x2ac] sm:$0xf] %v522_v43 }
  0x88   : > { %525 = vst [vmem:[%s3780_s29 + $0x2b0] sm:$0xf] %v524_v44  ;;  %v526_v45 = vld [vmem:[%s3776_s28 + $0x568] sm:$0xf]  ;;  %v528_v46 = vld [vmem:[%s3776_s28 + $0x570] sm:$0xf] }
  0x89   : > { %v530_v47 = vld [vmem:[%s3776_s28 + $0x578] sm:$0xf]  ;;  %527 = vst [vmem:[%s3780_s29 + $0x2b4] sm:$0xf] %v526_v45  ;;  %529 = vst [vmem:[%s3780_s29 + $0x2b8] sm:$0xf] %v528_v46 }
  0x8a   : > { %531 = vst [vmem:[%s3780_s29 + $0x2bc] sm:$0xf] %v530_v47  ;;  %v532_v48 = vld [vmem:[%s3776_s28 + $0x580] sm:$0xf]  ;;  %v534_v49 = vld [vmem:[%s3776_s28 + $0x588] sm:$0xf] }
  0x8b   : > { %v536_v50 = vld [vmem:[%s3776_s28 + $0x590] sm:$0xf]  ;;  %533 = vst [vmem:[%s3780_s29 + $0x2c0] sm:$0xf] %v532_v48  ;;  %535 = vst [vmem:[%s3780_s29 + $0x2c4] sm:$0xf] %v534_v49 }
  0x8c   : > { %537 = vst [vmem:[%s3780_s29 + $0x2c8] sm:$0xf] %v536_v50  ;;  %v538_v51 = vld [vmem:[%s3776_s28 + $0x598] sm:$0xf]  ;;  %v540_v52 = vld [vmem:[%s3776_s28 + $0x5a0] sm:$0xf] }
  0x8d   : > { %v542_v53 = vld [vmem:[%s3776_s28 + $0x5a8] sm:$0xf]  ;;  %539 = vst [vmem:[%s3780_s29 + $0x2cc] sm:$0xf] %v538_v51  ;;  %541 = vst [vmem:[%s3780_s29 + $0x2d0] sm:$0xf] %v540_v52 }
  0x8e   : > { %543 = vst [vmem:[%s3780_s29 + $0x2d4] sm:$0xf] %v542_v53  ;;  %v544_v54 = vld [vmem:[%s3776_s28 + $0x5b0] sm:$0xf]  ;;  %v546_v55 = vld [vmem:[%s3776_s28 + $0x5b8] sm:$0xf] }
  0x8f   : > { %v548_v56 = vld [vmem:[%s3776_s28 + $0x5c0] sm:$0xf]  ;;  %545 = vst [vmem:[%s3780_s29 + $0x2d8] sm:$0xf] %v544_v54  ;;  %547 = vst [vmem:[%s3780_s29 + $0x2dc] sm:$0xf] %v546_v55 }
  0x90   : > { %549 = vst [vmem:[%s3780_s29 + $0x2e0] sm:$0xf] %v548_v56  ;;  %v550_v57 = vld [vmem:[%s3776_s28 + $0x5c8] sm:$0xf]  ;;  %v552_v58 = vld [vmem:[%s3776_s28 + $0x5d0] sm:$0xf] }
  0x91   : > { %v554_v59 = vld [vmem:[%s3776_s28 + $0x5d8] sm:$0xf]  ;;  %551 = vst [vmem:[%s3780_s29 + $0x2e4] sm:$0xf] %v550_v57  ;;  %553 = vst [vmem:[%s3780_s29 + $0x2e8] sm:$0xf] %v552_v58 }
  0x92   : > { %555 = vst [vmem:[%s3780_s29 + $0x2ec] sm:$0xf] %v554_v59  ;;  %v556_v60 = vld [vmem:[%s3776_s28 + $0x5e0] sm:$0xf]  ;;  %v558_v61 = vld [vmem:[%s3776_s28 + $0x5e8] sm:$0xf] }
  0x93   : > { %v560_v62 = vld [vmem:[%s3776_s28 + $0x5f0] sm:$0xf]  ;;  %557 = vst [vmem:[%s3780_s29 + $0x2f0] sm:$0xf] %v556_v60  ;;  %559 = vst [vmem:[%s3780_s29 + $0x2f4] sm:$0xf] %v558_v61 }
  0x94   : > { %561 = vst [vmem:[%s3780_s29 + $0x2f8] sm:$0xf] %v560_v62  ;;  %v562_v63 = vld [vmem:[%s3776_s28 + $0x5f8] sm:$0xf]  ;;  %v564_v0 = vld [vmem:[%s3776_s28 + $0x600] sm:$0xf] }
  0x95   : > { %v566_v1 = vld [vmem:[%s3776_s28 + $0x608] sm:$0xf]  ;;  %563 = vst [vmem:[%s3780_s29 + $0x2fc] sm:$0xf] %v562_v63  ;;  %565 = vst [vmem:[%s3780_s29 + $0x300] sm:$0xf] %v564_v0 }
  0x96   : > { %567 = vst [vmem:[%s3780_s29 + $0x304] sm:$0xf] %v566_v1  ;;  %v568_v2 = vld [vmem:[%s3776_s28 + $0x610] sm:$0xf]  ;;  %v570_v3 = vld [vmem:[%s3776_s28 + $0x618] sm:$0xf] }
  0x97   : > { %v572_v4 = vld [vmem:[%s3776_s28 + $0x620] sm:$0xf]  ;;  %569 = vst [vmem:[%s3780_s29 + $0x308] sm:$0xf] %v568_v2  ;;  %571 = vst [vmem:[%s3780_s29 + $0x30c] sm:$0xf] %v570_v3 }
  0x98   : > { %573 = vst [vmem:[%s3780_s29 + $0x310] sm:$0xf] %v572_v4  ;;  %v574_v5 = vld [vmem:[%s3776_s28 + $0x628] sm:$0xf]  ;;  %v576_v6 = vld [vmem:[%s3776_s28 + $0x630] sm:$0xf] }
  0x99   : > { %v578_v7 = vld [vmem:[%s3776_s28 + $0x638] sm:$0xf]  ;;  %575 = vst [vmem:[%s3780_s29 + $0x314] sm:$0xf] %v574_v5  ;;  %577 = vst [vmem:[%s3780_s29 + $0x318] sm:$0xf] %v576_v6 }
  0x9a   : > { %579 = vst [vmem:[%s3780_s29 + $0x31c] sm:$0xf] %v578_v7  ;;  %v580_v8 = vld [vmem:[%s3776_s28 + $0x640] sm:$0xf]  ;;  %v582_v9 = vld [vmem:[%s3776_s28 + $0x648] sm:$0xf] }
  0x9b   : > { %v584_v10 = vld [vmem:[%s3776_s28 + $0x650] sm:$0xf]  ;;  %581 = vst [vmem:[%s3780_s29 + $0x320] sm:$0xf] %v580_v8  ;;  %583 = vst [vmem:[%s3780_s29 + $0x324] sm:$0xf] %v582_v9 }
  0x9c   : > { %585 = vst [vmem:[%s3780_s29 + $0x328] sm:$0xf] %v584_v10  ;;  %v586_v11 = vld [vmem:[%s3776_s28 + $0x658] sm:$0xf]  ;;  %v588_v12 = vld [vmem:[%s3776_s28 + $0x660] sm:$0xf] }
  0x9d   : > { %v590_v13 = vld [vmem:[%s3776_s28 + $0x668] sm:$0xf]  ;;  %587 = vst [vmem:[%s3780_s29 + $0x32c] sm:$0xf] %v586_v11  ;;  %589 = vst [vmem:[%s3780_s29 + $0x330] sm:$0xf] %v588_v12 }
  0x9e   : > { %591 = vst [vmem:[%s3780_s29 + $0x334] sm:$0xf] %v590_v13  ;;  %v592_v14 = vld [vmem:[%s3776_s28 + $0x670] sm:$0xf]  ;;  %v594_v15 = vld [vmem:[%s3776_s28 + $0x678] sm:$0xf] }
  0x9f   : > { %v596_v16 = vld [vmem:[%s3776_s28 + $0x680] sm:$0xf]  ;;  %593 = vst [vmem:[%s3780_s29 + $0x338] sm:$0xf] %v592_v14  ;;  %595 = vst [vmem:[%s3780_s29 + $0x33c] sm:$0xf] %v594_v15 }
  0xa0   : > { %597 = vst [vmem:[%s3780_s29 + $0x340] sm:$0xf] %v596_v16  ;;  %v598_v17 = vld [vmem:[%s3776_s28 + $0x688] sm:$0xf]  ;;  %v600_v18 = vld [vmem:[%s3776_s28 + $0x690] sm:$0xf] }
  0xa1   : > { %v602_v19 = vld [vmem:[%s3776_s28 + $0x698] sm:$0xf]  ;;  %599 = vst [vmem:[%s3780_s29 + $0x344] sm:$0xf] %v598_v17  ;;  %601 = vst [vmem:[%s3780_s29 + $0x348] sm:$0xf] %v600_v18 }
  0xa2   : > { %603 = vst [vmem:[%s3780_s29 + $0x34c] sm:$0xf] %v602_v19  ;;  %v604_v20 = vld [vmem:[%s3776_s28 + $0x6a0] sm:$0xf]  ;;  %v606_v21 = vld [vmem:[%s3776_s28 + $0x6a8] sm:$0xf] }
  0xa3   : > { %v608_v22 = vld [vmem:[%s3776_s28 + $0x6b0] sm:$0xf]  ;;  %605 = vst [vmem:[%s3780_s29 + $0x350] sm:$0xf] %v604_v20  ;;  %607 = vst [vmem:[%s3780_s29 + $0x354] sm:$0xf] %v606_v21 }
  0xa4   : > { %609 = vst [vmem:[%s3780_s29 + $0x358] sm:$0xf] %v608_v22  ;;  %v610_v23 = vld [vmem:[%s3776_s28 + $0x6b8] sm:$0xf]  ;;  %v612_v24 = vld [vmem:[%s3776_s28 + $0x6c0] sm:$0xf] }
  0xa5   : > { %v614_v25 = vld [vmem:[%s3776_s28 + $0x6c8] sm:$0xf]  ;;  %611 = vst [vmem:[%s3780_s29 + $0x35c] sm:$0xf] %v610_v23  ;;  %613 = vst [vmem:[%s3780_s29 + $0x360] sm:$0xf] %v612_v24 }
  0xa6   : > { %615 = vst [vmem:[%s3780_s29 + $0x364] sm:$0xf] %v614_v25  ;;  %v616_v26 = vld [vmem:[%s3776_s28 + $0x6d0] sm:$0xf]  ;;  %v618_v27 = vld [vmem:[%s3776_s28 + $0x6d8] sm:$0xf] }
  0xa7   : > { %v620_v28 = vld [vmem:[%s3776_s28 + $0x6e0] sm:$0xf]  ;;  %617 = vst [vmem:[%s3780_s29 + $0x368] sm:$0xf] %v616_v26  ;;  %619 = vst [vmem:[%s3780_s29 + $0x36c] sm:$0xf] %v618_v27 }
  0xa8   : > { %621 = vst [vmem:[%s3780_s29 + $0x370] sm:$0xf] %v620_v28  ;;  %v622_v29 = vld [vmem:[%s3776_s28 + $0x6e8] sm:$0xf]  ;;  %v624_v30 = vld [vmem:[%s3776_s28 + $0x6f0] sm:$0xf] }
  0xa9   : > { %v626_v31 = vld [vmem:[%s3776_s28 + $0x6f8] sm:$0xf]  ;;  %623 = vst [vmem:[%s3780_s29 + $0x374] sm:$0xf] %v622_v29  ;;  %625 = vst [vmem:[%s3780_s29 + $0x378] sm:$0xf] %v624_v30 }
  0xaa   : > { %627 = vst [vmem:[%s3780_s29 + $0x37c] sm:$0xf] %v626_v31  ;;  %v628_v32 = vld [vmem:[%s3776_s28 + $0x700] sm:$0xf]  ;;  %v630_v33 = vld [vmem:[%s3776_s28 + $0x708] sm:$0xf] }
  0xab   : > { %v632_v34 = vld [vmem:[%s3776_s28 + $0x710] sm:$0xf]  ;;  %629 = vst [vmem:[%s3780_s29 + $0x380] sm:$0xf] %v628_v32  ;;  %631 = vst [vmem:[%s3780_s29 + $0x384] sm:$0xf] %v630_v33 }
  0xac   : > { %633 = vst [vmem:[%s3780_s29 + $0x388] sm:$0xf] %v632_v34  ;;  %v634_v35 = vld [vmem:[%s3776_s28 + $0x718] sm:$0xf]  ;;  %v636_v36 = vld [vmem:[%s3776_s28 + $0x720] sm:$0xf] }
  0xad   : > { %v638_v37 = vld [vmem:[%s3776_s28 + $0x728] sm:$0xf]  ;;  %635 = vst [vmem:[%s3780_s29 + $0x38c] sm:$0xf] %v634_v35  ;;  %637 = vst [vmem:[%s3780_s29 + $0x390] sm:$0xf] %v636_v36 }
  0xae   : > { %639 = vst [vmem:[%s3780_s29 + $0x394] sm:$0xf] %v638_v37  ;;  %v640_v38 = vld [vmem:[%s3776_s28 + $0x730] sm:$0xf]  ;;  %v642_v39 = vld [vmem:[%s3776_s28 + $0x738] sm:$0xf] }
  0xaf   : > { %v644_v40 = vld [vmem:[%s3776_s28 + $0x740] sm:$0xf]  ;;  %641 = vst [vmem:[%s3780_s29 + $0x398] sm:$0xf] %v640_v38  ;;  %643 = vst [vmem:[%s3780_s29 + $0x39c] sm:$0xf] %v642_v39 }
  0xb0   : > { %645 = vst [vmem:[%s3780_s29 + $0x3a0] sm:$0xf] %v644_v40  ;;  %v646_v41 = vld [vmem:[%s3776_s28 + $0x748] sm:$0xf]  ;;  %v648_v42 = vld [vmem:[%s3776_s28 + $0x750] sm:$0xf] }
  0xb1   : > { %v650_v43 = vld [vmem:[%s3776_s28 + $0x758] sm:$0xf]  ;;  %647 = vst [vmem:[%s3780_s29 + $0x3a4] sm:$0xf] %v646_v41  ;;  %649 = vst [vmem:[%s3780_s29 + $0x3a8] sm:$0xf] %v648_v42 }
  0xb2   : > { %651 = vst [vmem:[%s3780_s29 + $0x3ac] sm:$0xf] %v650_v43  ;;  %v652_v44 = vld [vmem:[%s3776_s28 + $0x760] sm:$0xf]  ;;  %v654_v45 = vld [vmem:[%s3776_s28 + $0x768] sm:$0xf] }
  0xb3   : > { %v656_v46 = vld [vmem:[%s3776_s28 + $0x770] sm:$0xf]  ;;  %653 = vst [vmem:[%s3780_s29 + $0x3b0] sm:$0xf] %v652_v44  ;;  %655 = vst [vmem:[%s3780_s29 + $0x3b4] sm:$0xf] %v654_v45 }
  0xb4   : > { %657 = vst [vmem:[%s3780_s29 + $0x3b8] sm:$0xf] %v656_v46  ;;  %v658_v47 = vld [vmem:[%s3776_s28 + $0x778] sm:$0xf]  ;;  %v660_v48 = vld [vmem:[%s3776_s28 + $0x780] sm:$0xf] }
  0xb5   : > { %v662_v49 = vld [vmem:[%s3776_s28 + $0x788] sm:$0xf]  ;;  %659 = vst [vmem:[%s3780_s29 + $0x3bc] sm:$0xf] %v658_v47  ;;  %661 = vst [vmem:[%s3780_s29 + $0x3c0] sm:$0xf] %v660_v48 }
  0xb6   : > { %663 = vst [vmem:[%s3780_s29 + $0x3c4] sm:$0xf] %v662_v49  ;;  %v664_v50 = vld [vmem:[%s3776_s28 + $0x790] sm:$0xf]  ;;  %v666_v51 = vld [vmem:[%s3776_s28 + $0x798] sm:$0xf] }
  0xb7   : > { %v668_v52 = vld [vmem:[%s3776_s28 + $0x7a0] sm:$0xf]  ;;  %665 = vst [vmem:[%s3780_s29 + $0x3c8] sm:$0xf] %v664_v50  ;;  %667 = vst [vmem:[%s3780_s29 + $0x3cc] sm:$0xf] %v666_v51 }
  0xb8   : > { %669 = vst [vmem:[%s3780_s29 + $0x3d0] sm:$0xf] %v668_v52  ;;  %v670_v53 = vld [vmem:[%s3776_s28 + $0x7a8] sm:$0xf]  ;;  %v672_v54 = vld [vmem:[%s3776_s28 + $0x7b0] sm:$0xf] }
  0xb9   : > { %v674_v55 = vld [vmem:[%s3776_s28 + $0x7b8] sm:$0xf]  ;;  %671 = vst [vmem:[%s3780_s29 + $0x3d4] sm:$0xf] %v670_v53  ;;  %673 = vst [vmem:[%s3780_s29 + $0x3d8] sm:$0xf] %v672_v54 }
  0xba   : > { %675 = vst [vmem:[%s3780_s29 + $0x3dc] sm:$0xf] %v674_v55  ;;  %v676_v56 = vld [vmem:[%s3776_s28 + $0x7c0] sm:$0xf]  ;;  %v678_v57 = vld [vmem:[%s3776_s28 + $0x7c8] sm:$0xf] }
  0xbb   : > { %v680_v58 = vld [vmem:[%s3776_s28 + $0x7d0] sm:$0xf]  ;;  %677 = vst [vmem:[%s3780_s29 + $0x3e0] sm:$0xf] %v676_v56  ;;  %679 = vst [vmem:[%s3780_s29 + $0x3e4] sm:$0xf] %v678_v57 }
  0xbc   : > { %681 = vst [vmem:[%s3780_s29 + $0x3e8] sm:$0xf] %v680_v58  ;;  %v682_v59 = vld [vmem:[%s3776_s28 + $0x7d8] sm:$0xf]  ;;  %v684_v60 = vld [vmem:[%s3776_s28 + $0x7e0] sm:$0xf] }
  0xbd   : > { %v686_v61 = vld [vmem:[%s3776_s28 + $0x7e8] sm:$0xf]  ;;  %683 = vst [vmem:[%s3780_s29 + $0x3ec] sm:$0xf] %v682_v59  ;;  %685 = vst [vmem:[%s3780_s29 + $0x3f0] sm:$0xf] %v684_v60 }
  0xbe   : > { %687 = vst [vmem:[%s3780_s29 + $0x3f4] sm:$0xf] %v686_v61  ;;  %v688_v62 = vld [vmem:[%s3776_s28 + $0x7f0] sm:$0xf]  ;;  %v690_v63 = vld [vmem:[%s3776_s28 + $0x7f8] sm:$0xf] }
  0xbf   : > { %689 = vst [vmem:[%s3780_s29 + $0x3f8] sm:$0xf] %v688_v62  ;;  %691 = vst [vmem:[%s3780_s29 + $0x3fc] sm:$0xf] %v690_v63 }
  0xc0 PF: > { %p3089_p8 = scmp.ge.s32.totalorder %s3706_s16, 1  ;;  %p1231_p9 = scmp.lt.s32.totalorder %s3706_s16, 3 }
  0xc2   : > { %p1232_p10 = pnand %p3089_p8, %p1231_p9 }
  0xc3   : > { %s1238_s30 = sand.u32 (!%p1232_p10), 1, %s3690_s12   ;;  %v4298_v0 = vld [vmem:[%s4567_s0] sm:$0xff] (!%p1232_p10)  ;;  %v4308_v2 = vld [vmem:[%s4567_s0 + $0x8] sm:$0xff] (!%p1232_p10)  ;;  %p1276_p11 = scmp.lt.s32.totalorder (!%p1232_p10), %s3698_s14, 1 }
  0xc4   : > { %1235 = sbr.rel (%p1232_p10) target bundleno = 571 (0x23b), region = 69  ;;  %v4303_v1 = vld [vmem:[%s4567_s0 + $0x40] sm:$0xff] (!%p1232_p10)  ;;  %s3090_s10 = sshll.u32 (!%p1232_p10), %s1238_s30, 10  ;;  %v4317_v4 = vld [vmem:[%s4567_s0 + $0x48] sm:$0xff] (!%p1232_p10) }
  0xc5   : > { %v3094_v3 = vcombine.high (!%p1232_p10), %v4298_v0, %v4303_v1  ;;  %v3096_v5 = vcombine.high (!%p1232_p10), %v4308_v2, %v4317_v4  ;;  %s4321_s19 = scalar_lea.vmem (!%p1232_p10), [#allocation2], %s3090_s10  ;;  %v1297_v35 = vld [vmem:[%s4567_s0 + $0x80] sm:$0xff] (!%p1232_p10)  ;;  %v1298_v38 = vld [vmem:[%s4567_s0 + $0x88] sm:$0xff] (!%p1232_p10)  ;;  %v3093_v42 = vcombine.low (!%p1232_p10), %v4298_v0, %v4303_v1  ;;  %v3095_v43 = vcombine.low (!%p1232_p10), %v4308_v2, %v4317_v4  ;;  %s3091_s4 = sshll.u32 (!%p1232_p10), %s1238_s30, 4 }
  0xc6   : > { %v3540_v6 = vld [vmem:[%s4321_s19 + $0x40] sm:$0xff] (!%p1232_p10)   ;;  %v3544_v10 = vld [vmem:[%s4321_s19 + $0x48] sm:$0xff] (!%p1232_p10)   ;;  %v3548_v14 = vld [vmem:[%s4321_s19 + $0x50] sm:$0xff] (!%p1232_p10)   ;;  %s1268_s12 = scalar_lea.vmem (!%p1232_p10), [#allocation3], %s3091_s4 }
  0xc7   : > { %2536 = vmatprep.mubr.bf16.mxu0 (!%p1232_p10), %v3094_v3  ;;  %v3541_v7 = vld [vmem:[%s4321_s19 + $0xc0] sm:$0xff] (!%p1232_p10)   ;;  %2585 = vmatprep.mubr.bf16.mxu1 (!%p1232_p10), %v3096_v5  ;;  %v3545_v11 = vld [vmem:[%s4321_s19 + $0xc8] sm:$0xff] (!%p1232_p10)   ;;  %v3549_v15 = vld [vmem:[%s4321_s19 + $0xd0] sm:$0xff] (!%p1232_p10)  }
  0xc8   : > { %3276 = vmatprep.subr.bf16.mxu0 (!%p1232_p10), %v3540_v6  ;;  %v3542_v8 = vld [vmem:[%s4321_s19] sm:$0xff] (!%p1232_p10)   ;;  %3304 = vmatprep.subr.bf16.mxu1 (!%p1232_p10), %v3541_v7  ;;  %v3546_v12 = vld [vmem:[%s4321_s19 + $0x8] sm:$0xff] (!%p1232_p10)   ;;  %v3550_v16 = vld [vmem:[%s4321_s19 + $0x10] sm:$0xff] (!%p1232_p10)  }
  0xc9   : > { %v3543_v9 = vld [vmem:[%s4321_s19 + $0x80] sm:$0xff] (!%p1232_p10)   ;;  %3277 = vmatpush3.bf16.msra.mxu0 (!%p1232_p10), %v3542_v8  ;;  %v3547_v13 = vld [vmem:[%s4321_s19 + $0x88] sm:$0xff] (!%p1232_p10)   ;;  %v3551_v17 = vld [vmem:[%s4321_s19 + $0x90] sm:$0xff] (!%p1232_p10)  }
  0xca   : > { %3305 = vmatpush3.bf16.msra.mxu1 (!%p1232_p10), %v3543_v9  ;;  %3278 = vmatprep.subr.bf16.mxu0 (!%p1232_p10), %v3544_v10  ;;  %v3552_v18 = vld [vmem:[%s4321_s19 + $0x58] sm:$0xff] (!%p1232_p10)   ;;  %v3556_v22 = vld [vmem:[%s4321_s19 + $0x60] sm:$0xff] (!%p1232_p10)   ;;  %v3560_v26 = vld [vmem:[%s4321_s19 + $0x68] sm:$0xff] (!%p1232_p10)  }
  0xcb   : > { %3306 = vmatprep.subr.bf16.mxu1 %v3545_v11  ;;  %v3553_v19 = vld [vmem:[%s4321_s19 + $0xd8] sm:$0xff]   ;;  %v3557_v23 = vld [vmem:[%s4321_s19 + $0xe0] sm:$0xff]   ;;  %v3561_v27 = vld [vmem:[%s4321_s19 + $0xe8] sm:$0xff]   ;;  %s1277_s26 = scalar_select %p1276_p11, %s3698_s14, 1 }
  0xcc   : > { %v3554_v20 = vld [vmem:[%s4321_s19 + $0x18] sm:$0xff]   ;;  %v3558_v24 = vld [vmem:[%s4321_s19 + $0x20] sm:$0xff]   ;;  %v3562_v28 = vld [vmem:[%s4321_s19 + $0x28] sm:$0xff]   ;;  %s3258_s30 = sshll.u32 (%p3763_p6), %s3698_s14, 2 }
  0xcd   : > { %3279 = vmatpush3.bf16.msra.mxu0 %v3546_v12  ;;  %v3555_v21 = vld [vmem:[%s4321_s19 + $0x98] sm:$0xff]   ;;  %v3559_v25 = vld [vmem:[%s4321_s19 + $0xa0] sm:$0xff]   ;;  %v3563_v29 = vld [vmem:[%s4321_s19 + $0xa8] sm:$0xff]   ;;  %s1278_s29 = scalar_lea.vmem %s4569_s2, %s1277_s26  ;;  %s2939_s7 = scalar_lea.vmem (%p3763_p6), %s4570_s3, %s3258_s30 }
  0xce   : > { %3307 = vmatpush3.bf16.msra.mxu1 %v3547_v13  ;;  %3280 = vmatprep.subr.bf16.mxu0 %v3548_v14  ;;  %v3564_v30 = vld [vmem:[%s4321_s19 + $0x70] sm:$0xff]   ;;  %v3568_v34 = vld [vmem:[%s4321_s19 + $0x78] sm:$0xff]   ;;  %v1305_v36 = vld [vmem:[%s4567_s0 + $0xc0] sm:$0xff] }
  0xcf   : > { %3308 = vmatprep.subr.bf16.mxu1 %v3549_v15  ;;  %v3565_v31 = vld [vmem:[%s4321_s19 + $0xf0] sm:$0xff]   ;;  %v3569_v37 = vld [vmem:[%s4321_s19 + $0xf8] sm:$0xff]   ;;  %v1306_v39 = vld [vmem:[%s4567_s0 + $0xc8] sm:$0xff]  ;;  %v3110_v46 = vcombine.high %v1297_v35, %v1305_v36  ;;  %v3109_v54 = vcombine.low %v1297_v35, %v1305_v36 }
  0xd0   : > { %v3566_v32 = vld [vmem:[%s4321_s19 + $0x30] sm:$0xff]   ;;  %v3570_v40 = vld [vmem:[%s4321_s19 + $0x38] sm:$0xff]   ;;  %v3572_v44 = vld [vmem:[%s4321_s19 + $0x140] sm:$0xff]   ;;  %v3112_v48 = vcombine.high %v1298_v38, %v1306_v39  ;;  %v3111_v56 = vcombine.low %v1298_v38, %v1306_v39 }
  0xd1   : > { %3281 = vmatpush3.bf16.msra.mxu0 %v3550_v16  ;;  %v3567_v33 = vld [vmem:[%s4321_s19 + $0xb0] sm:$0xff]   ;;  %v3571_v41 = vld [vmem:[%s4321_s19 + $0xb8] sm:$0xff]   ;;  %v3573_v45 = vld [vmem:[%s4321_s19 + $0x1c0] sm:$0xff]  }
  0xd2   : > { %3309 = vmatpush3.bf16.msra.mxu1 %v3551_v17  ;;  %3282 = vmatprep.subr.bf16.mxu0 %v3552_v18  ;;  %v3574_v47 = vld [vmem:[%s4321_s19 + $0x100] sm:$0xff]   ;;  %v3576_v50 = vld [vmem:[%s4321_s19 + $0x148] sm:$0xff]   ;;  %v3580_v55 = vld [vmem:[%s4321_s19 + $0x150] sm:$0xff]  }
  0xd3   : > { %3310 = vmatprep.subr.bf16.mxu1 %v3553_v19  ;;  %v3575_v49 = vld [vmem:[%s4321_s19 + $0x180] sm:$0xff]   ;;  %v3577_v51 = vld [vmem:[%s4321_s19 + $0x1c8] sm:$0xff]   ;;  %v3581_v57 = vld [vmem:[%s4321_s19 + $0x1d0] sm:$0xff]  }
  0xd4   : > { %v3578_v52 = vld [vmem:[%s4321_s19 + $0x108] sm:$0xff]   ;;  %v3582_v58 = vld [vmem:[%s4321_s19 + $0x110] sm:$0xff]   ;;  %v3584_v60 = vld [vmem:[%s4321_s19 + $0x158] sm:$0xff]  }
  0xd5   : > { %3283 = vmatpush3.bf16.msra.mxu0 %v3554_v20  ;;  %v3579_v53 = vld [vmem:[%s4321_s19 + $0x188] sm:$0xff]   ;;  %v3583_v59 = vld [vmem:[%s4321_s19 + $0x190] sm:$0xff]   ;;  %v3585_v61 = vld [vmem:[%s4321_s19 + $0x1d8] sm:$0xff]  }
  0xd6   : > { %3311 = vmatpush3.bf16.msra.mxu1 %v3555_v21  ;;  %3284 = vmatprep.subr.bf16.mxu0 %v3556_v22  ;;  %v3586_v62 = vld [vmem:[%s4321_s19 + $0x118] sm:$0xff]   ;;  %v3588_v0 = vld [vmem:[%s4321_s19 + $0x160] sm:$0xff]   ;;  %v3592_v4 = vld [vmem:[%s4321_s19 + $0x168] sm:$0xff]  }
  0xd7   : > { %3312 = vmatprep.subr.bf16.mxu1 %v3557_v23  ;;  %v3587_v63 = vld [vmem:[%s4321_s19 + $0x198] sm:$0xff]   ;;  %v3589_v1 = vld [vmem:[%s4321_s19 + $0x1e0] sm:$0xff]   ;;  %v3593_v5 = vld [vmem:[%s4321_s19 + $0x1e8] sm:$0xff]  }
  0xd8   : > { %v3590_v2 = vld [vmem:[%s4321_s19 + $0x120] sm:$0xff]   ;;  %v3594_v6 = vld [vmem:[%s4321_s19 + $0x128] sm:$0xff]   ;;  %v3596_v8 = vld [vmem:[%s4321_s19 + $0x170] sm:$0xff]  }
  0xd9   : > { %3285 = vmatpush3.bf16.msra.mxu0 %v3558_v24  ;;  %v3591_v3 = vld [vmem:[%s4321_s19 + $0x1a0] sm:$0xff]   ;;  %v3595_v7 = vld [vmem:[%s4321_s19 + $0x1a8] sm:$0xff]   ;;  %v3597_v9 = vld [vmem:[%s4321_s19 + $0x1f0] sm:$0xff]  }
  0xda   : > { %3313 = vmatpush3.bf16.msra.mxu1 %v3559_v25  ;;  %3286 = vmatprep.subr.bf16.mxu0 %v3560_v26  ;;  %v3598_v10 = vld [vmem:[%s4321_s19 + $0x130] sm:$0xff]   ;;  %v3600_v12 = vld [vmem:[%s4321_s19 + $0x178] sm:$0xff]   ;;  %v3604_v24 = vld [vmem:[%s4321_s19 + $0x240] sm:$0xff]  }
  0xdb   : > { %3314 = vmatprep.subr.bf16.mxu1 %v3561_v27  ;;  %v3599_v11 = vld [vmem:[%s4321_s19 + $0x1b0] sm:$0xff]   ;;  %v3601_v14 = vld [vmem:[%s4321_s19 + $0x1f8] sm:$0xff]   ;;  %v3605_v25 = vld [vmem:[%s4321_s19 + $0x2c0] sm:$0xff]  }
  0xdc   : > { %v1283_v13 = vld [vmem:[%s4567_s0 + $0x10] sm:$0xff]  ;;  %v3602_v15 = vld [vmem:[%s4321_s19 + $0x138] sm:$0xff]   ;;  %v3606_v26 = vld [vmem:[%s4321_s19 + $0x200] sm:$0xff]  }
  0xdd   : > { %3287 = vmatpush3.bf16.msra.mxu0 %v3562_v28  ;;  %v3603_v16 = vld [vmem:[%s4321_s19 + $0x1b8] sm:$0xff]   ;;  %v1291_v17 = vld [vmem:[%s4567_s0 + $0x50] sm:$0xff]  ;;  %v3607_v27 = vld [vmem:[%s4321_s19 + $0x280] sm:$0xff]  }
  0xde   : > { %3315 = vmatpush3.bf16.msra.mxu1 %v3563_v29  ;;  %3288 = vmatprep.subr.bf16.mxu0 %v3564_v30  ;;  %v1284_v18 = vld [vmem:[%s4567_s0 + $0x18] sm:$0xff]  ;;  %v3097_v20 = vcombine.low %v1283_v13, %v1291_v17  ;;  %v3098_v21 = vcombine.high %v1283_v13, %v1291_v17  ;;  %v3608_v28 = vld [vmem:[%s4321_s19 + $0x248] sm:$0xff]   ;;  %v3612_v36 = vld [vmem:[%s4321_s19 + $0x250] sm:$0xff]  }
  0xdf   : > { %3316 = vmatprep.subr.bf16.mxu1 %v3565_v31  ;;  %v1292_v19 = vld [vmem:[%s4567_s0 + $0x58] sm:$0xff]  ;;  %v3609_v29 = vld [vmem:[%s4321_s19 + $0x2c8] sm:$0xff]   ;;  %v1309_v17 = vld [vmem:[%s4567_s0 + $0xe0] sm:$0xff] }
  0xe0   : > { %v3099_v22 = vcombine.low %v1284_v18, %v1292_v19  ;;  %v3100_v23 = vcombine.high %v1284_v18, %v1292_v19  ;;  %v3610_v30 = vld [vmem:[%s4321_s19 + $0x208] sm:$0xff]   ;;  %v1300_v38 = vld [vmem:[%s4567_s0 + $0x98] sm:$0xff] }
  0xe1   : > { %3289 = vmatpush3.bf16.msra.mxu0 %v3566_v32  ;;  %v3611_v31 = vld [vmem:[%s4321_s19 + $0x288] sm:$0xff]   ;;  %v1299_v32 = vld [vmem:[%s4567_s0 + $0x90] sm:$0xff]  ;;  %v1308_v39 = vld [vmem:[%s4567_s0 + $0xd8] sm:$0xff] }
  0xe2   : > { %3317 = vmatpush3.bf16.msra.mxu1 %v3567_v33  ;;  %3290 = vmatprep.subr.bf16.mxu0 %v3568_v34  ;;  %v1307_v33 = vld [vmem:[%s4567_s0 + $0xd0] sm:$0xff]  ;;  %v3641_v13 = vld [vmem:[%s4321_s19 + $0x3c8] sm:$0xff]  }
  0xe3   : > { %3318 = vmatprep.subr.bf16.mxu1 %v3569_v37  ;;  %v3114_v34 = vcombine.high %v1299_v32, %v1307_v33  ;;  %v3113_v35 = vcombine.low %v1299_v32, %v1307_v33  ;;  %v3613_v37 = vld [vmem:[%s4321_s19 + $0x2d0] sm:$0xff]   ;;  %v3652_v32 = vld [vmem:[%s4321_s19 + $0x360] sm:$0xff]  }
  0xe4   : > { %v3653_v33 = vld [vmem:[%s4321_s19 + $0x3e0] sm:$0xff]  }
  0xe5   : > { %3291 = vmatpush3.bf16.msra.mxu0 %v3570_v40  ;;  %v3116_v40 = vcombine.high %v1300_v38, %v1308_v39 }
  0xe6   : > { %3319 = vmatpush3.bf16.msra.mxu1 %v3571_v41  ;;  %3332 = vmatprep.subr.bf16.mxu0 %v3572_v44  ;;  %v3614_v41 = vld [vmem:[%s4321_s19 + $0x210] sm:$0xff]   ;;  %v3616_v44 = vld [vmem:[%s4321_s19 + $0x258] sm:$0xff]  }
  0xe7   : > { %3360 = vmatprep.subr.bf16.mxu1 %v3573_v45  ;;  %v3617_v45 = vld [vmem:[%s4321_s19 + $0x2d8] sm:$0xff]  }
  0xe8   : > { %2537 = vmatmul.mubr.bf16.vlgmr.msra.gmra.mrb[0].mxu0 %v3093_v42  ;;  %v3115_v42 = vcombine.low %v1300_v38, %v1308_v39  ;;  %v3658_v38 = vld [vmem:[%s4321_s19 + $0x328] sm:$0xff]  }
  0xe9   : > { %2586 = vmatmul.mubr.bf16.vlgmr.msra.gmra.mrb[0].mxu1 %v3095_v43  ;;  %3333 = vmatpush3.bf16.msra.mxu0 %v3574_v47  ;;  %v3615_v43 = vld [vmem:[%s4321_s19 + $0x290] sm:$0xff]   ;;  %v3619_v47 = vld [vmem:[%s4321_s19 + $0x298] sm:$0xff]   ;;  %v3659_v39 = vld [vmem:[%s4321_s19 + $0x3a8] sm:$0xff]  }
  0xea   : > { %3361 = vmatpush3.bf16.msra.mxu1 %v3575_v49  ;;  %2544 = vmatprep.mubr.bf16.mxu0 %v3110_v46  ;;  %v3618_v46 = vld [vmem:[%s4321_s19 + $0x218] sm:$0xff]   ;;  %v3621_v49 = vld [vmem:[%s4321_s19 + $0x2e0] sm:$0xff]  }
  0xeb   : > { %3334 = vmatprep.subr.bf16.mxu0 %v3576_v50  ;;  %2593 = vmatprep.mubr.bf16.mxu1 %v3112_v48  ;;  %v3620_v48 = vld [vmem:[%s4321_s19 + $0x260] sm:$0xff]  }
  0xec   : > { %3362 = vmatprep.subr.bf16.mxu1 %v3577_v51  ;;  %v3622_v50 = vld [vmem:[%s4321_s19 + $0x220] sm:$0xff]  }
  0xed   : > { %3335 = vmatpush3.bf16.msra.mxu0 %v3578_v52  ;;  %v3623_v51 = vld [vmem:[%s4321_s19 + $0x2a0] sm:$0xff]   ;;  %v3624_v52 = vld [vmem:[%s4321_s19 + $0x268] sm:$0xff]  }
  0xee   : > { %3363 = vmatpush3.bf16.msra.mxu1 %v3579_v53  ;;  %3336 = vmatprep.subr.bf16.mxu0 %v3580_v55  ;;  %v3625_v53 = vld [vmem:[%s4321_s19 + $0x2e8] sm:$0xff]  }
  0xef   : > { %3364 = vmatprep.subr.bf16.mxu1 %v3581_v57  ;;  %v3627_v55 = vld [vmem:[%s4321_s19 + $0x2a8] sm:$0xff]   ;;  %v3629_v57 = vld [vmem:[%s4321_s19 + $0x2f0] sm:$0xff]  }
  0xf0   : > { %2545 = vmatmul.mubr.bf16.gmra.mrb[4].mxu0 %v3109_v54  ;;  %v3626_v54 = vld [vmem:[%s4321_s19 + $0x228] sm:$0xff]  }
  0xf1   : > { %3337 = vmatpush3.bf16.msra.mxu0 %v3582_v58  ;;  %2594 = vmatmul.mubr.bf16.gmra.mrb[4].mxu1 %v3111_v56  ;;  %v3628_v56 = vld [vmem:[%s4321_s19 + $0x270] sm:$0xff]  }
  0xf2   : > { %3365 = vmatpush3.bf16.msra.mxu1 %v3583_v59  ;;  %3338 = vmatprep.subr.bf16.mxu0 %v3584_v60  ;;  %v3630_v58 = vld [vmem:[%s4321_s19 + $0x230] sm:$0xff]   ;;  %v3632_v60 = vld [vmem:[%s4321_s19 + $0x278] sm:$0xff]  }
  0xf3   : > { %3366 = vmatprep.subr.bf16.mxu1 %v3585_v61  ;;  %2634 = vmatprep.mubr.bf16.mxu0 %v3098_v21  ;;  %v3631_v59 = vld [vmem:[%s4321_s19 + $0x2b0] sm:$0xff]   ;;  %v3633_v61 = vld [vmem:[%s4321_s19 + $0x2f8] sm:$0xff]  }
  0xf4   : > { %2683 = vmatprep.mubr.bf16.mxu1 %v3100_v23  ;;  %v3645_v21 = vld [vmem:[%s4321_s19 + $0x3d0] sm:$0xff]   ;;  %v1310_v23 = vld [vmem:[%s4567_s0 + $0xe8] sm:$0xff] }
  0xf5   : > { %3339 = vmatpush3.bf16.msra.mxu0 %v3586_v62  ;;  %v3634_v62 = vld [vmem:[%s4321_s19 + $0x238] sm:$0xff]  }
  0xf6   : > { %3367 = vmatpush3.bf16.msra.mxu1 %v3587_v63  ;;  %3340 = vmatprep.subr.bf16.mxu0 %v3588_v0  ;;  %v3635_v63 = vld [vmem:[%s4321_s19 + $0x2b8] sm:$0xff]   ;;  %v1285_v0 = vld [vmem:[%s4567_s0 + $0x20] sm:$0xff] }
  0xf7   : > { %3368 = vmatprep.subr.bf16.mxu1 %v3589_v1  ;;  %v1293_v1 = vld [vmem:[%s4567_s0 + $0x60] sm:$0xff] }
  0xf9   : > { %3341 = vmatpush3.bf16.msra.mxu0 %v3590_v2  ;;  %v3101_v2 = vcombine.low %v1285_v0, %v1293_v1 }
  0xfa   : > { %3369 = vmatpush3.bf16.msra.mxu1 %v3591_v3  ;;  %3342 = vmatprep.subr.bf16.mxu0 %v3592_v4  ;;  %v3102_v3 = vcombine.high %v1285_v0, %v1293_v1  ;;  %v1286_v4 = vld [vmem:[%s4567_s0 + $0x28] sm:$0xff] }
  0xfb   : > { %3370 = vmatprep.subr.bf16.mxu1 %v3593_v5  ;;  %v1294_v5 = vld [vmem:[%s4567_s0 + $0x68] sm:$0xff] }
  0xfd   : > { %3343 = vmatpush3.bf16.msra.mxu0 %v3594_v6  ;;  %v3103_v6 = vcombine.low %v1286_v4, %v1294_v5 }
  0xfe   : > { %3371 = vmatpush3.bf16.msra.mxu1 %v3595_v7  ;;  %3344 = vmatprep.subr.bf16.mxu0 %v3596_v8  ;;  %v3104_v7 = vcombine.high %v1286_v4, %v1294_v5  ;;  %v3636_v8 = vld [vmem:[%s4321_s19 + $0x340] sm:$0xff]  }
  0xff   : > { %3372 = vmatprep.subr.bf16.mxu1 %v3597_v9  ;;  %v3637_v9 = vld [vmem:[%s4321_s19 + $0x3c0] sm:$0xff]  }
 0x101   : > { %3345 = vmatpush3.bf16.msra.mxu0 %v3598_v10  ;;  %v3638_v10 = vld [vmem:[%s4321_s19 + $0x300] sm:$0xff]  }
 0x102   : > { %3373 = vmatpush3.bf16.msra.mxu1 %v3599_v11  ;;  %3346 = vmatprep.subr.bf16.mxu0 %v3600_v12  ;;  %v3639_v11 = vld [vmem:[%s4321_s19 + $0x380] sm:$0xff]   ;;  %v3640_v12 = vld [vmem:[%s4321_s19 + $0x348] sm:$0xff]  }
 0x103   : > { %3374 = vmatprep.subr.bf16.mxu1 %v3601_v14  ;;  %v3642_v14 = vld [vmem:[%s4321_s19 + $0x308] sm:$0xff]  }
 0x105   : > { %3347 = vmatpush3.bf16.msra.mxu0 %v3602_v15  ;;  %v3643_v15 = vld [vmem:[%s4321_s19 + $0x388] sm:$0xff]  }
 0x106   : > { %3375 = vmatpush3.bf16.msra.mxu1 %v3603_v16  ;;  %3388 = vmatprep.subr.bf16.mxu0 %v3604_v24  ;;  %v1301_v16 = vld [vmem:[%s4567_s0 + $0xa0] sm:$0xff] }
 0x107   : > { %3416 = vmatprep.subr.bf16.mxu1 %v3605_v25  ;;  %v3118_v18 = vcombine.high %v1301_v16, %v1309_v17  ;;  %v3117_v19 = vcombine.low %v1301_v16, %v1309_v17  ;;  %v3646_v25 = vld [vmem:[%s4321_s19 + $0x310] sm:$0xff]  }
 0x108   : > { %2635 = vmatmul.mubr.bf16.vlgmr.msra.gmra.mrb[8].mxu0 %v3097_v20  ;;  %v3644_v20 = vld [vmem:[%s4321_s19 + $0x350] sm:$0xff]  }
 0x109   : > { %2684 = vmatmul.mubr.bf16.vlgmr.msra.gmra.mrb[8].mxu1 %v3099_v22  ;;  %3389 = vmatpush3.bf16.msra.mxu0 %v3606_v26  ;;  %v1302_v22 = vld [vmem:[%s4567_s0 + $0xa8] sm:$0xff] }
 0x10a   : > { %3417 = vmatpush3.bf16.msra.mxu1 %v3607_v27  ;;  %3390 = vmatprep.subr.bf16.mxu0 %v3608_v28  ;;  %v3120_v24 = vcombine.high %v1302_v22, %v1310_v23  ;;  %v3119_v26 = vcombine.low %v1302_v22, %v1310_v23  ;;  %v3647_v27 = vld [vmem:[%s4321_s19 + $0x390] sm:$0xff]   ;;  %v3648_v28 = vld [vmem:[%s4321_s19 + $0x358] sm:$0xff]  }
 0x10b   : > { %3418 = vmatprep.subr.bf16.mxu1 %v3609_v29  ;;  %2642 = vmatprep.mubr.bf16.mxu0 %v3114_v34  ;;  %v3649_v29 = vld [vmem:[%s4321_s19 + $0x3d8] sm:$0xff]   ;;  %v3654_v34 = vld [vmem:[%s4321_s19 + $0x320] sm:$0xff]  }
 0x10c   : > { %2691 = vmatprep.mubr.bf16.mxu1 %v3116_v40  ;;  %v3660_v40 = vld [vmem:[%s4321_s19 + $0x370] sm:$0xff]  }
 0x10d   : > { %3391 = vmatpush3.bf16.msra.mxu0 %v3610_v30  ;;  %v3650_v30 = vld [vmem:[%s4321_s19 + $0x318] sm:$0xff]  }
 0x10e   : > { %3419 = vmatpush3.bf16.msra.mxu1 %v3611_v31  ;;  %3392 = vmatprep.subr.bf16.mxu0 %v3612_v36  ;;  %v3651_v31 = vld [vmem:[%s4321_s19 + $0x398] sm:$0xff]   ;;  %v3656_v36 = vld [vmem:[%s4321_s19 + $0x368] sm:$0xff]  }
 0x10f   : > { %3420 = vmatprep.subr.bf16.mxu1 %v3613_v37  ;;  %v3657_v37 = vld [vmem:[%s4321_s19 + $0x3e8] sm:$0xff]  }
 0x110   : > { %2643 = vmatmul.mubr.bf16.gmra.mrb[12].mxu0 %v3113_v35  ;;  %v3655_v35 = vld [vmem:[%s4321_s19 + $0x3a0] sm:$0xff]  }
 0x111   : > { %3393 = vmatpush3.bf16.msra.mxu0 %v3614_v41  ;;  %2692 = vmatmul.mubr.bf16.gmra.mrb[12].mxu1 %v3115_v42  ;;  %v3661_v41 = vld [vmem:[%s4321_s19 + $0x3f0] sm:$0xff]  }
 0x112   : > { %3421 = vmatpush3.bf16.msra.mxu1 %v3615_v43  ;;  %3394 = vmatprep.subr.bf16.mxu0 %v3616_v44  ;;  %v3662_v42 = vld [vmem:[%s4321_s19 + $0x330] sm:$0xff]   ;;  %v3664_v44 = vld [vmem:[%s4321_s19 + $0x378] sm:$0xff]  }
 0x113   : > { %3422 = vmatprep.subr.bf16.mxu1 %v3617_v45  ;;  %2732 = vmatprep.mubr.bf16.mxu0 %v3102_v3  ;;  %v3663_v43 = vld [vmem:[%s4321_s19 + $0x3b0] sm:$0xff]   ;;  %v3665_v45 = vld [vmem:[%s4321_s19 + $0x3f8] sm:$0xff]  }
 0x114   : > { %2781 = vmatprep.mubr.bf16.mxu1 %v3104_v7 }
 0x115   : > { %3395 = vmatpush3.bf16.msra.mxu0 %v3618_v46  ;;  %v3666_v46 = vld [vmem:[%s4321_s19 + $0x338] sm:$0xff]  }
 0x116   : > { %3423 = vmatpush3.bf16.msra.mxu1 %v3619_v47  ;;  %3396 = vmatprep.subr.bf16.mxu0 %v3620_v48  ;;  %v3667_v47 = vld [vmem:[%s4321_s19 + $0x3b8] sm:$0xff]   ;;  %v1287_v48 = vld [vmem:[%s4567_s0 + $0x30] sm:$0xff] }
 0x117   : > { %3424 = vmatprep.subr.bf16.mxu1 %v3621_v49  ;;  %v1295_v49 = vld [vmem:[%s4567_s0 + $0x70] sm:$0xff] }
 0x119   : > { %3397 = vmatpush3.bf16.msra.mxu0 %v3622_v50  ;;  %v1288_v50 = vld [vmem:[%s4567_s0 + $0x38] sm:$0xff] }
 0x11a   : > { %3425 = vmatpush3.bf16.msra.mxu1 %v3623_v51  ;;  %3398 = vmatprep.subr.bf16.mxu0 %v3624_v52  ;;  %v3105_v51 = vcombine.low %v1287_v48, %v1295_v49  ;;  %v3106_v52 = vcombine.high %v1287_v48, %v1295_v49 }
 0x11b   : > { %3426 = vmatprep.subr.bf16.mxu1 %v3625_v53  ;;  %v1296_v53 = vld [vmem:[%s4567_s0 + $0x78] sm:$0xff] }
 0x11d   : > { %3399 = vmatpush3.bf16.msra.mxu0 %v3626_v54  ;;  %v1303_v54 = vld [vmem:[%s4567_s0 + $0xb0] sm:$0xff] }
 0x11e   : > { %3427 = vmatpush3.bf16.msra.mxu1 %v3627_v55  ;;  %3400 = vmatprep.subr.bf16.mxu0 %v3628_v56  ;;  %v1311_v55 = vld [vmem:[%s4567_s0 + $0xf0] sm:$0xff]  ;;  %v3107_v56 = vcombine.low %v1288_v50, %v1296_v53 }
 0x11f   : > { %3428 = vmatprep.subr.bf16.mxu1 %v3629_v57  ;;  %v3108_v57 = vcombine.high %v1288_v50, %v1296_v53 }
 0x121   : > { %3401 = vmatpush3.bf16.msra.mxu0 %v3630_v58  ;;  %v3122_v58 = vcombine.high %v1303_v54, %v1311_v55 }
 0x122   : > { %3429 = vmatpush3.bf16.msra.mxu1 %v3631_v59  ;;  %3402 = vmatprep.subr.bf16.mxu0 %v3632_v60  ;;  %v1304_v59 = vld [vmem:[%s4567_s0 + $0xb8] sm:$0xff] }
 0x123   : > { %3430 = vmatprep.subr.bf16.mxu1 %v3633_v61  ;;  %v1312_v60 = vld [vmem:[%s4567_s0 + $0xf8] sm:$0xff] }
 0x124   : > { %v3124_v61 = vcombine.high %v1304_v59, %v1312_v60 }
 0x125   : > { %3403 = vmatpush3.bf16.msra.mxu0 %v3634_v62  ;;  %v3121_v62 = vcombine.low %v1303_v54, %v1311_v55 }
 0x126   : > { %3431 = vmatpush3.bf16.msra.mxu1 %v3635_v63  ;;  %3444 = vmatprep.subr.bf16.mxu0 %v3636_v8  ;;  %v3123_v63 = vcombine.low %v1304_v59, %v1312_v60 }
 0x127   : > { %3472 = vmatprep.subr.bf16.mxu1 %v3637_v9 }
 0x128   : > { %2733 = vmatmul.mubr.bf16.vlgmr.msra.gmra.mrb[16].mxu0 %v3101_v2  ;;  %v3092_v2 = vld [vmem:[%s1278_s29] ss:$0 sm:$0xff] }
 0x129   : > { %2782 = vmatmul.mubr.bf16.vlgmr.msra.gmra.mrb[16].mxu1 %v3103_v6  ;;  %3445 = vmatpush3.bf16.msra.mxu0 %v3638_v10 }
 0x12a   : > { %3473 = vmatpush3.bf16.msra.mxu1 %v3639_v11  ;;  %3446 = vmatprep.subr.bf16.mxu0 %v3640_v12 }
 0x12b   : > { %3474 = vmatprep.subr.bf16.mxu1 %v3641_v13  ;;  %2740 = vmatprep.mubr.bf16.mxu0 %v3118_v18 }
 0x12c   : > { %2789 = vmatprep.mubr.bf16.mxu1 %v3120_v24 }
 0x12d   : > { %3447 = vmatpush3.bf16.msra.mxu0 %v3642_v14 }
 0x12e   : > { %3475 = vmatpush3.bf16.msra.mxu1 %v3643_v15  ;;  %3448 = vmatprep.subr.bf16.mxu0 %v3644_v20 }
 0x12f   : > { %3476 = vmatprep.subr.bf16.mxu1 %v3645_v21 }
 0x130   : > { %2741 = vmatmul.mubr.bf16.gmra.mrb[20].mxu0 %v3117_v19 }
 0x131   : > { %3449 = vmatpush3.bf16.msra.mxu0 %v3646_v25  ;;  %2790 = vmatmul.mubr.bf16.gmra.mrb[20].mxu1 %v3119_v26 }
 0x132   : > { %3477 = vmatpush3.bf16.msra.mxu1 %v3647_v27  ;;  %3450 = vmatprep.subr.bf16.mxu0 %v3648_v28 }
 0x133   : > { %3478 = vmatprep.subr.bf16.mxu1 %v3649_v29  ;;  %2830 = vmatprep.mubr.bf16.mxu0 %v3106_v52 }
 0x134   : > { %2879 = vmatprep.mubr.bf16.mxu1 %v3108_v57 }
 0x135   : > { %3451 = vmatpush3.bf16.msra.mxu0 %v3650_v30 }
 0x136   : > { %3479 = vmatpush3.bf16.msra.mxu1 %v3651_v31  ;;  %3452 = vmatprep.subr.bf16.mxu0 %v3652_v32 }
 0x137   : > { %3480 = vmatprep.subr.bf16.mxu1 %v3653_v33 }
 0x139   : > { %3453 = vmatpush3.bf16.msra.mxu0 %v3654_v34 }
 0x13a   : > { %3481 = vmatpush3.bf16.msra.mxu1 %v3655_v35  ;;  %3454 = vmatprep.subr.bf16.mxu0 %v3656_v36 }
 0x13b   : > { %3482 = vmatprep.subr.bf16.mxu1 %v3657_v37 }
 0x13d   : > { %3455 = vmatpush3.bf16.msra.mxu0 %v3658_v38 }
 0x13e   : > { %3483 = vmatpush3.bf16.msra.mxu1 %v3659_v39  ;;  %3456 = vmatprep.subr.bf16.mxu0 %v3660_v40 }
 0x13f   : > { %3484 = vmatprep.subr.bf16.mxu1 %v3661_v41 }
 0x141   : > { %3457 = vmatpush3.bf16.msra.mxu0 %v3662_v42 }
 0x142   : > { %3485 = vmatpush3.bf16.msra.mxu1 %v3663_v43  ;;  %3458 = vmatprep.subr.bf16.mxu0 %v3664_v44 }
 0x143   : > { %3486 = vmatprep.subr.bf16.mxu1 %v3665_v45 }
 0x145   : > { %3459 = vmatpush3.bf16.msra.mxu0 %v3666_v46 }
 0x146   : > { %3487 = vmatpush3.bf16.msra.mxu1 %v3667_v47 }
 0x148   : > { %2831 = vmatmul.mubr.bf16.vlgmr.msra.gmra.mrb[24].mxu0 %v3105_v51 }
 0x149   : > { %2880 = vmatmul.mubr.bf16.vlgmr.msra.gmra.mrb[24].mxu1 %v3107_v56  ;;  %2838 = vmatprep.mubr.bf16.mxu0 %v3122_v58 }
 0x14a   : > { %2887 = vmatprep.mubr.bf16.mxu1 %v3124_v61 }
 0x150   : > { %2839 = vmatmul.mubr.bf16.gmra.mrb[28].mxu0 %v3121_v62 }
 0x151   : > { %2888 = vmatmul.mubr.bf16.gmra.mrb[28].mxu1 %v3123_v63 }
 0x1bb   : > { %v3292_v0 = vpop.f32.mrb[0].mxu0 }
 0x1bc   : > { %v3320_v1 = vpop.f32.mrb[0].mxu1  ;;  %v3293_v3 = vpop.f32.mrb[1].mxu0 }
 0x1bd   : > { %v3294_v4 = vadd.f32 %v3293_v3, %v3292_v0  ;;  %v3321_v5 = vpop.f32.mrb[1].mxu1  ;;  %v3295_v6 = vpop.f32.mrb[2].mxu0 }
 0x1be   : > { %v3322_v7 = vadd.f32 %v3321_v5, %v3320_v1  ;;  %v3323_v8 = vpop.f32.mrb[2].mxu1  ;;  %v3296_v9 = vpop.f32.mrb[3].mxu0 }
 0x1bf   : > { %v2539_v10 = vadd.f32 %v3294_v4, %v3092_v2  ;;  %v3297_v11 = vadd.f32 %v3296_v9, %v3295_v6  ;;  %v3324_v12 = vpop.f32.mrb[3].mxu1 }
 0x1c0   : > { %v3325_v13 = vadd.f32 %v3324_v12, %v3323_v8 }
 0x1c1   : > { %v2588_v14 = vadd.f32 %v3322_v7, %v2539_v10  ;;  %v2542_v15 = vadd.f32 %v3297_v11, %v3092_v2 }
 0x1c3   : > { %v2591_v16 = vadd.f32 %v3325_v13, %v2542_v15  ;;  %v3298_v17 = vpop.f32.mrb[4].mxu0 }
 0x1c4   : > { %v3299_v18 = vpop.f32.mrb[5].mxu0  ;;  %v3326_v19 = vpop.f32.mrb[4].mxu1 }
 0x1c5   : > { %v3300_v20 = vadd.f32 %v3299_v18, %v3298_v17  ;;  %v3301_v21 = vpop.f32.mrb[6].mxu0  ;;  %v3327_v22 = vpop.f32.mrb[5].mxu1 }
 0x1c6   : > { %v3302_v23 = vpop.f32.mrb[7].mxu0  ;;  %v3328_v24 = vadd.f32 %v3327_v22, %v3326_v19  ;;  %v3329_v25 = vpop.f32.mrb[6].mxu1 }
 0x1c7   : > { %v2547_v26 = vadd.f32 %v3300_v20, %v3092_v2  ;;  %v3303_v27 = vadd.f32 %v3302_v23, %v3301_v21  ;;  %v3330_v28 = vpop.f32.mrb[7].mxu1 }
 0x1c8   : > { %v3331_v29 = vadd.f32 %v3330_v28, %v3329_v25 }
 0x1c9   : > { %v2550_v30 = vadd.f32 %v3303_v27, %v3092_v2  ;;  %v2596_v31 = vadd.f32 %v3328_v24, %v2547_v26 }
 0x1cb   : > { %v2599_v32 = vadd.f32 %v3331_v29, %v2550_v30 }
 0x1db   : > { %v3348_v33 = vpop.f32.mrb[8].mxu0 }
 0x1dc   : > { %v3376_v34 = vpop.f32.mrb[8].mxu1  ;;  %v3349_v35 = vpop.f32.mrb[9].mxu0 }
 0x1dd   : > { %v3377_v36 = vpop.f32.mrb[9].mxu1  ;;  %v3350_v37 = vadd.f32 %v3349_v35, %v3348_v33  ;;  %v3351_v39 = vpop.f32.mrb[10].mxu0 }
 0x1de   : > { %v3378_v38 = vadd.f32 %v3377_v36, %v3376_v34  ;;  %v3379_v40 = vpop.f32.mrb[10].mxu1  ;;  %v3352_v41 = vpop.f32.mrb[11].mxu0 }
 0x1df   : > { %v3380_v42 = vpop.f32.mrb[11].mxu1  ;;  %v2637_v43 = vadd.f32 %v3350_v37, %v2588_v14  ;;  %v3353_v44 = vadd.f32 %v3352_v41, %v3351_v39 }
 0x1e0   : > { %v3381_v45 = vadd.f32 %v3380_v42, %v3379_v40 }
 0x1e1   : > { %v2686_v46 = vadd.f32 %v3378_v38, %v2637_v43  ;;  %v2640_v47 = vadd.f32 %v3353_v44, %v2591_v16 }
 0x1e3   : > { %v2689_v48 = vadd.f32 %v3381_v45, %v2640_v47  ;;  %v3354_v49 = vpop.f32.mrb[12].mxu0 }
 0x1e4   : > { %v3355_v50 = vpop.f32.mrb[13].mxu0  ;;  %v3382_v55 = vpop.f32.mrb[12].mxu1 }
 0x1e5   : > { %v3356_v51 = vadd.f32 %v3355_v50, %v3354_v49  ;;  %v3357_v52 = vpop.f32.mrb[14].mxu0  ;;  %v3383_v57 = vpop.f32.mrb[13].mxu1 }
 0x1e6   : > { %v3358_v53 = vpop.f32.mrb[15].mxu0  ;;  %v3384_v59 = vadd.f32 %v3383_v57, %v3382_v55  ;;  %v3385_v60 = vpop.f32.mrb[14].mxu1 }
 0x1e7   : > { %v2645_v54 = vadd.f32 %v3356_v51, %v2596_v31  ;;  %v3359_v56 = vadd.f32 %v3358_v53, %v3357_v52  ;;  %v3386_v61 = vpop.f32.mrb[15].mxu1 }
 0x1e8   : > { %v3387_v63 = vadd.f32 %v3386_v61, %v3385_v60 }
 0x1e9   : > { %v2648_v58 = vadd.f32 %v3359_v56, %v2599_v32  ;;  %v2694_v62 = vadd.f32 %v3384_v59, %v2645_v54 }
 0x1eb   : > { %v2697_v0 = vadd.f32 %v3387_v63, %v2648_v58 }
 0x1fb   : > { %v3404_v1 = vpop.f32.mrb[16].mxu0 }
 0x1fc   : > { %v3432_v2 = vpop.f32.mrb[16].mxu1  ;;  %v3405_v3 = vpop.f32.mrb[17].mxu0 }
 0x1fd   : > { %v3406_v4 = vadd.f32 %v3405_v3, %v3404_v1  ;;  %v3433_v5 = vpop.f32.mrb[17].mxu1  ;;  %v3407_v6 = vpop.f32.mrb[18].mxu0 }
 0x1fe   : > { %v3434_v7 = vadd.f32 %v3433_v5, %v3432_v2  ;;  %v3435_v8 = vpop.f32.mrb[18].mxu1  ;;  %v3408_v9 = vpop.f32.mrb[19].mxu0 }
 0x1ff   : > { %v2735_v10 = vadd.f32 %v3406_v4, %v2686_v46  ;;  %v3409_v11 = vadd.f32 %v3408_v9, %v3407_v6  ;;  %v3436_v12 = vpop.f32.mrb[19].mxu1 }
 0x200   : > { %v3437_v13 = vadd.f32 %v3436_v12, %v3435_v8 }
 0x201   : > { %v2784_v14 = vadd.f32 %v3434_v7, %v2735_v10  ;;  %v2738_v15 = vadd.f32 %v3409_v11, %v2689_v48 }
 0x203   : > { %v2787_v16 = vadd.f32 %v3437_v13, %v2738_v15  ;;  %v3410_v17 = vpop.f32.mrb[20].mxu0 }
 0x204   : > { %v3411_v18 = vpop.f32.mrb[21].mxu0  ;;  %v3438_v21 = vpop.f32.mrb[20].mxu1 }
 0x205   : > { %v3412_v19 = vadd.f32 %v3411_v18, %v3410_v17  ;;  %v3413_v20 = vpop.f32.mrb[22].mxu0  ;;  %v3439_v25 = vpop.f32.mrb[21].mxu1 }
 0x206   : > { %v3414_v22 = vpop.f32.mrb[23].mxu0  ;;  %v3440_v26 = vadd.f32 %v3439_v25, %v3438_v21  ;;  %v3441_v27 = vpop.f32.mrb[22].mxu1 }
 0x207   : > { %v2743_v23 = vadd.f32 %v3412_v19, %v2694_v62  ;;  %v3415_v24 = vadd.f32 %v3414_v22, %v3413_v20  ;;  %v3442_v29 = vpop.f32.mrb[23].mxu1 }
 0x208   : > { %v3443_v31 = vadd.f32 %v3442_v29, %v3441_v27 }
 0x209   : > { %v2746_v28 = vadd.f32 %v3415_v24, %v2697_v0  ;;  %v2792_v30 = vadd.f32 %v3440_v26, %v2743_v23 }
 0x20b   : > { %v2795_v32 = vadd.f32 %v3443_v31, %v2746_v28 }
 0x21b   : > { %v3460_v33 = vpop.f32.mrb[24].mxu0 }
 0x21c   : > { %v3488_v34 = vpop.f32.mrb[24].mxu1  ;;  %v3461_v35 = vpop.f32.mrb[25].mxu0 }
 0x21d   : > { %v3462_v36 = vadd.f32 %v3461_v35, %v3460_v33  ;;  %v3489_v37 = vpop.f32.mrb[25].mxu1  ;;  %v3463_v38 = vpop.f32.mrb[26].mxu0 }
 0x21e   : > { %v3490_v39 = vadd.f32 %v3489_v37, %v3488_v34  ;;  %v3491_v40 = vpop.f32.mrb[26].mxu1  ;;  %v3464_v41 = vpop.f32.mrb[27].mxu0 }
 0x21f   : > { %v2833_v42 = vadd.f32 %v3462_v36, %v2784_v14  ;;  %v3465_v43 = vadd.f32 %v3464_v41, %v3463_v38  ;;  %v3492_v44 = vpop.f32.mrb[27].mxu1 }
 0x220   : > { %v3493_v45 = vadd.f32 %v3492_v44, %v3491_v40 }
 0x221   : > { %v2882_v46 = vadd.f32 %v3490_v39, %v2833_v42  ;;  %v2836_v47 = vadd.f32 %v3465_v43, %v2787_v16 }
 0x223   : > { %v2900_v48 = vmul.f32 0.2, %v2882_v46  ;;  %v2885_v49 = vadd.f32 %v3493_v45, %v2836_v47  ;;  %v3466_v50 = vpop.f32.mrb[28].mxu0  ;;  %vm2896_vm0 = vcmp.ge.f32.partialorder %v2882_v46, 0.0 }
 0x224   : > { %v3494_v51 = vpop.f32.mrb[28].mxu1  ;;  %v3467_v52 = vpop.f32.mrb[29].mxu0 }
 0x225   : > { %vm2897_vm1 = vcmp.ge.f32.partialorder %v2885_v49, 0.0  ;;  %v2901_v53 = vmul.f32 0.2, %v2885_v49  ;;  %v3468_v54 = vadd.f32 %v3467_v52, %v3466_v50  ;;  %v3495_v55 = vpop.f32.mrb[29].mxu1  ;;  %v3469_v56 = vpop.f32.mrb[30].mxu0  ;;  %v2904_v60 = vsel %vm2896_vm0, %v2882_v46, %v2900_v48 }
 0x226   : > { %v3496_v57 = vadd.f32 %v3495_v55, %v3494_v51  ;;  %v3497_v58 = vpop.f32.mrb[30].mxu1  ;;  %v3470_v59 = vpop.f32.mrb[31].mxu0 }
 0x227   : > { %v2905_v61 = vsel %vm2897_vm1, %v2885_v49, %v2901_v53  ;;  %v2841_v62 = vadd.f32 %v3468_v54, %v2792_v30  ;;  %v3471_v63 = vadd.f32 %v3470_v59, %v3469_v56  ;;  %v3498_v0 = vpop.f32.mrb[31].mxu1 }
 0x228   : > { %v3268_v1 = vpack.c.bf16 %v2905_v61, %v2904_v60  ;;  %v3499_v2 = vadd.f32 %v3498_v0, %v3497_v58 }
 0x229   : > { %v2890_v3 = vadd.f32 %v3496_v57, %v2841_v62  ;;  %v2844_v4 = vadd.f32 %v3471_v63, %v2795_v32 }
 0x22a   : > { %3269 = vst [vmem:[%s1268_s12] sm:$0xff] %v3268_v1  }
 0x22b   : > { %v2902_v5 = vmul.f32 0.2, %v2890_v3  ;;  %v2893_v6 = vadd.f32 %v3499_v2, %v2844_v4  ;;  %vm2898_vm2 = vcmp.ge.f32.partialorder %v2890_v3, 0.0 }
 0x22c   : > { %2934 = sbr.rel (!%p3763_p6) target bundleno = 571 (0x23b), region = 77 }
 0x22d   : > { %vm2899_vm3 = vcmp.ge.f32.partialorder %v2893_v6, 0.0  ;;  %v2903_v7 = vmul.f32 0.2, %v2893_v6  ;;  %v2906_v8 = vsel %vm2898_vm2, %v2890_v3, %v2902_v5 }
 0x22f   : > { %v2907_v9 = vsel %vm2899_vm3, %v2893_v6, %v2903_v7 }
 0x230   : > { %v3273_v10 = vpack.c.bf16 %v2907_v9, %v2906_v8 }
 0x231   : > { %v2955_v11 = vld [vmem:[%s1268_s12] sm:$0xf] (%p3763_p6)  ;;  %v2957_v12 = vld [vmem:[%s1268_s12 + $0x4] sm:$0xf] (%p3763_p6) }
 0x232   : > { %3275 = vst [vmem:[%s1268_s12 + $0x8] sm:$0xff] %v3273_v10   ;;  %2956 = vst [vmem:[%s2939_s7] sm:$0xf] (%p3763_p6), %v2955_v11 }
 0x233   : > { %2958 = vst [vmem:[%s2939_s7 + $0x8] sm:$0xf] %v2957_v12 }
 0x239   : > { %v2959_v13 = vld [vmem:[%s1268_s12 + $0x8] sm:$0xf]  ;;  %v2961_v14 = vld [vmem:[%s1268_s12 + $0xc] sm:$0xf] }
 0x23a   : > { %2960 = vst [vmem:[%s2939_s7 + $0x10] sm:$0xf] %v2959_v13  ;;  %2962 = vst [vmem:[%s2939_s7 + $0x18] sm:$0xf] %v2961_v14 }
 0x23b PF: > { %s13_s16 = sadd.s32 1, %s3706_s16   ;;  %s4572_s12 = smov %s3694_s13 }
 0x23c   : > { %p10_p12 = scmp.ge.s32.totalorder %s13_s16, 4   ;;  %s4573_s13 = smov %s3768_s22 }
 0x23d   : > { %s4574_s14 = smov %s3702_s15  ;;  %s4575_s15 = smov %s4577_s17 }
 0x23e   :  { %12 = sbr.rel (!%p10_p12) target bundleno = 3 (0x3), region = 155 }

</bundles_post_ra>
